<compile_context>
chip_gen: v7x
topology: tpu7x:2x2x1
jax: 0.10.0
libtpu: 0.0.40
codegen_flags: <defaults>
</compile_context>

<pallas_src>
import functools
import math

import jax
import jax.numpy as jnp
import numpy as np
from jax.experimental import pallas as pl
from jax.experimental.pallas import tpu as pltpu

_BF16 = jnp.bfloat16


def _dot(a, b):
    return jnp.dot(a, b, preferred_element_type=jnp.float32)


def _dot_nt(a, b):
    # (m, k) x (n, k) -> (m, n): contract last dims of both (A @ B^T) without a transpose.
    return jax.lax.dot_general(a, b, (((1,), (1,)), ((), ())),
                               preferred_element_type=jnp.float32)


def _single_stream_ipa_kernel(
    x_ref, shift_ref, scale_ref, gate_ref, pd_ref, po_ref,
    ipk_ref, ipv_ref, ones_ref,
    w1_ref, b1_ref, qs_ref, ks_ref, seg_ref, segt_ref,
    w2a_ref, w2m_ref, b2_ref,
    out_ref,
    *, H, M, D, num_heads, kv_chunk):
    f32 = jnp.float32
    x = x_ref[...]                                    # (L, H) f32
    L = x.shape[0]

    # --- pre_norm (LayerNorm, no affine, eps=1e-6) + modulation ---------------
    mu = jnp.mean(x, axis=-1, keepdims=True)
    xc = x - mu
    var = jnp.mean(xc * xc, axis=-1, keepdims=True)
    x_mod = (1.0 + scale_ref[...]) * (xc * jax.lax.rsqrt(var + 1e-6)) + shift_ref[...]

    # --- linear1 (fused qkv + mlp): bf16 operands, fp32 accumulation ----------
    h1 = _dot(x_mod.astype(_BF16), w1_ref[...]) + b1_ref[...]     # (L, 3H+M) f32
    q = h1[:, 0:H]
    k = h1[:, H:2 * H]
    v = h1[:, 2 * H:3 * H]
    mlp = h1[:, 3 * H:3 * H + M]

    # --- QKNorm (per-head RMSNorm, eps=1e-6), full width -----------------------
    # One merged segment matmul gives both q and k per-head sum-of-squares.
    sq = jnp.concatenate([q * q, k * k], axis=0)                  # (2L, H)
    inv = jax.lax.rsqrt(_dot(sq, seg_ref[...]) * (1.0 / D) + 1e-6)  # (2L, nh)
    inv_full = _dot(inv, segt_ref[...])                           # (2L, H)
    q = q * inv_full[:L, :] * qs_ref[...]      # qs includes the 1/sqrt(D) fold
    k = k * inv_full[L:, :] * ks_ref[...]

    # --- RoPE full width; pd/po arrive as (L, D), replicated across heads in VMEM
    pd = jnp.concatenate([pd_ref[...]] * num_heads, axis=1)       # (L, H)
    po = jnp.concatenate([po_ref[...]] * num_heads, axis=1)
    lane = jax.lax.broadcasted_iota(jnp.int32, (L, H), 1)
    is_even = (lane & 1) == 0

    def pair_swap(z):
        nxt = pltpu.roll(z, shift=H - 1, axis=1)   # z[i+1] (np.roll convention)
        prv = pltpu.roll(z, shift=1, axis=1)       # z[i-1]
        return jnp.where(is_even, nxt, prv)

    q_rot = pd * q + po * pair_swap(q)
    k_rot = pd * k + po * pair_swap(k)

    q_bf = q.astype(_BF16)          # pre-RoPE q feeds the IP cross-attention
    qr_bf = q_rot.astype(_BF16)
    kr_bf = k_rot.astype(_BF16)
    v_bf = v.astype(_BF16)

    # --- IP-adapter cross-attention: all heads via block-diagonal operands -----
    s_ip = _dot(q_bf, ipk_ref[...])                               # (L, nh*T) f32
    m_ip = jnp.max(s_ip, axis=-1, keepdims=True)                  # row max: valid per-group stabiliser
    p_ip = jnp.exp(s_ip - m_ip)
    denom = jnp.maximum(_dot(p_ip, ones_ref[...]), 1e-30)         # per-head sums broadcast back
    p_ip = p_ip * pl.reciprocal(denom, approx=True)
    ip_attn = _dot(p_ip.astype(_BF16), ipv_ref[...])              # (L, H) f32; ip_scale pre-folded

    # --- mlp_act = GELU(approximate="tanh"), fp32 elementwise (v5e-safe) -------
    # TODO(synk): on v6e/v7x this block could run in bf16 to halve VALU/EUP pressure.
    c = 0.7978845608028654  # sqrt(2/pi)
    mlp_act = 0.5 * mlp * (1.0 + jnp.tanh(c * (mlp + 0.044715 * mlp * mlp * mlp)))

    # --- linear2 accumulated incrementally: no (L, H+M) concat, no scratch -----
    lin2 = _dot(mlp_act.astype(_BF16), w2m_ref[...]) + b2_ref[...]
    lin2 = lin2 + _dot(ip_attn.astype(_BF16), w2a_ref[...])

    # --- self-attention: per-head online softmax over KV chunks (flash-style);
    #     heads grouped to 128-lane chunks for lane-dense w2a matmuls. ----------
    # TODO(synk): at real Flux shapes (L~4k) add an L / head grid axis and stream
    # w1/w2 blocks instead of keeping them fully VMEM-resident (v7x 64 MiB).
    group = max(1, 128 // D)
    n_groups = (num_heads + group - 1) // group
    n_chunks = (L + kv_chunk - 1) // kv_chunk
    for g in range(n_groups):
        outs = []
        for h in range(g * group, min((g + 1) * group, num_heads)):
            sl = slice(h * D, (h + 1) * D)
            qh = qr_bf[:, sl]                                     # (L, D) bf16
            m_i = jnp.full((L, 1), -jnp.inf, f32)
            l_i = jnp.zeros((L, 1), f32)
            acc = jnp.zeros((L, D), f32)
            for ci in range(n_chunks):
                r0 = ci * kv_chunk
                r1 = min(r0 + kv_chunk, L)
                kc = kr_bf[r0:r1, sl]
                vc = v_bf[r0:r1, sl]
                s = _dot_nt(qh, kc)                               # (L, chunk) f32
                m_new = jnp.maximum(m_i, jnp.max(s, axis=-1, keepdims=True))
                alpha = jnp.exp(m_i - m_new)
                p = jnp.exp(s - m_new)
                l_i = alpha * l_i + jnp.sum(p, axis=-1, keepdims=True)
                acc = alpha * acc + _dot(p.astype(_BF16), vc)
                m_i = m_new
            outs.append(acc * pl.reciprocal(l_i, approx=True))    # (L, D) f32
        og = outs[0] if len(outs) == 1 else jnp.concatenate(outs, axis=1)  # (L, group*D)
        r0 = g * group * D
        lin2 = lin2 + _dot(og.astype(_BF16), w2a_ref[r0:r0 + og.shape[1], :])

    out_ref[...] = x + gate_ref[...] * lin2
    # TODO(synk): float16 nan_to_num clamp path not needed (kernel runs fp32/bf16).


def single_stream_block_ipa(x, vec, pe, image_emb, t, params, *,
                            num_heads, ip_scale=1.0, kv_chunk=None):
    # TODO(synk): IP-adapter timestep_range gating on `t` (timestep_range=None =>
    # adapter always active) and attn_mask=None path only.
    del t
    f32 = jnp.float32
    x = x.astype(f32)
    B, L, H = x.shape
    D = H // num_heads
    M = params["w1"].shape[1] - 3 * H
    T = image_emb.shape[1]
    nhT = num_heads * T
    if kv_chunk is None:
        kv_chunk = min(L, 512)
    kv_chunk = max(8, min(kv_chunk, L))

    # --- modulation hoisted out of the kernel ---------------------------------
    vec_f = vec.astype(f32)
    vec_silu = vec_f * jax.nn.sigmoid(vec_f)
    mod = vec_silu @ params["w_mod"] + params["b_mod"]            # (B, 3H)
    shift = mod[:, 0:H].reshape(B, 1, H)
    scale = mod[:, H:2 * H].reshape(B, 1, H)
    gate = mod[:, 2 * H:3 * H].reshape(B, 1, H)

    # --- RoPE coefficient planes kept at (B, L, D) (no per-head HBM duplication)
    pe_sq = pe[:, 0].astype(f32)                                  # (B, L, D/2, 2, 2)
    pd = jnp.stack([pe_sq[..., 0, 0], pe_sq[..., 1, 1]], axis=-1).reshape(B, L, D)
    po = jnp.stack([pe_sq[..., 0, 1], pe_sq[..., 1, 0]], axis=-1).reshape(B, L, D)

    # --- IP-adapter projections hoisted; packed into block-diagonal operands ---
    ip_k = (image_emb.astype(f32) @ params["wk_ip"]).reshape(B, T, num_heads, D)
    ip_v = (image_emb.astype(f32) @ params["wv_ip"]).reshape(B, T, num_heads, D)
    eye_h = jnp.eye(num_heads, dtype=f32)
    ipk_blk = jnp.einsum("bthd,hj->bhdjt", ip_k, eye_h).reshape(B, H, nhT).astype(_BF16)
    ipv_blk = (ip_scale * jnp.einsum("bthd,hj->bjthd", ip_v, eye_h)
               ).reshape(B, nhT, H).astype(_BF16)
    ones_blk = jnp.kron(jnp.eye(num_heads, dtype=f32), jnp.ones((T, T), f32))  # (nhT, nhT)

    # --- QKNorm learned scales (1, H); 1/sqrt(D) folded into qs ----------------
    qs_full = (jnp.tile(params["q_scale"].reshape(1, D), (1, num_heads))
               * (1.0 / math.sqrt(D))).astype(f32)
    ks_full = jnp.tile(params["k_scale"].reshape(1, D), (1, num_heads)).astype(f32)

    # 0/1 head-segment matrices for full-width per-head RMS statistics.
    head_id = jnp.arange(H, dtype=jnp.int32) // D
    seg = (head_id[:, None] == jnp.arange(num_heads)[None, :]).astype(f32)   # (H, nh)
    segt = seg.T                                                              # (nh, H)

    # bf16 weights (halves HBM traffic / VMEM residency; fp32 MXU accumulation).
    w1_bf = params["w1"].astype(_BF16)
    w2a_bf = params["w2"][:H, :].astype(_BF16)
    w2m_bf = params["w2"][H:, :].astype(_BF16)
    b1 = params["b1"].astype(f32)
    b2 = params["b2"].astype(f32)

    kernel = functools.partial(
        _single_stream_ipa_kernel,
        H=H, M=M, D=D, num_heads=num_heads, kv_chunk=kv_chunk)

    def per_batch(*dims):
        nd = len(dims)
        return pl.BlockSpec((None,) + dims, lambda b: (b,) + (0,) * nd)

    def invariant(arr):
        return pl.BlockSpec(arr.shape, lambda b: (0,) * arr.ndim)

    # TODO(synk): pipeline_mode=pl.Buffered(1) on the grid-invariant weight specs
    # (single-buffer) once buffer_count=1 is confirmed on the target jax version.
    in_specs = [
        per_batch(L, H),                                          # x
        per_batch(1, H), per_batch(1, H), per_batch(1, H),        # shift/scale/gate
        per_batch(L, D), per_batch(L, D),                         # pd / po
        per_batch(H, nhT), per_batch(nhT, H),                     # ipk_blk / ipv_blk
        invariant(ones_blk),
        invariant(w1_bf), invariant(b1),
        invariant(qs_full), invariant(ks_full),
        invariant(seg), invariant(segt),
        invariant(w2a_bf), invariant(w2m_bf), invariant(b2),
    ]

    flops = B * (
        2 * L * H * (3 * H + M)              # linear1
        + 4 * L * L * H                      # self-attention (QK^T + PV)
        + 4 * L * H * nhT                    # IP cross-attention
        + 2 * L * M * H + 4 * L * H * H)     # linear2 (mlp / self / ip paths)
    transcendentals = B * (L * M + num_heads * L * L + L * nhT)
    bytes_accessed = (
        4 * (2 * B * L * H)                                  # x in + out
        + 4 * B * (2 * L * D + 3 * H)                        # pd/po + modulation
        + 2 * B * 2 * H * nhT                                # ip block operands (bf16)
        + 2 * (params["w1"].size + params["w2"].size)        # bf16 weights
        + 4 * (params["b1"].size + params["b2"].size + 2 * H
               + seg.size + segt.size + ones_blk.size))

    return pl.pallas_call(
        kernel,
        out_shape=jax.ShapeDtypeStruct((B, L, H), f32),
        grid_spec=pltpu.PrefetchScalarGridSpec(
            num_scalar_prefetch=0,
            grid=(B,),
            in_specs=in_specs,
            out_specs=pl.BlockSpec((None, L, H), lambda b: (b, 0, 0)),
        ),
        compiler_params=pltpu.CompilerParams(
            dimension_semantics=("parallel",)),
        cost_estimate=pl.CostEstimate(
            flops=int(flops), transcendentals=int(transcendentals),
            bytes_accessed=int(bytes_accessed)),
    )(x, shift, scale, gate, pd, po, ipk_blk, ipv_blk, ones_blk,
      w1_bf, b1, qs_full, ks_full, seg, segt, w2a_bf, w2m_bf, b2)


# --------------------------- pure-JAX reference ------------------------------
def reference_forward(x, vec, pe, image_emb, params, *, num_heads, ip_scale=1.0):
    B, L, H = x.shape
    D = H // num_heads
    vec_silu = vec * jax.nn.sigmoid(vec)
    mod = vec_silu @ params["w_mod"] + params["b_mod"][0]
    shift, scale, gate = jnp.split(mod, 3, axis=-1)
    shift, scale, gate = (a[:, None, :] for a in (shift, scale, gate))

    mu = x.mean(-1, keepdims=True)
    var = ((x - mu) ** 2).mean(-1, keepdims=True)
    xn = (x - mu) / jnp.sqrt(var + 1e-6)
    x_mod = (1.0 + scale) * xn + shift

    h1 = x_mod @ params["w1"] + params["b1"][0]
    qkv, mlp = h1[..., :3 * H], h1[..., 3 * H:]
    qkv = qkv.reshape(B, L, 3, num_heads, D).transpose(2, 0, 3, 1, 4)
    q, k, v = qkv[0], qkv[1], qkv[2]                         # (B, Hh, L, D)

    def rms(z, s):
        return z * jax.lax.rsqrt(jnp.mean(z * z, -1, keepdims=True) + 1e-6) * s[0]

    q = rms(q, params["q_scale"])
    k = rms(k, params["k_scale"])

    def rope(z):
        z_ = z.reshape(*z.shape[:-1], -1, 1, 2)
        out = pe[..., 0] * z_[..., 0] + pe[..., 1] * z_[..., 1]
        return out.reshape(z.shape)

    qr, kr = rope(q), rope(k)
    s = jnp.einsum("bhqd,bhkd->bhqk", qr, kr) / math.sqrt(D)
    attn = jnp.einsum("bhqk,bhkd->bhqd", jax.nn.softmax(s, -1), v)
    attn = attn.transpose(0, 2, 1, 3).reshape(B, L, H)

    ipk = (image_emb @ params["wk_ip"]).reshape(B, -1, num_heads, D).transpose(0, 2, 1, 3)
    ipv = (image_emb @ params["wv_ip"]).reshape(B, -1, num_heads, D).transpose(0, 2, 1, 3)
    s_ip = jnp.einsum("bhqd,bhkd->bhqk", q, ipk) / math.sqrt(D)
    ip_out = jnp.einsum("bhqk,bhkd->bhqd", jax.nn.softmax(s_ip, -1), ipv)
    ip_out = ip_out.transpose(0, 2, 1, 3).reshape(B, L, H)
    attn = attn + ip_scale * ip_out

    c = 0.7978845608028654
    mlp_act = 0.5 * mlp * (1.0 + jnp.tanh(c * (mlp + 0.044715 * mlp ** 3)))
    out = jnp.concatenate([attn, mlp_act], -1) @ params["w2"] + params["b2"][0]
    return x + gate * out


if __name__ == "__main__":
    B, L, H, num_heads = 2, 64, 128, 4
    D = H // num_heads
    M = 4 * H                   # mlp_ratio = 4
    T, C = 4, 64                # IP image tokens / image embedding dim
    ip_scale = 0.75

    key = jax.random.PRNGKey(0)
    ks = jax.random.split(key, 16)
    f32 = jnp.float32

    x = 0.5 * jax.random.normal(ks[0], (B, L, H), f32)
    vec = 0.5 * jax.random.normal(ks[1], (B, H), f32)
    image_emb = 0.5 * jax.random.normal(ks[2], (B, T, C), f32)
    t = jnp.float32(0.5)

    # rotary positional embedding with the Flux layout (B, 1, L, D/2, 2, 2)
    pos = jnp.arange(L, dtype=f32)[:, None]
    freqs = 1.0 / (10000.0 ** (jnp.arange(0, D, 2, dtype=f32) / D))
    theta = pos * freqs[None, :]
    cos, sin = jnp.cos(theta), jnp.sin(theta)
    rot = jnp.stack([jnp.stack([cos, -sin], -1), jnp.stack([sin, cos], -1)], axis=-2)
    pe = jnp.broadcast_to(rot[None, None], (B, 1, L, D // 2, 2, 2))

    def init(k, shape, std):
        return std * jax.random.normal(k, shape, f32)

    params = dict(
        w_mod=init(ks[3], (H, 3 * H), 0.05),
        b_mod=init(ks[4], (1, 3 * H), 0.02),
        w1=init(ks[5], (H, 3 * H + M), 0.05),
        b1=init(ks[6], (1, 3 * H + M), 0.02),
        q_scale=jnp.ones((1, D), f32) + init(ks[7], (1, D), 0.02),
        k_scale=jnp.ones((1, D), f32) + init(ks[8], (1, D), 0.02),
        w2=init(ks[9], (H + M, H), 0.03),
        b2=init(ks[10], (1, H), 0.02),
        wk_ip=init(ks[11], (C, H), 0.05),
        wv_ip=init(ks[12], (C, H), 0.05),
    )

    # kv_chunk=32 < L so the online-softmax KV-tiled path is actually exercised.
    out = single_stream_block_ipa(x, vec, pe, image_emb, t, params,
                                  num_heads=num_heads, ip_scale=ip_scale,
                                  kv_chunk=32)
    out = jax.block_until_ready(out)

    ref = reference_forward(x, vec, pe, image_emb, params,
                            num_heads=num_heads, ip_scale=ip_scale)
    ref = jax.block_until_ready(ref)

    assert out.shape == (B, L, H) and out.dtype == jnp.float32
    if not np.allclose(np.asarray(out), np.asarray(ref), rtol=5e-2, atol=5e-2):
        max_err = float(np.max(np.abs(np.asarray(out) - np.asarray(ref))))
        raise AssertionError(f"kernel mismatch vs reference, max abs err = {max_err}")
    print("KERNEL_OK")
</pallas_src>

<mosaic_0001>
module attributes {stable_mosaic.version = 11 : i64} {
  func.func @_single_stream_ipa_kernel(%arg0: i32, %arg1: memref<1x64x128xf32, #tpu.memory_space<vmem>>, %arg2: memref<1x1x128xf32, #tpu.memory_space<vmem>>, %arg3: memref<1x1x128xf32, #tpu.memory_space<vmem>>, %arg4: memref<1x1x128xf32, #tpu.memory_space<vmem>>, %arg5: memref<1x64x32xf32, #tpu.memory_space<vmem>>, %arg6: memref<1x64x32xf32, #tpu.memory_space<vmem>>, %arg7: memref<1x128x16xbf16, #tpu.memory_space<vmem>>, %arg8: memref<1x16x128xbf16, #tpu.memory_space<vmem>>, %arg9: memref<16x16xf32, #tpu.memory_space<vmem>>, %arg10: memref<128x896xbf16, #tpu.memory_space<vmem>>, %arg11: memref<1x896xf32, #tpu.memory_space<vmem>>, %arg12: memref<1x128xf32, #tpu.memory_space<vmem>>, %arg13: memref<1x128xf32, #tpu.memory_space<vmem>>, %arg14: memref<128x4xf32, #tpu.memory_space<vmem>>, %arg15: memref<4x128xf32, #tpu.memory_space<vmem>>, %arg16: memref<128x128xbf16, #tpu.memory_space<vmem>>, %arg17: memref<512x128xbf16, #tpu.memory_space<vmem>>, %arg18: memref<1x128xf32, #tpu.memory_space<vmem>>, %arg19: memref<1x64x128xf32, #tpu.memory_space<vmem>>) attributes {dimension_semantics = [#tpu.dimension_semantics<parallel>], iteration_bounds = array<i64: 2>, scalar_prefetch = 0 : i64, scratch_operands = 0 : i64, tpu.core_type = #tpu.core_type<tc>, window_params = [{transform_indices = @transform_0, window_bounds = array<i64: 1, 64, 128>}, {transform_indices = @transform_1, window_bounds = array<i64: 1, 1, 128>}, {transform_indices = @transform_2, window_bounds = array<i64: 1, 1, 128>}, {transform_indices = @transform_3, window_bounds = array<i64: 1, 1, 128>}, {transform_indices = @transform_4, window_bounds = array<i64: 1, 64, 32>}, {transform_indices = @transform_5, window_bounds = array<i64: 1, 64, 32>}, {transform_indices = @transform_6, window_bounds = array<i64: 1, 128, 16>}, {transform_indices = @transform_7, window_bounds = array<i64: 1, 16, 128>}, {pipeline_mode = #tpu.pipeline_mode<synchronous>, transform_indices = @transform_8, window_bounds = array<i64: 16, 16>}, {pipeline_mode = #tpu.pipeline_mode<synchronous>, transform_indices = @transform_9, window_bounds = array<i64: 128, 896>}, {pipeline_mode = #tpu.pipeline_mode<synchronous>, transform_indices = @transform_10, window_bounds = array<i64: 1, 896>}, {pipeline_mode = #tpu.pipeline_mode<synchronous>, transform_indices = @transform_11, window_bounds = array<i64: 1, 128>}, {pipeline_mode = #tpu.pipeline_mode<synchronous>, transform_indices = @transform_12, window_bounds = array<i64: 1, 128>}, {pipeline_mode = #tpu.pipeline_mode<synchronous>, transform_indices = @transform_13, window_bounds = array<i64: 128, 4>}, {pipeline_mode = #tpu.pipeline_mode<synchronous>, transform_indices = @transform_14, window_bounds = array<i64: 4, 128>}, {pipeline_mode = #tpu.pipeline_mode<synchronous>, transform_indices = @transform_15, window_bounds = array<i64: 128, 128>}, {pipeline_mode = #tpu.pipeline_mode<synchronous>, transform_indices = @transform_16, window_bounds = array<i64: 512, 128>}, {pipeline_mode = #tpu.pipeline_mode<synchronous>, transform_indices = @transform_17, window_bounds = array<i64: 1, 128>}, {transform_indices = @transform_18, window_bounds = array<i64: 1, 64, 128>}]} {
    %c0 = arith.constant 0 : index
    %c0_0 = arith.constant 0 : index
    %c0_1 = arith.constant 0 : index
    %0 = vector.load %arg1[%c0, %c0_0, %c0_1] : memref<1x64x128xf32, #tpu.memory_space<vmem>>, vector<1x64x128xf32>
    %1 = vector.shape_cast %0 : vector<1x64x128xf32> to vector<64x128xf32>
    %cst = arith.constant dense<0.000000e+00> : vector<64xf32>
    %2 = vector.multi_reduction <add>, %1, %cst [1] : vector<64x128xf32> to vector<64xf32>
    %3 = vector.shape_cast %2 : vector<64xf32> to vector<64x1xf32>
    %cst_2 = arith.constant 1.280000e+02 : f32
    %4 = vector.broadcast %cst_2 : f32 to vector<64x1xf32>
    %5 = arith.divf %3, %4 : vector<64x1xf32>
    %6 = vector.broadcast %5 : vector<64x1xf32> to vector<64x128xf32>
    %7 = arith.subf %1, %6 : vector<64x128xf32>
    %8 = arith.mulf %7, %7 : vector<64x128xf32>
    %cst_3 = arith.constant dense<0.000000e+00> : vector<64xf32>
    %9 = vector.multi_reduction <add>, %8, %cst_3 [1] : vector<64x128xf32> to vector<64xf32>
    %10 = vector.shape_cast %9 : vector<64xf32> to vector<64x1xf32>
    %cst_4 = arith.constant 1.280000e+02 : f32
    %11 = vector.broadcast %cst_4 : f32 to vector<64x1xf32>
    %12 = arith.divf %10, %11 : vector<64x1xf32>
    %c0_5 = arith.constant 0 : index
    %c0_6 = arith.constant 0 : index
    %c0_7 = arith.constant 0 : index
    %13 = vector.load %arg3[%c0_5, %c0_6, %c0_7] : memref<1x1x128xf32, #tpu.memory_space<vmem>>, vector<1x1x128xf32>
    %14 = vector.shape_cast %13 : vector<1x1x128xf32> to vector<1x128xf32>
    %cst_8 = arith.constant 1.000000e+00 : f32
    %15 = vector.broadcast %cst_8 : f32 to vector<1x128xf32>
    %16 = arith.addf %15, %14 : vector<1x128xf32>
    %cst_9 = arith.constant 9.99999997E-7 : f32
    %17 = vector.broadcast %cst_9 : f32 to vector<64x1xf32>
    %18 = arith.addf %12, %17 : vector<64x1xf32>
    %19 = math.rsqrt %18 : vector<64x1xf32>
    %20 = vector.broadcast %19 : vector<64x1xf32> to vector<64x128xf32>
    %21 = arith.mulf %7, %20 : vector<64x128xf32>
    %22 = vector.broadcast %16 : vector<1x128xf32> to vector<64x128xf32>
    %23 = arith.mulf %22, %21 : vector<64x128xf32>
    %c0_10 = arith.constant 0 : index
    %c0_11 = arith.constant 0 : index
    %c0_12 = arith.constant 0 : index
    %24 = vector.load %arg2[%c0_10, %c0_11, %c0_12] : memref<1x1x128xf32, #tpu.memory_space<vmem>>, vector<1x1x128xf32>
    %25 = vector.shape_cast %24 : vector<1x1x128xf32> to vector<1x128xf32>
    %26 = vector.broadcast %25 : vector<1x128xf32> to vector<64x128xf32>
    %27 = arith.addf %23, %26 : vector<64x128xf32>
    %28 = arith.truncf %27 : vector<64x128xf32> to vector<64x128xbf16>
    %c0_13 = arith.constant 0 : index
    %c0_14 = arith.constant 0 : index
    %29 = vector.load %arg10[%c0_13, %c0_14] : memref<128x896xbf16, #tpu.memory_space<vmem>>, vector<128x896xbf16>
    %cst_15 = arith.constant dense<0.000000e+00> : vector<64x896xf32>
    %30 = tpu.matmul %28, %29, %cst_15 {dimension_numbers = #tpu.dot_dimension_numbers<[1], [0], [0], [1], [0, 0, 1, 1], [], []>} : vector<64x128xbf16>, vector<128x896xbf16>, vector<64x896xf32> -> vector<64x896xf32>
    %c0_16 = arith.constant 0 : index
    %c0_17 = arith.constant 0 : index
    %31 = vector.load %arg11[%c0_16, %c0_17] : memref<1x896xf32, #tpu.memory_space<vmem>>, vector<1x896xf32>
    %32 = vector.broadcast %31 : vector<1x896xf32> to vector<64x896xf32>
    %33 = arith.addf %30, %32 : vector<64x896xf32>
    %34 = vector.extract_strided_slice %33 {offsets = [0, 0], sizes = [64, 128], strides = [1, 1]} : vector<64x896xf32> to vector<64x128xf32>
    %35 = vector.extract_strided_slice %33 {offsets = [0, 128], sizes = [64, 128], strides = [1, 1]} : vector<64x896xf32> to vector<64x128xf32>
    %36 = vector.extract_strided_slice %33 {offsets = [0, 256], sizes = [64, 128], strides = [1, 1]} : vector<64x896xf32> to vector<64x128xf32>
    %37 = vector.extract_strided_slice %33 {offsets = [0, 384], sizes = [64, 512], strides = [1, 1]} : vector<64x896xf32> to vector<64x512xf32>
    %38 = arith.mulf %34, %34 : vector<64x128xf32>
    %39 = arith.mulf %35, %35 : vector<64x128xf32>
    %40 = tpu.concatenate %38, %39 in 0 : vector<64x128xf32>, vector<64x128xf32> -> vector<128x128xf32>
    %c0_18 = arith.constant 0 : index
    %c0_19 = arith.constant 0 : index
    %41 = vector.load %arg14[%c0_18, %c0_19] : memref<128x4xf32, #tpu.memory_space<vmem>>, vector<128x4xf32>
    %cst_20 = arith.constant dense<0.000000e+00> : vector<128x4xf32>
    %42 = tpu.matmul %40, %41, %cst_20 {dimension_numbers = #tpu.dot_dimension_numbers<[1], [0], [0], [1], [0, 0, 1, 1], [], []>} : vector<128x128xf32>, vector<128x4xf32>, vector<128x4xf32> -> vector<128x4xf32>
    %cst_21 = arith.constant 3.125000e-02 : f32
    %43 = vector.broadcast %cst_21 : f32 to vector<128x4xf32>
    %44 = arith.mulf %42, %43 : vector<128x4xf32>
    %cst_22 = arith.constant 9.99999997E-7 : f32
    %45 = vector.broadcast %cst_22 : f32 to vector<128x4xf32>
    %46 = arith.addf %44, %45 : vector<128x4xf32>
    %47 = math.rsqrt %46 : vector<128x4xf32>
    %c0_23 = arith.constant 0 : index
    %c0_24 = arith.constant 0 : index
    %48 = vector.load %arg15[%c0_23, %c0_24] : memref<4x128xf32, #tpu.memory_space<vmem>>, vector<4x128xf32>
    %cst_25 = arith.constant dense<0.000000e+00> : vector<128x128xf32>
    %49 = tpu.matmul %47, %48, %cst_25 {dimension_numbers = #tpu.dot_dimension_numbers<[1], [0], [0], [1], [0, 0, 1, 1], [], []>} : vector<128x4xf32>, vector<4x128xf32>, vector<128x128xf32> -> vector<128x128xf32>
    %50 = vector.extract_strided_slice %49 {offsets = [0, 0], sizes = [64, 128], strides = [1, 1]} : vector<128x128xf32> to vector<64x128xf32>
    %51 = arith.mulf %34, %50 : vector<64x128xf32>
    %c0_26 = arith.constant 0 : index
    %c0_27 = arith.constant 0 : index
    %52 = vector.load %arg12[%c0_26, %c0_27] : memref<1x128xf32, #tpu.memory_space<vmem>>, vector<1x128xf32>
    %53 = vector.broadcast %52 : vector<1x128xf32> to vector<64x128xf32>
    %54 = arith.mulf %51, %53 : vector<64x128xf32>
    %55 = vector.extract_strided_slice %49 {offsets = [64, 0], sizes = [64, 128], strides = [1, 1]} : vector<128x128xf32> to vector<64x128xf32>
    %56 = arith.mulf %35, %55 : vector<64x128xf32>
    %c0_28 = arith.constant 0 : index
    %c0_29 = arith.constant 0 : index
    %57 = vector.load %arg13[%c0_28, %c0_29] : memref<1x128xf32, #tpu.memory_space<vmem>>, vector<1x128xf32>
    %58 = vector.broadcast %57 : vector<1x128xf32> to vector<64x128xf32>
    %59 = arith.mulf %56, %58 : vector<64x128xf32>
    %c0_30 = arith.constant 0 : index
    %c0_31 = arith.constant 0 : index
    %c0_32 = arith.constant 0 : index
    %60 = vector.load %arg5[%c0_30, %c0_31, %c0_32] : memref<1x64x32xf32, #tpu.memory_space<vmem>>, vector<1x64x32xf32>
    %61 = vector.shape_cast %60 : vector<1x64x32xf32> to vector<64x32xf32>
    %62 = tpu.concatenate %61, %61, %61, %61 in 1 : vector<64x32xf32>, vector<64x32xf32>, vector<64x32xf32>, vector<64x32xf32> -> vector<64x128xf32>
    %c0_33 = arith.constant 0 : index
    %c0_34 = arith.constant 0 : index
    %c0_35 = arith.constant 0 : index
    %63 = vector.load %arg6[%c0_33, %c0_34, %c0_35] : memref<1x64x32xf32, #tpu.memory_space<vmem>>, vector<1x64x32xf32>
    %64 = vector.shape_cast %63 : vector<1x64x32xf32> to vector<64x32xf32>
    %65 = tpu.concatenate %64, %64, %64, %64 in 1 : vector<64x32xf32>, vector<64x32xf32>, vector<64x32xf32>, vector<64x32xf32> -> vector<64x128xf32>
    %66 = tpu.iota {dimensions = array<i32: 1>} : vector<64x128xi32>
    %c1_i32 = arith.constant 1 : i32
    %67 = vector.broadcast %c1_i32 : i32 to vector<64x128xi32>
    %68 = arith.andi %66, %67 : vector<64x128xi32>
    %c0_i32 = arith.constant 0 : i32
    %69 = vector.broadcast %c0_i32 : i32 to vector<64x128xi32>
    %70 = arith.cmpi eq, %68, %69 : vector<64x128xi32>
    %71 = arith.mulf %62, %54 : vector<64x128xf32>
    %c127_i32 = arith.constant 127 : i32
    %72 = tpu.dynamic_rotate %54 by %c127_i32 dim 1 : vector<64x128xf32>, i32 -> vector<64x128xf32>
    %c1_i32_36 = arith.constant 1 : i32
    %73 = tpu.dynamic_rotate %54 by %c1_i32_36 dim 1 : vector<64x128xf32>, i32 -> vector<64x128xf32>
    %74 = arith.select %70, %72, %73 : vector<64x128xi1>, vector<64x128xf32>
    %75 = arith.mulf %65, %74 : vector<64x128xf32>
    %76 = arith.addf %71, %75 : vector<64x128xf32>
    %77 = arith.mulf %62, %59 : vector<64x128xf32>
    %c127_i32_37 = arith.constant 127 : i32
    %78 = tpu.dynamic_rotate %59 by %c127_i32_37 dim 1 : vector<64x128xf32>, i32 -> vector<64x128xf32>
    %c1_i32_38 = arith.constant 1 : i32
    %79 = tpu.dynamic_rotate %59 by %c1_i32_38 dim 1 : vector<64x128xf32>, i32 -> vector<64x128xf32>
    %80 = arith.select %70, %78, %79 : vector<64x128xi1>, vector<64x128xf32>
    %81 = arith.mulf %65, %80 : vector<64x128xf32>
    %82 = arith.addf %77, %81 : vector<64x128xf32>
    %83 = arith.truncf %54 : vector<64x128xf32> to vector<64x128xbf16>
    %84 = arith.truncf %76 : vector<64x128xf32> to vector<64x128xbf16>
    %85 = arith.truncf %82 : vector<64x128xf32> to vector<64x128xbf16>
    %86 = arith.truncf %36 : vector<64x128xf32> to vector<64x128xbf16>
    %c0_39 = arith.constant 0 : index
    %c0_40 = arith.constant 0 : index
    %c0_41 = arith.constant 0 : index
    %87 = vector.load %arg7[%c0_39, %c0_40, %c0_41] : memref<1x128x16xbf16, #tpu.memory_space<vmem>>, vector<1x128x16xbf16>
    %88 = vector.shape_cast %87 : vector<1x128x16xbf16> to vector<128x16xbf16>
    %cst_42 = arith.constant dense<0.000000e+00> : vector<64x16xf32>
    %89 = tpu.matmul %83, %88, %cst_42 {dimension_numbers = #tpu.dot_dimension_numbers<[1], [0], [0], [1], [0, 0, 1, 1], [], []>} : vector<64x128xbf16>, vector<128x16xbf16>, vector<64x16xf32> -> vector<64x16xf32>
    %cst_43 = arith.constant dense<0xFF800000> : vector<64xf32>
    %90 = vector.multi_reduction <maximumf>, %89, %cst_43 [1] : vector<64x16xf32> to vector<64xf32>
    %91 = vector.shape_cast %90 : vector<64xf32> to vector<64x1xf32>
    %92 = vector.broadcast %91 : vector<64x1xf32> to vector<64x16xf32>
    %93 = arith.subf %89, %92 : vector<64x16xf32>
    %94 = math.exp %93 : vector<64x16xf32>
    %c0_44 = arith.constant 0 : index
    %c0_45 = arith.constant 0 : index
    %95 = vector.load %arg9[%c0_44, %c0_45] : memref<16x16xf32, #tpu.memory_space<vmem>>, vector<16x16xf32>
    %cst_46 = arith.constant dense<0.000000e+00> : vector<64x16xf32>
    %96 = tpu.matmul %94, %95, %cst_46 {dimension_numbers = #tpu.dot_dimension_numbers<[1], [0], [0], [1], [0, 0, 1, 1], [], []>} : vector<64x16xf32>, vector<16x16xf32>, vector<64x16xf32> -> vector<64x16xf32>
    %cst_47 = arith.constant 1.000000e-30 : f32
    %97 = vector.broadcast %cst_47 : f32 to vector<64x16xf32>
    %98 = arith.maximumf %96, %97 : vector<64x16xf32>
    %99 = tpu.reciprocal %98 {approx = true} : vector<64x16xf32> -> vector<64x16xf32>
    %100 = arith.mulf %94, %99 : vector<64x16xf32>
    %101 = arith.truncf %100 : vector<64x16xf32> to vector<64x16xbf16>
    %c0_48 = arith.constant 0 : index
    %c0_49 = arith.constant 0 : index
    %c0_50 = arith.constant 0 : index
    %102 = vector.load %arg8[%c0_48, %c0_49, %c0_50] : memref<1x16x128xbf16, #tpu.memory_space<vmem>>, vector<1x16x128xbf16>
    %103 = vector.shape_cast %102 : vector<1x16x128xbf16> to vector<16x128xbf16>
    %cst_51 = arith.constant dense<0.000000e+00> : vector<64x128xf32>
    %104 = tpu.matmul %101, %103, %cst_51 {dimension_numbers = #tpu.dot_dimension_numbers<[1], [0], [0], [1], [0, 0, 1, 1], [], []>} : vector<64x16xbf16>, vector<16x128xbf16>, vector<64x128xf32> -> vector<64x128xf32>
    %cst_52 = arith.constant 5.000000e-01 : f32
    %105 = vector.broadcast %cst_52 : f32 to vector<64x512xf32>
    %106 = arith.mulf %105, %37 : vector<64x512xf32>
    %cst_53 = arith.constant 4.471500e-02 : f32
    %107 = vector.broadcast %cst_53 : f32 to vector<64x512xf32>
    %108 = arith.mulf %107, %37 : vector<64x512xf32>
    %109 = arith.mulf %108, %37 : vector<64x512xf32>
    %110 = arith.mulf %109, %37 : vector<64x512xf32>
    %111 = arith.addf %37, %110 : vector<64x512xf32>
    %cst_54 = arith.constant 0.797884583 : f32
    %112 = vector.broadcast %cst_54 : f32 to vector<64x512xf32>
    %113 = arith.mulf %112, %111 : vector<64x512xf32>
    %114 = math.tanh %113 : vector<64x512xf32>
    %cst_55 = arith.constant 1.000000e+00 : f32
    %115 = vector.broadcast %cst_55 : f32 to vector<64x512xf32>
    %116 = arith.addf %115, %114 : vector<64x512xf32>
    %117 = arith.mulf %106, %116 : vector<64x512xf32>
    %118 = arith.truncf %117 : vector<64x512xf32> to vector<64x512xbf16>
    %c0_56 = arith.constant 0 : index
    %c0_57 = arith.constant 0 : index
    %119 = vector.load %arg17[%c0_56, %c0_57] : memref<512x128xbf16, #tpu.memory_space<vmem>>, vector<512x128xbf16>
    %cst_58 = arith.constant dense<0.000000e+00> : vector<64x128xf32>
    %120 = tpu.matmul %118, %119, %cst_58 {dimension_numbers = #tpu.dot_dimension_numbers<[1], [0], [0], [1], [0, 0, 1, 1], [], []>} : vector<64x512xbf16>, vector<512x128xbf16>, vector<64x128xf32> -> vector<64x128xf32>
    %c0_59 = arith.constant 0 : index
    %c0_60 = arith.constant 0 : index
    %121 = vector.load %arg18[%c0_59, %c0_60] : memref<1x128xf32, #tpu.memory_space<vmem>>, vector<1x128xf32>
    %122 = vector.broadcast %121 : vector<1x128xf32> to vector<64x128xf32>
    %123 = arith.addf %120, %122 : vector<64x128xf32>
    %124 = arith.truncf %104 : vector<64x128xf32> to vector<64x128xbf16>
    %c0_61 = arith.constant 0 : index
    %c0_62 = arith.constant 0 : index
    %125 = vector.load %arg16[%c0_61, %c0_62] : memref<128x128xbf16, #tpu.memory_space<vmem>>, vector<128x128xbf16>
    %cst_63 = arith.constant dense<0.000000e+00> : vector<64x128xf32>
    %126 = tpu.matmul %124, %125, %cst_63 {dimension_numbers = #tpu.dot_dimension_numbers<[1], [0], [0], [1], [0, 0, 1, 1], [], []>} : vector<64x128xbf16>, vector<128x128xbf16>, vector<64x128xf32> -> vector<64x128xf32>
    %127 = arith.addf %123, %126 : vector<64x128xf32>
    %128 = vector.extract_strided_slice %84 {offsets = [0, 0], sizes = [64, 32], strides = [1, 1]} : vector<64x128xbf16> to vector<64x32xbf16>
    %cst_64 = arith.constant 0xFF800000 : f32
    %129 = vector.broadcast %cst_64 : f32 to vector<64x1xf32>
    %cst_65 = arith.constant 0.000000e+00 : f32
    %130 = vector.broadcast %cst_65 : f32 to vector<64x1xf32>
    %cst_66 = arith.constant 0.000000e+00 : f32
    %131 = vector.broadcast %cst_66 : f32 to vector<64x32xf32>
    %132 = vector.extract_strided_slice %85 {offsets = [0, 0], sizes = [32, 32], strides = [1, 1]} : vector<64x128xbf16> to vector<32x32xbf16>
    %133 = vector.extract_strided_slice %86 {offsets = [0, 0], sizes = [32, 32], strides = [1, 1]} : vector<64x128xbf16> to vector<32x32xbf16>
    %cst_67 = arith.constant dense<0.000000e+00> : vector<64x32xf32>
    %134 = tpu.matmul %128, %132, %cst_67 {dimension_numbers = #tpu.dot_dimension_numbers<[1], [1], [0], [0], [0, 0, 1, 0], [], []>} : vector<64x32xbf16>, vector<32x32xbf16>, vector<64x32xf32> -> vector<64x32xf32>
    %cst_68 = arith.constant dense<0xFF800000> : vector<64xf32>
    %135 = vector.multi_reduction <maximumf>, %134, %cst_68 [1] : vector<64x32xf32> to vector<64xf32>
    %136 = vector.shape_cast %135 : vector<64xf32> to vector<64x1xf32>
    %137 = arith.maximumf %129, %136 : vector<64x1xf32>
    %138 = arith.subf %129, %137 : vector<64x1xf32>
    %139 = math.exp %138 : vector<64x1xf32>
    %140 = vector.broadcast %137 : vector<64x1xf32> to vector<64x32xf32>
    %141 = arith.subf %134, %140 : vector<64x32xf32>
    %142 = math.exp %141 : vector<64x32xf32>
    %143 = arith.mulf %139, %130 : vector<64x1xf32>
    %cst_69 = arith.constant dense<0.000000e+00> : vector<64xf32>
    %144 = vector.multi_reduction <add>, %142, %cst_69 [1] : vector<64x32xf32> to vector<64xf32>
    %145 = vector.shape_cast %144 : vector<64xf32> to vector<64x1xf32>
    %146 = arith.addf %143, %145 : vector<64x1xf32>
    %147 = vector.broadcast %139 : vector<64x1xf32> to vector<64x32xf32>
    %148 = arith.mulf %147, %131 : vector<64x32xf32>
    %149 = arith.truncf %142 : vector<64x32xf32> to vector<64x32xbf16>
    %cst_70 = arith.constant dense<0.000000e+00> : vector<64x32xf32>
    %150 = tpu.matmul %149, %133, %cst_70 {dimension_numbers = #tpu.dot_dimension_numbers<[1], [0], [0], [1], [0, 0, 1, 1], [], []>} : vector<64x32xbf16>, vector<32x32xbf16>, vector<64x32xf32> -> vector<64x32xf32>
    %151 = arith.addf %148, %150 : vector<64x32xf32>
    %152 = vector.extract_strided_slice %85 {offsets = [32, 0], sizes = [32, 32], strides = [1, 1]} : vector<64x128xbf16> to vector<32x32xbf16>
    %153 = vector.extract_strided_slice %86 {offsets = [32, 0], sizes = [32, 32], strides = [1, 1]} : vector<64x128xbf16> to vector<32x32xbf16>
    %cst_71 = arith.constant dense<0.000000e+00> : vector<64x32xf32>
    %154 = tpu.matmul %128, %152, %cst_71 {dimension_numbers = #tpu.dot_dimension_numbers<[1], [1], [0], [0], [0, 0, 1, 0], [], []>} : vector<64x32xbf16>, vector<32x32xbf16>, vector<64x32xf32> -> vector<64x32xf32>
    %cst_72 = arith.constant dense<0xFF800000> : vector<64xf32>
    %155 = vector.multi_reduction <maximumf>, %154, %cst_72 [1] : vector<64x32xf32> to vector<64xf32>
    %156 = vector.shape_cast %155 : vector<64xf32> to vector<64x1xf32>
    %157 = arith.maximumf %137, %156 : vector<64x1xf32>
    %158 = arith.subf %137, %157 : vector<64x1xf32>
    %159 = math.exp %158 : vector<64x1xf32>
    %160 = vector.broadcast %157 : vector<64x1xf32> to vector<64x32xf32>
    %161 = arith.subf %154, %160 : vector<64x32xf32>
    %162 = math.exp %161 : vector<64x32xf32>
    %163 = arith.mulf %159, %146 : vector<64x1xf32>
    %cst_73 = arith.constant dense<0.000000e+00> : vector<64xf32>
    %164 = vector.multi_reduction <add>, %162, %cst_73 [1] : vector<64x32xf32> to vector<64xf32>
    %165 = vector.shape_cast %164 : vector<64xf32> to vector<64x1xf32>
    %166 = arith.addf %163, %165 : vector<64x1xf32>
    %167 = vector.broadcast %159 : vector<64x1xf32> to vector<64x32xf32>
    %168 = arith.mulf %167, %151 : vector<64x32xf32>
    %169 = arith.truncf %162 : vector<64x32xf32> to vector<64x32xbf16>
    %cst_74 = arith.constant dense<0.000000e+00> : vector<64x32xf32>
    %170 = tpu.matmul %169, %153, %cst_74 {dimension_numbers = #tpu.dot_dimension_numbers<[1], [0], [0], [1], [0, 0, 1, 1], [], []>} : vector<64x32xbf16>, vector<32x32xbf16>, vector<64x32xf32> -> vector<64x32xf32>
    %171 = arith.addf %168, %170 : vector<64x32xf32>
    %172 = tpu.reciprocal %166 {approx = true} : vector<64x1xf32> -> vector<64x1xf32>
    %173 = vector.broadcast %172 : vector<64x1xf32> to vector<64x32xf32>
    %174 = arith.mulf %171, %173 : vector<64x32xf32>
    %175 = vector.extract_strided_slice %84 {offsets = [0, 32], sizes = [64, 32], strides = [1, 1]} : vector<64x128xbf16> to vector<64x32xbf16>
    %cst_75 = arith.constant 0xFF800000 : f32
    %176 = vector.broadcast %cst_75 : f32 to vector<64x1xf32>
    %cst_76 = arith.constant 0.000000e+00 : f32
    %177 = vector.broadcast %cst_76 : f32 to vector<64x1xf32>
    %cst_77 = arith.constant 0.000000e+00 : f32
    %178 = vector.broadcast %cst_77 : f32 to vector<64x32xf32>
    %179 = vector.extract_strided_slice %85 {offsets = [0, 32], sizes = [32, 32], strides = [1, 1]} : vector<64x128xbf16> to vector<32x32xbf16>
    %180 = vector.extract_strided_slice %86 {offsets = [0, 32], sizes = [32, 32], strides = [1, 1]} : vector<64x128xbf16> to vector<32x32xbf16>
    %cst_78 = arith.constant dense<0.000000e+00> : vector<64x32xf32>
    %181 = tpu.matmul %175, %179, %cst_78 {dimension_numbers = #tpu.dot_dimension_numbers<[1], [1], [0], [0], [0, 0, 1, 0], [], []>} : vector<64x32xbf16>, vector<32x32xbf16>, vector<64x32xf32> -> vector<64x32xf32>
    %cst_79 = arith.constant dense<0xFF800000> : vector<64xf32>
    %182 = vector.multi_reduction <maximumf>, %181, %cst_79 [1] : vector<64x32xf32> to vector<64xf32>
    %183 = vector.shape_cast %182 : vector<64xf32> to vector<64x1xf32>
    %184 = arith.maximumf %176, %183 : vector<64x1xf32>
    %185 = arith.subf %176, %184 : vector<64x1xf32>
    %186 = math.exp %185 : vector<64x1xf32>
    %187 = vector.broadcast %184 : vector<64x1xf32> to vector<64x32xf32>
    %188 = arith.subf %181, %187 : vector<64x32xf32>
    %189 = math.exp %188 : vector<64x32xf32>
    %190 = arith.mulf %186, %177 : vector<64x1xf32>
    %cst_80 = arith.constant dense<0.000000e+00> : vector<64xf32>
    %191 = vector.multi_reduction <add>, %189, %cst_80 [1] : vector<64x32xf32> to vector<64xf32>
    %192 = vector.shape_cast %191 : vector<64xf32> to vector<64x1xf32>
    %193 = arith.addf %190, %192 : vector<64x1xf32>
    %194 = vector.broadcast %186 : vector<64x1xf32> to vector<64x32xf32>
    %195 = arith.mulf %194, %178 : vector<64x32xf32>
    %196 = arith.truncf %189 : vector<64x32xf32> to vector<64x32xbf16>
    %cst_81 = arith.constant dense<0.000000e+00> : vector<64x32xf32>
    %197 = tpu.matmul %196, %180, %cst_81 {dimension_numbers = #tpu.dot_dimension_numbers<[1], [0], [0], [1], [0, 0, 1, 1], [], []>} : vector<64x32xbf16>, vector<32x32xbf16>, vector<64x32xf32> -> vector<64x32xf32>
    %198 = arith.addf %195, %197 : vector<64x32xf32>
    %199 = vector.extract_strided_slice %85 {offsets = [32, 32], sizes = [32, 32], strides = [1, 1]} : vector<64x128xbf16> to vector<32x32xbf16>
    %200 = vector.extract_strided_slice %86 {offsets = [32, 32], sizes = [32, 32], strides = [1, 1]} : vector<64x128xbf16> to vector<32x32xbf16>
    %cst_82 = arith.constant dense<0.000000e+00> : vector<64x32xf32>
    %201 = tpu.matmul %175, %199, %cst_82 {dimension_numbers = #tpu.dot_dimension_numbers<[1], [1], [0], [0], [0, 0, 1, 0], [], []>} : vector<64x32xbf16>, vector<32x32xbf16>, vector<64x32xf32> -> vector<64x32xf32>
    %cst_83 = arith.constant dense<0xFF800000> : vector<64xf32>
    %202 = vector.multi_reduction <maximumf>, %201, %cst_83 [1] : vector<64x32xf32> to vector<64xf32>
    %203 = vector.shape_cast %202 : vector<64xf32> to vector<64x1xf32>
    %204 = arith.maximumf %184, %203 : vector<64x1xf32>
    %205 = arith.subf %184, %204 : vector<64x1xf32>
    %206 = math.exp %205 : vector<64x1xf32>
    %207 = vector.broadcast %204 : vector<64x1xf32> to vector<64x32xf32>
    %208 = arith.subf %201, %207 : vector<64x32xf32>
    %209 = math.exp %208 : vector<64x32xf32>
    %210 = arith.mulf %206, %193 : vector<64x1xf32>
    %cst_84 = arith.constant dense<0.000000e+00> : vector<64xf32>
    %211 = vector.multi_reduction <add>, %209, %cst_84 [1] : vector<64x32xf32> to vector<64xf32>
    %212 = vector.shape_cast %211 : vector<64xf32> to vector<64x1xf32>
    %213 = arith.addf %210, %212 : vector<64x1xf32>
    %214 = vector.broadcast %206 : vector<64x1xf32> to vector<64x32xf32>
    %215 = arith.mulf %214, %198 : vector<64x32xf32>
    %216 = arith.truncf %209 : vector<64x32xf32> to vector<64x32xbf16>
    %cst_85 = arith.constant dense<0.000000e+00> : vector<64x32xf32>
    %217 = tpu.matmul %216, %200, %cst_85 {dimension_numbers = #tpu.dot_dimension_numbers<[1], [0], [0], [1], [0, 0, 1, 1], [], []>} : vector<64x32xbf16>, vector<32x32xbf16>, vector<64x32xf32> -> vector<64x32xf32>
    %218 = arith.addf %215, %217 : vector<64x32xf32>
    %219 = tpu.reciprocal %213 {approx = true} : vector<64x1xf32> -> vector<64x1xf32>
    %220 = vector.broadcast %219 : vector<64x1xf32> to vector<64x32xf32>
    %221 = arith.mulf %218, %220 : vector<64x32xf32>
    %222 = vector.extract_strided_slice %84 {offsets = [0, 64], sizes = [64, 32], strides = [1, 1]} : vector<64x128xbf16> to vector<64x32xbf16>
    %cst_86 = arith.constant 0xFF800000 : f32
    %223 = vector.broadcast %cst_86 : f32 to vector<64x1xf32>
    %cst_87 = arith.constant 0.000000e+00 : f32
    %224 = vector.broadcast %cst_87 : f32 to vector<64x1xf32>
    %cst_88 = arith.constant 0.000000e+00 : f32
    %225 = vector.broadcast %cst_88 : f32 to vector<64x32xf32>
    %226 = vector.extract_strided_slice %85 {offsets = [0, 64], sizes = [32, 32], strides = [1, 1]} : vector<64x128xbf16> to vector<32x32xbf16>
    %227 = vector.extract_strided_slice %86 {offsets = [0, 64], sizes = [32, 32], strides = [1, 1]} : vector<64x128xbf16> to vector<32x32xbf16>
    %cst_89 = arith.constant dense<0.000000e+00> : vector<64x32xf32>
    %228 = tpu.matmul %222, %226, %cst_89 {dimension_numbers = #tpu.dot_dimension_numbers<[1], [1], [0], [0], [0, 0, 1, 0], [], []>} : vector<64x32xbf16>, vector<32x32xbf16>, vector<64x32xf32> -> vector<64x32xf32>
    %cst_90 = arith.constant dense<0xFF800000> : vector<64xf32>
    %229 = vector.multi_reduction <maximumf>, %228, %cst_90 [1] : vector<64x32xf32> to vector<64xf32>
    %230 = vector.shape_cast %229 : vector<64xf32> to vector<64x1xf32>
    %231 = arith.maximumf %223, %230 : vector<64x1xf32>
    %232 = arith.subf %223, %231 : vector<64x1xf32>
    %233 = math.exp %232 : vector<64x1xf32>
    %234 = vector.broadcast %231 : vector<64x1xf32> to vector<64x32xf32>
    %235 = arith.subf %228, %234 : vector<64x32xf32>
    %236 = math.exp %235 : vector<64x32xf32>
    %237 = arith.mulf %233, %224 : vector<64x1xf32>
    %cst_91 = arith.constant dense<0.000000e+00> : vector<64xf32>
    %238 = vector.multi_reduction <add>, %236, %cst_91 [1] : vector<64x32xf32> to vector<64xf32>
    %239 = vector.shape_cast %238 : vector<64xf32> to vector<64x1xf32>
    %240 = arith.addf %237, %239 : vector<64x1xf32>
    %241 = vector.broadcast %233 : vector<64x1xf32> to vector<64x32xf32>
    %242 = arith.mulf %241, %225 : vector<64x32xf32>
    %243 = arith.truncf %236 : vector<64x32xf32> to vector<64x32xbf16>
    %cst_92 = arith.constant dense<0.000000e+00> : vector<64x32xf32>
    %244 = tpu.matmul %243, %227, %cst_92 {dimension_numbers = #tpu.dot_dimension_numbers<[1], [0], [0], [1], [0, 0, 1, 1], [], []>} : vector<64x32xbf16>, vector<32x32xbf16>, vector<64x32xf32> -> vector<64x32xf32>
    %245 = arith.addf %242, %244 : vector<64x32xf32>
    %246 = vector.extract_strided_slice %85 {offsets = [32, 64], sizes = [32, 32], strides = [1, 1]} : vector<64x128xbf16> to vector<32x32xbf16>
    %247 = vector.extract_strided_slice %86 {offsets = [32, 64], sizes = [32, 32], strides = [1, 1]} : vector<64x128xbf16> to vector<32x32xbf16>
    %cst_93 = arith.constant dense<0.000000e+00> : vector<64x32xf32>
    %248 = tpu.matmul %222, %246, %cst_93 {dimension_numbers = #tpu.dot_dimension_numbers<[1], [1], [0], [0], [0, 0, 1, 0], [], []>} : vector<64x32xbf16>, vector<32x32xbf16>, vector<64x32xf32> -> vector<64x32xf32>
    %cst_94 = arith.constant dense<0xFF800000> : vector<64xf32>
    %249 = vector.multi_reduction <maximumf>, %248, %cst_94 [1] : vector<64x32xf32> to vector<64xf32>
    %250 = vector.shape_cast %249 : vector<64xf32> to vector<64x1xf32>
    %251 = arith.maximumf %231, %250 : vector<64x1xf32>
    %252 = arith.subf %231, %251 : vector<64x1xf32>
    %253 = math.exp %252 : vector<64x1xf32>
    %254 = vector.broadcast %251 : vector<64x1xf32> to vector<64x32xf32>
    %255 = arith.subf %248, %254 : vector<64x32xf32>
    %256 = math.exp %255 : vector<64x32xf32>
    %257 = arith.mulf %253, %240 : vector<64x1xf32>
    %cst_95 = arith.constant dense<0.000000e+00> : vector<64xf32>
    %258 = vector.multi_reduction <add>, %256, %cst_95 [1] : vector<64x32xf32> to vector<64xf32>
    %259 = vector.shape_cast %258 : vector<64xf32> to vector<64x1xf32>
    %260 = arith.addf %257, %259 : vector<64x1xf32>
    %261 = vector.broadcast %253 : vector<64x1xf32> to vector<64x32xf32>
    %262 = arith.mulf %261, %245 : vector<64x32xf32>
    %263 = arith.truncf %256 : vector<64x32xf32> to vector<64x32xbf16>
    %cst_96 = arith.constant dense<0.000000e+00> : vector<64x32xf32>
    %264 = tpu.matmul %263, %247, %cst_96 {dimension_numbers = #tpu.dot_dimension_numbers<[1], [0], [0], [1], [0, 0, 1, 1], [], []>} : vector<64x32xbf16>, vector<32x32xbf16>, vector<64x32xf32> -> vector<64x32xf32>
    %265 = arith.addf %262, %264 : vector<64x32xf32>
    %266 = tpu.reciprocal %260 {approx = true} : vector<64x1xf32> -> vector<64x1xf32>
    %267 = vector.broadcast %266 : vector<64x1xf32> to vector<64x32xf32>
    %268 = arith.mulf %265, %267 : vector<64x32xf32>
    %269 = vector.extract_strided_slice %84 {offsets = [0, 96], sizes = [64, 32], strides = [1, 1]} : vector<64x128xbf16> to vector<64x32xbf16>
    %cst_97 = arith.constant 0xFF800000 : f32
    %270 = vector.broadcast %cst_97 : f32 to vector<64x1xf32>
    %cst_98 = arith.constant 0.000000e+00 : f32
    %271 = vector.broadcast %cst_98 : f32 to vector<64x1xf32>
    %cst_99 = arith.constant 0.000000e+00 : f32
    %272 = vector.broadcast %cst_99 : f32 to vector<64x32xf32>
    %273 = vector.extract_strided_slice %85 {offsets = [0, 96], sizes = [32, 32], strides = [1, 1]} : vector<64x128xbf16> to vector<32x32xbf16>
    %274 = vector.extract_strided_slice %86 {offsets = [0, 96], sizes = [32, 32], strides = [1, 1]} : vector<64x128xbf16> to vector<32x32xbf16>
    %cst_100 = arith.constant dense<0.000000e+00> : vector<64x32xf32>
    %275 = tpu.matmul %269, %273, %cst_100 {dimension_numbers = #tpu.dot_dimension_numbers<[1], [1], [0], [0], [0, 0, 1, 0], [], []>} : vector<64x32xbf16>, vector<32x32xbf16>, vector<64x32xf32> -> vector<64x32xf32>
    %cst_101 = arith.constant dense<0xFF800000> : vector<64xf32>
    %276 = vector.multi_reduction <maximumf>, %275, %cst_101 [1] : vector<64x32xf32> to vector<64xf32>
    %277 = vector.shape_cast %276 : vector<64xf32> to vector<64x1xf32>
    %278 = arith.maximumf %270, %277 : vector<64x1xf32>
    %279 = arith.subf %270, %278 : vector<64x1xf32>
    %280 = math.exp %279 : vector<64x1xf32>
    %281 = vector.broadcast %278 : vector<64x1xf32> to vector<64x32xf32>
    %282 = arith.subf %275, %281 : vector<64x32xf32>
    %283 = math.exp %282 : vector<64x32xf32>
    %284 = arith.mulf %280, %271 : vector<64x1xf32>
    %cst_102 = arith.constant dense<0.000000e+00> : vector<64xf32>
    %285 = vector.multi_reduction <add>, %283, %cst_102 [1] : vector<64x32xf32> to vector<64xf32>
    %286 = vector.shape_cast %285 : vector<64xf32> to vector<64x1xf32>
    %287 = arith.addf %284, %286 : vector<64x1xf32>
    %288 = vector.broadcast %280 : vector<64x1xf32> to vector<64x32xf32>
    %289 = arith.mulf %288, %272 : vector<64x32xf32>
    %290 = arith.truncf %283 : vector<64x32xf32> to vector<64x32xbf16>
    %cst_103 = arith.constant dense<0.000000e+00> : vector<64x32xf32>
    %291 = tpu.matmul %290, %274, %cst_103 {dimension_numbers = #tpu.dot_dimension_numbers<[1], [0], [0], [1], [0, 0, 1, 1], [], []>} : vector<64x32xbf16>, vector<32x32xbf16>, vector<64x32xf32> -> vector<64x32xf32>
    %292 = arith.addf %289, %291 : vector<64x32xf32>
    %293 = vector.extract_strided_slice %85 {offsets = [32, 96], sizes = [32, 32], strides = [1, 1]} : vector<64x128xbf16> to vector<32x32xbf16>
    %294 = vector.extract_strided_slice %86 {offsets = [32, 96], sizes = [32, 32], strides = [1, 1]} : vector<64x128xbf16> to vector<32x32xbf16>
    %cst_104 = arith.constant dense<0.000000e+00> : vector<64x32xf32>
    %295 = tpu.matmul %269, %293, %cst_104 {dimension_numbers = #tpu.dot_dimension_numbers<[1], [1], [0], [0], [0, 0, 1, 0], [], []>} : vector<64x32xbf16>, vector<32x32xbf16>, vector<64x32xf32> -> vector<64x32xf32>
    %cst_105 = arith.constant dense<0xFF800000> : vector<64xf32>
    %296 = vector.multi_reduction <maximumf>, %295, %cst_105 [1] : vector<64x32xf32> to vector<64xf32>
    %297 = vector.shape_cast %296 : vector<64xf32> to vector<64x1xf32>
    %298 = arith.maximumf %278, %297 : vector<64x1xf32>
    %299 = arith.subf %278, %298 : vector<64x1xf32>
    %300 = math.exp %299 : vector<64x1xf32>
    %301 = vector.broadcast %298 : vector<64x1xf32> to vector<64x32xf32>
    %302 = arith.subf %295, %301 : vector<64x32xf32>
    %303 = math.exp %302 : vector<64x32xf32>
    %304 = arith.mulf %300, %287 : vector<64x1xf32>
    %cst_106 = arith.constant dense<0.000000e+00> : vector<64xf32>
    %305 = vector.multi_reduction <add>, %303, %cst_106 [1] : vector<64x32xf32> to vector<64xf32>
    %306 = vector.shape_cast %305 : vector<64xf32> to vector<64x1xf32>
    %307 = arith.addf %304, %306 : vector<64x1xf32>
    %308 = vector.broadcast %300 : vector<64x1xf32> to vector<64x32xf32>
    %309 = arith.mulf %308, %292 : vector<64x32xf32>
    %310 = arith.truncf %303 : vector<64x32xf32> to vector<64x32xbf16>
    %cst_107 = arith.constant dense<0.000000e+00> : vector<64x32xf32>
    %311 = tpu.matmul %310, %294, %cst_107 {dimension_numbers = #tpu.dot_dimension_numbers<[1], [0], [0], [1], [0, 0, 1, 1], [], []>} : vector<64x32xbf16>, vector<32x32xbf16>, vector<64x32xf32> -> vector<64x32xf32>
    %312 = arith.addf %309, %311 : vector<64x32xf32>
    %313 = tpu.reciprocal %307 {approx = true} : vector<64x1xf32> -> vector<64x1xf32>
    %314 = vector.broadcast %313 : vector<64x1xf32> to vector<64x32xf32>
    %315 = arith.mulf %312, %314 : vector<64x32xf32>
    %316 = tpu.concatenate %174, %221, %268, %315 in 1 : vector<64x32xf32>, vector<64x32xf32>, vector<64x32xf32>, vector<64x32xf32> -> vector<64x128xf32>
    %317 = arith.truncf %316 : vector<64x128xf32> to vector<64x128xbf16>
    %c0_108 = arith.constant 0 : index
    %c0_109 = arith.constant 0 : index
    %318 = vector.load %arg16[%c0_108, %c0_109] : memref<128x128xbf16, #tpu.memory_space<vmem>>, vector<128x128xbf16>
    %cst_110 = arith.constant dense<0.000000e+00> : vector<64x128xf32>
    %319 = tpu.matmul %317, %318, %cst_110 {dimension_numbers = #tpu.dot_dimension_numbers<[1], [0], [0], [1], [0, 0, 1, 1], [], []>} : vector<64x128xbf16>, vector<128x128xbf16>, vector<64x128xf32> -> vector<64x128xf32>
    %320 = arith.addf %127, %319 : vector<64x128xf32>
    %c0_111 = arith.constant 0 : index
    %c0_112 = arith.constant 0 : index
    %c0_113 = arith.constant 0 : index
    %321 = vector.load %arg4[%c0_111, %c0_112, %c0_113] : memref<1x1x128xf32, #tpu.memory_space<vmem>>, vector<1x1x128xf32>
    %322 = vector.shape_cast %321 : vector<1x1x128xf32> to vector<1x128xf32>
    %323 = vector.broadcast %322 : vector<1x128xf32> to vector<64x128xf32>
    %324 = arith.mulf %323, %320 : vector<64x128xf32>
    %325 = arith.addf %1, %324 : vector<64x128xf32>
    %c0_114 = arith.constant 0 : index
    %c0_115 = arith.constant 0 : index
    %c0_116 = arith.constant 0 : index
    %326 = vector.load %arg19[%c0_114, %c0_115, %c0_116] : memref<1x64x128xf32, #tpu.memory_space<vmem>>, vector<1x64x128xf32>
    %327 = vector.shape_cast %326 : vector<1x64x128xf32> to vector<64x128xf32>
    %328 = vector.shape_cast %325 : vector<64x128xf32> to vector<1x64x128xf32>
    tpu.vector_store %arg19[%c0_114, %c0_115, %c0_116], %328 {strides = array<i32>} : memref<1x64x128xf32, #tpu.memory_space<vmem>>, vector<1x64x128xf32>,
    return
  }
  func.func @transform_0(%arg0: i32) -> (i32, i32, i32) {
    %c0_i32 = arith.constant 0 : i32
    %c0_i32_0 = arith.constant 0 : i32
    %c0_i32_1 = arith.constant 0 : i32
    return %arg0, %c0_i32, %c0_i32_0 : i32, i32, i32
  }
  func.func @transform_1(%arg0: i32) -> (i32, i32, i32) {
    %c0_i32 = arith.constant 0 : i32
    %c0_i32_0 = arith.constant 0 : i32
    %c0_i32_1 = arith.constant 0 : i32
    return %arg0, %c0_i32, %c0_i32_0 : i32, i32, i32
  }
  func.func @transform_2(%arg0: i32) -> (i32, i32, i32) {
    %c0_i32 = arith.constant 0 : i32
    %c0_i32_0 = arith.constant 0 : i32
    %c0_i32_1 = arith.constant 0 : i32
    return %arg0, %c0_i32, %c0_i32_0 : i32, i32, i32
  }
  func.func @transform_3(%arg0: i32) -> (i32, i32, i32) {
    %c0_i32 = arith.constant 0 : i32
    %c0_i32_0 = arith.constant 0 : i32
    %c0_i32_1 = arith.constant 0 : i32
    return %arg0, %c0_i32, %c0_i32_0 : i32, i32, i32
  }
  func.func @transform_4(%arg0: i32) -> (i32, i32, i32) {
    %c0_i32 = arith.constant 0 : i32
    %c0_i32_0 = arith.constant 0 : i32
    %c0_i32_1 = arith.constant 0 : i32
    return %arg0, %c0_i32, %c0_i32_0 : i32, i32, i32
  }
  func.func @transform_5(%arg0: i32) -> (i32, i32, i32) {
    %c0_i32 = arith.constant 0 : i32
    %c0_i32_0 = arith.constant 0 : i32
    %c0_i32_1 = arith.constant 0 : i32
    return %arg0, %c0_i32, %c0_i32_0 : i32, i32, i32
  }
  func.func @transform_6(%arg0: i32) -> (i32, i32, i32) {
    %c0_i32 = arith.constant 0 : i32
    %c0_i32_0 = arith.constant 0 : i32
    %c0_i32_1 = arith.constant 0 : i32
    return %arg0, %c0_i32, %c0_i32_0 : i32, i32, i32
  }
  func.func @transform_7(%arg0: i32) -> (i32, i32, i32) {
    %c0_i32 = arith.constant 0 : i32
    %c0_i32_0 = arith.constant 0 : i32
    %c0_i32_1 = arith.constant 0 : i32
    return %arg0, %c0_i32, %c0_i32_0 : i32, i32, i32
  }
  func.func @transform_8(%arg0: i32) -> (i32, i32) {
    %c0_i32 = arith.constant 0 : i32
    %c0_i32_0 = arith.constant 0 : i32
    %c0_i32_1 = arith.constant 0 : i32
    return %c0_i32, %c0_i32_0 : i32, i32
  }
  func.func @transform_9(%arg0: i32) -> (i32, i32) {
    %c0_i32 = arith.constant 0 : i32
    %c0_i32_0 = arith.constant 0 : i32
    %c0_i32_1 = arith.constant 0 : i32
    return %c0_i32, %c0_i32_0 : i32, i32
  }
  func.func @transform_10(%arg0: i32) -> (i32, i32) {
    %c0_i32 = arith.constant 0 : i32
    %c0_i32_0 = arith.constant 0 : i32
    %c0_i32_1 = arith.constant 0 : i32
    return %c0_i32, %c0_i32_0 : i32, i32
  }
  func.func @transform_11(%arg0: i32) -> (i32, i32) {
    %c0_i32 = arith.constant 0 : i32
    %c0_i32_0 = arith.constant 0 : i32
    %c0_i32_1 = arith.constant 0 : i32
    return %c0_i32, %c0_i32_0 : i32, i32
  }
  func.func @transform_12(%arg0: i32) -> (i32, i32) {
    %c0_i32 = arith.constant 0 : i32
    %c0_i32_0 = arith.constant 0 : i32
    %c0_i32_1 = arith.constant 0 : i32
    return %c0_i32, %c0_i32_0 : i32, i32
  }
  func.func @transform_13(%arg0: i32) -> (i32, i32) {
    %c0_i32 = arith.constant 0 : i32
    %c0_i32_0 = arith.constant 0 : i32
    %c0_i32_1 = arith.constant 0 : i32
    return %c0_i32, %c0_i32_0 : i32, i32
  }
  func.func @transform_14(%arg0: i32) -> (i32, i32) {
    %c0_i32 = arith.constant 0 : i32
    %c0_i32_0 = arith.constant 0 : i32
    %c0_i32_1 = arith.constant 0 : i32
    return %c0_i32, %c0_i32_0 : i32, i32
  }
  func.func @transform_15(%arg0: i32) -> (i32, i32) {
    %c0_i32 = arith.constant 0 : i32
    %c0_i32_0 = arith.constant 0 : i32
    %c0_i32_1 = arith.constant 0 : i32
    return %c0_i32, %c0_i32_0 : i32, i32
  }
  func.func @transform_16(%arg0: i32) -> (i32, i32) {
    %c0_i32 = arith.constant 0 : i32
    %c0_i32_0 = arith.constant 0 : i32
    %c0_i32_1 = arith.constant 0 : i32
    return %c0_i32, %c0_i32_0 : i32, i32
  }
  func.func @transform_17(%arg0: i32) -> (i32, i32) {
    %c0_i32 = arith.constant 0 : i32
    %c0_i32_0 = arith.constant 0 : i32
    %c0_i32_1 = arith.constant 0 : i32
    return %c0_i32, %c0_i32_0 : i32, i32
  }
  func.func @transform_18(%arg0: i32) -> (i32, i32, i32) {
    %c0_i32 = arith.constant 0 : i32
    %c0_i32_0 = arith.constant 0 : i32
    %c0_i32_1 = arith.constant 0 : i32
    return %arg0, %c0_i32, %c0_i32_0 : i32, i32, i32
  }
}

</mosaic_0001>

<bundles_post_ra>
// kernel: tpu_custom_call.1
= control target key start
LH: loop header
LB: loop body
LE: loop exit
PB: predicated region body
PF: predicated region fallthrough
CT: control target
= control target key end

     0   :  { %s12617_s0 = inlined_call_operand.hbm [shape: f32[2,64,128], index: 0, kind: input, shape index: {}]   ;;  %s12618_s1 = inlined_call_operand.hbm [shape: f32[2,1,128], index: 1, kind: input, shape index: {}]   ;;  %s12619_s2 = inlined_call_operand.hbm [shape: f32[2,1,128], index: 2, kind: input, shape index: {}]   ;;  %s12620_s3 = inlined_call_operand.hbm [shape: f32[2,1,128], index: 3, kind: input, shape index: {}]   ;;  %s12621_s4 = inlined_call_operand.vmem [shape: f32[2,64,32], index: 4, kind: input, shape index: {}]   ;;  %s12622_s5 = inlined_call_operand.vmem [shape: f32[2,64,32], index: 5, kind: input, shape index: {}]   ;;  %s12623_s6 = inlined_call_operand.vmem [shape: bf16[2,128,16], index: 6, kind: input, shape index: {}]   ;;  %s12624_s7 = inlined_call_operand.hbm [shape: bf16[2,16,128], index: 7, kind: input, shape index: {}]   ;;  %s12625_s8 = inlined_call_operand.hbm [shape: f32[16,16], index: 8, kind: input, shape index: {}]   ;;  %s12626_s9 = inlined_call_operand.vmem [shape: bf16[128,896], index: 9, kind: input, shape index: {}]   ;;  %s12627_s10 = inlined_call_operand.hbm [shape: f32[1,896], index: 10, kind: input, shape index: {}]   ;;  %s12628_s11 = inlined_call_operand.vmem [shape: f32[1,128], index: 11, kind: input, shape index: {}]   ;;  %s12629_s12 = inlined_call_operand.hbm [shape: f32[1,128], index: 12, kind: input, shape index: {}]   ;;  %s12630_s13 = inlined_call_operand.vmem [shape: f32[128,4], index: 13, kind: input, shape index: {}]   ;;  %s12631_s14 = inlined_call_operand.vmem [shape: f32[4,128], index: 14, kind: input, shape index: {}]   ;;  %s12632_s15 = inlined_call_operand.hbm [shape: bf16[128,128], index: 15, kind: input, shape index: {}]   ;;  %s12633_s16 = inlined_call_operand.vmem [shape: bf16[512,128], index: 16, kind: input, shape index: {}]   ;;  %s12634_s17 = inlined_call_operand.vmem [shape: f32[1,128], index: 17, kind: input, shape index: {}]   ;;  %s12635_s18 = inlined_call_operand.hbm [shape: f32[2,64,128], index: 18, kind: output, shape index: {}]  }
   0x1   :  { %12807 = sst [smem:[#allocation96_spill]] %s12617_s0 }
   0x2   :  { %12808 = sst [smem:[#allocation97_spill]] %s12618_s1 }
   0x3   :  { %12809 = sst [smem:[#allocation98_spill]] %s12619_s2 }
   0x4   :  { %12810 = sst [smem:[#allocation99_spill]] %s12620_s3 }
   0x5   :  { %12811 = sst [smem:[#allocation100_spill]] %s12621_s4 }
   0x6   :  { %12812 = sst [smem:[#allocation101_spill]] %s12622_s5 }
   0x7   :  { %12813 = sst [smem:[#allocation102_spill]] %s12623_s6 }
   0x8   :  { %12814 = sst [smem:[#allocation103_spill]] %s12625_s8 }
   0x9   :  { %12815 = sst [smem:[#allocation104_spill]] %s12628_s11 }
   0xa   :  { %12816 = sst [smem:[#allocation105_spill]] %s12629_s12 }
   0xb   :  { %12817 = sst [smem:[#allocation106_spill]] %s12631_s14 }
   0xc   :  { %12818 = sst [smem:[#allocation107_spill]] %s12633_s16 }
   0xd   :  { %12819 = sst [smem:[#allocation108_spill]] %s12634_s17 }
   0xe   :  { %12820 = sst [smem:[#allocation109_spill]] %s12635_s18 }
   0xf   :  { %23 = vsyncpa [#allocation3], 0 }
  0x10   :  { %25 = vsyncpa [#allocation3 + $0x1], 0 }
  0x11   :  { %26 = vsyncpa [#allocation6], 0 }
  0x12   :  { %28 = vsyncpa [#allocation6 + $0x1], 0 }
  0x13   :  { %29 = vsyncpa [#allocation9], 0 }
  0x14   :  { %31 = vsyncpa [#allocation9 + $0x1], 0 }
  0x15   :  { %32 = vsyncpa [#allocation12], 0 }
  0x16   :  { %33 = vsyncpa [#allocation15], 0 }
  0x17   :  { %34 = vsyncpa [#allocation4], 0 }
  0x18   :  { %36 = vsyncpa [#allocation4 + $0x1], 0  ;;  %s8916_s27 = smov 0   ;;  %s8918_s28 = smov 0  }
  0x19   :  { %s8920_s29 = smov 0   ;;  %s8922_s30 = smov 0  }
  0x1a LB: > { %12821 = sst [smem:[#allocation24_spill]] %s8785_s27  ;;  %s8937_s0 = sadd.s32 4294967295, %s8797_s30   ;;  %s8797_s30 = sphi %s8922_s30, %s13227_s30   ;;  %s8793_s29 = sphi %s8920_s29, %s13229_s29   ;;  %s8789_s28 = sphi %s8918_s28, %s13231_s28   ;;  %s8785_s27 = sphi %s8916_s27, %s13230_s27  }
  0x1b   : > { %12822 = sst [smem:[#allocation25_spill]] %s8793_s29  ;;  %s6669_s19 = sadd.s32 4294967294, %s8797_s30  }
  0x1c   : > { %p62_p0 = scmp.ne.s32.totalorder %s8789_s28, %s8785_s27  ;;  %p12642_p1 = scmp.eq.s32.totalorder %s8937_s0, 0 }
  0x1d   : > { %p484_p3 = scmp.eq.s32.totalorder %s6669_s19, 1  ;;  %p6670_p5 = scmp.ge.s32.totalorder %s8797_s30, 1 }
  0x1e   : > { %p8946_p4 = por %p12642_p1, %p62_p0  ;;  %p491_p7 = scmp.lt.s32.totalorder %s8797_s30, 3 }
  0x1f   : > { %p8951_p6 = por %p484_p3, %p62_p0  ;;  %s8799_s22 = smov [#allocation11]  }
  0x20   : > { %s12823_s1 = scalar_select %p8946_p4, 1, 0 }
  0x21   : > { %s12824_s20 = scalar_select %p8951_p6, 1, 0 }
  0x22   : > { %p8956_p8 = pnand %p6670_p5, %p491_p7  ;;  %s503_s2 = sshll.u32 %s8799_s22, 4  ;;  %s8960_s2 = int_to_ptr.vmem [resolvable:$true] %s503_s2 }
  0x23   : > { %12825 = sst [smem:[#allocation26_spill]] %s12824_s20  ;;  %s8800_s24 = smov [#allocation14]  }
  0x24   : > { %s12826_s21 = scalar_select %p8956_p8, 1, 0 }
  0x25   : > { %p7693_p9 = pneg %p8956_p8  ;;  %s534_s25 = sshll.u32 %s8800_s24, 4  ;;  %s8971_s25 = int_to_ptr.vmem [resolvable:$true] %s534_s25 }
  0x26   : > { %s12828_s8 = sld [smem:[#allocation103_spill]] }
  0x27   : > { %p8967_p11 = pnand %p7693_p9, %p12642_p1 }
  0x29   : > { %s12827_s23 = scalar_select %p8967_p11, 1, 0 }
  0x2a   : > { %p8981_p13 = pneg %p8967_p11 }
  0x2c   : > { %s8453_s20 = scalar_lea.hbm %s12828_s8, 256 }
  0x2d   : > { %p8454_p12 = scmp.ne.s32.totalorder %s12828_s8, %s8453_s20  ;;  %p8460_p5 = scmp.lt.u32.totalorder %s8453_s20, %s12828_s8 }
  0x2e   : > { %s12829_s18 = scalar_select %p8981_p13, 1, 0 }
  0x2f   : > { %p8456_p0 = pnand %p8981_p13, %p8454_p12 }
  0x31   : > { %p8457_p3 = pneg %p8456_p0 }
  0x33   : > { %p8462_p7 = pnand %p8460_p5, %p8457_p3 }
  0x35   : > { %8465 = shalt.err (!%p8462_p7)
}
  0x36   : > { %s8466_s27 = scalar_lea.vmem %s8960_s2, 256  ;;  %p8474_p2 = scmp.lt.s32.totalorder %s8960_s2, %s8960_s2 }
  0x37   : > { %p8467_p9 = scmp.ne.s32.totalorder %s8960_s2, %s8466_s27  ;;  %p8475_p6 = scmp.lt.s32.totalorder %s8466_s27, %s8466_s27 }
  0x39   : > { %p8469_p10 = pnand %p8467_p9, %p8981_p13  ;;  %p8476_p12 = por %p8475_p6, %p8474_p2 }
  0x3b   : > { %p8470_p1 = pneg %p8469_p10 }
  0x3d   : > { %p8477_p0 = pnand %p8476_p12, %p8470_p1 }
  0x3f   : > { %8480 = shalt.err (!%p8477_p0)
}
  0x40   : > { %s12643_s26 = smov 128   ;;  %s12644_s17 = smov 8  }
  0x41   : > { %7696 = dma.hbm_to_vmem [thread:$0]  (!%p8967_p11), %s12828_s8, 256, %s8960_s2, [#allocation12], %s12643_s26, %s12643_s26, %s12644_s17  }
  0x42   : > { %s12830_s12 = sld [smem:[#allocation105_spill]] }
  0x48   : > { %s8481_s27 = scalar_lea.hbm %s12830_s12, 16 }
  0x49   : > { %p8482_p1 = scmp.ne.s32.totalorder %s12830_s12, %s8481_s27  ;;  %p8488_p10 = scmp.lt.u32.totalorder %s8481_s27, %s12830_s12 }
  0x4b   : > { %p8484_p2 = pnand %p8482_p1, %p8981_p13 }
  0x4d   : > { %p8485_p6 = pneg %p8484_p2 }
  0x4f   : > { %p8490_p3 = pnand %p8488_p10, %p8485_p6 }
  0x51   : > { %8493 = shalt.err (!%p8490_p3)
}
  0x52   : > { %s8494_s2 = scalar_lea.vmem %s8971_s25, 16  ;;  %s8501_s4 = scalar_lea.vmem %s8971_s25, 32 }
  0x53   : > { %p8495_p5 = scmp.ne.s32.totalorder %s8971_s25, %s8494_s2  ;;  %p8502_p12 = scmp.lt.s32.totalorder %s8971_s25, %s8971_s25 }
  0x54   : > { %p8503_p0 = scmp.lt.s32.totalorder %s8501_s4, %s8494_s2 }
  0x55   : > { %p8497_p7 = pnand %p8495_p5, %p8981_p13 }
  0x56   : > { %p8504_p1 = por %p8503_p0, %p8502_p12 }
  0x57   : > { %p8498_p9 = pneg %p8497_p7 }
  0x59   : > { %p8505_p2 = pnand %p8504_p1, %p8498_p9 }
  0x5b   : > { %8508 = shalt.err (!%p8505_p2)
}
  0x5c   : > { %7702 = dma.hbm_to_vmem [thread:$0]  (!%p8967_p11), %s12830_s12, 16, %s8971_s25, [#allocation15]  }
  0x5d   : > { %s9030_s11 = sadd.s32 1, %s8797_s30   ;;  %s49_s20 = sadd.s32 1, %s8793_s29 }
  0x5e   : > { %12831 = sst [smem:[#allocation27_spill]] %s9030_s11  ;;  %s46_s19 = ssub.s32 %s8797_s30, %s9030_s11 }
  0x5f   : > { %p56_p6 = scmp.ne.s32.totalorder %s8793_s29, %s8789_s28  ;;  %p47_p10 = scmp.eq.s32.totalorder %s46_s19, 0 }
  0x60   : > { %p57_p3 = scmp.eq.s32.totalorder %s8797_s30, 0  ;;  %p12832_p5 = scmp.eq.s32.totalorder %s8937_s0, 1 }
  0x61   : > { %p7730_p9 = scmp.lt.s32.totalorder %s8797_s30, 2  ;;  %s9049_s27 = sand.u32 1, %s8793_s29  }
  0x62   : > { %p9040_p7 = por %p12832_p5, %p56_p6  ;;  %p58_p12 = por %p57_p3, %p56_p6 }
  0x63   : > { %s9046_s24 = scalar_select %p47_p10, %s8793_s29, %s49_s20  }
  0x64   : > { %s12833_s22 = scalar_select %p9040_p7, 1, 0 }
  0x65   : > { %12835 = sst [smem:[#allocation29_spill]] %s9046_s24  ;;  %s12650_s25 = sand.u32 1, %s8797_s30  }
  0x66   : > { %12834 = sst [smem:[#allocation28_spill]] %s12833_s22  ;;  %p9052_p0 = pnand %p7730_p9, %p58_p12 }
  0x67   : > { %s9057_s4 = sshll.u32 %s8797_s30, 4  ;;  %s594_s5 = scalar_lea.vmem [#allocation5], %s9049_s27 }
  0x68   : > { %s12836_s2 = scalar_select %p9052_p0, 1, 0 }
  0x69   : > { %s601_s6 = sshll.u32 %s594_s5, 4  ;;  %s12837_s17 = sld [smem:[#allocation97_spill]]  ;;  %s9066_s6 = int_to_ptr.vmem [resolvable:$true] %s601_s6 }
  0x6a   : > { %s9070_s8 = scalar_lea.sflag [#allocation6], %s12650_s25  ;;  %p9076_p2 = pneg %p9052_p0 }
  0x6c   : > { %s12838_s24 = scalar_select %p9076_p2, 1, 0 }
  0x6f   : > { %s9064_s20 = scalar_lea.hbm %s12837_s17, %s9057_s4  ;;  %s8514_s19 = scalar_lea.hbm %s12837_s17, 32 }
  0x70   : > { %s8509_s12 = scalar_lea.hbm %s9064_s20, 16  ;;  %p8515_p3 = scmp.lt.u32.totalorder %s9064_s20, %s12837_s17 }
  0x71   : > { %p8510_p1 = scmp.ne.s32.totalorder %s9064_s20, %s8509_s12  ;;  %p8516_p5 = scmp.lt.u32.totalorder %s8514_s19, %s8509_s12 }
  0x72   : > { %p8518_p12 = scmp.lt.u32.totalorder %s8509_s12, %s9064_s20 }
  0x73   : > { %p8512_p6 = pnand %p9076_p2, %p8510_p1  ;;  %p8517_p9 = por %p8516_p5, %p8515_p3 }
  0x75   : > { %p8513_p10 = pneg %p8512_p6  ;;  %p8519_p7 = por %p8518_p12, %p8517_p9 }
  0x77   : > { %p8520_p4 = pnand %p8519_p7, %p8513_p10 }
  0x79   : > { %8523 = shalt.err (!%p8520_p4)
}
  0x7a   : > { %s8524_s25 = scalar_lea.vmem %s9066_s6, 16  ;;  %s8803_s26 = smov [#allocation5]  }
  0x7b   : > { %p8525_p1 = scmp.ne.s32.totalorder %s9066_s6, %s8524_s25  ;;  %s8529_s5 = sshll.u32 %s8803_s26, 4  ;;  %s8530_s5 = int_to_ptr.vmem [resolvable:$false] %s8529_s5 }
  0x7c   : > { %s8531_s29 = scalar_lea.vmem %s8530_s5, 32  ;;  %p8532_p11 = scmp.lt.s32.totalorder %s9066_s6, %s8530_s5 }
  0x7d   : > { %p8527_p6 = pnand %p8525_p1, %p9076_p2  ;;  %p8533_p13 = scmp.lt.s32.totalorder %s8531_s29, %s8524_s25 }
  0x7f   : > { %p8528_p8 = pneg %p8527_p6  ;;  %p8534_p3 = por %p8533_p13, %p8532_p11 }
  0x81   : > { %p8535_p5 = pnand %p8534_p3, %p8528_p8 }
  0x83   : > { %8538 = shalt.err (!%p8535_p5)
}
  0x84   : > { %7712 = dma.hbm_to_vmem [thread:$0]  (!%p9052_p0), %s9064_s20, 16, %s9066_s6, %s9070_s8  }
  0x85   : > { %s12839_s3 = sld [smem:[#allocation99_spill]]  ;;  %s628_s25 = scalar_lea.vmem [#allocation8], %s9049_s27 }
  0x86   : > { %s635_s26 = sshll.u32 %s628_s25, 4  ;;  %s8804_s5 = smov [#allocation13]   ;;  %s9107_s26 = int_to_ptr.vmem [resolvable:$true] %s635_s26 }
  0x87   : > { %s9109_s29 = sshll.u32 %s8804_s5, 4  ;;  %s12840_s17 = sand.u32 1, %s8797_s30   ;;  %s521_s29 = int_to_ptr.vmem [resolvable:$true] %s9109_s29 }
  0x88   : > { %s9113_s22 = scalar_lea.sflag [#allocation9], %s12840_s17 }
  0x8b   : > { %s9104_s19 = scalar_lea.hbm %s12839_s3, %s9057_s4  ;;  %s8544_s11 = scalar_lea.hbm %s12839_s3, 32 }
  0x8c   : > { %s8539_s6 = scalar_lea.hbm %s9104_s19, 16  ;;  %p8545_p13 = scmp.lt.u32.totalorder %s9104_s19, %s12839_s3 }
  0x8d   : > { %p8540_p4 = scmp.ne.s32.totalorder %s9104_s19, %s8539_s6  ;;  %p8546_p7 = scmp.lt.u32.totalorder %s8544_s11, %s8539_s6 }
  0x8e   : > { %p8548_p9 = scmp.lt.u32.totalorder %s8539_s6, %s9104_s19 }
  0x8f   : > { %p8542_p8 = pnand %p8540_p4, %p9076_p2  ;;  %p8547_p10 = por %p8546_p7, %p8545_p13 }
  0x91   : > { %p8543_p11 = pneg %p8542_p8  ;;  %p8549_p12 = por %p8548_p9, %p8547_p10 }
  0x93   : > { %p8550_p1 = pnand %p8549_p12, %p8543_p11 }
  0x95   : > { %8553 = shalt.err (!%p8550_p1)
}
  0x96   : > { %s8554_s17 = scalar_lea.vmem %s9107_s26, 16  ;;  %s8805_s25 = smov [#allocation8]  }
  0x97   : > { %p8555_p6 = scmp.ne.s32.totalorder %s9107_s26, %s8554_s17  ;;  %s8559_s5 = sshll.u32 %s8805_s25, 4  ;;  %s8560_s5 = int_to_ptr.vmem [resolvable:$false] %s8559_s5 }
  0x98   : > { %s8561_s14 = scalar_lea.vmem %s8560_s5, 32  ;;  %p8562_p4 = scmp.lt.s32.totalorder %s9107_s26, %s8560_s5 }
  0x99   : > { %p8557_p3 = pnand %p8555_p6, %p9076_p2  ;;  %p8563_p8 = scmp.lt.s32.totalorder %s8561_s14, %s8554_s17 }
  0x9b   : > { %p8558_p5 = pneg %p8557_p3  ;;  %p8564_p13 = por %p8563_p8, %p8562_p4 }
  0x9d   : > { %p8565_p7 = pnand %p8564_p13, %p8558_p5 }
  0x9f   : > { %8568 = shalt.err (!%p8565_p7)
}
  0xa0   : > { %7718 = dma.hbm_to_vmem [thread:$0]  (!%p9052_p0), %s9104_s19, 16, %s9107_s26, %s9113_s22  }
  0xa1   : > { %s8569_s20 = scalar_lea.hbm %s12627_s10, 112  ;;  %p12841_p10 = scmp.ne.s32.totalorder %s12829_s18, 0 }
  0xa2   : > { %p8570_p11 = scmp.ne.s32.totalorder %s12627_s10, %s8569_s20  ;;  %p8576_p1 = scmp.lt.u32.totalorder %s8569_s20, %s12627_s10 }
  0xa4   : > { %p8572_p9 = pnand %p8570_p11, %p12841_p10 }
  0xa6   : > { %p8573_p12 = pneg %p8572_p9 }
  0xa8   : > { %p8578_p6 = pnand %p8576_p1, %p8573_p12 }
  0xaa   : > { %8581 = shalt.err (!%p8578_p6)
}
  0xab   : > { %s8582_s5 = scalar_lea.vmem %s521_s29, 112  ;;  %s8589_s19 = scalar_lea.vmem %s521_s29, 128 }
  0xac   : > { %p8583_p3 = scmp.ne.s32.totalorder %s521_s29, %s8582_s5  ;;  %p8590_p8 = scmp.lt.s32.totalorder %s521_s29, %s521_s29 }
  0xad   : > { %p8591_p13 = scmp.lt.s32.totalorder %s8589_s19, %s8582_s5 }
  0xae   : > { %p8585_p5 = pnand %p8583_p3, %p12841_p10 }
  0xaf   : > { %p8592_p7 = por %p8591_p13, %p8590_p8 }
  0xb0   : > { %p8586_p4 = pneg %p8585_p5 }
  0xb2   : > { %p8593_p0 = pnand %p8592_p7, %p8586_p4 }
  0xb4   : > { %8596 = shalt.err (!%p8593_p0)
}
  0xb5   : > { %p12842_p11 = scmp.ne.s32.totalorder %s12827_s23, 0  ;;  %s8806_s16 = smov [#allocation16]  }
  0xb6   : > { %s550_s6 = sshll.u32 %s8806_s16, 4  ;;  %s8597_s11 = scalar_lea.hbm %s12632_s15, 1024  ;;  %s551_s6 = int_to_ptr.vmem [resolvable:$true] %s550_s6 }
  0xb7   : > { %7699 = dma.hbm_to_vmem [thread:$0]  (!%p12842_p11), %s12627_s10, 112, %s521_s29, [#allocation12]  }
  0xb8   : > { %p8598_p9 = scmp.ne.s32.totalorder %s12632_s15, %s8597_s11  ;;  %p8604_p1 = scmp.lt.u32.totalorder %s8597_s11, %s12632_s15 }
  0xba   : > { %p8600_p0 = pnand %p8598_p9, %p12841_p10 }
  0xbc   : > { %p8601_p12 = pneg %p8600_p0 }
  0xbe   : > { %p8606_p6 = pnand %p8604_p1, %p8601_p12 }
  0xc0   : > { %8609 = shalt.err (!%p8606_p6)
}
  0xc1   : > { %s8610_s29 = scalar_lea.vmem %s551_s6, 1024  ;;  %p8618_p8 = scmp.lt.s32.totalorder %s551_s6, %s551_s6 }
  0xc2   : > { %p8611_p3 = scmp.ne.s32.totalorder %s551_s6, %s8610_s29  ;;  %p8619_p13 = scmp.lt.s32.totalorder %s8610_s29, %s8610_s29 }
  0xc4   : > { %p8613_p5 = pnand %p8611_p3, %p12841_p10  ;;  %p8620_p7 = por %p8619_p13, %p8618_p8 }
  0xc6   : > { %p8614_p4 = pneg %p8613_p5 }
  0xc8   : > { %p8621_p2 = pnand %p8620_p7, %p8614_p4 }
  0xca   : > { %8624 = shalt.err (!%p8621_p2)
}
  0xcb   : > { %s12664_s26 = smov 64   ;;  %s12665_s14 = smov 4  }
  0xcc   : > { %7705 = dma.hbm_to_vmem [thread:$0]  (!%p12842_p11), %s12632_s15, 1024, %s551_s6, [#allocation15], %s12664_s26, %s12664_s26, %s12665_s14  }
  0xcd   : > { %s6676_s20 = sshll.u32 %s9049_s27, 6  ;;  %s6907_s12 = sshll.u32 %s8797_s30, 10 }
  0xce   : > { %s12843_s25 = sld [smem:[#allocation96_spill]]  ;;  %s574_s19 = scalar_lea.vmem [#allocation2], %s6676_s20 }
  0xcf   : > { %s581_s23 = sshll.u32 %s574_s19, 4  ;;  %s571_s29 = scalar_lea.sflag [#allocation3], %s9049_s27  ;;  %s9184_s23 = int_to_ptr.vmem [resolvable:$true] %s581_s23 }
  0xd0   : > { %p12844_p10 = scmp.ne.s32.totalorder %s12838_s24, 0 }
  0xd4   : > { %s9182_s5 = scalar_lea.hbm %s12843_s25, %s6907_s12  ;;  %s8630_s18 = scalar_lea.hbm %s12843_s25, 2048 }
  0xd5   : > { %s8625_s3 = scalar_lea.hbm %s9182_s5, 1024  ;;  %p8631_p0 = scmp.lt.u32.totalorder %s9182_s5, %s12843_s25 }
  0xd6   : > { %p8626_p2 = scmp.ne.s32.totalorder %s9182_s5, %s8625_s3  ;;  %p8632_p12 = scmp.lt.u32.totalorder %s8630_s18, %s8625_s3 }
  0xd7   : > { %p8634_p6 = scmp.lt.u32.totalorder %s8625_s3, %s9182_s5 }
  0xd8   : > { %p8628_p11 = pnand %p8626_p2, %p12844_p10  ;;  %p8633_p1 = por %p8632_p12, %p8631_p0 }
  0xda   : > { %p8629_p9 = pneg %p8628_p11  ;;  %p8635_p3 = por %p8634_p6, %p8633_p1 }
  0xdc   : > { %p8636_p5 = pnand %p8635_p3, %p8629_p9 }
  0xde   : > { %8639 = shalt.err (!%p8636_p5)
}
  0xdf   : > { %s8640_s20 = scalar_lea.vmem %s9184_s23, 1024  ;;  %s8809_s17 = smov [#allocation2]  }
  0xe0   : > { %p8641_p4 = scmp.ne.s32.totalorder %s9184_s23, %s8640_s20  ;;  %s8645_s19 = sshll.u32 %s8809_s17, 4  ;;  %s8646_s19 = int_to_ptr.vmem [resolvable:$false] %s8645_s19 }
  0xe1   : > { %s8647_s6 = scalar_lea.vmem %s8646_s19, 2048  ;;  %p8648_p7 = scmp.lt.s32.totalorder %s9184_s23, %s8646_s19 }
  0xe2   : > { %p8643_p8 = pnand %p8641_p4, %p12844_p10  ;;  %p8649_p2 = scmp.lt.s32.totalorder %s8647_s6, %s8640_s20 }
  0xe4   : > { %p8644_p13 = pneg %p8643_p8  ;;  %p8650_p11 = por %p8649_p2, %p8648_p7 }
  0xe6   : > { %p8651_p0 = pnand %p8650_p11, %p8644_p13 }
  0xe8   : > { %8654 = shalt.err (!%p8651_p0)
}
  0xe9   : > { %p12845_p9 = scmp.ne.s32.totalorder %s12836_s2, 0  ;;  %s12846_s3 = smov 8  }
  0xea   : > { %s12847_s16 = smov 128   ;;  %s12848_s11 = sld [smem:[#allocation98_spill]] }
  0xeb   : > { %7709 = dma.hbm_to_vmem [thread:$0]  (!%p12845_p9), %s9182_s5, 1024, %s9184_s23, %s571_s29, %s12847_s16, %s12847_s16, %s12846_s3  }
  0xec   : > { %s611_s17 = scalar_lea.vmem [#allocation7], %s9049_s27  ;;  %s6682_s6 = sshll.u32 %s9049_s27, 3 }
  0xed   : > { %s618_s19 = sshll.u32 %s611_s17, 4  ;;  %s619_s19 = int_to_ptr.vmem [resolvable:$true] %s618_s19 }
  0xf0   : > { %s9217_s20 = scalar_lea.hbm %s12848_s11, %s9057_s4  ;;  %s8660_s23 = scalar_lea.hbm %s12848_s11, 32 }
  0xf1   : > { %s8655_s26 = scalar_lea.hbm %s9217_s20, 16  ;;  %p8661_p3 = scmp.lt.u32.totalorder %s9217_s20, %s12848_s11 }
  0xf2   : > { %p8656_p12 = scmp.ne.s32.totalorder %s9217_s20, %s8655_s26  ;;  %p8662_p5 = scmp.lt.u32.totalorder %s8660_s23, %s8655_s26 }
  0xf3   : > { %p8664_p8 = scmp.lt.u32.totalorder %s8655_s26, %s9217_s20 }
  0xf4   : > { %p8658_p1 = pnand %p8656_p12, %p12844_p10  ;;  %p8663_p4 = por %p8662_p5, %p8661_p3 }
  0xf6   : > { %p8659_p6 = pneg %p8658_p1  ;;  %p8665_p13 = por %p8664_p8, %p8663_p4 }
  0xf8   : > { %p8666_p7 = pnand %p8665_p13, %p8659_p6 }
  0xfa   : > { %8669 = shalt.err (!%p8666_p7)
}
  0xfb   : > { %s8670_s3 = scalar_lea.vmem %s619_s19, 16  ;;  %s8810_s16 = smov [#allocation7]  }
  0xfc   : > { %p8671_p2 = scmp.ne.s32.totalorder %s619_s19, %s8670_s3  ;;  %s8675_s18 = sshll.u32 %s8810_s16, 4  ;;  %s8676_s18 = int_to_ptr.vmem [resolvable:$false] %s8675_s18 }
  0xfd   : > { %s8677_s14 = scalar_lea.vmem %s8676_s18, 32  ;;  %p8678_p12 = scmp.lt.s32.totalorder %s619_s19, %s8676_s18 }
  0xfe   : > { %p8673_p11 = pnand %p8671_p2, %p12844_p10  ;;  %p8679_p1 = scmp.lt.s32.totalorder %s8677_s14, %s8670_s3 }
 0x100   : > { %p8674_p0 = pneg %p8673_p11  ;;  %p8680_p9 = por %p8679_p1, %p8678_p12 }
 0x102   : > { %p8681_p3 = pnand %p8680_p9, %p8674_p0 }
 0x104   : > { %8684 = shalt.err (!%p8681_p3)
}
 0x105   : > { %p12849_p5 = scmp.ne.s32.totalorder %s12836_s2, 0  ;;  %s6908_s26 = sshll.u32 %s8797_s30, 7 }
 0x106   : > { %s9243_s5 = scalar_lea.hbm %s12624_s7, %s6908_s26  ;;  %s670_s23 = scalar_lea.vmem [#allocation10], %s6682_s6 }
 0x107   : > { %7715 = dma.hbm_to_vmem [thread:$0]  (!%p12849_p5), %s9217_s20, 16, %s619_s19, %s9070_s8  }
 0x108   : > { %s677_s29 = sshll.u32 %s670_s23, 4  ;;  %s8685_s4 = scalar_lea.hbm %s9243_s5, 128  ;;  %s9247_s29 = int_to_ptr.vmem [resolvable:$true] %s677_s29 }
 0x109   : > { %p8686_p9 = scmp.ne.s32.totalorder %s9243_s5, %s8685_s4  ;;  %s8690_s19 = scalar_lea.hbm %s12624_s7, 256 }
 0x10a   : > { %p8691_p8 = scmp.lt.u32.totalorder %s9243_s5, %s12624_s7  ;;  %p8692_p13 = scmp.lt.u32.totalorder %s8690_s19, %s8685_s4 }
 0x10b   : > { %p8688_p6 = pnand %p8686_p9, %p12844_p10  ;;  %p8694_p2 = scmp.lt.u32.totalorder %s8685_s4, %s9243_s5 }
 0x10c   : > { %p8693_p7 = por %p8692_p13, %p8691_p8 }
 0x10d   : > { %p8689_p4 = pneg %p8688_p6 }
 0x10e   : > { %p8695_p11 = por %p8694_p2, %p8693_p7 }
 0x110   : > { %p8696_p0 = pnand %p8695_p11, %p8689_p4 }
 0x112   : > { %8699 = shalt.err (!%p8696_p0)
}
 0x113   : > { %s8700_s27 = scalar_lea.vmem %s9247_s29, 128  ;;  %s8811_s6 = smov [#allocation10]  }
 0x114   : > { %p8701_p12 = scmp.ne.s32.totalorder %s9247_s29, %s8700_s27  ;;  %s8705_s18 = sshll.u32 %s8811_s6, 4  ;;  %s8706_s18 = int_to_ptr.vmem [resolvable:$false] %s8705_s18 }
 0x115   : > { %s8707_s14 = scalar_lea.vmem %s8706_s18, 256  ;;  %p8708_p9 = scmp.lt.s32.totalorder %s9247_s29, %s8706_s18 }
 0x116   : > { %p8703_p1 = pnand %p8701_p12, %p12844_p10  ;;  %p8709_p6 = scmp.lt.s32.totalorder %s8707_s14, %s8700_s27 }
 0x118   : > { %p8704_p3 = pneg %p8703_p1  ;;  %p8710_p8 = por %p8709_p6, %p8708_p9 }
 0x11a   : > { %p8711_p13 = pnand %p8710_p8, %p8704_p3 }
 0x11c   : > { %8714 = shalt.err (!%p8711_p13)
}
 0x11d   : > { %s12850_s26 = smov 4   ;;  %s12851_s12 = smov 64  }
 0x11e   : > { %7721 = dma.hbm_to_vmem [thread:$0]  (!%p12849_p5), %s9243_s5, 128, %s9247_s29, %s9113_s22, %s12851_s12, %s12851_s12, %s12850_s26  }
 0x11f   : > { %p12852_p10 = scmp.ne.s32.totalorder %s12826_s21, 0 }
 0x121   : > { %689 = sbr.rel (%p12852_p10) target bundleno = 3076 (0xc04), region = 92 }
 0x128   : > { %s9277_s24 = sand.u32 1, %s8789_s28   ;;  %p12853_p4 = scmp.ne.s32.totalorder %s12823_s1, 0 }
 0x129   : > { %s6686_s17 = sshll.u32 %s9277_s24, 6  ;;  %s692_s23 = scalar_lea.sflag [#allocation3], %s9277_s24 }
 0x12a   : > { %s9283_s2 = scalar_lea.vmem [#allocation2], %s6686_s17 }
 0x12b   : > { %8760 = dma.done.wait (%p12853_p4), %s692_s23, 1024  }
 0x12c   : > { %8762 = vsyncadd (%p12853_p4), %s692_s23, 4294966272  ;;  %s700_s21 = sand.u32 1, %s8937_s0   ;;  %s703_s5 = scalar_lea.vmem [#allocation5], %s9277_s24 }
 0x12d   : > { %s701_s22 = scalar_lea.sflag [#allocation6], %s700_s21 }
 0x12e   : > { %8764 = dma.done.wait (%p12853_p4), %s701_s22, 32  }
 0x12f   : > { %8766 = vsyncadd (%p12853_p4), %s701_s22, 4294967264  ;;  %s711_s29 = scalar_lea.vmem [#allocation7], %s9277_s24  ;;  %s717_s4 = scalar_lea.sflag [#allocation9], %s700_s21 }
 0x130   : > { %s719_s8 = scalar_lea.vmem [#allocation8], %s9277_s24 }
 0x131   : > { %8768 = dma.done.wait (%p12853_p4), %s717_s4, 144  }
 0x132   : > { %8770 = vsyncadd (%p12853_p4), %s717_s4, 4294967152  ;;  %s6687_s20 = sshll.u32 %s9277_s24, 3  ;;  %p12854_p5 = scmp.eq.s32.totalorder %s8937_s0, 0 }
 0x133   : > { %s9302_s19 = scalar_lea.vmem [#allocation10], %s6687_s20 }
 0x134   : > { %8772 = dma.done.wait (%p12854_p5), [#allocation12], 368   ;;  %p12855_p7 = pmov %p12854_p5 }
 0x135   : > { %p12856_p2 = pmov %p12854_p5 }
 0x136   : > { %8774 = vsyncadd (%p12855_p7), [#allocation12], 4294966928 }
 0x137   : > { %8776 = dma.done.wait (%p12856_p2), [#allocation15], 1040   ;;  %p12857_p11 = pmov %p12856_p2 }
 0x138   : > { %v845_v0 = vld [vmem:[%s9283_s2] sm:$0xff]  ;;  %v847_v1 = vld [vmem:[%s9283_s2 + $0x10] sm:$0xff]  ;;  %v846_v2 = vld [vmem:[%s9283_s2 + $0x8] sm:$0xff]  ;;  %s12858_s21 = sld [smem:[#allocation107_spill]]  ;;  %s12904_s4 = sld [smem:[#allocation106_spill]]  ;;  %vm1925_vm0 = vcmask 1043456  }
 0x139   : > { %8778 = vsyncadd (%p12857_p11), [#allocation15], 4294966256  ;;  %853 = vadd.xlane.f32.xlu0 %v845_v0  ;;  %857 = vadd.xlane.f32.xlu1 %v847_v1  ;;  %v848_v3 = vld [vmem:[%s9283_s2 + $0x18] sm:$0xff]  ;;  %v849_v4 = vld [vmem:[%s9283_s2 + $0x20] sm:$0xff]  ;;  %p829_p0 = scmp.lt.s32.totalorder %s8937_s0, 1  ;;  %s12912_s16 = sld [smem:[#allocation102_spill]] }
 0x13a   : > { %v850_v5 = vld [vmem:[%s9283_s2 + $0x28] sm:$0xff]  ;;  %v851_v6 = vld [vmem:[%s9283_s2 + $0x30] sm:$0xff]  ;;  %v852_v7 = vld [vmem:[%s9283_s2 + $0x38] sm:$0xff]  ;;  %vm1876_vm1 = vcmask 31744   ;;  %s12921_s14 = sld [smem:[#allocation104_spill]]  ;;  %vm2624_vm2 = vcmask 130048  }
 0x13b   : > { %v7844_v8 = vld [vmem:[%s12626_s9 + $0x4] ss:$28 sps:$4 sm:$0xff]   ;;  %v7846_v9 = vld [vmem:[%s12626_s9 + $0xc] ss:$28 sps:$4 sm:$0xff]   ;;  %v7850_v12 = vld [vmem:[%s12626_s9 + $0x3c] ss:$28 sps:$4 sm:$0xff]  }
 0x13c   : > { %v7848_v10 = vld [vmem:[%s12626_s9] ss:$28 sps:$4 sm:$0xff]   ;;  %v7849_v11 = vld [vmem:[%s12626_s9 + $0x8] ss:$28 sps:$4 sm:$0xff]   ;;  %1366 = vmatprep.subr.bf16.mxu0 %v7844_v8  ;;  %1439 = vmatprep.subr.bf16.mxu1 %v7846_v9  ;;  %v7854_v46 = vld [vmem:[%s12626_s9 + $0x38] ss:$28 sps:$4 sm:$0xff]  }
 0x13d   : > { %855 = vadd.xlane.f32.xlu0 %v846_v2  ;;  %859 = vadd.xlane.f32.xlu1 %v848_v3  ;;  %v7852_v13 = vld [vmem:[%s12626_s9 + $0x44] ss:$28 sps:$4 sm:$0xff]   ;;  %v7856_v48 = vld [vmem:[%s12626_s9 + $0x74] ss:$28 sps:$4 sm:$0xff]   ;;  %v7858_v49 = vld [vmem:[%s12626_s9 + $0x7c] ss:$28 sps:$4 sm:$0xff]  }
 0x13e   : > { %1367 = vmatpush1.bf16.msra.mxu0 %v7848_v10  ;;  %1440 = vmatpush1.bf16.msra.mxu1 %v7849_v11  ;;  %v7855_v47 = vld [vmem:[%s12626_s9 + $0x40] ss:$28 sps:$4 sm:$0xff]   ;;  %v7860_v50 = vld [vmem:[%s12626_s9 + $0x70] ss:$28 sps:$4 sm:$0xff]   ;;  %v7861_v51 = vld [vmem:[%s12626_s9 + $0x78] ss:$28 sps:$4 sm:$0xff]  }
 0x13f   : > { %1368 = vmatprep.subr.bf16.mxu0 %v7850_v12  ;;  %1441 = vmatprep.subr.bf16.mxu1 %v7852_v13  ;;  %v7862_v52 = vld [vmem:[%s12626_s9 + $0xac] ss:$28 sps:$4 sm:$0xff]   ;;  %v7864_v53 = vld [vmem:[%s12626_s9 + $0xb4] ss:$28 sps:$4 sm:$0xff]   ;;  %v7868_v56 = vld [vmem:[%s12626_s9 + $0xe4] ss:$28 sps:$4 sm:$0xff]  }
 0x140   : > { %v7866_v54 = vld [vmem:[%s12626_s9 + $0xa8] ss:$28 sps:$4 sm:$0xff]   ;;  %v7867_v55 = vld [vmem:[%s12626_s9 + $0xb0] ss:$28 sps:$4 sm:$0xff]   ;;  %v7872_v58 = vld [vmem:[%s12626_s9 + $0xe0] ss:$28 sps:$4 sm:$0xff]  }
 0x141   : > { %861 = vadd.xlane.f32.xlu0 %v849_v4  ;;  %863 = vadd.xlane.f32.xlu1 %v850_v5  ;;  %v7870_v57 = vld [vmem:[%s12626_s9 + $0xec] ss:$28 sps:$4 sm:$0xff]   ;;  %v7874_v60 = vld [vmem:[%s12626_s9 + $0x11c] ss:$28 sps:$4 sm:$0xff]   ;;  %v7876_v61 = vld [vmem:[%s12626_s9 + $0x124] ss:$28 sps:$4 sm:$0xff]  }
 0x142   : > { %1369 = vmatpush1.bf16.msra.mxu0 %v7854_v46  ;;  %1442 = vmatpush1.bf16.msra.mxu1 %v7855_v47  ;;  %v7873_v59 = vld [vmem:[%s12626_s9 + $0xe8] ss:$28 sps:$4 sm:$0xff]   ;;  %v7878_v62 = vld [vmem:[%s12626_s9 + $0x118] ss:$28 sps:$4 sm:$0xff]   ;;  %v7879_v63 = vld [vmem:[%s12626_s9 + $0x120] ss:$28 sps:$4 sm:$0xff]  }
 0x143   : > { %1370 = vmatprep.subr.bf16.mxu0 %v7856_v48  ;;  %1443 = vmatprep.subr.bf16.mxu1 %v7858_v49  ;;  %v8812_v8 = vmov 0   ;;  %v7894_v9 = vld [vmem:[%s12626_s9 + $0x14] ss:$28 sps:$4 sm:$0xff]   ;;  %s12934_s23 = sld [smem:[#allocation100_spill]]  ;;  %s8813_s3 = smov 32   ;;  %vm2208_vm3 = vcmask 261120  }
 0x144   : > { %1398 = vmatprep.mubr.bf16.mxu0 %v8812_v8  ;;  %1471 = vmatprep.mubr.bf16.mxu1 %v8812_v8  ;;  %v9456_v10 = vld [vmem:[%s12626_s9 + $0x18] ss:$28 sps:$4 sm:$0xff]   ;;  %s8817_s6 = smov 1   ;;  %vm2217_vm4 = vcmask 523264   ;;  %vm2226_vm6 = vcmask 785408   ;;  %s8818_s18 = smov [#allocation17]  }
 0x145   : > { %865 = vadd.xlane.f32.xlu0 %v851_v6  ;;  %867 = vadd.xlane.f32.xlu1 %v852_v7 }
 0x146   : > { %1371 = vmatpush1.bf16.msra.mxu0 %v7860_v50  ;;  %1444 = vmatpush1.bf16.msra.mxu1 %v7861_v51 }
 0x147   : > { %1372 = vmatprep.subr.bf16.mxu0 %v7862_v52  ;;  %1445 = vmatprep.subr.bf16.mxu1 %v7864_v53 }
 0x14a   : > { %1373 = vmatpush1.bf16.msra.mxu0 %v7866_v54  ;;  %1446 = vmatpush1.bf16.msra.mxu1 %v7867_v55  ;;  %v9474_v54 = vld [vmem:[%s703_s5] ss:$0 sm:$0xff]  ;;  %s830_s5 = scalar_select %p829_p0, %s8937_s0, 1 }
 0x14b   : > { %1374 = vmatprep.subr.bf16.mxu0 %v7868_v56  ;;  %1447 = vmatprep.subr.bf16.mxu1 %v7870_v57 }
 0x14c   : > { %s10268_s20 = sshll.u32 %s830_s5, 6  ;;  %s12935_s5 = sld [smem:[#allocation101_spill]] }
 0x14d   : > { %s10274_s27 = scalar_lea.vmem %s12912_s16, %s10268_s20  ;;  %s10413_s22 = scalar_lea.vmem %s12934_s23, %s10268_s20 }
 0x14e   : > { %1375 = vmatpush1.bf16.msra.mxu0 %v7872_v58  ;;  %1448 = vmatpush1.bf16.msra.mxu1 %v7873_v59  ;;  %s8815_s16 = smov 96  }
 0x14f   : > { %1376 = vmatprep.subr.bf16.mxu0 %v7874_v60  ;;  %1449 = vmatprep.subr.bf16.mxu1 %v7876_v61 }
 0x152   : > { %1377 = vmatpush1.bf16.msra.mxu0 %v7878_v62  ;;  %1450 = vmatpush1.bf16.msra.mxu1 %v7879_v63  ;;  %v7898_v62 = vld [vmem:[%s12626_s9 + $0x4c] ss:$28 sps:$4 sm:$0xff]   ;;  %s10422_s1 = scalar_lea.vmem %s12935_s5, %s10268_s20  ;;  %s8814_s20 = smov 64  }
 0x153   : > { %v7899_v63 = vld [vmem:[%s12626_s9 + $0x50] ss:$28 sps:$4 sm:$0xff]  }
 0x1c6   : > { %v854_v14 = vpop.xlane.xlu0 %853  ;;  %v858_v15 = vpop.xlane.xlu1 %857 }
 0x1c7   : > { %v870_v16 = vmul.f32 0.0078125, %v854_v14  ;;  %v872_v17 = vmul.f32 0.0078125, %v858_v15 }
 0x1c9   : > { %v9338_v18 = vsub.f32 %v845_v0, %v870_v16  ;;  %v9340_v19 = vsub.f32 %v847_v1, %v872_v17  ;;  %v7880_v0 = vld [vmem:[%s12626_s9 + $0x154] ss:$28 sps:$4 sm:$0xff]   ;;  %v7882_v1 = vld [vmem:[%s12626_s9 + $0x15c] ss:$28 sps:$4 sm:$0xff]   ;;  %v12666_v16 = vlaneseq }
 0x1ca   : > { %v856_v20 = vpop.xlane.xlu0 %855  ;;  %v860_v21 = vpop.xlane.xlu1 %859  ;;  %1378 = vmatprep.subr.bf16.mxu0 %v7880_v0  ;;  %1451 = vmatprep.subr.bf16.mxu1 %v7882_v1 }
 0x1cb   : > { %v871_v22 = vmul.f32 0.0078125, %v856_v20  ;;  %v886_v23 = vmul.f32 %v9338_v18, %v9338_v18  ;;  %v873_v24 = vmul.f32 0.0078125, %v860_v21  ;;  %v888_v25 = vmul.f32 %v9340_v19, %v9340_v19 }
 0x1cd   : > { %894 = vadd.xlane.f32.xlu0 %v886_v23  ;;  %v9346_v26 = vsub.f32 %v846_v2, %v871_v22  ;;  %v9348_v27 = vsub.f32 %v848_v3, %v873_v24  ;;  %v7884_v2 = vld [vmem:[%s12626_s9 + $0x150] ss:$28 sps:$4 sm:$0xff]   ;;  %v7885_v3 = vld [vmem:[%s12626_s9 + $0x158] ss:$28 sps:$4 sm:$0xff]  }
 0x1ce   : > { %v862_v28 = vpop.xlane.xlu0 %861  ;;  %v864_v29 = vpop.xlane.xlu1 %863  ;;  %1379 = vmatpush1.bf16.msra.mxu0 %v7884_v2  ;;  %1452 = vmatpush1.bf16.msra.mxu1 %v7885_v3  ;;  %v7896_v2 = vld [vmem:[%s12626_s9 + $0x48] ss:$28 sps:$4 sm:$0xff]  }
 0x1cf   : > { %v874_v30 = vmul.f32 0.0078125, %v862_v28  ;;  %v887_v31 = vmul.f32 %v9346_v26, %v9346_v26  ;;  %v875_v32 = vmul.f32 0.0078125, %v864_v29  ;;  %v889_v33 = vmul.f32 %v9348_v27, %v9348_v27  ;;  %v918_v29 = vld [vmem:[%s711_s29] sm:$0x1] }
 0x1d1   : > { %898 = vadd.xlane.f32.xlu0 %v888_v25  ;;  %896 = vadd.xlane.f32.xlu1 %v887_v31  ;;  %v9354_v34 = vsub.f32 %v849_v4, %v874_v30  ;;  %v9356_v35 = vsub.f32 %v850_v5, %v875_v32  ;;  %v7886_v4 = vld [vmem:[%s12626_s9 + $0x18c] ss:$28 sps:$4 sm:$0xff]   ;;  %v7888_v5 = vld [vmem:[%s12626_s9 + $0x194] ss:$28 sps:$4 sm:$0xff]   ;;  %v9460_v25 = vshrl.u32 %v12666_v16, 7 }
 0x1d2   : > { %v866_v36 = vpop.xlane.xlu0 %865  ;;  %v868_v37 = vpop.xlane.xlu1 %867  ;;  %1380 = vmatprep.subr.bf16.mxu0 %v7886_v4  ;;  %1453 = vmatprep.subr.bf16.mxu1 %v7888_v5  ;;  %v7902_v4 = vld [vmem:[%s12626_s9 + $0x84] ss:$28 sps:$4 sm:$0xff]  }
 0x1d3   : > { %v876_v38 = vmul.f32 0.0078125, %v866_v36  ;;  %v890_v39 = vmul.f32 %v9354_v34, %v9354_v34  ;;  %v877_v40 = vmul.f32 0.0078125, %v868_v37  ;;  %v891_v41 = vmul.f32 %v9356_v35, %v9356_v35  ;;  %v7903_v5 = vld [vmem:[%s12626_s9 + $0x88] ss:$28 sps:$4 sm:$0xff]  }
 0x1d4   : > { %v947_v36 = vsub.s32 0, %v9460_v25 }
 0x1d5   : > { %900 = vadd.xlane.f32.xlu1 %v889_v33  ;;  %902 = vadd.xlane.f32.xlu0 %v890_v39  ;;  %v9362_v42 = vsub.f32 %v851_v6, %v876_v38  ;;  %v9364_v43 = vsub.f32 %v852_v7, %v877_v40  ;;  %v7890_v6 = vld [vmem:[%s12626_s9 + $0x188] ss:$28 sps:$4 sm:$0xff]   ;;  %v7891_v7 = vld [vmem:[%s12626_s9 + $0x190] ss:$28 sps:$4 sm:$0xff]   ;;  %v919_v33 = vadd.f32 1.0, %v918_v29 }
 0x1d6   : > { %1381 = vmatpush1.bf16.msra.mxu0 %v7890_v6  ;;  %1454 = vmatpush1.bf16.msra.mxu1 %v7891_v7  ;;  %v7908_v29 = vld [vmem:[%s12626_s9 + $0xf0] ss:$28 sps:$4 sm:$0xff]  }
 0x1d7   : > { %v892_v44 = vmul.f32 %v9362_v42, %v9362_v42  ;;  %v893_v45 = vmul.f32 %v9364_v43, %v9364_v43  ;;  %1512 = vmatprep.subr.bf16.mxu0 %v7894_v9  ;;  %7201 = vmatprep.subr.bf16.mxu1 %v9456_v10  ;;  %v9468_v46 = vrot.slane %v919_v33, %v947_v36  ;;  %v7912_v33 = vld [vmem:[%s12626_s9 + $0x128] ss:$28 sps:$4 sm:$0xff]  }
 0x1d9   : > { %904 = vadd.xlane.f32.xlu1 %v891_v41  ;;  %906 = vadd.xlane.f32.xlu0 %v892_v44 }
 0x1dd   : > { %908 = vadd.xlane.f32.xlu1 %v893_v45 }
 0x25a   : > { %v895_v11 = vpop.xlane.xlu0 %894 }
 0x25b   : > { %v910_v12 = vmul.f32 0.0078125, %v895_v11 }
 0x25d   : > { %v920_v13 = vadd.f32 1e-06, %v910_v12  ;;  %v7907_v12 = vld [vmem:[%s12626_s9 + $0xc0] ss:$28 sps:$4 sm:$0xff]  }
 0x25e   : > { %v897_v14 = vpop.xlane.xlu1 %896  ;;  %v899_v15 = vpop.xlane.xlu0 %898 }
 0x25f   : > { %7973 = vrsqrt.f32 %v920_v13  ;;  %v911_v17 = vmul.f32 0.0078125, %v897_v14  ;;  %v912_v20 = vmul.f32 0.0078125, %v899_v15 }
 0x261   : > { %v921_v21 = vadd.f32 1e-06, %v911_v17  ;;  %v922_v22 = vadd.f32 1e-06, %v912_v20  ;;  %v7904_v17 = vld [vmem:[%s12626_s9 + $0xb8] ss:$28 sps:$4 sm:$0xff]  }
 0x262   : > { %v901_v23 = vpop.xlane.xlu1 %900  ;;  %v903_v24 = vpop.xlane.xlu0 %902 }
 0x263   : > { %7975 = vrsqrt.f32 %v921_v21  ;;  %v913_v28 = vmul.f32 0.0078125, %v901_v23  ;;  %v914_v31 = vmul.f32 0.0078125, %v903_v24  ;;  %v7910_v21 = vld [vmem:[%s12626_s9 + $0xf4] ss:$28 sps:$4 sm:$0xff]  }
 0x264   : > { %7977 = vrsqrt.f32 %v922_v22  ;;  %v7911_v22 = vld [vmem:[%s12626_s9 + $0xf8] ss:$28 sps:$4 sm:$0xff]  }
 0x265   : > { %v923_v30 = vadd.f32 1e-06, %v913_v28  ;;  %v924_v39 = vadd.f32 1e-06, %v914_v31  ;;  %v7915_v31 = vld [vmem:[%s12626_s9 + $0x130] ss:$28 sps:$4 sm:$0xff]  }
 0x266   : > { %v905_v32 = vpop.xlane.xlu1 %904  ;;  %v907_v41 = vpop.xlane.xlu0 %906 }
 0x267   : > { %7979 = vrsqrt.f32 %v923_v30  ;;  %v915_v37 = vmul.f32 0.0078125, %v905_v32  ;;  %v916_v49 = vmul.f32 0.0078125, %v907_v41  ;;  %v7916_v41 = vld [vmem:[%s12626_s9 + $0x160] ss:$28 sps:$4 sm:$0xff]  }
 0x269   : > { %v7974_v38 = vpop.eup %7973  ;;  %v925_v40 = vadd.f32 1e-06, %v915_v37  ;;  %v926_v56 = vadd.f32 1e-06, %v916_v49  ;;  %v7920_v49 = vld [vmem:[%s12626_s9 + $0x198] ss:$28 sps:$4 sm:$0xff]  }
 0x26a   : > { %v909_v44 = vpop.xlane.xlu1 %908  ;;  %v936_v45 = vmul.f32 %v7974_v38, %v9338_v18  ;;  %v7918_v38 = vld [vmem:[%s12626_s9 + $0x164] ss:$28 sps:$4 sm:$0xff]  }
 0x26b   : > { %7981 = vrsqrt.f32 %v925_v40  ;;  %v917_v47 = vmul.f32 0.0078125, %v909_v44 }
 0x26c   : > { %7983 = vrsqrt.f32 %v924_v39  ;;  %v950_v51 = vmul.f32 %v9468_v46, %v936_v45  ;;  %v7919_v39 = vld [vmem:[%s12626_s9 + $0x168] ss:$28 sps:$4 sm:$0xff]   ;;  %v7922_v45 = vld [vmem:[%s12626_s9 + $0x19c] ss:$28 sps:$4 sm:$0xff]  }
 0x26d   : > { %v7976_v48 = vpop.eup %7975  ;;  %v927_v53 = vadd.f32 1e-06, %v917_v47  ;;  %v1666_v47 = vld [vmem:[%s12630_s13] sm:$0xff] }
 0x26e   : > { %v937_v50 = vmul.f32 %v7976_v48, %v9346_v26  ;;  %v7978_v52 = vpop.eup %7977  ;;  %v965_v57 = vadd.f32 %v9474_v54, %v950_v51  ;;  %v7892_v26 = vld [vmem:[%s12626_s9 + $0x10] ss:$28 sps:$4 sm:$0xff]  }
 0x26f   : > { %v938_v59 = vmul.f32 %v7978_v52, %v9340_v19  ;;  %7985 = vrsqrt.f32 %v927_v53  ;;  %v1667_v48 = vld [vmem:[%s12630_s13 + $0x8] sm:$0xff]  ;;  %v1668_v51 = vld [vmem:[%s12630_s13 + $0x10] sm:$0xff]  ;;  %v1669_v52 = vld [vmem:[%s12630_s13 + $0x18] sm:$0xff] }
 0x270   : > { %v951_v18 = vmul.f32 %v9468_v46, %v937_v50  ;;  %7987 = vrsqrt.f32 %v926_v56  ;;  %v7597_v50 = vpack.c.bf16 %v1667_v48, %v1666_v47  ;;  %v7601_v53 = vpack.c.bf16 %v1669_v52, %v1668_v51  ;;  %v1672_v56 = vld [vmem:[%s12630_s13 + $0x30] sm:$0xff] }
 0x271   : > { %v7980_v55 = vpop.eup %7979 }
 0x272   : > { %v966_v58 = vadd.f32 %v9474_v54, %v951_v18  ;;  %v939_v60 = vmul.f32 %v7980_v55, %v9348_v27  ;;  %v952_v27 = vmul.f32 %v9468_v46, %v938_v59  ;;  %v1671_v18 = vld [vmem:[%s12630_s13 + $0x28] sm:$0xff]  ;;  %v1674_v59 = vld [vmem:[%s12630_s13 + $0x40] sm:$0xff] }
 0x274   : > { %v9484_v61 = vpack.c.bf16 %v966_v58, %v965_v57  ;;  %v953_v0 = vmul.f32 %v9468_v46, %v939_v60  ;;  %v967_v7 = vadd.f32 %v9474_v54, %v952_v27  ;;  %v1673_v57 = vld [vmem:[%s12630_s13 + $0x38] sm:$0xff]  ;;  %v1675_v60 = vld [vmem:[%s12630_s13 + $0x48] sm:$0xff] }
 0x275   : > { %v7982_v19 = vpop.eup %7981  ;;  %v7609_v58 = vpack.c.bf16 %v1673_v57, %v1672_v56 }
 0x276   : > { %1399 = vmatmul.mubr.bf16.vlgmr.msra.gmra.mrb[0].mxu0 %v9484_v61  ;;  %1472 = vmatmul.mubr.bf16.vlgmr.msra.gmra.mrb[0].mxu1 %v9484_v61  ;;  %v7984_v1 = vpop.eup %7983  ;;  %v968_v3 = vadd.f32 %v9474_v54, %v953_v0  ;;  %v941_v6 = vmul.f32 %v7982_v19, %v9356_v35  ;;  %v7906_v35 = vld [vmem:[%s12626_s9 + $0xbc] ss:$28 sps:$4 sm:$0xff]   ;;  %v1678_v0 = vld [vmem:[%s12630_s13 + $0x60] sm:$0xff]  ;;  %v1679_v19 = vld [vmem:[%s12630_s13 + $0x68] sm:$0xff] }
 0x277   : > { %1513 = vmatpush1.bf16.msra.mxu0 %v7892_v26  ;;  %7202 = vmatpush3.bf16.msra.mxu1 %v9456_v10  ;;  %v940_v9 = vmul.f32 %v7984_v1, %v9354_v34  ;;  %v7900_v10 = vld [vmem:[%s12626_s9 + $0x80] ss:$28 sps:$4 sm:$0xff]   ;;  %v7613_v26 = vpack.c.bf16 %v1675_v60, %v1674_v59  ;;  %v7621_v27 = vpack.c.bf16 %v1679_v19, %v1678_v0  ;;  %v1680_v1 = vld [vmem:[%s12630_s13 + $0x70] sm:$0xff] }
 0x278   : > { %1514 = vmatprep.subr.bf16.mxu0 %v7898_v62  ;;  %7203 = vmatprep.subr.bf16.mxu1 %v7899_v63  ;;  %v9515_v11 = vpack.c.bf16 %v968_v3, %v967_v7  ;;  %v955_v34 = vmul.f32 %v9468_v46, %v941_v6  ;;  %v1677_v62 = vld [vmem:[%s12630_s13 + $0x58] sm:$0xff]  ;;  %v1053_v6 = vsub.s32 2, %v9460_v25 }
 0x279   : > { %1408 = vmatprep.mubr.bf16.mxu0 %v8812_v8  ;;  %1481 = vmatprep.mubr.bf16.mxu1 %v8812_v8  ;;  %v7986_v13 = vpop.eup %7985  ;;  %v954_v14 = vmul.f32 %v9468_v46, %v940_v9 }
 0x27a   : > { %v7988_v15 = vpop.eup %7987  ;;  %v970_v20 = vadd.f32 %v9474_v54, %v955_v34  ;;  %v943_v23 = vmul.f32 %v7986_v13, %v9364_v43  ;;  %v7914_v43 = vld [vmem:[%s12626_s9 + $0x12c] ss:$28 sps:$4 sm:$0xff]  }
 0x27b   : > { %1515 = vmatpush1.bf16.msra.mxu0 %v7896_v2  ;;  %7204 = vmatpush3.bf16.msra.mxu1 %v7899_v63  ;;  %v969_v24 = vadd.f32 %v9474_v54, %v954_v14  ;;  %v942_v28 = vmul.f32 %v7988_v15, %v9362_v42  ;;  %v1681_v2 = vld [vmem:[%s12630_s13 + $0x78] sm:$0xff] }
 0x27c   : > { %1516 = vmatprep.subr.bf16.mxu0 %v7902_v4  ;;  %7205 = vmatprep.subr.bf16.mxu1 %v7903_v5  ;;  %v957_v42 = vmul.f32 %v9468_v46, %v943_v23  ;;  %v7625_v3 = vpack.c.bf16 %v1681_v2, %v1680_v1  ;;  %v9643_v4 = vld [vmem:[#allocation13] sm:$0xff]  ;;  %v7930_v2 = vld [vmem:[%s12858_s21 + $0x58] sm:$0xff]  }
 0x27d   : > { %v9545_v30 = vpack.c.bf16 %v970_v20, %v969_v24  ;;  %v956_v32 = vmul.f32 %v9468_v46, %v942_v28  ;;  %v7923_v46 = vld [vmem:[%s12626_s9 + $0x1a0] ss:$28 sps:$4 sm:$0xff]   ;;  %v9650_v7 = vrot.slane %v9643_v4, %v947_v36 }
 0x27e   : > { %1409 = vmatmul.mubr.bf16.gmra.mrb[4].mxu0 %v9515_v11  ;;  %1482 = vmatmul.mubr.bf16.gmra.mrb[4].mxu1 %v9515_v11  ;;  %v972_v37 = vadd.f32 %v9474_v54, %v957_v42  ;;  %v7926_v42 = vld [vmem:[%s12858_s21 + $0x48] sm:$0xff]  }
 0x27f   : > { %1517 = vmatpush1.bf16.msra.mxu0 %v7900_v10  ;;  %7206 = vmatpush3.bf16.msra.mxu1 %v7903_v5  ;;  %v971_v40 = vadd.f32 %v9474_v54, %v956_v32  ;;  %v1670_v54 = vld [vmem:[%s12630_s13 + $0x20] sm:$0xff]  ;;  %v1057_v5 = vsub.s32 3, %v9460_v25  ;;  %v9656_v10 = vrot.slane %v9643_v4, %v1053_v6 }
 0x280   : > { %1518 = vmatprep.subr.bf16.mxu0 %v7906_v35  ;;  %7207 = vmatprep.subr.bf16.mxu1 %v7907_v12  ;;  %v7605_v55 = vpack.c.bf16 %v1671_v18, %v1670_v54  ;;  %v7928_v54 = vld [vmem:[%s12858_s21 + $0x50] sm:$0xff]  }
 0x281   : > { %1418 = vmatprep.mubr.bf16.mxu0 %v8812_v8  ;;  %1491 = vmatprep.mubr.bf16.mxu1 %v8812_v8  ;;  %v976_v44 = vpack.c.bf16 %v972_v37, %v971_v40  ;;  %v9653_v9 = vrot.slane %v9643_v4, %v1057_v5  ;;  %v1049_v37 = vsub.s32 1, %v9460_v25 }
 0x283   : > { %1519 = vmatpush1.bf16.msra.mxu0 %v7904_v17  ;;  %7208 = vmatpush3.bf16.msra.mxu1 %v7907_v12  ;;  %v9717_v60 = vrot.slane %v9643_v4, %v1049_v37 }
 0x284   : > { %1520 = vmatprep.subr.bf16.mxu0 %v7910_v21  ;;  %7209 = vmatprep.subr.bf16.mxu1 %v7911_v22 }
 0x286   : > { %1419 = vmatmul.mubr.bf16.gmra.mrb[8].mxu0 %v9545_v30  ;;  %1492 = vmatmul.mubr.bf16.gmra.mrb[8].mxu1 %v9545_v30 }
 0x287   : > { %1521 = vmatpush1.bf16.msra.mxu0 %v7908_v29  ;;  %7210 = vmatpush3.bf16.msra.mxu1 %v7911_v22  ;;  %v7925_v29 = vld [vmem:[%s12858_s21] sm:$0xff]  }
 0x288   : > { %1522 = vmatprep.subr.bf16.mxu0 %v7914_v43  ;;  %7211 = vmatprep.subr.bf16.mxu1 %v7915_v31 }
 0x289   : > { %1428 = vmatprep.mubr.bf16.mxu0 %v8812_v8  ;;  %1501 = vmatprep.mubr.bf16.mxu1 %v8812_v8 }
 0x28b   : > { %1523 = vmatpush1.bf16.msra.mxu0 %v7912_v33  ;;  %7212 = vmatpush3.bf16.msra.mxu1 %v7915_v31 }
 0x28c   : > { %1524 = vmatprep.subr.bf16.mxu0 %v7918_v38  ;;  %7213 = vmatprep.subr.bf16.mxu1 %v7919_v39 }
 0x28e   : > { %1429 = vmatmul.mubr.bf16.gmra.mrb[12].mxu0 %v976_v44  ;;  %1502 = vmatmul.mubr.bf16.gmra.mrb[12].mxu1 %v976_v44 }
 0x28f   : > { %1525 = vmatpush1.bf16.msra.mxu0 %v7916_v41  ;;  %7214 = vmatpush3.bf16.msra.mxu1 %v7919_v39  ;;  %v7927_v41 = vld [vmem:[%s12858_s21 + $0x8] sm:$0xff]  }
 0x290   : > { %7217 = vmatprep.mubr.bf16.mxu1 %v9484_v61  ;;  %1526 = vmatprep.subr.bf16.mxu0 %v7922_v45 }
 0x291   : > { %7215 = vmatprep.subr.bf16.mxu1 %v7923_v46  ;;  %1544 = vmatprep.mubr.bf16.mxu0 %v8812_v8 }
 0x293   : > { %1527 = vmatpush1.bf16.msra.mxu0 %v7920_v49  ;;  %7216 = vmatpush3.bf16.msra.mxu1 %v7923_v46 }
 0x294   : > { %7598 = vmatprep.subr.bf16.mxu0 %v7597_v50 }
 0x296   : > { %1545 = vmatmul.mubr.bf16.vlgmr.msra.gmra.mrb[16].mxu0 %v9484_v61  ;;  %7218 = vmatmul.mubr.bf16.vlgmr.msra.gmra.mrb[16].mxu1 %v9515_v11  ;;  %v1676_v61 = vld [vmem:[%s12630_s13 + $0x50] sm:$0xff] }
 0x297   : > { %7221 = vmatprep.mubr.bf16.mxu1 %v9545_v30  ;;  %1554 = vmatprep.mubr.bf16.mxu0 %v8812_v8  ;;  %v7617_v63 = vpack.c.bf16 %v1677_v62, %v1676_v61  ;;  %v1069_v62 = vsub.s32 6, %v9460_v25 }
 0x298   : > { %7600 = vmatpush3.bf16.msra.mxu0 %v7597_v50 }
 0x299   : > { %7602 = vmatprep.subr.bf16.mxu0 %v7601_v53 }
 0x29c   : > { %7604 = vmatpush3.bf16.msra.mxu0 %v7601_v53  ;;  %v1061_v53 = vsub.s32 4, %v9460_v25 }
 0x29d   : > { %7606 = vmatprep.subr.bf16.mxu0 %v7605_v55 }
 0x29e   : > { %1555 = vmatmul.mubr.bf16.gmra.mrb[20].mxu0 %v9515_v11  ;;  %7222 = vmatmul.mubr.bf16.gmra.mrb[20].mxu1 %v976_v44 }
 0x29f   : > { %1564 = vmatprep.mubr.bf16.mxu0 %v8812_v8 }
 0x2a0   : > { %7608 = vmatpush3.bf16.msra.mxu0 %v7605_v55 }
 0x2a1   : > { %7610 = vmatprep.subr.bf16.mxu0 %v7609_v58 }
 0x2a4   : > { %7612 = vmatpush3.bf16.msra.mxu0 %v7609_v58 }
 0x2a5   : > { %7614 = vmatprep.subr.bf16.mxu0 %v7613_v26 }
 0x2a6   : > { %1565 = vmatmul.mubr.bf16.gmra.mrb[24].mxu0 %v9545_v30 }
 0x2a7   : > { %1574 = vmatprep.mubr.bf16.mxu0 %v8812_v8  ;;  %v7924_v8 = vld [vmem:[%s12858_s21 + $0x40] sm:$0xff]  }
 0x2a8   : > { %7616 = vmatpush3.bf16.msra.mxu0 %v7613_v26 }
 0x2a9   : > { %7618 = vmatprep.subr.bf16.mxu0 %v7617_v63 }
 0x2ac   : > { %7620 = vmatpush3.bf16.msra.mxu0 %v7617_v63  ;;  %v7929_v63 = vld [vmem:[%s12858_s21 + $0x10] sm:$0xff]  }
 0x2ad   : > { %7622 = vmatprep.subr.bf16.mxu0 %v7621_v27 }
 0x2ae   : > { %1575 = vmatmul.mubr.bf16.gmra.mrb[28].mxu0 %v976_v44 }
 0x2b0   : > { %7624 = vmatpush3.bf16.msra.mxu0 %v7621_v27 }
 0x2b1   : > { %7626 = vmatprep.subr.bf16.mxu0 %v7625_v3 }
 0x2b4   : > { %7628 = vmatpush3.bf16.msra.mxu0 %v7625_v3 }
 0x2b5   : > { %7001 = vmatprep.subr.bf16.mxu0 %v7924_v8 }
 0x349   : > { %v1400_v11 = vpop.f32.mrb[0].mxu0  ;;  %v1473_v35 = vpop.f32.mrb[0].mxu1 }
 0x34a   : > { %v9659_v12 = vadd.f32 %v1400_v11, %v9650_v7  ;;  %v9661_v34 = vpop.f32.mrb[1].mxu0  ;;  %v1475_v13 = vpop.f32.mrb[1].mxu1  ;;  %v1474_v20 = vadd.f32 %v1473_v35, %v9656_v10 }
 0x34b   : > { %v9664_v14 = vadd.f32 %v1475_v13, %v9653_v9  ;;  %v1404_v15 = vpop.f32.mrb[2].mxu0  ;;  %v1477_v36 = vpop.f32.mrb[2].mxu1  ;;  %v9739_v6 = vadd.f32 %v9661_v34, %v9717_v60  ;;  %v9742_v13 = vrot.slane %v9643_v4, %v1061_v53 }
 0x34c   : > { %12859 = vst [vmem:[#allocation30_spill] sm:$0xff] %v9659_v12  ;;  %v1650_v17 = vmul.f32 %v9659_v12, %v9659_v12  ;;  %v9670_v21 = vadd.f32 %v1404_v15, %v9650_v7  ;;  %v1478_v22 = vadd.f32 %v1477_v36, %v9656_v10  ;;  %v9673_v23 = vpop.f32.mrb[3].mxu0  ;;  %v1479_v24 = vpop.f32.mrb[3].mxu1  ;;  %v9745_v15 = vrot.slane %v9643_v4, %v1069_v62 }
 0x34d   : > { %v2949_v28 = vmul.f32 0.044715, %v9664_v14  ;;  %v9684_v31 = vadd.f32 %v1479_v24, %v9653_v9  ;;  %12865 = vst [vmem:[#allocation36_spill] sm:$0xff] %v9739_v6  ;;  %v1065_v36 = vsub.s32 5, %v9460_v25  ;;  %v7932_v25 = vld [vmem:[%s12858_s21 + $0x60] sm:$0xff]  }
 0x34e   : > { %12860 = vst [vmem:[#allocation31_spill] sm:$0xff] %v9670_v21  ;;  %v1651_v30 = vmul.f32 %v9670_v21, %v9670_v21  ;;  %v9681_v43 = vpack.c.bf16 %v1478_v22, %v1474_v20  ;;  %7257 = vmatprep.mubr.f32.mxu0 %v1650_v17  ;;  %v7931_v17 = vld [vmem:[%s12858_s21 + $0x18] sm:$0xff]  }
 0x34f   : > { %v2981_v32 = vmul.f32 %v2949_v28, %v9664_v14  ;;  %v2953_v33 = vmul.f32 0.044715, %v9684_v31 }
 0x350   : > { %12861 = vst [vmem:[#allocation32_spill] sm:$0xff] %v9681_v43  ;;  %7258 = vmatmul.mubr.f32.vlgmr.msra.gmra.mrb[32].mxu0 %v1651_v30 }
 0x351   : > { %v3013_v38 = vmul.f32 %v2981_v32, %v9664_v14  ;;  %v1410_v39 = vpop.f32.mrb[4].mxu0  ;;  %v1483_v40 = vpop.f32.mrb[4].mxu1  ;;  %7002 = vmatpush3.bf16.msra.mxu0 %v7925_v29  ;;  %v2985_v44 = vmul.f32 %v2953_v33, %v9684_v31  ;;  %v9761_v29 = vadd.f32 %v9673_v23, %v9717_v60 }
 0x352   : > { %v9698_v45 = vadd.f32 %v1410_v39, %v9650_v7  ;;  %v1484_v46 = vadd.f32 %v1483_v40, %v9656_v10  ;;  %v1412_v47 = vpop.f32.mrb[5].mxu0  ;;  %v1485_v48 = vpop.f32.mrb[5].mxu1  ;;  %7003 = vmatprep.subr.bf16.mxu0 %v7926_v42 }
 0x353   : > { %v3045_v49 = vadd.f32 %v3013_v38, %v9664_v14  ;;  %v9703_v50 = vadd.f32 %v1485_v48, %v9653_v9  ;;  %v1414_v51 = vpop.f32.mrb[6].mxu0  ;;  %v1487_v52 = vpop.f32.mrb[6].mxu1  ;;  %v3017_v18 = vmul.f32 %v2985_v44, %v9684_v31  ;;  %12867 = vst [vmem:[#allocation38_spill] sm:$0xff] %v9761_v29  ;;  %v9764_v30 = vadd.f32 %v1412_v47, %v9717_v60 }
 0x354   : > { %12862 = vst [vmem:[#allocation33_spill] sm:$0xff] %v9698_v45  ;;  %v1652_v55 = vmul.f32 %v9698_v45, %v9698_v45  ;;  %v9713_v56 = vadd.f32 %v1414_v51, %v9650_v7  ;;  %v1488_v57 = vadd.f32 %v1487_v52, %v9656_v10  ;;  %v1416_v58 = vpop.f32.mrb[7].mxu0  ;;  %v1489_v59 = vpop.f32.mrb[7].mxu1  ;;  %v7933_v51 = vld [vmem:[%s12858_s21 + $0x20] sm:$0xff]   ;;  %v9792_v52 = vmul.f32 %v9739_v6, %v9739_v6 }
 0x355   : > { %v3077_v26 = vmul.f32 0.7978846, %v3045_v49  ;;  %v2957_v61 = vmul.f32 0.044715, %v9703_v50  ;;  %7004 = vmatpush3.bf16.msra.mxu0 %v7927_v41  ;;  %v3049_v0 = vadd.f32 %v3017_v18, %v9684_v31  ;;  %v9730_v1 = vadd.f32 %v1489_v59, %v9653_v9  ;;  %12868 = vst [vmem:[#allocation39_spill] sm:$0xff] %v9764_v30 }
 0x356   : > { %12863 = vst [vmem:[#allocation34_spill] sm:$0xff] %v9713_v56  ;;  %v1653_v19 = vmul.f32 %v9713_v56, %v9713_v56  ;;  %v9727_v27 = vpack.c.bf16 %v1488_v57, %v1484_v46  ;;  %7260 = vmatprep.mubr.f32.mxu0 %v1652_v55  ;;  %7005 = vmatprep.subr.bf16.mxu0 %v7928_v54  ;;  %v2917_v18 = vmul.f32 0.5, %v9664_v14 }
 0x357   : > { %7989 = vtanh.f32 %v3077_v26  ;;  %v2989_v3 = vmul.f32 %v2957_v61, %v9703_v50  ;;  %v3081_v8 = vmul.f32 0.7978846, %v3049_v0  ;;  %v2961_v5 = vmul.f32 0.044715, %v9730_v1 }
 0x358   : > { %12864 = vst [vmem:[#allocation35_spill] sm:$0xff] %v9727_v27  ;;  %7261 = vmatmul.mubr.f32.gmra.mrb[34].mxu0 %v1653_v19  ;;  %v9771_v38 = vadd.f32 %v1416_v58, %v9717_v60  ;;  %v9785_v49 = vrot.slane %v9643_v4, %v1065_v36  ;;  %v7934_v4 = vld [vmem:[%s12858_s21 + $0x68] sm:$0xff]   ;;  %v9807_v59 = vmul.f32 %v9761_v29, %v9761_v29  ;;  %v2921_v26 = vmul.f32 0.5, %v9684_v31 }
 0x359   : > { %v1420_v11 = vpop.f32.mrb[8].mxu0  ;;  %v1493_v35 = vpop.f32.mrb[8].mxu1  ;;  %7006 = vmatpush3.bf16.msra.mxu0 %v7929_v63  ;;  %7991 = vtanh.f32 %v3081_v8  ;;  %v2993_v20 = vmul.f32 %v2961_v5, %v9730_v1  ;;  %v3021_v42 = vmul.f32 %v2989_v3, %v9703_v50  ;;  %v9812_v61 = vmul.f32 %v9764_v30, %v9764_v30  ;;  %v7935_v31 = vld [vmem:[%s12858_s21 + $0x28] sm:$0xff]  }
 0x35a   : > { %v9753_v34 = vadd.f32 %v1420_v11, %v9650_v7  ;;  %v1494_v22 = vadd.f32 %v1493_v35, %v9656_v10  ;;  %v1422_v24 = vpop.f32.mrb[9].mxu0  ;;  %v1495_v28 = vpop.f32.mrb[9].mxu1  ;;  %7007 = vmatprep.subr.bf16.mxu0 %v7930_v2  ;;  %12869 = vst [vmem:[#allocation40_spill] sm:$0xff] %v9771_v38  ;;  %v9816_v62 = vmul.f32 %v9771_v38, %v9771_v38  ;;  %v9826_v3 = vmul.f32 0.5, %v9703_v50 }
 0x35b   : > { %v9768_v32 = vadd.f32 %v1495_v28, %v9653_v9  ;;  %v1424_v33 = vpop.f32.mrb[10].mxu0  ;;  %v1497_v37 = vpop.f32.mrb[10].mxu1  ;;  %v3025_v46 = vmul.f32 %v2993_v20, %v9730_v1  ;;  %v3053_v58 = vadd.f32 %v3021_v42, %v9703_v50  ;;  %v9819_v63 = vadd.f32 %v1422_v24, %v9717_v60  ;;  %v7936_v20 = vld [vmem:[%s12858_s21 + $0x70] sm:$0xff]  }
 0x35c   : > { %12866 = vst [vmem:[#allocation37_spill] sm:$0xff] %v9753_v34  ;;  %v1654_v39 = vmul.f32 %v9753_v34, %v9753_v34  ;;  %v9776_v40 = vadd.f32 %v1424_v33, %v9650_v7  ;;  %v1498_v23 = vadd.f32 %v1497_v37, %v9656_v10  ;;  %v1426_v41 = vpop.f32.mrb[11].mxu0  ;;  %v1499_v44 = vpop.f32.mrb[11].mxu1  ;;  %v9840_v50 = vmul.f32 0.5, %v9730_v1 }
 0x35d   : > { %v2965_v47 = vmul.f32 0.044715, %v9768_v32  ;;  %v9782_v48 = vadd.f32 %v1499_v44, %v9653_v9  ;;  %7008 = vmatpush3.bf16.msra.mxu0 %v7931_v17  ;;  %12872 = vst [vmem:[#allocation43_spill] sm:$0xff] %v9819_v63  ;;  %v3057_v8 = vadd.f32 %v3025_v46, %v9730_v1  ;;  %v9830_v5 = vadd.f32 %v1426_v41, %v9717_v60 }
 0x35e   : > { %12870 = vst [vmem:[#allocation41_spill] sm:$0xff] %v9776_v40  ;;  %v1655_v53 = vmul.f32 %v9776_v40, %v9776_v40  ;;  %v9796_v54 = vpack.c.bf16 %v1498_v23, %v1494_v22  ;;  %7263 = vmatprep.mubr.f32.mxu0 %v1654_v39  ;;  %7009 = vmatprep.subr.bf16.mxu0 %v7932_v25  ;;  %v3085_v33 = vmul.f32 0.7978846, %v3053_v58 }
 0x35f   : > { %v2997_v55 = vmul.f32 %v2965_v47, %v9768_v32  ;;  %v2969_v57 = vmul.f32 0.044715, %v9782_v48  ;;  %12873 = vst [vmem:[#allocation44_spill] sm:$0xff] %v9830_v5  ;;  %v9855_v47 = vmul.f32 %v9819_v63, %v9819_v63 }
 0x360   : > { %12871 = vst [vmem:[#allocation42_spill] sm:$0xff] %v9796_v54  ;;  %7264 = vmatmul.mubr.f32.gmra.mrb[36].mxu0 %v1655_v53  ;;  %7993 = vtanh.f32 %v3085_v33 }
 0x361   : > { %v7990_v14 = vpop.eup %7989  ;;  %v3001_v0 = vmul.f32 %v2969_v57, %v9782_v48  ;;  %v1430_v19 = vpop.f32.mrb[12].mxu0  ;;  %7010 = vmatpush3.bf16.msra.mxu0 %v7933_v51  ;;  %v3029_v22 = vmul.f32 %v2997_v55, %v9768_v32 }
 0x362   : > { %v1503_v2 = vpop.f32.mrb[12].mxu1  ;;  %v9833_v11 = vadd.f32 %v1430_v19, %v9650_v7  ;;  %v1432_v36 = vpop.f32.mrb[13].mxu0  ;;  %7011 = vmatprep.subr.bf16.mxu0 %v7934_v4  ;;  %v3141_v46 = vadd.f32 1.0, %v7990_v14  ;;  %v3089_v4 = vmul.f32 0.7978846, %v3057_v8  ;;  %v9876_v14 = vmul.f32 %v9830_v5, %v9830_v5 }
 0x363   : > { %v1504_v35 = vadd.f32 %v1503_v2, %v9656_v10  ;;  %v1505_v17 = vpop.f32.mrb[13].mxu1  ;;  %v3033_v24 = vmul.f32 %v3001_v0, %v9782_v48  ;;  %v1434_v25 = vpop.f32.mrb[14].mxu0  ;;  %v9858_v51 = vadd.f32 %v1432_v36, %v9717_v60  ;;  %v9879_v0 = vmul.f32 0.5, %v9768_v32 }
 0x364   : > { %12874 = vst [vmem:[#allocation45_spill] sm:$0xff] %v9833_v11  ;;  %v9845_v28 = vadd.f32 %v1505_v17, %v9653_v9  ;;  %v1507_v42 = vpop.f32.mrb[14].mxu1  ;;  %v7992_v37 = vpop.eup %7991  ;;  %v1656_v39 = vmul.f32 %v9833_v11, %v9833_v11  ;;  %v9850_v23 = vadd.f32 %v1434_v25, %v9650_v7  ;;  %v7937_v7 = vld [vmem:[%s12858_s21 + $0x30] sm:$0xff]   ;;  %v3061_v19 = vadd.f32 %v3029_v22, %v9768_v32  ;;  %v7939_v32 = vld [vmem:[%s12858_s21 + $0x38] sm:$0xff]  }
 0x365   : > { %v1508_v1 = vadd.f32 %v1507_v42, %v9656_v10  ;;  %v1436_v41 = vpop.f32.mrb[15].mxu0  ;;  %v1509_v44 = vpop.f32.mrb[15].mxu1  ;;  %12876 = vst [vmem:[#allocation47_spill] sm:$0xff] %v9858_v51  ;;  %7012 = vmatpush3.bf16.msra.mxu0 %v7935_v31  ;;  %v3145_v58 = vadd.f32 1.0, %v7992_v37  ;;  %v3065_v2 = vadd.f32 %v3033_v24, %v9782_v48  ;;  %v9884_v8 = vmul.f32 %v3141_v46, %v2917_v18 }
 0x366   : > { %12875 = vst [vmem:[#allocation46_spill] sm:$0xff] %v9850_v23  ;;  %v9861_v53 = vadd.f32 %v1509_v44, %v9653_v9  ;;  %v2973_v10 = vmul.f32 0.044715, %v9845_v28  ;;  %v1657_v55 = vmul.f32 %v9850_v23, %v9850_v23  ;;  %7266 = vmatprep.mubr.f32.mxu0 %v1656_v39  ;;  %7013 = vmatprep.subr.bf16.mxu0 %v7936_v20  ;;  %v7938_v9 = vld [vmem:[%s12858_s21 + $0x78] sm:$0xff]   ;;  %7995 = vtanh.f32 %v3089_v4 }
 0x367   : > { %v9869_v57 = vpack.c.bf16 %v1508_v1, %v1504_v35  ;;  %v9886_v35 = vmul.f32 %v3145_v58, %v2921_v26  ;;  %v9890_v36 = vmul.f32 %v9858_v51, %v9858_v51  ;;  %v9893_v17 = vadd.f32 %v1436_v41, %v9717_v60 }
 0x368   : > { %v2977_v31 = vmul.f32 0.044715, %v9861_v53  ;;  %7267 = vmatmul.mubr.f32.gmra.mrb[38].mxu0 %v1657_v55  ;;  %v9900_v18 = vmul.f32 0.5, %v9782_v48  ;;  %v3005_v26 = vmul.f32 %v2973_v10, %v9845_v28  ;;  %v3093_v41 = vmul.f32 0.7978846, %v3061_v19 }
 0x369   : > { %12877 = vst [vmem:[#allocation48_spill] sm:$0xff] %v9869_v57  ;;  %12878 = vst [vmem:[#allocation49_spill] sm:$0xff] %v9893_v17  ;;  %v1546_v20 = vpop.f32.mrb[16].mxu0  ;;  %v7219_v25 = vpop.f32.mrb[16].mxu1  ;;  %7269 = vmatprep.mubr.f32.mxu0 %v9792_v52  ;;  %7014 = vmatpush3.bf16.msra.mxu0 %v7937_v7  ;;  %v9909_v52 = vld [vmem:[#allocation16] sm:$0xff]   ;;  %v9928_v58 = vmul.f32 %v9893_v17, %v9893_v17 }
 0x36a   : > { %v9904_v22 = vadd.f32 %v1546_v20, %v9742_v13  ;;  %v9907_v60 = vadd.f32 %v7219_v25, %v9745_v15  ;;  %v1548_v24 = vpop.f32.mrb[17].mxu0  ;;  %v1619_v42 = vpop.f32.mrb[17].mxu1  ;;  %7015 = vmatprep.subr.bf16.mxu0 %v7938_v9  ;;  %v3097_v44 = vmul.f32 0.7978846, %v3065_v2  ;;  %v3009_v46 = vmul.f32 %v2977_v31, %v9861_v53 }
 0x36b   : > { %v1549_v37 = vadd.f32 %v1548_v24, %v9785_v49  ;;  %v9915_v48 = vadd.f32 %v1619_v42, %v9745_v15  ;;  %v1550_v39 = vpop.f32.mrb[18].mxu0  ;;  %v7220_v1 = vpop.f32.mrb[18].mxu1  ;;  %v9940_v24 = vmul.f32 0.5, %v9861_v53  ;;  %7997 = vtanh.f32 %v3093_v41 }
 0x36c   : > { %v2950_v7 = vmul.f32 0.044715, %v9904_v22  ;;  %v9920_v4 = vadd.f32 %v1550_v39, %v9742_v13  ;;  %v9923_v10 = vadd.f32 %v7220_v1, %v9745_v15  ;;  %v1552_v55 = vpop.f32.mrb[19].mxu0  ;;  %v1622_v9 = vpop.f32.mrb[19].mxu1  ;;  %7270 = vmatmul.mubr.f32.gmra.mrb[40].mxu0 %v9807_v59  ;;  %v2960_v19 = vmul.f32 0.044715, %v9907_v60 }
 0x36d   : > { %v2951_v2 = vmul.f32 0.044715, %v1549_v37  ;;  %v1553_v31 = vadd.f32 %v1552_v55, %v9785_v49  ;;  %7272 = vmatprep.mubr.f32.mxu0 %v9812_v61  ;;  %7016 = vmatpush3.bf16.msra.mxu0 %v7939_v32  ;;  %v2952_v20 = vmul.f32 0.044715, %v9915_v48  ;;  %v9937_v59 = vmul.f32 0.5, %v9845_v28  ;;  %12880 = vst [vmem:[#allocation51_spill] sm:$0xff] %v9940_v24 }
 0x36e   : > { %v2954_v25 = vmul.f32 0.044715, %v9920_v4  ;;  %7357 = vmatprep.subr.bf16.mxu0 %v9909_v52  ;;  %v2964_v39 = vmul.f32 0.044715, %v9923_v10  ;;  %v9944_v61 = vmul.f32 %v3005_v26, %v9845_v28  ;;  %v9947_v32 = vmul.f32 %v3009_v46, %v9861_v53  ;;  %v7994_v26 = vpop.eup %7993 }
 0x36f   : > { %12879 = vst [vmem:[#allocation50_spill] sm:$0xff] %v9937_v59  ;;  %v2983_v42 = vmul.f32 %v2951_v2, %v1549_v37  ;;  %v2955_v1 = vmul.f32 0.044715, %v1553_v31  ;;  %v2982_v55 = vmul.f32 %v2950_v7, %v9904_v22  ;;  %7999 = vtanh.f32 %v3097_v44 }
 0x370   : > { %7273 = vmatmul.mubr.f32.gmra.mrb[42].mxu0 %v9816_v62  ;;  %v2992_v16 = vmul.f32 %v2960_v19, %v9907_v60  ;;  %v9953_v2 = vadd.f32 %v1622_v9, %v9745_v15  ;;  %v2984_v46 = vmul.f32 %v2952_v20, %v9915_v48  ;;  %v2986_v54 = vmul.f32 %v2954_v25, %v9920_v4 }
 0x371   : > { %v3015_v33 = vmul.f32 %v2983_v42, %v1549_v37  ;;  %v2987_v57 = vmul.f32 %v2955_v1, %v1553_v31  ;;  %v1556_v27 = vpop.f32.mrb[20].mxu0  ;;  %v7223_v41 = vpop.f32.mrb[20].mxu1  ;;  %7275 = vmatprep.mubr.f32.mxu0 %v9855_v47  ;;  %v2996_v1 = vmul.f32 %v2964_v39, %v9923_v10  ;;  %v9983_v51 = vadd.f32 1.0, %v7994_v26 }
 0x372   : > { %v9959_v7 = vadd.f32 %v1556_v27, %v9742_v13  ;;  %v9962_v62 = vadd.f32 %v7223_v41, %v9745_v15  ;;  %v1558_v44 = vpop.f32.mrb[21].mxu0  ;;  %v1635_v19 = vpop.f32.mrb[21].mxu1  ;;  %v2956_v25 = vmul.f32 0.044715, %v9953_v2  ;;  %v3014_v17 = vmul.f32 %v2982_v55, %v9904_v22 }
 0x373   : > { %v9964_v42 = vpop.eup %7995  ;;  %v3047_v9 = vadd.f32 %v3015_v33, %v1549_v37  ;;  %v3019_v38 = vmul.f32 %v2987_v57, %v1553_v31  ;;  %v9968_v47 = vadd.f32 %v1558_v44, %v9785_v49  ;;  %v1560_v20 = vpop.f32.mrb[22].mxu0  ;;  %v9973_v41 = vadd.f32 %v1635_v19, %v9745_v15 }
 0x374   : > { %12881 = vst [vmem:[#allocation52_spill] sm:$0xff] %v9962_v62  ;;  %v7224_v30 = vpop.f32.mrb[22].mxu1  ;;  %v2958_v27 = vmul.f32 0.044715, %v9959_v7  ;;  %v9976_v29 = vadd.f32 %v1560_v20, %v9742_v13  ;;  %v1562_v6 = vpop.f32.mrb[23].mxu0  ;;  %7276 = vmatmul.mubr.f32.gmra.mrb[44].mxu0 %v9876_v14  ;;  %v9979_v57 = vmul.f32 0.5, %v1549_v37  ;;  %v9990_v5 = vmul.f32 %v2992_v16, %v9907_v60 }
 0x375   : > { %v1638_v33 = vpop.f32.mrb[23].mxu1  ;;  %v3079_v39 = vmul.f32 0.7978846, %v3047_v9  ;;  %v2976_v44 = vmul.f32 0.044715, %v9962_v62  ;;  %7278 = vmatprep.mubr.f32.mxu0 %v9890_v36  ;;  %v9986_v19 = vmul.f32 0.5, %v1553_v31  ;;  %v3051_v63 = vadd.f32 %v3019_v38, %v1553_v31  ;;  %v10004_v16 = vpop.eup %7997 }
 0x376   : > { %v2959_v20 = vmul.f32 0.044715, %v9968_v47  ;;  %v9993_v14 = vmul.f32 %v2984_v46, %v9915_v48  ;;  %v3018_v37 = vmul.f32 %v2986_v54, %v9920_v4  ;;  %v2968_v9 = vmul.f32 0.044715, %v9973_v41 }
 0x377   : > { %v9998_v36 = vmul.f32 %v2996_v1, %v9923_v10  ;;  %v2988_v55 = vmul.f32 %v2956_v25, %v9953_v2  ;;  %v2990_v26 = vmul.f32 %v2958_v27, %v9959_v7  ;;  %v2962_v38 = vmul.f32 0.044715, %v9976_v29 }
 0x378   : > { %7279 = vmatmul.mubr.f32.gmra.mrb[46].mxu0 %v9928_v58  ;;  %8001 = vtanh.f32 %v3079_v39  ;;  %v3008_v31 = vmul.f32 %v2976_v44, %v9962_v62  ;;  %v10008_v54 = vadd.f32 %v7224_v30, %v9745_v15  ;;  %v10011_v46 = vadd.f32 %v1562_v6, %v9785_v49 }
 0x379   : > { %v1566_v1 = vpop.f32.mrb[24].mxu0  ;;  %v10013_v11 = vpop.eup %7999  ;;  %v3083_v25 = vmul.f32 0.7978846, %v3051_v63  ;;  %v2991_v27 = vmul.f32 %v2959_v20, %v9968_v47  ;;  %v10017_v23 = vadd.f32 %v1638_v33, %v9745_v15  ;;  %v3000_v44 = vmul.f32 %v2968_v9, %v9973_v41 }
 0x37a   : > { %12882 = vst [vmem:[#allocation53_spill] sm:$0xff] %v10008_v54  ;;  %v10020_v58 = vadd.f32 %v1566_v1, %v9742_v13  ;;  %v1568_v39 = vpop.f32.mrb[25].mxu0  ;;  %v2980_v30 = vmul.f32 0.044715, %v10008_v54  ;;  %v2963_v6 = vmul.f32 0.044715, %v10011_v46  ;;  %v10029_v63 = vmul.f32 %v2988_v55, %v9953_v2 }
 0x37b   : > { %v10026_v34 = vadd.f32 %v1568_v39, %v9785_v49  ;;  %v1570_v40 = vpop.f32.mrb[26].mxu0  ;;  %v3022_v15 = vmul.f32 %v2990_v26, %v9959_v7  ;;  %v2994_v33 = vmul.f32 %v2962_v38, %v9976_v29  ;;  %v10037_v9 = vmul.f32 %v3008_v31, %v9962_v62 }
 0x37c   : > { %v10034_v20 = vadd.f32 %v1570_v40, %v9742_v13  ;;  %v1572_v1 = vpop.f32.mrb[27].mxu0  ;;  %v3012_v45 = vmul.f32 %v2980_v30, %v10008_v54  ;;  %v2972_v39 = vmul.f32 0.044715, %v10017_v23  ;;  %v2966_v56 = vmul.f32 0.044715, %v10020_v58 }
 0x37d   : > { %12883 = vst [vmem:[#allocation54_spill] sm:$0xff] %v10037_v9  ;;  %8003 = vtanh.f32 %v3083_v25  ;;  %v2995_v55 = vmul.f32 %v2963_v6, %v10011_v46  ;;  %v3046_v38 = vadd.f32 %v3014_v17, %v9904_v22  ;;  %v10046_v40 = vmul.f32 %v2991_v27, %v9968_v47 }
 0x37e   : > { %v2970_v26 = vmul.f32 0.044715, %v10034_v20  ;;  %v10049_v12 = vmul.f32 %v3000_v44, %v9973_v41  ;;  %v2967_v31 = vmul.f32 0.044715, %v10026_v34  ;;  %v10053_v30 = vadd.f32 %v1572_v1, %v9785_v49 }
 0x37f   : > { %v3026_v21 = vmul.f32 %v2994_v33, %v9976_v29  ;;  %v10057_v25 = vmul.f32 0.5, %v9904_v22  ;;  %v10060_v6 = vmul.f32 0.5, %v9920_v4  ;;  %v3050_v17 = vadd.f32 %v3018_v37, %v9920_v4 }
 0x380   : > { %12884 = vst [vmem:[#allocation55_spill] sm:$0xff] %v10049_v12  ;;  %v10064_v27 = vmul.f32 %v3012_v45, %v10008_v54  ;;  %v3004_v44 = vmul.f32 %v2972_v39, %v10017_v23  ;;  %v2998_v43 = vmul.f32 %v2966_v56, %v10020_v58  ;;  %v3078_v1 = vmul.f32 0.7978846, %v3046_v38 }
 0x381   : > { %v1576_v9 = vpop.f32.mrb[28].mxu0  ;;  %v10069_v62 = vmul.f32 %v2995_v55, %v10011_v46  ;;  %v3002_v22 = vmul.f32 %v2970_v26, %v10034_v20  ;;  %v3082_v59 = vmul.f32 0.7978846, %v3050_v17  ;;  %v2999_v45 = vmul.f32 %v2967_v31, %v10026_v34 }
 0x382   : > { %12885 = vst [vmem:[#allocation56_spill] sm:$0xff] %v10064_v27  ;;  %v10073_v33 = vadd.f32 %v1576_v9, %v9742_v13  ;;  %v1578_v24 = vpop.f32.mrb[29].mxu0  ;;  %v10075_v4 = vpop.eup %8001  ;;  %v2971_v37 = vmul.f32 0.044715, %v10053_v30  ;;  %8005 = vtanh.f32 %v3078_v1  ;;  %v3054_v56 = vadd.f32 %v3022_v15, %v9959_v7 }
 0x383   : > { %v1580_v39 = vpop.f32.mrb[30].mxu0  ;;  %8007 = vtanh.f32 %v3082_v59  ;;  %v3058_v9 = vadd.f32 %v3026_v21, %v9976_v29  ;;  %v3030_v17 = vmul.f32 %v2998_v43, %v10020_v58  ;;  %v10087_v27 = vadd.f32 %v1578_v24, %v9785_v49 }
 0x384   : > { %v2974_v55 = vmul.f32 0.044715, %v10073_v33  ;;  %v10082_v38 = vadd.f32 %v1580_v39, %v9742_v13  ;;  %v1582_v26 = vpop.f32.mrb[31].mxu0  ;;  %v3086_v31 = vmul.f32 0.7978846, %v3054_v56  ;;  %v3153_v54 = vadd.f32 1.0, %v9964_v42 }
 0x385   : > { %v3034_v1 = vmul.f32 %v3002_v22, %v10034_v20  ;;  %v3090_v13 = vmul.f32 0.7978846, %v3058_v9  ;;  %v3003_v39 = vmul.f32 %v2971_v37, %v10053_v30  ;;  %v10096_v21 = vmul.f32 %v9983_v51, %v9826_v3 }
 0x386   : > { %v3006_v15 = vmul.f32 %v2974_v55, %v10073_v33  ;;  %v2978_v12 = vmul.f32 0.044715, %v10082_v38  ;;  %8009 = vtanh.f32 %v3086_v31  ;;  %v10099_v43 = vmul.f32 %v3153_v54, %v9840_v50 }
 0x387   : > { %v8004_v59 = vpop.eup %8003  ;;  %v10102_v24 = vmul.f32 %v3004_v44, %v10017_v23  ;;  %8011 = vtanh.f32 %v3090_v13  ;;  %v10107_v56 = vmul.f32 %v2999_v45, %v10026_v34  ;;  %v2975_v37 = vmul.f32 0.044715, %v10087_v27 }
 0x388   : > { %v3038_v42 = vmul.f32 %v3006_v15, %v10073_v33  ;;  %v3010_v22 = vmul.f32 %v2978_v12, %v10082_v38  ;;  %v2926_v3 = vmul.f32 0.5, %v9959_v7  ;;  %v3209_v50 = vpack.c.bf16 %v10099_v43, %v10096_v21  ;;  %v12891_v43 = vld [vmem:[#allocation51_spill] sm:$0xff] }
 0x389   : > { %v3062_v54 = vadd.f32 %v3030_v17, %v10020_v58  ;;  %v3066_v44 = vadd.f32 %v3034_v1, %v10034_v20  ;;  %v3157_v55 = vadd.f32 1.0, %v10004_v16  ;;  %v10118_v12 = vmul.f32 %v3003_v39, %v10053_v30 }
 0x38a   : > { %v3042_v51 = vmul.f32 %v3010_v22, %v10082_v38  ;;  %v10121_v45 = vadd.f32 %v1582_v26, %v9785_v49  ;;  %v2930_v9 = vmul.f32 0.5, %v9976_v29  ;;  %v3161_v7 = vadd.f32 1.0, %v10013_v11 }
 0x38b   : > { %v3094_v31 = vmul.f32 0.7978846, %v3062_v54  ;;  %v3098_v15 = vmul.f32 0.7978846, %v3066_v44  ;;  %v10126_v13 = vmul.f32 %v3157_v55, %v9879_v0  ;;  %v3070_v17 = vadd.f32 %v3038_v42, %v10073_v33 }
 0x38c   : > { %v8006_v1 = vpop.eup %8005  ;;  %v10130_v16 = vmul.f32 %v3161_v7, %v9900_v18  ;;  %v3074_v39 = vadd.f32 %v3042_v51, %v10082_v38  ;;  %v3069_v49 = vadd.f32 %v9944_v61, %v9845_v28  ;;  %v3073_v29 = vadd.f32 %v9947_v32, %v9861_v53 }
 0x38d   : > { %v8008_v11 = vpop.eup %8007  ;;  %v3007_v26 = vmul.f32 %v2975_v37, %v10087_v27  ;;  %v3142_v22 = vadd.f32 1.0, %v8006_v1  ;;  %8013 = vtanh.f32 %v3094_v31  ;;  %v3102_v0 = vmul.f32 0.7978846, %v3070_v17 }
 0x38e   : > { %v3146_v54 = vadd.f32 1.0, %v8008_v11  ;;  %8015 = vtanh.f32 %v3098_v15  ;;  %v3213_v18 = vpack.c.bf16 %v10130_v16, %v10126_v13  ;;  %v3106_v42 = vmul.f32 0.7978846, %v3074_v39 }
 0x38f   : > { %v2979_v51 = vmul.f32 0.044715, %v10121_v45  ;;  %8017 = vtanh.f32 %v3102_v0  ;;  %v3101_v44 = vmul.f32 0.7978846, %v3069_v49  ;;  %v3105_v28 = vmul.f32 0.7978846, %v3073_v29 }
 0x390   : > { %v8010_v61 = vpop.eup %8009  ;;  %v3174_v53 = vmul.f32 %v3142_v22, %v10057_v25  ;;  %v3178_v32 = vmul.f32 %v3146_v54, %v10060_v6  ;;  %8019 = vtanh.f32 %v3106_v42  ;;  %v3048_v37 = vadd.f32 %v9993_v14, %v9915_v48  ;;  %v7941_v6 = vld [vmem:[#allocation16 + $0x8] sm:$0xff]  }
 0x391   : > { %v8012_v55 = vpop.eup %8011  ;;  %v3150_v7 = vadd.f32 1.0, %v8010_v61  ;;  %8021 = vtanh.f32 %v3101_v44  ;;  %v3052_v31 = vadd.f32 %v10029_v63, %v9953_v2  ;;  %v3143_v15 = vadd.f32 1.0, %v10075_v4 }
 0x392   : > { %v3206_v17 = vpack.c.bf16 %v3178_v32, %v3174_v53  ;;  %v3154_v1 = vadd.f32 1.0, %v8012_v55  ;;  %8023 = vtanh.f32 %v3105_v28  ;;  %v3080_v39 = vmul.f32 0.7978846, %v3048_v37  ;;  %v12889_v53 = vld [vmem:[#allocation55_spill] sm:$0xff] }
 0x393   : > { %v10149_v25 = vmul.f32 %v3007_v26, %v10087_v27  ;;  %v2934_v49 = vmul.f32 0.5, %v10020_v58  ;;  %v3084_v29 = vmul.f32 0.7978846, %v3052_v31  ;;  %v3147_v14 = vadd.f32 1.0, %v8004_v59 }
 0x394   : > { %3516 = vmatprep.mubr.bf16.mxu0 %v3206_v17  ;;  %v3182_v11 = vmul.f32 %v3150_v7, %v2926_v3  ;;  %v3186_v22 = vmul.f32 %v3154_v1, %v2930_v9  ;;  %8025 = vtanh.f32 %v3080_v39  ;;  %v10153_v63 = vmul.f32 %v3143_v15, %v9979_v57 }
 0x395   : > { %v12887_v4 = vpack.c.bf16 %v9886_v35, %v9884_v8  ;;  %8027 = vtanh.f32 %v3084_v29  ;;  %v10159_v26 = vmul.f32 %v3147_v14, %v9986_v19  ;;  %v3056_v58 = vadd.f32 %v9990_v5, %v9907_v60  ;;  %v7942_v19 = vld [vmem:[#allocation16 + $0x10] sm:$0xff]  }
 0x396   : > { %12886 = vst [vmem:[#allocation57_spill] sm:$0xff] %v10153_v63  ;;  %v3060_v59 = vadd.f32 %v9998_v36, %v9923_v10  ;;  %v3011_v3 = vmul.f32 %v2979_v51, %v10121_v45  ;;  %v3210_v57 = vpack.c.bf16 %v3186_v22, %v3182_v11  ;;  %v2938_v9 = vmul.f32 0.5, %v10034_v20 }
 0x397   : > { %3517 = vmatmul.mubr.bf16.vlgmr.msra.gmra.mrb[48].mxu0 %v12887_v4  ;;  %12888 = vst [vmem:[#allocation58_spill] sm:$0xff] %v10159_v26  ;;  %v3055_v8 = vadd.f32 %v10046_v40, %v9968_v47  ;;  %v8014_v35 = vpop.eup %8013  ;;  %v3088_v5 = vmul.f32 0.7978846, %v3056_v58  ;;  %v3059_v36 = vadd.f32 %v10069_v62, %v10011_v46  ;;  %v2942_v51 = vmul.f32 0.5, %v10073_v33  ;;  %v7943_v33 = vld [vmem:[#allocation16 + $0x18] sm:$0xff]   ;;  %v12890_v4 = vld [vmem:[#allocation50_spill] sm:$0xff] }
 0x398   : > { %7358 = vmatpush3.bf16.msra.mxu0 %v9909_v52  ;;  %v3092_v54 = vmul.f32 0.7978846, %v3060_v59  ;;  %v8016_v42 = vpop.eup %8015  ;;  %3524 = vmatprep.mubr.bf16.mxu0 %v3210_v57  ;;  %v3158_v52 = vadd.f32 1.0, %v8014_v35  ;;  %v2946_v20 = vmul.f32 0.5, %v10082_v38  ;;  %v3064_v32 = vadd.f32 %v12889_v53, %v9973_v41 }
 0x399   : > { %7359 = vmatprep.subr.bf16.mxu0 %v7941_v6  ;;  %v3087_v44 = vmul.f32 0.7978846, %v3055_v8  ;;  %v8018_v40 = vpop.eup %8017  ;;  %v3162_v28 = vadd.f32 1.0, %v8016_v42  ;;  %8029 = vtanh.f32 %v3088_v5  ;;  %v3091_v61 = vmul.f32 0.7978846, %v3059_v36 }
 0x39a   : > { %v8020_v37 = vpop.eup %8019  ;;  %v3190_v55 = vmul.f32 %v3158_v52, %v2934_v49  ;;  %v3166_v7 = vadd.f32 1.0, %v8018_v40  ;;  %8031 = vtanh.f32 %v3092_v54  ;;  %v3068_v62 = vadd.f32 %v10102_v24, %v10017_v23  ;;  %v12892_v52 = vld [vmem:[#allocation52_spill] sm:$0xff]  ;;  %v12896_v40 = vld [vmem:[#allocation53_spill] sm:$0xff] }
 0x39b   : > { %v8022_v31 = vpop.eup %8021  ;;  %v3194_v38 = vmul.f32 %v3162_v28, %v2938_v9  ;;  %v3170_v15 = vadd.f32 1.0, %v8020_v37  ;;  %8033 = vtanh.f32 %v3087_v44  ;;  %v3096_v17 = vmul.f32 0.7978846, %v3064_v32  ;;  %v7944_v9 = vld [vmem:[#allocation16 + $0x20] sm:$0xff]  }
 0x39c   : > { %7360 = vmatpush3.bf16.msra.mxu0 %v7941_v6  ;;  %v8024_v1 = vpop.eup %8023  ;;  %v3198_v39 = vmul.f32 %v3166_v7, %v2942_v51  ;;  %v3165_v29 = vadd.f32 1.0, %v8022_v31  ;;  %8035 = vtanh.f32 %v3091_v61  ;;  %v3100_v14 = vmul.f32 0.7978846, %v3068_v62  ;;  %v12893_v51 = vld [vmem:[#allocation54_spill] sm:$0xff] }
 0x39d   : > { %7361 = vmatprep.subr.bf16.mxu0 %v7942_v19  ;;  %v3214_v6 = vpack.c.bf16 %v3194_v38, %v3190_v55  ;;  %v3202_v49 = vmul.f32 %v3170_v15, %v2946_v20  ;;  %v3169_v11 = vadd.f32 1.0, %v8024_v1  ;;  %8037 = vtanh.f32 %v3096_v17 }
 0x39e   : > { %v8026_v24 = vpop.eup %8025  ;;  %v3043_v22 = vmul.f32 %v3011_v3, %v10121_v45  ;;  %v10185_v58 = vmul.f32 %v3165_v29, %v12890_v4  ;;  %v2920_v59 = vmul.f32 0.5, %v9915_v48  ;;  %8039 = vtanh.f32 %v3100_v14  ;;  %v7946_v29 = vld [vmem:[#allocation16 + $0x30] sm:$0xff]  }
 0x39f   : > { %3525 = vmatmul.mubr.bf16.gmra.mrb[52].mxu0 %v3209_v50  ;;  %v8028_v57 = vpop.eup %8027  ;;  %v3218_v21 = vpack.c.bf16 %v3202_v49, %v3198_v39  ;;  %v10189_v50 = vmul.f32 %v3169_v11, %v12891_v43  ;;  %v3144_v8 = vadd.f32 1.0, %v8026_v24  ;;  %v3063_v35 = vadd.f32 %v10107_v56, %v10026_v34 }
 0x3a0   : > { %7362 = vmatpush3.bf16.msra.mxu0 %v7942_v19  ;;  %3532 = vmatprep.mubr.bf16.mxu0 %v3214_v6  ;;  %v2924_v3 = vmul.f32 0.5, %v9953_v2  ;;  %v3148_v19 = vadd.f32 1.0, %v8028_v57  ;;  %v2928_v5 = vmul.f32 0.5, %v9907_v60  ;;  %v3067_v48 = vadd.f32 %v10118_v12, %v10053_v30  ;;  %v12897_v60 = vld [vmem:[#allocation56_spill] sm:$0xff]  ;;  %v7945_v12 = vld [vmem:[#allocation16 + $0x28] sm:$0xff]  }
 0x3a1   : > { %7363 = vmatprep.subr.bf16.mxu0 %v7943_v33  ;;  %v3217_v54 = vpack.c.bf16 %v10189_v50, %v10185_v58  ;;  %v2932_v36 = vmul.f32 0.5, %v9923_v10  ;;  %v3095_v42 = vmul.f32 0.7978846, %v3063_v35  ;;  %v3072_v20 = vadd.f32 %v12893_v51, %v12892_v52  ;;  %v7947_v58 = vld [vmem:[#allocation16 + $0x38] sm:$0xff]  }
 0x3a2   : > { %v10202_v44 = vmul.f32 %v3144_v8, %v2920_v59  ;;  %v10204_v56 = vmul.f32 %v3148_v19, %v2924_v3  ;;  %v3099_v2 = vmul.f32 0.7978846, %v3067_v48  ;;  %v3076_v28 = vadd.f32 %v12897_v60, %v12896_v40  ;;  %v12907_v60 = vld [vmem:[#allocation32_spill] sm:$0xff] }
 0x3a3   : > { %v8030_v61 = vpop.eup %8029  ;;  %v2927_v53 = vmul.f32 0.5, %v9968_v47  ;;  %8041 = vtanh.f32 %v3095_v42  ;;  %v3104_v10 = vmul.f32 0.7978846, %v3072_v20  ;;  %v3071_v32 = vadd.f32 %v10149_v25, %v10087_v27 }
 0x3a4   : > { %7364 = vmatpush3.bf16.msra.mxu0 %v7943_v33  ;;  %12894 = vst [vmem:[#allocation55_spill] sm:$0xff] %v10202_v44  ;;  %12895 = vst [vmem:[#allocation50_spill] sm:$0xff] %v10204_v56  ;;  %v8032_v37 = vpop.eup %8031  ;;  %v3152_v7 = vadd.f32 1.0, %v8030_v61  ;;  %8043 = vtanh.f32 %v3099_v2  ;;  %v3108_v62 = vmul.f32 0.7978846, %v3076_v28  ;;  %v3075_v47 = vadd.f32 %v3043_v22, %v10121_v45 }
 0x3a5   : > { %7365 = vmatprep.subr.bf16.mxu0 %v7944_v9  ;;  %v8034_v31 = vpop.eup %8033  ;;  %v3156_v33 = vadd.f32 1.0, %v8032_v37  ;;  %8045 = vtanh.f32 %v3104_v10  ;;  %v3103_v38 = vmul.f32 0.7978846, %v3071_v32  ;;  %v2931_v17 = vmul.f32 0.5, %v10011_v46  ;;  %v12937_v10 = vld [vmem:[#allocation38_spill] sm:$0xff]  ;;  %v12939_v46 = vld [vmem:[#allocation40_spill] sm:$0xff] }
 0x3a6   : > { %v8036_v15 = vpop.eup %8035  ;;  %v10217_v25 = vmul.f32 %v3152_v7, %v2928_v5  ;;  %v3151_v1 = vadd.f32 1.0, %v8034_v31  ;;  %8047 = vtanh.f32 %v3108_v62  ;;  %v3107_v16 = vmul.f32 0.7978846, %v3075_v47  ;;  %v1875_v5 = vld [vmem:[%s12904_s4] sm:$0xf]  ;;  %s12970_s4 = sld [smem:[#allocation108_spill]] }
 0x3a7   : > { %3533 = vmatmul.mubr.bf16.gmra.mrb[56].mxu0 %v3213_v18  ;;  %v8038_v39 = vpop.eup %8037  ;;  %v10220_v14 = vmul.f32 %v3156_v33, %v2932_v36  ;;  %v3155_v13 = vadd.f32 1.0, %v8036_v15  ;;  %8049 = vtanh.f32 %v3103_v38  ;;  %v2936_v49 = vmul.f32 0.5, %v9973_v41  ;;  %7281 = vmatprep.subr.msk.mxu1 %vm1925_vm0, %v1875_v5 }
 0x3a8   : > { %7366 = vmatpush3.bf16.msra.mxu0 %v7944_v9  ;;  %3540 = vmatprep.mubr.bf16.mxu0 %v3218_v21  ;;  %12898 = vst [vmem:[#allocation51_spill] sm:$0xff] %v10217_v25  ;;  %v8040_v18 = vpop.eup %8039  ;;  %v10222_v6 = vmul.f32 %v3151_v1, %v2927_v53  ;;  %v2940_v11 = vmul.f32 0.5, %v10017_v23  ;;  %v3160_v24 = vadd.f32 1.0, %v8038_v39  ;;  %8051 = vtanh.f32 %v3107_v16 }
 0x3a9   : > { %7367 = vmatprep.subr.bf16.mxu0 %v7945_v12  ;;  %12899 = vst [vmem:[#allocation52_spill] sm:$0xff] %v10220_v14  ;;  %v10228_v22 = vmul.f32 %v3155_v13, %v2931_v17  ;;  %v3164_v4 = vadd.f32 1.0, %v8040_v18  ;;  %v2935_v8 = vmul.f32 0.5, %v10026_v34  ;;  %v2939_v35 = vmul.f32 0.5, %v10053_v30  ;;  %7282 = vmatpush3.msk.msra.mxu1 %vm1925_vm0, %v1875_v5 }
 0x3aa   : > { %12900 = vst [vmem:[#allocation54_spill] sm:$0xff] %v10222_v6  ;;  %v10232_v57 = vmul.f32 %v3160_v24, %v2936_v49  ;;  %v2944_v48 = vmul.f32 0.5, %v12892_v52  ;;  %v2948_v34 = vmul.f32 0.5, %v12896_v40  ;;  %v2947_v40 = vmul.f32 0.5, %v10121_v45  ;;  %v7949_v49 = vld [vmem:[%s10274_s27 + $0x8] sm:$0xff]  }
 0x3ab   : > { %12901 = vst [vmem:[#allocation53_spill] sm:$0xff] %v10228_v22  ;;  %v10234_v9 = vmul.f32 %v3164_v4, %v2940_v11 }
 0x3ac   : > { %7368 = vmatpush3.bf16.msra.mxu0 %v7945_v12  ;;  %12902 = vst [vmem:[#allocation56_spill] sm:$0xff] %v10232_v57  ;;  %v2943_v12 = vmul.f32 0.5, %v10087_v27  ;;  %v7948_v27 = vld [vmem:[%s10274_s27] sm:$0xff]  }
 0x3ad   : > { %7369 = vmatprep.subr.bf16.mxu0 %v7946_v29  ;;  %12903 = vst [vmem:[#allocation59_spill] sm:$0xff] %v10234_v9  ;;  %v8042_v41 = vpop.eup %8041  ;;  %7307 = vmatprep.subr.bf16.mxu1 %v7948_v27 }
 0x3ae   : > { %v8044_v21 = vpop.eup %8043  ;;  %v3159_v43 = vadd.f32 1.0, %v8042_v41 }
 0x3af   : > { %3541 = vmatmul.mubr.bf16.gmra.mrb[60].mxu0 %v3217_v54  ;;  %v8046_v50 = vpop.eup %8045  ;;  %v3163_v3 = vadd.f32 1.0, %v8044_v21 }
 0x3b0   : > { %7370 = vmatpush3.bf16.msra.mxu0 %v7946_v29  ;;  %v8048_v19 = vpop.eup %8047  ;;  %v3168_v54 = vadd.f32 1.0, %v8046_v50  ;;  %v10244_v42 = vmul.f32 %v3159_v43, %v2935_v8  ;;  %v7950_v43 = vld [vmem:[%s10274_s27 + $0x10] sm:$0xff]  }
 0x3b1   : > { %7371 = vmatprep.subr.bf16.mxu0 %v7947_v58  ;;  %v8050_v36 = vpop.eup %8049  ;;  %v10246_v51 = vmul.f32 %v3163_v3, %v2939_v35  ;;  %v3172_v20 = vadd.f32 1.0, %v8048_v19  ;;  %v7951_v35 = vld [vmem:[%s10274_s27 + $0x18] sm:$0xff]  }
 0x3b2   : > { %12905 = vst [vmem:[#allocation60_spill] sm:$0xff] %v10244_v42  ;;  %v3167_v30 = vadd.f32 1.0, %v8050_v36  ;;  %v8052_v2 = vpop.eup %8051  ;;  %v10252_v28 = vmul.f32 %v3168_v54, %v2944_v48  ;;  %v12940_v42 = vlaneseq }
 0x3b3   : > { %12906 = vst [vmem:[#allocation61_spill] sm:$0xff] %v10246_v51  ;;  %v10254_v61 = vmul.f32 %v3172_v20, %v2948_v34  ;;  %v3171_v53 = vadd.f32 1.0, %v8052_v2 }
 0x3b4   : > { %7372 = vmatpush3.bf16.msra.mxu0 %v7947_v58  ;;  %12908 = vst [vmem:[#allocation32_spill] sm:$0xff] %v10252_v28  ;;  %v10260_v32 = vmul.f32 %v3167_v30, %v2943_v12  ;;  %v2348_v51 = vand.u32 127, %v12940_v42 }
 0x3b5   : > { %7393 = vmatprep.subr.bf16.mxu0 %v12907_v60  ;;  %12909 = vst [vmem:[#allocation62_spill] sm:$0xff] %v10254_v61  ;;  %v10262_v37 = vmul.f32 %v3171_v53, %v2947_v40 }
 0x3b6   : > { %12910 = vst [vmem:[#allocation63_spill] sm:$0xff] %v10260_v32  ;;  %v2349_v9 = vand.u32 1, %v2348_v51 }
 0x3b7   : > { %12911 = vst [vmem:[#allocation64_spill] sm:$0xff] %v10262_v37 }
 0x3b8   : > { %vm10693_vm5 = vcmp.eq.s32.totalorder %v2349_v9, 0 }
 0x423   : > { %v7259_v45 = vpop.f32.mrb[32].mxu0 }
 0x424   : > { %v1828_v62 = vmul.f32 0.03125, %v7259_v45  ;;  %v1748_v31 = vpop.f32.mrb[33].mxu0 }
 0x425   : > { %v1827_v33 = vmul.f32 0.03125, %v1748_v31 }
 0x426   : > { %v1844_v47 = vadd.f32 1e-06, %v1828_v62 }
 0x427   : > { %v1843_v38 = vadd.f32 1e-06, %v1827_v33 }
 0x429   : > { %8053 = vrsqrt.f32 %v1843_v38 }
 0x42a   : > { %8055 = vrsqrt.f32 %v1844_v47 }
 0x42b   : > { %v7262_v15 = vpop.f32.mrb[34].mxu0 }
 0x42c   : > { %v1830_v17 = vmul.f32 0.03125, %v7262_v15  ;;  %v1758_v1 = vpop.f32.mrb[35].mxu0 }
 0x42d   : > { %v1829_v39 = vmul.f32 0.03125, %v1758_v1 }
 0x42e   : > { %v1846_v29 = vadd.f32 1e-06, %v1830_v17 }
 0x42f   : > { %v1845_v13 = vadd.f32 1e-06, %v1829_v39 }
 0x431   : > { %8057 = vrsqrt.f32 %v1845_v13 }
 0x432   : > { %8059 = vrsqrt.f32 %v1846_v29 }
 0x433   : > { %v8054_v16 = vpop.eup %8053  ;;  %v7265_v18 = vpop.f32.mrb[36].mxu0 }
 0x434   : > { %v8056_v11 = vpop.eup %8055  ;;  %v1832_v24 = vmul.f32 0.03125, %v7265_v18  ;;  %v1768_v4 = vpop.f32.mrb[37].mxu0  ;;  %7283 = vmatprep.mubr.msk.f32.mxu1 %vm1876_vm1, %v8054_v16 }
 0x435   : > { %v1831_v58 = vmul.f32 0.03125, %v1768_v4  ;;  %7284 = vmatmul.mubr.msk.f32.vlgmr.msra.gmra.mrb[24].mxu1 %vm1876_vm1, %v8056_v11 }
 0x436   : > { %v1848_v41 = vadd.f32 1e-06, %v1832_v24  ;;  %7308 = vmatpush3.bf16.msra.mxu1 %v7948_v27 }
 0x437   : > { %v1847_v21 = vadd.f32 1e-06, %v1831_v58  ;;  %7309 = vmatprep.subr.bf16.mxu1 %v7949_v49 }
 0x439   : > { %8061 = vrsqrt.f32 %v1847_v21 }
 0x43a   : > { %8063 = vrsqrt.f32 %v1848_v41  ;;  %7310 = vmatpush3.bf16.msra.mxu1 %v7949_v49 }
 0x43b   : > { %v8058_v50 = vpop.eup %8057  ;;  %v7268_v8 = vpop.f32.mrb[38].mxu0  ;;  %7311 = vmatprep.subr.bf16.mxu1 %v7950_v43 }
 0x43c   : > { %v8060_v3 = vpop.eup %8059  ;;  %v1834_v19 = vmul.f32 0.03125, %v7268_v8  ;;  %v1778_v5 = vpop.f32.mrb[39].mxu0  ;;  %7286 = vmatprep.mubr.msk.f32.mxu1 %vm1876_vm1, %v8058_v50 }
 0x43d   : > { %v1833_v48 = vmul.f32 0.03125, %v1778_v5  ;;  %7287 = vmatmul.mubr.msk.f32.gmra.mrb[26].mxu1 %vm1876_vm1, %v8060_v3 }
 0x43e   : > { %v1850_v54 = vadd.f32 1e-06, %v1834_v19  ;;  %7312 = vmatpush3.bf16.msra.mxu1 %v7950_v43 }
 0x43f   : > { %v1849_v36 = vadd.f32 1e-06, %v1833_v48  ;;  %v7271_v34 = vpop.f32.mrb[40].mxu0  ;;  %7313 = vmatprep.subr.bf16.mxu1 %v7951_v35 }
 0x440   : > { %v1836_v20 = vmul.f32 0.03125, %v7271_v34  ;;  %v1788_v30 = vpop.f32.mrb[41].mxu0 }
 0x441   : > { %8065 = vrsqrt.f32 %v1849_v36  ;;  %v1835_v2 = vmul.f32 0.03125, %v1788_v30 }
 0x442   : > { %8067 = vrsqrt.f32 %v1850_v54  ;;  %v1852_v12 = vadd.f32 1e-06, %v1836_v20  ;;  %7314 = vmatpush3.bf16.msra.mxu1 %v7951_v35 }
 0x443   : > { %v8062_v40 = vpop.eup %8061  ;;  %v1851_v53 = vadd.f32 1e-06, %v1835_v2  ;;  %v7274_v27 = vpop.f32.mrb[42].mxu0 }
 0x444   : > { %v8064_v45 = vpop.eup %8063  ;;  %v1838_v62 = vmul.f32 0.03125, %v7274_v27  ;;  %v1798_v31 = vpop.f32.mrb[43].mxu0  ;;  %7289 = vmatprep.mubr.msk.f32.mxu1 %vm1876_vm1, %v8062_v40 }
 0x445   : > { %8069 = vrsqrt.f32 %v1851_v53  ;;  %v1837_v33 = vmul.f32 0.03125, %v1798_v31  ;;  %7290 = vmatmul.mubr.msk.f32.gmra.mrb[28].mxu1 %vm1876_vm1, %v8064_v45 }
 0x446   : > { %8071 = vrsqrt.f32 %v1852_v12  ;;  %v1854_v47 = vadd.f32 1e-06, %v1838_v62 }
 0x447   : > { %v1853_v38 = vadd.f32 1e-06, %v1837_v33  ;;  %v7277_v15 = vpop.f32.mrb[44].mxu0 }
 0x448   : > { %v1840_v17 = vmul.f32 0.03125, %v7277_v15  ;;  %v1808_v1 = vpop.f32.mrb[45].mxu0 }
 0x449   : > { %8073 = vrsqrt.f32 %v1853_v38  ;;  %v1839_v39 = vmul.f32 0.03125, %v1808_v1 }
 0x44a   : > { %8075 = vrsqrt.f32 %v1854_v47  ;;  %v1856_v29 = vadd.f32 1e-06, %v1840_v17 }
 0x44b   : > { %v8066_v13 = vpop.eup %8065  ;;  %v1855_v16 = vadd.f32 1e-06, %v1839_v39  ;;  %v7280_v18 = vpop.f32.mrb[46].mxu0 }
 0x44c   : > { %v8068_v49 = vpop.eup %8067  ;;  %v1842_v11 = vmul.f32 0.03125, %v7280_v18  ;;  %v1818_v24 = vpop.f32.mrb[47].mxu0  ;;  %7292 = vmatprep.mubr.msk.f32.mxu1 %vm1876_vm1, %v8066_v13  ;;  %v7952_v18 = vld [vmem:[%s10274_s27 + $0x20] sm:$0xff]  }
 0x44d   : > { %8077 = vrsqrt.f32 %v1855_v16  ;;  %v1841_v4 = vmul.f32 0.03125, %v1818_v24  ;;  %7293 = vmatmul.mubr.msk.f32.gmra.mrb[30].mxu1 %vm1876_vm1, %v8068_v49  ;;  %v7953_v49 = vld [vmem:[%s10274_s27 + $0x28] sm:$0xff]   ;;  %7315 = vmatprep.subr.bf16.mxu1 %v7952_v18  ;;  %v7955_v24 = vld [vmem:[%s10274_s27 + $0x38] sm:$0xff]  }
 0x44e   : > { %8079 = vrsqrt.f32 %v1856_v29  ;;  %v1858_v58 = vadd.f32 1e-06, %v1842_v11  ;;  %7316 = vmatpush3.bf16.msra.mxu1 %v7952_v18  ;;  %v7954_v11 = vld [vmem:[%s10274_s27 + $0x30] sm:$0xff]   ;;  %s8816_s27 = smov 127  }
 0x44f   : > { %v8070_v41 = vpop.eup %8069  ;;  %v1857_v21 = vadd.f32 1e-06, %v1841_v4  ;;  %7317 = vmatprep.subr.bf16.mxu1 %v7953_v49 }
 0x450   : > { %v8072_v43 = vpop.eup %8071  ;;  %7295 = vmatprep.mubr.msk.f32.mxu1 %vm1876_vm1, %v8070_v41  ;;  %v12922_v41 = vld [vmem:[#allocation31_spill] sm:$0xff] }
 0x451   : > { %8081 = vrsqrt.f32 %v1857_v21  ;;  %7296 = vmatmul.mubr.msk.f32.gmra.mrb[32].mxu1 %vm1876_vm1, %v8072_v43 }
 0x452   : > { %8083 = vrsqrt.f32 %v1858_v58  ;;  %7318 = vmatpush3.bf16.msra.mxu1 %v7953_v49  ;;  %v6773_v58 = vld [vmem:[%s12921_s14] ss:$0 sm:$0xff]  ;;  %s8719_s14 = sshll.u32 %s8818_s18, 4  ;;  %s8720_s14 = int_to_ptr.vmem [resolvable:$false] %s8719_s14 }
 0x453   : > { %v8074_v50 = vpop.eup %8073  ;;  %7319 = vmatprep.subr.bf16.mxu1 %v7954_v11 }
 0x454   : > { %v8076_v8 = vpop.eup %8075  ;;  %7298 = vmatprep.mubr.msk.f32.mxu1 %vm1876_vm1, %v8074_v50  ;;  %v12923_v50 = vld [vmem:[#allocation30_spill] sm:$0xff] }
 0x455   : > { %7299 = vmatmul.mubr.msk.f32.gmra.mrb[34].mxu1 %vm1876_vm1, %v8076_v8 }
 0x456   : > { %7320 = vmatpush3.bf16.msra.mxu1 %v7954_v11  ;;  %v12928_v11 = vld [vmem:[#allocation46_spill] sm:$0xff] }
 0x457   : > { %v8078_v35 = vpop.eup %8077  ;;  %7321 = vmatprep.subr.bf16.mxu1 %v7955_v24 }
 0x458   : > { %v8080_v3 = vpop.eup %8079  ;;  %7301 = vmatprep.mubr.msk.f32.mxu1 %vm1876_vm1, %v8078_v35 }
 0x459   : > { %7302 = vmatmul.mubr.msk.f32.gmra.mrb[36].mxu1 %vm1876_vm1, %v8080_v3 }
 0x45a   : > { %7322 = vmatpush3.bf16.msra.mxu1 %v7955_v24 }
 0x45b   : > { %v8082_v19 = vpop.eup %8081 }
 0x45c   : > { %v8084_v5 = vpop.eup %8083  ;;  %7304 = vmatprep.mubr.msk.f32.mxu1 %vm1876_vm1, %v8082_v19 }
 0x45d   : > { %7305 = vmatmul.mubr.msk.f32.gmra.mrb[38].mxu1 %vm1876_vm1, %v8084_v5 }
 0x46a   : > { %v7017_v48 = vpop.f32.mrb[48].mxu0 }
 0x46b   : > { %v7018_v54 = vpop.f32.mrb[49].mxu0 }
 0x46c   : > { %v10296_v36 = vadd.f32 %v7018_v54, %v7017_v48  ;;  %v7020_v34 = vpop.f32.mrb[50].mxu0  ;;  %v12924_v48 = vld [vmem:[#allocation34_spill] sm:$0xff] }
 0x46d   : > { %v7021_v20 = vpop.f32.mrb[51].mxu0 }
 0x46e   : > { %12913 = vst [vmem:[#allocation65_spill] sm:$0xff] %v10296_v36  ;;  %v10298_v30 = vadd.f32 %v7021_v20, %v7020_v34  ;;  %v12925_v20 = vld [vmem:[#allocation33_spill] sm:$0xff] }
 0x470   : > { %12914 = vst [vmem:[#allocation66_spill] sm:$0xff] %v10298_v30 }
 0x472   : > { %v7023_v2 = vpop.f32.mrb[52].mxu0 }
 0x473   : > { %v7024_v12 = vpop.f32.mrb[53].mxu0 }
 0x474   : > { %v10300_v40 = vadd.f32 %v7024_v12, %v7023_v2  ;;  %v7026_v53 = vpop.f32.mrb[54].mxu0 }
 0x475   : > { %v7027_v27 = vpop.f32.mrb[55].mxu0 }
 0x476   : > { %12915 = vst [vmem:[#allocation67_spill] sm:$0xff] %v10300_v40  ;;  %v10302_v45 = vadd.f32 %v7027_v27, %v7026_v53 }
 0x478   : > { %12916 = vst [vmem:[#allocation68_spill] sm:$0xff] %v10302_v45 }
 0x47a   : > { %v7029_v62 = vpop.f32.mrb[56].mxu0 }
 0x47b   : > { %v7030_v31 = vpop.f32.mrb[57].mxu0 }
 0x47c   : > { %v10304_v33 = vadd.f32 %v7030_v31, %v7029_v62  ;;  %v7032_v47 = vpop.f32.mrb[58].mxu0  ;;  %v12926_v31 = vld [vmem:[#allocation41_spill] sm:$0xff] }
 0x47d   : > { %v7033_v38 = vpop.f32.mrb[59].mxu0 }
 0x47e   : > { %12917 = vst [vmem:[#allocation69_spill] sm:$0xff] %v10304_v33  ;;  %v10306_v15 = vadd.f32 %v7033_v38, %v7032_v47 }
 0x480   : > { %12918 = vst [vmem:[#allocation70_spill] sm:$0xff] %v10306_v15 }
 0x482   : > { %v7035_v17 = vpop.f32.mrb[60].mxu0 }
 0x483   : > { %v7036_v1 = vpop.f32.mrb[61].mxu0 }
 0x484   : > { %v10308_v39 = vadd.f32 %v7036_v1, %v7035_v17  ;;  %v7038_v29 = vpop.f32.mrb[62].mxu0  ;;  %v12927_v17 = vld [vmem:[#allocation37_spill] sm:$0xff] }
 0x485   : > { %v7039_v13 = vpop.f32.mrb[63].mxu0 }
 0x486   : > { %12919 = vst [vmem:[#allocation71_spill] sm:$0xff] %v10308_v39  ;;  %v10310_v16 = vadd.f32 %v7039_v13, %v7038_v29 }
 0x488   : > { %12920 = vst [vmem:[#allocation72_spill] sm:$0xff] %v10310_v16 }
 0x508   : > { %v7285_v4 = vpop.f32.mrb[24].mxu1 }
 0x509   : > { %v2075_v21 = vmul.f32 %v7285_v4, %v12922_v41  ;;  %v1995_v43 = vpop.f32.mrb[25].mxu1  ;;  %v12929_v41 = vld [vmem:[#allocation45_spill] sm:$0xff] }
 0x50a   : > { %v2074_v8 = vmul.f32 %v1995_v43, %v12923_v50 }
 0x50b   : > { %v10321_v35 = vmul.f32 %v6773_v58, %v2075_v21 }
 0x50c   : > { %v10323_v3 = vmul.f32 %v6773_v58, %v2074_v8 }
 0x50e   : > { %v2479_v19 = vpack.c.bf16 %v10321_v35, %v10323_v3 }
 0x510   : > { %v7288_v5 = vpop.f32.mrb[26].mxu1  ;;  %7323 = vmatprep.mubr.bf16.mxu1 %v2479_v19 }
 0x511   : > { %v2077_v54 = vmul.f32 %v7288_v5, %v12924_v48  ;;  %v2005_v34 = vpop.f32.mrb[27].mxu1 }
 0x512   : > { %v2076_v2 = vmul.f32 %v2005_v34, %v12925_v20  ;;  %v12930_v20 = vld [vmem:[#allocation44_spill] sm:$0xff] }
 0x513   : > { %v10329_v12 = vmul.f32 %v6773_v58, %v2077_v54 }
 0x514   : > { %v10331_v53 = vmul.f32 %v6773_v58, %v2076_v2 }
 0x516   : > { %v2480_v27 = vpack.c.bf16 %v10329_v12, %v10331_v53 }
 0x518   : > { %v7291_v62 = vpop.f32.mrb[28].mxu1  ;;  %7324 = vmatmul.mubr.bf16.vlgmr.msra.gmra.mrb[40].mxu1 %v2480_v27 }
 0x519   : > { %v2079_v47 = vmul.f32 %v7291_v62, %v12926_v31  ;;  %v2015_v38 = vpop.f32.mrb[29].mxu1  ;;  %v10360_v62 = vld [vmem:[#allocation14] ss:$0 sm:$0xff] }
 0x51a   : > { %v2078_v1 = vmul.f32 %v2015_v38, %v12927_v17 }
 0x51b   : > { %v10337_v29 = vmul.f32 %v6773_v58, %v2079_v47 }
 0x51c   : > { %v10339_v13 = vmul.f32 %v6773_v58, %v2078_v1  ;;  %v12932_v1 = vld [vmem:[#allocation49_spill] sm:$0xff] }
 0x51e   : > { %v2481_v18 = vpack.c.bf16 %v10337_v29, %v10339_v13 }
 0x520   : > { %v7294_v49 = vpop.f32.mrb[30].mxu1  ;;  %7327 = vmatprep.mubr.bf16.mxu1 %v2481_v18 }
 0x521   : > { %v2081_v24 = vmul.f32 %v7294_v49, %v12928_v11  ;;  %v2025_v4 = vpop.f32.mrb[31].mxu1  ;;  %v12933_v11 = vld [vmem:[#allocation47_spill] sm:$0xff] }
 0x522   : > { %v2080_v21 = vmul.f32 %v2025_v4, %v12929_v41 }
 0x523   : > { %v10345_v43 = vmul.f32 %v6773_v58, %v2081_v24 }
 0x524   : > { %v10347_v50 = vmul.f32 %v6773_v58, %v2080_v21  ;;  %v10349_v8 = vpop.f32.mrb[32].mxu1  ;;  %v12931_v58 = vld [vmem:[#allocation43_spill] sm:$0xff] }
 0x525   : > { %v10351_v19 = vpop.f32.mrb[33].mxu1  ;;  %v2098_v52 = vmul.f32 %v10349_v8, %v12937_v10  ;;  %v10481_v10 = vld [vmem:[%s10422_s1 + $0x10] sm:$0xff]  ;;  %v10484_v8 = vld [vmem:[%s10413_s22 + $0x18] sm:$0xff] }
 0x526   : > { %v2482_v5 = vpack.c.bf16 %v10345_v43, %v10347_v50 }
 0x528   : > { %v10355_v48 = vpop.f32.mrb[34].mxu1  ;;  %7328 = vmatmul.mubr.bf16.gmra.mrb[44].mxu1 %v2482_v5 }
 0x529   : > { %v10357_v54 = vpop.f32.mrb[35].mxu1  ;;  %v2100_v0 = vmul.f32 %v10355_v48, %v12939_v46  ;;  %v10535_v46 = vld [vmem:[%s10422_s1 + $0x20] sm:$0xff]  ;;  %v10538_v48 = vld [vmem:[%s10413_s22 + $0x28] sm:$0xff] }
 0x52c   : > { %v7303_v34 = vpop.f32.mrb[36].mxu1 }
 0x52d   : > { %v2102_v2 = vmul.f32 %v7303_v34, %v12930_v20  ;;  %v2055_v27 = vpop.f32.mrb[37].mxu1 }
 0x52e   : > { %v2101_v31 = vmul.f32 %v2055_v27, %v12931_v58 }
 0x52f   : > { %v10364_v47 = vmul.f32 %v10360_v62, %v2102_v2 }
 0x530   : > { %v10367_v38 = vmul.f32 %v10360_v62, %v2101_v31  ;;  %v7306_v17 = vpop.f32.mrb[38].mxu1 }
 0x531   : > { %v2104_v18 = vmul.f32 %v7306_v17, %v12932_v1  ;;  %v2065_v49 = vpop.f32.mrb[39].mxu1 }
 0x532   : > { %v2103_v24 = vmul.f32 %v2065_v49, %v12933_v11 }
 0x533   : > { %v10372_v4 = vmul.f32 %v10360_v62, %v2104_v18 }
 0x534   : > { %v10375_v41 = vmul.f32 %v10360_v62, %v2103_v24 }
 0x5eb   : > { %v10377_v21 = vpop.f32.mrb[40].mxu1 }
 0x5ec   : > { %v10379_v5 = vpop.f32.mrb[41].mxu1  ;;  %v2631_v58 = vsel %vm2624_vm2, %v10377_v21, -inf }
 0x5ed   : > { %v10381_v34 = vpop.f32.mrb[42].mxu1  ;;  %v2625_v20 = vsel %vm2624_vm2, %v10379_v5, -inf }
 0x5ee   : > { %2626 = vmax.xlane.f32.xlu0 %v2625_v20  ;;  %v10385_v2 = vpop.f32.mrb[43].mxu1  ;;  %v2634_v31 = vsel %vm2624_vm2, %v10381_v34, -inf }
 0x5ef   : > { %v2628_v27 = vsel %vm2624_vm2, %v10385_v2, -inf }
 0x5f0   : > { %2629 = vmax.xlane.f32.xlu1 %v2628_v27 }
 0x5f2   : > { %2632 = vmax.xlane.f32.xlu0 %v2631_v58  ;;  %v2673_v58 = vld [vmem:[#allocation11] sm:$0xff] }
 0x5f4   : > { %2635 = vmax.xlane.f32.xlu1 %v2634_v31  ;;  %v2674_v31 = vld [vmem:[#allocation11 + $0x8] sm:$0xff] }
 0x5f5   : > { %v7629_v7 = vpack.c.bf16 %v2674_v31, %v2673_v58 }
 0x5f7   : > { %7630 = vmatprep.subr.bf16.mxu1 %v7629_v7 }
 0x5f8   : > { %7632 = vmatpush3.bf16.msra.mxu1 %v7629_v7  ;;  %v10427_v7 = vld [vmem:[%s10413_s22] sm:$0xff] }
 0x5fb   : > { %v10393_v17 = vpop.f32.mrb[44].mxu1 }
 0x5fc   : > { %v10395_v1 = vpop.f32.mrb[45].mxu1  ;;  %v2643_v20 = vsel %vm2624_vm2, %v10393_v17, -inf }
 0x5fd   : > { %v10397_v18 = vpop.f32.mrb[46].mxu1  ;;  %v2637_v49 = vsel %vm2624_vm2, %v10395_v1, -inf }
 0x5fe   : > { %2638 = vmax.xlane.f32.xlu0 %v2637_v49  ;;  %v10401_v11 = vpop.f32.mrb[47].mxu1  ;;  %v2646_v27 = vsel %vm2624_vm2, %v10397_v18, -inf  ;;  %v10416_v49 = vld [vmem:[%s10413_s22 + $0x8] sm:$0xff] }
 0x5ff   : > { %v2640_v24 = vsel %vm2624_vm2, %v10401_v11, -inf }
 0x600   : > { %2641 = vmax.xlane.f32.xlu1 %v2640_v24  ;;  %v10430_v24 = vld [vmem:[%s10422_s1] sm:$0xff] }
 0x602   : > { %2644 = vmax.xlane.f32.xlu0 %v2643_v20  ;;  %v10437_v20 = vld [vmem:[%s10422_s1 + $0x8] sm:$0xff] }
 0x604   : > { %2647 = vmax.xlane.f32.xlu1 %v2646_v27  ;;  %v12936_v27 = vld [vmem:[#allocation36_spill] sm:$0xff] }
 0x605   : > { %v2097_v58 = vmul.f32 %v10351_v19, %v12936_v27  ;;  %v10467_v19 = vmul.f32 %v10360_v62, %v2098_v52  ;;  %v10474_v27 = vld [vmem:[%s10413_s22 + $0x10] sm:$0xff]  ;;  %v10491_v52 = vld [vmem:[%s10422_s1 + $0x18] sm:$0xff] }
 0x607   : > { %v10458_v31 = vmul.f32 %v10360_v62, %v2097_v58  ;;  %v12938_v58 = vld [vmem:[#allocation39_spill] sm:$0xff] }
 0x608   : > { %v2099_v23 = vmul.f32 %v10357_v54, %v12938_v58  ;;  %v10521_v54 = vmul.f32 %v10360_v62, %v2100_v0  ;;  %v10545_v0 = vld [vmem:[%s10422_s1 + $0x28] sm:$0xff] }
 0x60a   : > { %v10512_v59 = vmul.f32 %v10360_v62, %v2099_v23  ;;  %v10528_v23 = vld [vmem:[%s10413_s22 + $0x20] sm:$0xff] }
 0x615   : > { %2138 = vrot.lane.b32.xlu1 %v10416_v49, %s8813_s3 }
 0x618   : > { %2136 = vrot.lane.b32.xlu0 %v10427_v7, %s8813_s3 }
 0x619   : > { %2251 = vrot.lane.b32.xlu1 %v10430_v24, %s8813_s3 }
 0x61c   : > { %2160 = vrot.lane.b32.xlu0 %v10427_v7, %s8814_s20 }
 0x61d   : > { %2253 = vrot.lane.b32.xlu1 %v10437_v20, %s8813_s3 }
 0x620   : > { %2275 = vrot.lane.b32.xlu0 %v10430_v24, %s8814_s20 }
 0x621   : > { %2162 = vrot.lane.b32.xlu1 %v10416_v49, %s8814_s20 }
 0x624   : > { %2184 = vrot.lane.b32.xlu0 %v10427_v7, %s8815_s16 }
 0x625   : > { %2277 = vrot.lane.b32.xlu1 %v10437_v20, %s8814_s20 }
 0x628   : > { %2299 = vrot.lane.b32.xlu0 %v10430_v24, %s8815_s16 }
 0x629   : > { %2186 = vrot.lane.b32.xlu1 %v10416_v49, %s8815_s16 }
 0x62c   : > { %2423 = vrot.lane.b32.xlu0 %v10458_v31, %s8816_s27 }
 0x62d   : > { %2301 = vrot.lane.b32.xlu1 %v10437_v20, %s8815_s16 }
 0x630   : > { %2439 = vrot.lane.b32.xlu0 %v10458_v31, %s8817_s6 }
 0x631   : > { %2425 = vrot.lane.b32.xlu1 %v10467_v19, %s8816_s27 }
 0x634   : > { %2140 = vrot.lane.b32.xlu0 %v10474_v27, %s8813_s3 }
 0x635   : > { %2441 = vrot.lane.b32.xlu1 %v10467_v19, %s8817_s6 }
 0x638   : > { %2255 = vrot.lane.b32.xlu0 %v10481_v10, %s8813_s3 }
 0x639   : > { %2142 = vrot.lane.b32.xlu1 %v10484_v8, %s8813_s3 }
 0x63c   : > { %2164 = vrot.lane.b32.xlu0 %v10474_v27, %s8814_s20 }
 0x63d   : > { %2257 = vrot.lane.b32.xlu1 %v10491_v52, %s8813_s3 }
 0x640   : > { %2279 = vrot.lane.b32.xlu0 %v10481_v10, %s8814_s20 }
 0x641   : > { %2166 = vrot.lane.b32.xlu1 %v10484_v8, %s8814_s20 }
 0x644   : > { %2188 = vrot.lane.b32.xlu0 %v10474_v27, %s8815_s16 }
 0x645   : > { %2281 = vrot.lane.b32.xlu1 %v10491_v52, %s8814_s20 }
 0x648   : > { %2303 = vrot.lane.b32.xlu0 %v10481_v10, %s8815_s16 }
 0x649   : > { %2190 = vrot.lane.b32.xlu1 %v10484_v8, %s8815_s16 }
 0x64c   : > { %2427 = vrot.lane.b32.xlu0 %v10512_v59, %s8816_s27 }
 0x64d   : > { %2305 = vrot.lane.b32.xlu1 %v10491_v52, %s8815_s16 }
 0x650   : > { %2443 = vrot.lane.b32.xlu0 %v10512_v59, %s8817_s6 }
 0x651   : > { %2429 = vrot.lane.b32.xlu1 %v10521_v54, %s8816_s27 }
 0x654   : > { %2144 = vrot.lane.b32.xlu0 %v10528_v23, %s8813_s3 }
 0x655   : > { %2445 = vrot.lane.b32.xlu1 %v10521_v54, %s8817_s6 }
 0x658   : > { %2259 = vrot.lane.b32.xlu0 %v10535_v46, %s8813_s3 }
 0x659   : > { %2146 = vrot.lane.b32.xlu1 %v10538_v48, %s8813_s3 }
 0x65c   : > { %2168 = vrot.lane.b32.xlu0 %v10528_v23, %s8814_s20 }
 0x65d   : > { %2261 = vrot.lane.b32.xlu1 %v10545_v0, %s8813_s3 }
 0x660   : > { %2283 = vrot.lane.b32.xlu0 %v10535_v46, %s8814_s20 }
 0x661   : > { %2170 = vrot.lane.b32.xlu1 %v10538_v48, %s8814_s20 }
 0x664   : > { %2359 = vrot.lane.b32.xlu0 %v10323_v3, %s8816_s27 }
 0x665   : > { %2285 = vrot.lane.b32.xlu1 %v10545_v0, %s8814_s20 }
 0x668   : > { %2375 = vrot.lane.b32.xlu0 %v10323_v3, %s8817_s6 }
 0x669   : > { %2361 = vrot.lane.b32.xlu1 %v10321_v35, %s8816_s27 }
 0x66c   : > { %2192 = vrot.lane.b32.xlu0 %v10528_v23, %s8815_s16 }
 0x66d   : > { %2377 = vrot.lane.b32.xlu1 %v10321_v35, %s8817_s6 }
 0x670   : > { %2307 = vrot.lane.b32.xlu0 %v10535_v46, %s8815_s16 }
 0x671   : > { %2194 = vrot.lane.b32.xlu1 %v10538_v48, %s8815_s16 }
 0x674   : > { %2363 = vrot.lane.b32.xlu0 %v10331_v53, %s8816_s27 }
 0x675   : > { %2309 = vrot.lane.b32.xlu1 %v10545_v0, %s8815_s16 }
 0x678   : > { %2379 = vrot.lane.b32.xlu0 %v10331_v53, %s8817_s6 }
 0x679   : > { %2365 = vrot.lane.b32.xlu1 %v10329_v12, %s8816_s27 }
 0x67b   : > { %v2627_v62 = vpop.xlane.xlu0 %2626 }
 0x67c   : > { %v2649_v58 = vsub.f32 %v10379_v5, %v2627_v62  ;;  %2431 = vrot.lane.b32.xlu0 %v10367_v38, %s8816_s27  ;;  %v10591_v62 = vld [vmem:[%s10413_s22 + $0x30] sm:$0xff] }
 0x67d   : > { %v2630_v55 = vpop.xlane.xlu1 %2629  ;;  %2381 = vrot.lane.b32.xlu1 %v10329_v12, %s8817_s6 }
 0x67e   : > { %v2657_v16 = vmul.f32 1.442695, %v2649_v58  ;;  %v2650_v39 = vsub.f32 %v10385_v2, %v2630_v55 }
 0x67f   : > { %v2633_v15 = vpop.xlane.xlu0 %2632 }
 0x680   : > { %8085 = vpow2.f32 %v2657_v16  ;;  %v2659_v33 = vmul.f32 1.442695, %v2650_v39  ;;  %v2651_v45 = vsub.f32 %v10377_v21, %v2633_v15  ;;  %2447 = vrot.lane.b32.xlu0 %v10367_v38, %s8817_s6  ;;  %v10599_v15 = vld [vmem:[%s10422_s1 + $0x30] sm:$0xff]  ;;  %v10602_v39 = vld [vmem:[%s10413_s22 + $0x38] sm:$0xff] }
 0x681   : > { %v2636_v5 = vpop.xlane.xlu1 %2635  ;;  %2433 = vrot.lane.b32.xlu1 %v10364_v47, %s8816_s27 }
 0x682   : > { %8087 = vpow2.f32 %v2659_v33  ;;  %v2661_v58 = vmul.f32 1.442695, %v2651_v45  ;;  %v2652_v55 = vsub.f32 %v10381_v34, %v2636_v5  ;;  %v10611_v33 = vld [vmem:[%s10422_s1 + $0x38] sm:$0xff]  ;;  %s13221_s1 = sld [smem:[#allocation109_spill]] }
 0x684   : > { %8089 = vpow2.f32 %v2661_v58  ;;  %v2663_v16 = vmul.f32 1.442695, %v2652_v55  ;;  %2148 = vrot.lane.b32.xlu0 %v10591_v62, %s8813_s3 }
 0x685   : > { %2449 = vrot.lane.b32.xlu1 %v10364_v47, %s8817_s6 }
 0x686   : > { %8091 = vpow2.f32 %v2663_v16 }
 0x688   : > { %2263 = vrot.lane.b32.xlu0 %v10599_v15, %s8813_s3 }
 0x689   : > { %2150 = vrot.lane.b32.xlu1 %v10602_v39, %s8813_s3 }
 0x68a   : > { %v10608_v45 = vpop.eup %8085 }
 0x68b   : > { %7335 = vmatprep.mubr.msk.f32.mxu1 %vm2624_vm2, %v10608_v45  ;;  %v2639_v21 = vpop.xlane.xlu0 %2638 }
 0x68c   : > { %v10615_v34 = vpop.eup %8087  ;;  %v2653_v2 = vsub.f32 %v10395_v1, %v2639_v21  ;;  %2172 = vrot.lane.b32.xlu0 %v10591_v62, %s8814_s20 }
 0x68d   : > { %7336 = vmatmul.mubr.msk.f32.vlgmr.msra.gmra.mrb[48].mxu1 %vm2624_vm2, %v10615_v34  ;;  %2265 = vrot.lane.b32.xlu1 %v10611_v33, %s8813_s3  ;;  %v2642_v5 = vpop.xlane.xlu1 %2641 }
 0x68e   : > { %v10624_v58 = vpop.eup %8089  ;;  %v2665_v55 = vmul.f32 1.442695, %v2653_v2  ;;  %v2654_v16 = vsub.f32 %v10401_v11, %v2642_v5 }
 0x68f   : > { %7338 = vmatprep.mubr.msk.f32.mxu1 %vm2624_vm2, %v10624_v58  ;;  %v2645_v40 = vpop.xlane.xlu0 %2644 }
 0x690   : > { %v10629_v1 = vpop.eup %8091  ;;  %8093 = vpow2.f32 %v2665_v55  ;;  %v2667_v21 = vmul.f32 1.442695, %v2654_v16  ;;  %v2655_v30 = vsub.f32 %v10393_v17, %v2645_v40  ;;  %2287 = vrot.lane.b32.xlu0 %v10599_v15, %s8814_s20 }
 0x691   : > { %7339 = vmatmul.mubr.msk.f32.gmra.mrb[50].mxu1 %vm2624_vm2, %v10629_v1  ;;  %2174 = vrot.lane.b32.xlu1 %v10602_v39, %s8814_s20  ;;  %v2648_v11 = vpop.xlane.xlu1 %2647 }
 0x692   : > { %8095 = vpow2.f32 %v2667_v21  ;;  %v2669_v2 = vmul.f32 1.442695, %v2655_v30  ;;  %v2656_v5 = vsub.f32 %v10397_v18, %v2648_v11 }
 0x693   : > { %v2137_v36 = vpop.permute.xlu0 %2136 }
 0x694   : > { %8097 = vpow2.f32 %v2669_v2  ;;  %v2671_v55 = vmul.f32 1.442695, %v2656_v5  ;;  %2367 = vrot.lane.b32.xlu0 %v10339_v13, %s8816_s27  ;;  %v2209_v25 = vsel %vm2208_vm3, %v10427_v7, %v2137_v36 }
 0x695   : > { %2289 = vrot.lane.b32.xlu1 %v10611_v33, %s8814_s20  ;;  %v2139_v40 = vpop.permute.xlu1 %2138 }
 0x696   : > { %8099 = vpow2.f32 %v2671_v55  ;;  %v2210_v14 = vsel %vm2208_vm3, %v10416_v49, %v2139_v40 }
 0x697   : > { %v2161_v17 = vpop.permute.xlu0 %2160 }
 0x698   : > { %2383 = vrot.lane.b32.xlu0 %v10339_v13, %s8817_s6  ;;  %v2218_v26 = vsel %vm2217_vm4, %v2209_v25, %v2161_v17 }
 0x699   : > { %2369 = vrot.lane.b32.xlu1 %v10337_v29, %s8816_s27  ;;  %v2252_v30 = vpop.permute.xlu1 %2251 }
 0x69a   : > { %v10647_v18 = vpop.eup %8093  ;;  %v2323_v22 = vsel %vm2208_vm3, %v10430_v24, %v2252_v30 }
 0x69b   : > { %7341 = vmatprep.mubr.msk.f32.mxu1 %vm2624_vm2, %v10647_v18  ;;  %v2276_v16 = vpop.permute.xlu0 %2275 }
 0x69c   : > { %v10651_v21 = vpop.eup %8095  ;;  %2196 = vrot.lane.b32.xlu0 %v10591_v62, %s8815_s16  ;;  %v2331_v63 = vsel %vm2217_vm4, %v2323_v22, %v2276_v16 }
 0x69d   : > { %2385 = vrot.lane.b32.xlu1 %v10337_v29, %s8817_s6  ;;  %7342 = vmatmul.mubr.msk.f32.gmra.mrb[52].mxu1 %vm2624_vm2, %v10651_v21  ;;  %v2254_v11 = vpop.permute.xlu1 %2253 }
 0x69e   : > { %v10659_v2 = vpop.eup %8097  ;;  %v2324_v51 = vsel %vm2208_vm3, %v10437_v20, %v2254_v11 }
 0x69f   : > { %v2185_v5 = vpop.permute.xlu0 %2184  ;;  %7344 = vmatprep.mubr.msk.f32.mxu1 %vm2624_vm2, %v10659_v2 }
 0x6a0   : > { %v10663_v55 = vpop.eup %8099  ;;  %2311 = vrot.lane.b32.xlu0 %v10599_v15, %s8815_s16  ;;  %v10710_v40 = vsel %vm2226_vm6, %v2218_v26, %v2185_v5 }
 0x6a1   : > { %2198 = vrot.lane.b32.xlu1 %v10602_v39, %s8815_s16  ;;  %7345 = vmatmul.mubr.msk.f32.gmra.mrb[54].mxu1 %vm2624_vm2, %v10663_v55  ;;  %v2163_v32 = vpop.permute.xlu1 %2162 }
 0x6a2   : > { %v2219_v36 = vsel %vm2217_vm4, %v2210_v14, %v2163_v32 }
 0x6a3   : > { %v2300_v37 = vpop.permute.xlu0 %2299 }
 0x6a4   : > { %2371 = vrot.lane.b32.xlu0 %v10347_v50, %s8816_s27  ;;  %v10705_v22 = vsel %vm2226_vm6, %v2331_v63, %v2300_v37 }
 0x6a5   : > { %2313 = vrot.lane.b32.xlu1 %v10611_v33, %s8815_s16  ;;  %v2278_v28 = vpop.permute.xlu1 %2277 }
 0x6a6   : > { %v2332_v49 = vsel %vm2217_vm4, %v2324_v51, %v2278_v28 }
 0x6a7   : > { %v2424_v61 = vpop.permute.xlu0 %2423 }
 0x6a8   : > { %2387 = vrot.lane.b32.xlu0 %v10347_v50, %s8817_s6 }
 0x6a9   : > { %2373 = vrot.lane.b32.xlu1 %v10345_v43, %s8816_s27  ;;  %v2187_v57 = vpop.permute.xlu1 %2186 }
 0x6aa   : > { %v10713_v25 = vsel %vm2226_vm6, %v2219_v36, %v2187_v57 }
 0x6ab   : > { %v2440_v6 = vpop.permute.xlu0 %2439  ;;  %v2416_v26 = vmul.f32 %v10713_v25, %v10467_v19 }
 0x6ac   : > { %2435 = vrot.lane.b32.xlu0 %v10375_v41, %s8816_s27  ;;  %v2455_v9 = vsel %vm10693_vm5, %v2424_v61, %v2440_v6  ;;  %v2415_v6 = vmul.f32 %v10710_v40, %v10458_v31 }
 0x6ad   : > { %2389 = vrot.lane.b32.xlu1 %v10345_v43, %s8817_s6  ;;  %v2302_v42 = vpop.permute.xlu1 %2301  ;;  %v2463_v28 = vmul.f32 %v2455_v9, %v10705_v22 }
 0x6ae   : > { %v10716_v14 = vsel %vm2226_vm6, %v2332_v49, %v2302_v42 }
 0x6af   : > { %v2141_v30 = vpop.permute.xlu0 %2140  ;;  %v2471_v37 = vadd.f32 %v2463_v28, %v2415_v6 }
 0x6b0   : > { %2451 = vrot.lane.b32.xlu0 %v10375_v41, %s8817_s6 }
 0x6b1   : > { %2437 = vrot.lane.b32.xlu1 %v10372_v4, %s8816_s27  ;;  %v2426_v7 = vpop.permute.xlu1 %2425 }
 0x6b3   : > { %v2256_v20 = vpop.permute.xlu0 %2255 }
 0x6b5   : > { %2453 = vrot.lane.b32.xlu1 %v10372_v4, %s8817_s6  ;;  %v2442_v63 = vpop.permute.xlu1 %2441 }
 0x6b6   : > { %v2456_v32 = vsel %vm10693_vm5, %v2426_v7, %v2442_v63  ;;  %v2325_v63 = vsel %vm2208_vm3, %v10481_v10, %v2256_v20 }
 0x6b7   : > { %v2464_v57 = vmul.f32 %v2456_v32, %v10716_v14  ;;  %v2165_v61 = vpop.permute.xlu0 %2164  ;;  %v2211_v32 = vsel %vm2208_vm3, %v10474_v27, %v2141_v30 }
 0x6b9   : > { %v2472_v17 = vadd.f32 %v2464_v57, %v2416_v26  ;;  %v2143_v16 = vpop.permute.xlu1 %2142 }
 0x6ba   : > { %v2212_v6 = vsel %vm2208_vm3, %v10484_v8, %v2143_v16 }
 0x6bb   : > { %v10728_v11 = vpack.c.bf16 %v2472_v17, %v2471_v37  ;;  %v2280_v5 = vpop.permute.xlu0 %2279  ;;  %v2220_v17 = vsel %vm2217_vm4, %v2211_v32, %v2165_v61 }
 0x6bc   : > { %v2333_v57 = vsel %vm2217_vm4, %v2325_v63, %v2280_v5 }
 0x6bd   : > { %v2258_v42 = vpop.permute.xlu1 %2257  ;;  %4357 = vrot.lane.b32.xlu0 %v10728_v11, %s8815_s16 }
 0x6be   : > { %v2326_v26 = vsel %vm2208_vm3, %v10491_v52, %v2258_v42 }
 0x6bf   : > { %v2189_v51 = vpop.permute.xlu0 %2188 }
 0x6c0   : > { %v2229_v8 = vsel %vm2226_vm6, %v2220_v17, %v2189_v51 }
 0x6c1   : > { %v2167_v36 = vpop.permute.xlu1 %2166 }
 0x6c2   : > { %v2221_v44 = vsel %vm2217_vm4, %v2212_v6, %v2167_v36  ;;  %v2417_v36 = vmul.f32 %v2229_v8, %v10512_v59 }
 0x6c3   : > { %v2304_v49 = vpop.permute.xlu0 %2303 }
 0x6c4   : > { %v2341_v20 = vsel %vm2226_vm6, %v2333_v57, %v2304_v49 }
 0x6c5   : > { %v2282_v31 = vpop.permute.xlu1 %2281 }
 0x6c6   : > { %v2334_v56 = vsel %vm2217_vm4, %v2326_v26, %v2282_v31 }
 0x6c7   : > { %v2428_v7 = vpop.permute.xlu0 %2427 }
 0x6c9   : > { %v2191_v9 = vpop.permute.xlu1 %2190 }
 0x6ca   : > { %v2230_v52 = vsel %vm2226_vm6, %v2221_v44, %v2191_v9 }
 0x6cb   : > { %v2444_v19 = vpop.permute.xlu0 %2443  ;;  %v2418_v31 = vmul.f32 %v2230_v52, %v10521_v54 }
 0x6cc   : > { %v2457_v27 = vsel %vm10693_vm5, %v2428_v7, %v2444_v19 }
 0x6cd   : > { %v2306_v28 = vpop.permute.xlu1 %2305  ;;  %v2465_v5 = vmul.f32 %v2457_v27, %v2341_v20 }
 0x6ce   : > { %v2342_v16 = vsel %vm2226_vm6, %v2334_v56, %v2306_v28 }
 0x6cf   : > { %v2145_v37 = vpop.permute.xlu0 %2144  ;;  %v2473_v32 = vadd.f32 %v2465_v5, %v2417_v36 }
 0x6d1   : > { %v2430_v10 = vpop.permute.xlu1 %2429 }
 0x6d3   : > { %v2260_v30 = vpop.permute.xlu0 %2259 }
 0x6d5   : > { %v2446_v42 = vpop.permute.xlu1 %2445 }
 0x6d6   : > { %v2458_v61 = vsel %vm10693_vm5, %v2430_v10, %v2446_v42  ;;  %v2351_v42 = vmul.f32 %v10710_v40, %v10323_v3 }
 0x6d7   : > { %v2466_v49 = vmul.f32 %v2458_v61, %v2342_v16  ;;  %v2169_v63 = vpop.permute.xlu0 %2168  ;;  %v2352_v61 = vmul.f32 %v10713_v25, %v10321_v35  ;;  %v7957_v35 = vld [vmem:[%s12858_s21 + $0xc0] sm:$0xff]  }
 0x6d9   : > { %v2474_v7 = vadd.f32 %v2466_v49, %v2418_v31  ;;  %v2147_v19 = vpop.permute.xlu1 %2146 }
 0x6db   : > { %v10754_v6 = vpack.c.bf16 %v2474_v7, %v2473_v32  ;;  %v2284_v51 = vpop.permute.xlu0 %2283 }
 0x6dd   : > { %4359 = vrot.lane.b32.xlu1 %v10754_v6, %s8815_s16  ;;  %v2262_v44 = vpop.permute.xlu1 %2261 }
 0x6df   : > { %v2360_v56 = vpop.permute.xlu0 %2359 }
 0x6e1   : > { %v2171_v9 = vpop.permute.xlu1 %2170 }
 0x6e3   : > { %v2376_v28 = vpop.permute.xlu0 %2375 }
 0x6e4   : > { %v2391_v54 = vsel %vm10693_vm5, %v2360_v56, %v2376_v28 }
 0x6e5   : > { %v2286_v26 = vpop.permute.xlu1 %2285  ;;  %v2399_v10 = vmul.f32 %v2391_v54, %v10705_v22 }
 0x6e7   : > { %v2193_v57 = vpop.permute.xlu0 %2192  ;;  %v2407_v49 = vadd.f32 %v2399_v10, %v2351_v42  ;;  %v2213_v10 = vsel %vm2208_vm3, %v10528_v23, %v2145_v37  ;;  %v2214_v42 = vsel %vm2208_vm3, %v10538_v48, %v2147_v19 }
 0x6e8   : > { %v2222_v23 = vsel %vm2217_vm4, %v2213_v10, %v2169_v63  ;;  %v2223_v37 = vsel %vm2217_vm4, %v2214_v42, %v2171_v9 }
 0x6e9   : > { %v2362_v59 = vpop.permute.xlu1 %2361 }
 0x6eb   : > { %v2308_v17 = vpop.permute.xlu0 %2307 }
 0x6ed   : > { %v2378_v27 = vpop.permute.xlu1 %2377 }
 0x6ee   : > { %v2392_v5 = vsel %vm10693_vm5, %v2362_v59, %v2378_v27  ;;  %v7956_v59 = vld [vmem:[%s9302_s19] sm:$0xff]   ;;  %s8721_s19 = scalar_lea.vmem %s8720_s14, 2048 }
 0x6ef   : > { %v2400_v36 = vmul.f32 %v2392_v5, %v10716_v14  ;;  %v2364_v31 = vpop.permute.xlu0 %2363  ;;  %7347 = vmatprep.subr.bf16.mxu1 %v7956_v59  ;;  %v2327_v14 = vsel %vm2208_vm3, %v10535_v46, %v2260_v30 }
 0x6f0   : > { %7348 = vmatpush3.bf16.msra.mxu1 %v7956_v59  ;;  %v2335_v46 = vsel %vm2217_vm4, %v2327_v14, %v2284_v51 }
 0x6f1   : > { %v2408_v32 = vadd.f32 %v2400_v36, %v2352_v61  ;;  %v2195_v7 = vpop.permute.xlu1 %2194  ;;  %7041 = vmatprep.subr.bf16.mxu1 %v7957_v35  ;;  %v2328_v61 = vsel %vm2208_vm3, %v10545_v0, %v2262_v44  ;;  %v2343_v44 = vsel %vm2226_vm6, %v2335_v46, %v2308_v17 }
 0x6f2   : > { %v2336_v48 = vsel %vm2217_vm4, %v2328_v61, %v2286_v26 }
 0x6f3   : > { %v10768_v56 = vpack.c.bf16 %v2408_v32, %v2407_v49  ;;  %v2380_v28 = vpop.permute.xlu0 %2379  ;;  %v2354_v49 = vmul.f32 %v2230_v52, %v10329_v12  ;;  %v2231_v52 = vsel %vm2226_vm6, %v2222_v23, %v2193_v57 }
 0x6f4   : > { %v2393_v40 = vsel %vm10693_vm5, %v2364_v31, %v2380_v28  ;;  %v2353_v31 = vmul.f32 %v2229_v8, %v10331_v53  ;;  %v2419_v17 = vmul.f32 %v2231_v52, %v10367_v38 }
 0x6f5   : > { %v2310_v22 = vpop.permute.xlu1 %2309  ;;  %4347 = vrot.lane.b32.xlu0 %v10768_v56, %s8815_s16  ;;  %v2401_v27 = vmul.f32 %v2393_v40, %v2341_v20 }
 0x6f6   : > { %v2344_v63 = vsel %vm2226_vm6, %v2336_v48, %v2310_v22 }
 0x6f7   : > { %v2432_v54 = vpop.permute.xlu0 %2431  ;;  %v2409_v20 = vadd.f32 %v2401_v27, %v2353_v31 }
 0x6f9   : > { %v2366_v3 = vpop.permute.xlu1 %2365 }
 0x6fb   : > { %v2448_v25 = vpop.permute.xlu0 %2447 }
 0x6fc   : > { %v2459_v53 = vsel %vm10693_vm5, %v2432_v54, %v2448_v25 }
 0x6fd   : > { %v2382_v5 = vpop.permute.xlu1 %2381  ;;  %v2467_v51 = vmul.f32 %v2459_v53, %v2343_v44 }
 0x6fe   : > { %v2394_v36 = vsel %vm10693_vm5, %v2366_v3, %v2382_v5 }
 0x6ff   : > { %v2402_v30 = vmul.f32 %v2394_v36, %v2342_v16  ;;  %v2149_v32 = vpop.permute.xlu0 %2148  ;;  %v2232_v16 = vsel %vm2226_vm6, %v2223_v37, %v2195_v7  ;;  %v2475_v35 = vadd.f32 %v2467_v51, %v2419_v17 }
 0x700   : > { %v2420_v28 = vmul.f32 %v2232_v16, %v10364_v47  ;;  %v2356_v46 = vmul.f32 %v2232_v16, %v10337_v29 }
 0x701   : > { %v2410_v19 = vadd.f32 %v2402_v30, %v2354_v49  ;;  %v2434_v0 = vpop.permute.xlu1 %2433  ;;  %v2355_v49 = vmul.f32 %v2231_v52, %v10339_v13  ;;  %v2215_v13 = vsel %vm2208_vm3, %v10591_v62, %v2149_v32 }
 0x703   : > { %v10797_v8 = vpack.c.bf16 %v2410_v19, %v2409_v20  ;;  %v2264_v12 = vpop.permute.xlu0 %2263 }
 0x704   : > { %v2329_v53 = vsel %vm2208_vm3, %v10599_v15, %v2264_v12 }
 0x705   : > { %4349 = vrot.lane.b32.xlu1 %v10797_v8, %s8815_s16  ;;  %v2450_v9 = vpop.permute.xlu1 %2449 }
 0x706   : > { %v2460_v26 = vsel %vm10693_vm5, %v2434_v0, %v2450_v9 }
 0x707   : > { %v2468_v59 = vmul.f32 %v2460_v26, %v2344_v63  ;;  %v2173_v54 = vpop.permute.xlu0 %2172 }
 0x709   : > { %v2476_v57 = vadd.f32 %v2468_v59, %v2420_v28  ;;  %v2151_v3 = vpop.permute.xlu1 %2150 }
 0x70a   : > { %v2216_v29 = vsel %vm2208_vm3, %v10602_v39, %v2151_v3 }
 0x70b   : > { %v10808_v7 = vpack.c.bf16 %v2476_v57, %v2475_v35  ;;  %v2288_v22 = vpop.permute.xlu0 %2287 }
 0x70c   : > { %v2337_v16 = vsel %vm2217_vm4, %v2329_v53, %v2288_v22 }
 0x70d   : > { %v2266_v40 = vpop.permute.xlu1 %2265  ;;  %4655 = vrot.lane.b32.xlu0 %v10808_v7, %s8815_s16 }
 0x70e   : > { %v2330_v52 = vsel %vm2208_vm3, %v10611_v33, %v2266_v40 }
 0x70f   : > { %v2368_v25 = vpop.permute.xlu0 %2367 }
 0x711   : > { %v2175_v14 = vpop.permute.xlu1 %2174 }
 0x712   : > { %v2225_v51 = vsel %vm2217_vm4, %v2216_v29, %v2175_v14 }
 0x713   : > { %v2384_v10 = vpop.permute.xlu0 %2383 }
 0x714   : > { %v2395_v47 = vsel %vm10693_vm5, %v2368_v25, %v2384_v10 }
 0x715   : > { %v2290_v27 = vpop.permute.xlu1 %2289  ;;  %v2403_v61 = vmul.f32 %v2395_v47, %v2343_v44 }
 0x716   : > { %v2338_v15 = vsel %vm2217_vm4, %v2330_v52, %v2290_v27 }
 0x717   : > { %v2197_v5 = vpop.permute.xlu0 %2196  ;;  %v2411_v37 = vadd.f32 %v2403_v61, %v2355_v49  ;;  %v12944_v49 = vld [vmem:[#allocation35_spill] sm:$0xff] }
 0x719   : > { %v2370_v38 = vpop.permute.xlu1 %2369 }
 0x71b   : > { %v2312_v42 = vpop.permute.xlu0 %2311 }
 0x71c   : > { %v2345_v26 = vsel %vm2226_vm6, %v2337_v16, %v2312_v42 }
 0x71d   : > { %v2386_v36 = vpop.permute.xlu1 %2385 }
 0x71e   : > { %v2396_v31 = vsel %vm10693_vm5, %v2370_v38, %v2386_v36 }
 0x71f   : > { %v2404_v30 = vmul.f32 %v2396_v31, %v2344_v63  ;;  %v2372_v23 = vpop.permute.xlu0 %2371  ;;  %v2224_v63 = vsel %vm2217_vm4, %v2215_v13, %v2173_v54 }
 0x720   : > { %v2233_v39 = vsel %vm2226_vm6, %v2224_v63, %v2197_v5 }
 0x721   : > { %v2412_v48 = vadd.f32 %v2404_v30, %v2356_v46  ;;  %v2199_v20 = vpop.permute.xlu1 %2198  ;;  %v2357_v54 = vmul.f32 %v2233_v39, %v10347_v50 }
 0x722   : > { %v2234_v32 = vsel %vm2226_vm6, %v2225_v51, %v2199_v20 }
 0x723   : > { %v10818_v19 = vpack.c.bf16 %v2412_v48, %v2411_v37  ;;  %v2388_v0 = vpop.permute.xlu0 %2387  ;;  %v2358_v35 = vmul.f32 %v2234_v32, %v10345_v43  ;;  %v2421_v43 = vmul.f32 %v2233_v39, %v10375_v41  ;;  %v2422_v38 = vmul.f32 %v2234_v32, %v10372_v4  ;;  %v12943_v4 = vld [vmem:[#allocation42_spill] sm:$0xff]  ;;  %v12945_v48 = vld [vmem:[#allocation48_spill] sm:$0xff] }
 0x724   : > { %v2397_v62 = vsel %vm10693_vm5, %v2372_v23, %v2388_v0 }
 0x725   : > { %4351 = vrot.lane.b32.xlu1 %v10818_v19, %s8815_s16  ;;  %v2314_v44 = vpop.permute.xlu1 %2313  ;;  %v2405_v17 = vmul.f32 %v2397_v62, %v2345_v26 }
 0x726   : > { %v2346_v33 = vsel %vm2226_vm6, %v2338_v15, %v2314_v44 }
 0x727   : > { %v2436_v12 = vpop.permute.xlu0 %2435  ;;  %v2413_v22 = vadd.f32 %v2405_v17, %v2357_v54  ;;  %v7961_v17 = vld [vmem:[%s12858_s21 + $0xd0] sm:$0xff]   ;;  %v7963_v54 = vld [vmem:[%s12858_s21 + $0xd8] sm:$0xff]  }
 0x729   : > { %v2374_v9 = vpop.permute.xlu1 %2373 }
 0x72b   : > { %v2452_v57 = vpop.permute.xlu0 %2451 }
 0x72c   : > { %v2461_v14 = vsel %vm10693_vm5, %v2436_v12, %v2452_v57 }
 0x72d   : > { %v2390_v28 = vpop.permute.xlu1 %2389  ;;  %v2469_v27 = vmul.f32 %v2461_v14, %v2345_v26  ;;  %v7965_v14 = vld [vmem:[%s12858_s21 + $0xe0] sm:$0xff]  }
 0x72e   : > { %v2398_v59 = vsel %vm10693_vm5, %v2374_v9, %v2390_v28  ;;  %v7962_v28 = vld [vmem:[%s12858_s21 + $0x90] sm:$0xff]  }
 0x72f   : > { %v2406_v3 = vmul.f32 %v2398_v59, %v2346_v33  ;;  %v2477_v42 = vadd.f32 %v2469_v27, %v2421_v43  ;;  %v7967_v43 = vld [vmem:[%s12858_s21 + $0xe8] sm:$0xff]  }
 0x731   : > { %v2414_v40 = vadd.f32 %v2406_v3, %v2358_v35  ;;  %v2438_v25 = vpop.permute.xlu1 %2437 }
 0x733   : > { %v10846_v10 = vpack.c.bf16 %v2414_v40, %v2413_v22  ;;  %v7964_v22 = vld [vmem:[%s12858_s21 + $0x98] sm:$0xff]  }
 0x735   : > { %v2454_v5 = vpop.permute.xlu1 %2453  ;;  %4353 = vrot.lane.b32.xlu0 %v10846_v10, %s8815_s16 }
 0x736   : > { %v2462_v50 = vsel %vm10693_vm5, %v2438_v25, %v2454_v5 }
 0x737   : > { %v2470_v47 = vmul.f32 %v2462_v50, %v2346_v33  ;;  %v7959_v33 = vld [vmem:[%s12858_s21 + $0xc8] sm:$0xff]  }
 0x739   : > { %v2478_v61 = vadd.f32 %v2470_v47, %v2422_v38  ;;  %4979 = vrot.lane.b32.xlu0 %v10728_v11, %s8814_s20  ;;  %v12946_v38 = vld [vmem:[#allocation50_spill] sm:$0xff] }
 0x73b   : > { %v10856_v36 = vpack.c.bf16 %v2478_v61, %v2477_v42  ;;  %v7969_v42 = vld [vmem:[%s12858_s21 + $0xf0] sm:$0xff]  }
 0x73c   : > { %v7970_v61 = vld [vmem:[%s12858_s21 + $0xb0] sm:$0xff]  }
 0x73d   : > { %4971 = vrot.lane.b32.xlu0 %v10768_v56, %s8814_s20  ;;  %4657 = vrot.lane.b32.xlu1 %v10856_v36, %s8815_s16 }
 0x741   : > { %5273 = vrot.lane.b32.xlu0 %v10808_v7, %s8814_s20  ;;  %4981 = vrot.lane.b32.xlu1 %v10754_v6, %s8814_s20 }
 0x745   : > { %4977 = vrot.lane.b32.xlu0 %v10846_v10, %s8814_s20  ;;  %4973 = vrot.lane.b32.xlu1 %v10797_v8, %s8814_s20 }
 0x749   : > { %5595 = vrot.lane.b32.xlu0 %v10728_v11, %s8813_s3  ;;  %4975 = vrot.lane.b32.xlu1 %v10818_v19, %s8814_s20 }
 0x74d   : > { %5587 = vrot.lane.b32.xlu0 %v10768_v56, %s8813_s3  ;;  %5275 = vrot.lane.b32.xlu1 %v10856_v36, %s8814_s20 }
 0x751   : > { %5889 = vrot.lane.b32.xlu0 %v10808_v7, %s8813_s3  ;;  %5597 = vrot.lane.b32.xlu1 %v10754_v6, %s8813_s3 }
 0x755   : > { %5593 = vrot.lane.b32.xlu0 %v10846_v10, %s8813_s3  ;;  %5589 = vrot.lane.b32.xlu1 %v10797_v8, %s8813_s3 }
 0x759   : > { %4562 = vrot.lane.b32.xlu0 %v12907_v60, %s8815_s16  ;;  %5591 = vrot.lane.b32.xlu1 %v10818_v19, %s8813_s3 }
 0x75d   : > { %4864 = vrot.lane.b32.xlu0 %v12943_v4, %s8815_s16  ;;  %5891 = vrot.lane.b32.xlu1 %v10856_v36, %s8813_s3 }
 0x760   : > { %v7337_v41 = vpop.f32.mrb[48].mxu1 }
 0x761   : > { %v2805_v24 = vmax.f32 %v7337_v41, 1e-30  ;;  %v2765_v31 = vpop.f32.mrb[49].mxu1  ;;  %5182 = vrot.lane.b32.xlu0 %v12907_v60, %s8814_s20  ;;  %4564 = vrot.lane.b32.xlu1 %v12944_v49, %s8815_s16  ;;  %v7971_v41 = vld [vmem:[%s12858_s21 + $0xf8] sm:$0xff]  }
 0x762   : > { %v2804_v46 = vmax.f32 %v2765_v31, 1e-30  ;;  %v12949_v31 = vld [vmem:[#allocation58_spill] sm:$0xff] }
 0x763   : > { %8101 = vrcp.f32 %v2805_v24  ;;  %v7972_v24 = vld [vmem:[%s12858_s21 + $0xb8] sm:$0xff]  }
 0x764   : > { %8103 = vrcp.f32 %v2804_v46  ;;  %v7340_v30 = vpop.f32.mrb[50].mxu1  ;;  %v12950_v46 = vld [vmem:[#allocation57_spill] sm:$0xff] }
 0x765   : > { %v2807_v23 = vmax.f32 %v7340_v30, 1e-30  ;;  %v2775_v37 = vpop.f32.mrb[51].mxu1  ;;  %5480 = vrot.lane.b32.xlu0 %v12943_v4, %s8814_s20  ;;  %4866 = vrot.lane.b32.xlu1 %v12945_v48, %s8815_s16  ;;  %v12951_v30 = vpack.c.bf16 %v12949_v31, %v12950_v46 }
 0x766   : > { %v2806_v20 = vmax.f32 %v2775_v37, 1e-30  ;;  %v12953_v37 = vld [vmem:[#allocation51_spill] sm:$0xff] }
 0x767   : > { %8105 = vrcp.f32 %v2807_v23  ;;  %v12952_v23 = vld [vmem:[#allocation52_spill] sm:$0xff] }
 0x768   : > { %8107 = vrcp.f32 %v2806_v20  ;;  %v12954_v20 = vpack.c.bf16 %v12952_v23, %v12953_v37 }
 0x769   : > { %5184 = vrot.lane.b32.xlu1 %v12944_v49, %s8814_s20 }
 0x76d   : > { %v8102_v0 = vpop.eup %8101  ;;  %5482 = vrot.lane.b32.xlu1 %v12945_v48, %s8814_s20 }
 0x76e   : > { %v8104_v53 = vpop.eup %8103  ;;  %v2821_v44 = vmul.f32 %v8102_v0, %v10615_v34  ;;  %v3768_v0 = vsel %vm2208_vm3, %v10728_v11, 0 }
 0x76f   : > { %v2820_v13 = vmul.f32 %v8104_v53, %v10608_v45  ;;  %v7958_v45 = vld [vmem:[%s12858_s21 + $0x80] sm:$0xff]   ;;  %v12955_v53 = vld [vmem:[#allocation53_spill] sm:$0xff] }
 0x770   : > { %v7343_v29 = vpop.f32.mrb[52].mxu1 }
 0x771   : > { %v8106_v52 = vpop.eup %8105  ;;  %v2809_v16 = vmax.f32 %v7343_v29, 1e-30  ;;  %v2785_v63 = vpop.f32.mrb[53].mxu1  ;;  %v2828_v51 = vpack.c.bf16 %v2821_v44, %v2820_v13  ;;  %v12956_v44 = vld [vmem:[#allocation54_spill] sm:$0xff]  ;;  %v12958_v29 = vld [vmem:[#allocation59_spill] sm:$0xff] }
 0x772   : > { %v8108_v15 = vpop.eup %8107  ;;  %v2823_v12 = vmul.f32 %v8106_v52, %v10629_v1  ;;  %v2808_v9 = vmax.f32 %v2785_v63, 1e-30  ;;  %v12957_v13 = vpack.c.bf16 %v12955_v53, %v12956_v44  ;;  %v12959_v52 = vld [vmem:[#allocation56_spill] sm:$0xff]  ;;  %v3771_v63 = vsel %vm2208_vm3, %v10754_v6, 0 }
 0x773   : > { %v2822_v26 = vmul.f32 %v8108_v15, %v10624_v58  ;;  %8109 = vrcp.f32 %v2809_v16  ;;  %7349 = vmatprep.mubr.msk.bf16.mxu1 %vm2624_vm2, %v2828_v51  ;;  %v7960_v58 = vld [vmem:[%s12858_s21 + $0x88] sm:$0xff]   ;;  %v12960_v16 = vpack.c.bf16 %v12958_v29, %v12959_v52  ;;  %v12962_v51 = vld [vmem:[#allocation60_spill] sm:$0xff] }
 0x774   : > { %8111 = vrcp.f32 %v2808_v9  ;;  %v7346_v62 = vpop.f32.mrb[54].mxu1  ;;  %v12965_v9 = vld [vmem:[#allocation32_spill] sm:$0xff] }
 0x775   : > { %v2829_v34 = vpack.c.bf16 %v2823_v12, %v2822_v26  ;;  %v2811_v39 = vmax.f32 %v7346_v62, 1e-30  ;;  %v2795_v32 = vpop.f32.mrb[55].mxu1  ;;  %v12964_v12 = vld [vmem:[#allocation62_spill] sm:$0xff]  ;;  %v12967_v62 = vld [vmem:[#allocation64_spill] sm:$0xff] }
 0x776   : > { %v2810_v1 = vmax.f32 %v2795_v32, 1e-30  ;;  %v12966_v26 = vpack.c.bf16 %v12964_v12, %v12965_v9  ;;  %v4358_v32 = vpop.permute.xlu0 %4357 }
 0x777   : > { %8113 = vrcp.f32 %v2811_v39  ;;  %7350 = vmatmul.mubr.msk.bf16.vlgmr.msra.gmra.mrb[56].mxu1 %vm2624_vm2, %v2829_v34  ;;  %v4043_v39 = vsel %vm2208_vm3, %v10856_v36, 0 }
 0x778   : > { %8115 = vrcp.f32 %v2810_v1  ;;  %7042 = vmatpush3.bf16.msra.mxu1 %v7958_v45  ;;  %v12968_v45 = vld [vmem:[#allocation63_spill] sm:$0xff] }
 0x779   : > { %7043 = vmatprep.subr.bf16.mxu1 %v7959_v33  ;;  %v12969_v34 = vpack.c.bf16 %v12967_v62, %v12968_v45  ;;  %v4360_v33 = vpop.permute.xlu1 %4359  ;;  %v12972_v45 = vld [vmem:[#allocation66_spill] sm:$0xff] }
 0x77c   : > { %7044 = vmatpush3.bf16.msra.mxu1 %v7960_v58 }
 0x77d   : > { %v8110_v59 = vpop.eup %8109  ;;  %7045 = vmatprep.subr.bf16.mxu1 %v7961_v17  ;;  %v4350_v1 = vpop.permute.xlu1 %4349 }
 0x77e   : > { %v8112_v35 = vpop.eup %8111  ;;  %v2825_v57 = vmul.f32 %v8110_v59, %v10651_v21 }
 0x77f   : > { %v2824_v3 = vmul.f32 %v8112_v35, %v10647_v18  ;;  %v7966_v18 = vld [vmem:[%s12858_s21 + $0xa0] sm:$0xff]  }
 0x780   : > { %7046 = vmatpush3.bf16.msra.mxu1 %v7962_v28 }
 0x781   : > { %v8114_v40 = vpop.eup %8113  ;;  %7047 = vmatprep.subr.bf16.mxu1 %v7963_v54  ;;  %v2830_v25 = vpack.c.bf16 %v2825_v57, %v2824_v3 }
 0x782   : > { %v8116_v27 = vpop.eup %8115  ;;  %v2827_v5 = vmul.f32 %v8114_v40, %v10663_v55  ;;  %v12947_v55 = vld [vmem:[#allocation55_spill] sm:$0xff] }
 0x783   : > { %7353 = vmatprep.mubr.msk.bf16.mxu1 %vm2624_vm2, %v2830_v25  ;;  %v2826_v21 = vmul.f32 %v8116_v27, %v10659_v2  ;;  %v12948_v47 = vpack.c.bf16 %v12946_v38, %v12947_v55  ;;  %v7968_v2 = vld [vmem:[%s12858_s21 + $0xa8] sm:$0xff]  }
 0x784   : > { %7048 = vmatpush3.bf16.msra.mxu1 %v7964_v22 }
 0x785   : > { %7049 = vmatprep.subr.bf16.mxu1 %v7965_v14  ;;  %v2831_v50 = vpack.c.bf16 %v2827_v5, %v2826_v21 }
 0x787   : > { %7354 = vmatmul.mubr.msk.bf16.gmra.mrb[60].mxu1 %vm2624_vm2, %v2831_v50 }
 0x788   : > { %7050 = vmatpush3.bf16.msra.mxu1 %v7966_v18  ;;  %3581 = vmatprep.mubr.bf16.mxu1 %v12948_v47 }
 0x789   : > { %7051 = vmatprep.subr.bf16.mxu1 %v7967_v43 }
 0x78c   : > { %7052 = vmatpush3.bf16.msra.mxu1 %v7968_v2 }
 0x78d   : > { %7053 = vmatprep.subr.bf16.mxu1 %v7969_v42 }
 0x790   : > { %7054 = vmatpush3.bf16.msra.mxu1 %v7970_v61 }
 0x791   : > { %7055 = vmatprep.subr.bf16.mxu1 %v7971_v41 }
 0x794   : > { %7056 = vmatpush3.bf16.msra.mxu1 %v7972_v24 }
 0x795   : > { %7649 = vmatprep.subr.msk.bf16.mxu1 %vm2208_vm3, %v10728_v11  ;;  %v12961_v11 = vld [vmem:[#allocation61_spill] sm:$0xff] }
 0x796   : > { %v12963_v15 = vpack.c.bf16 %v12961_v11, %v12962_v51 }
 0x797   : > { %3582 = vmatmul.mubr.bf16.vlgmr.msra.gmra.mrb[64].mxu1 %v12951_v30 }
 0x798   : > { %3589 = vmatprep.mubr.bf16.mxu1 %v12954_v20 }
 0x79d   : > { %7382 = vmatpush3.bf16.xpose.msra.mxu1 %v3768_v0 }
 0x79e   : > { %7650 = vmatprep.subr.msk.bf16.mxu1 %vm2208_vm3, %v10754_v6  ;;  %v4040_v6 = vsel %vm2208_vm3, %v10808_v7, 0 }
 0x79f   : > { %3590 = vmatmul.mubr.bf16.gmra.mrb[68].mxu1 %v12957_v13 }
 0x7a0   : > { %3597 = vmatprep.mubr.bf16.mxu1 %v12960_v16 }
 0x7a5   : > { %7384 = vmatpush3.bf16.xpose.msra.mxu1 %v3771_v63  ;;  %v6796_v63 = vld [vmem:[%s12970_s4] ss:$0 sm:$0xff] }
 0x7a6   : > { %7651 = vmatprep.subr.msk.bf16.mxu1 %vm2208_vm3, %v10808_v7  ;;  %v4374_v7 = vsel %vm2208_vm3, %v4358_v32, 0 }
 0x7a7   : > { %3598 = vmatmul.mubr.bf16.gmra.mrb[72].mxu1 %v12963_v15  ;;  %v12971_v15 = vld [vmem:[#allocation65_spill] sm:$0xff] }
 0x7a8   : > { %3605 = vmatprep.mubr.bf16.mxu1 %v12966_v26  ;;  %v3519_v12 = vadd.f32 %v12971_v15, %v6796_v63 }
 0x7af   : > { %3606 = vmatmul.mubr.bf16.gmra.mrb[76].mxu1 %v12969_v34  ;;  %v3522_v34 = vadd.f32 %v12972_v45, %v6796_v63 }
 0x7b0   : > { %7385 = vmatprep.mubr.msk.bf16.mxu1 %vm2208_vm3, %v10768_v56 }
 0x7b7   : > { %7386 = vmatmul.mubr.msk.bf16.vlgmr.msra.gmra.mrb[80].mxu1 %vm2208_vm3, %v10797_v8 }
 0x7b8   : > { %7406 = vmatpush3.bf16.xpose.msra.mxu1 %v4040_v6  ;;  %7389 = vmatprep.mubr.msk.bf16.mxu1 %vm2208_vm3, %v10818_v19 }
 0x7b9   : > { %7652 = vmatprep.subr.msk.bf16.mxu1 %vm2208_vm3, %v10856_v36  ;;  %v4348_v36 = vpop.permute.xlu0 %4347 }
 0x7bd   : > { %v4656_v58 = vpop.permute.xlu0 %4655 }
 0x7bf   : > { %7390 = vmatmul.mubr.msk.bf16.gmra.mrb[84].mxu1 %vm2208_vm3, %v10846_v10 }
 0x7c0   : > { %7408 = vmatpush3.bf16.xpose.msra.mxu1 %v4043_v39  ;;  %7409 = vmatprep.mubr.msk.bf16.mxu1 %vm2208_vm3, %v10768_v56  ;;  %v4377_v56 = vsel %vm2208_vm3, %v4360_v33, 0 }
 0x7c1   : > { %7653 = vmatprep.subr.msk.bf16.mxu1 %vm2208_vm3, %v4358_v32 }
 0x7c7   : > { %7410 = vmatmul.mubr.msk.bf16.vlgmr.msra.gmra.mrb[88].mxu1 %vm2208_vm3, %v10797_v8  ;;  %v4352_v8 = vpop.permute.xlu1 %4351 }
 0x7c8   : > { %7430 = vmatpush3.bf16.xpose.msra.mxu1 %v4374_v7  ;;  %7413 = vmatprep.mubr.msk.bf16.mxu1 %vm2208_vm3, %v10818_v19  ;;  %v4660_v19 = vsel %vm2208_vm3, %v4656_v58, 0 }
 0x7c9   : > { %7654 = vmatprep.subr.msk.bf16.mxu1 %vm2208_vm3, %v4360_v33 }
 0x7cb   : > { %v4658_v17 = vpop.permute.xlu1 %4657 }
 0x7cc   : > { %v4663_v28 = vsel %vm2208_vm3, %v4658_v17, 0 }
 0x7cf   : > { %7414 = vmatmul.mubr.msk.bf16.gmra.mrb[92].mxu1 %vm2208_vm3, %v10846_v10  ;;  %v4354_v10 = vpop.permute.xlu0 %4353  ;;  %v4982_v54 = vpop.permute.xlu1 %4981 }
 0x7d0   : > { %7432 = vmatpush3.bf16.xpose.msra.mxu1 %v4377_v56  ;;  %7433 = vmatprep.mubr.msk.bf16.mxu1 %vm2208_vm3, %v4348_v36  ;;  %v4999_v22 = vsel %vm2208_vm3, %v4982_v54, 0 }
 0x7d1   : > { %7655 = vmatprep.subr.msk.bf16.mxu1 %vm2208_vm3, %v4656_v58 }
 0x7d3   : > { %v4980_v59 = vpop.permute.xlu0 %4979  ;;  %v4974_v3 = vpop.permute.xlu1 %4973 }
 0x7d4   : > { %v4996_v35 = vsel %vm2208_vm3, %v4980_v59, 0 }
 0x7d7   : > { %7434 = vmatmul.mubr.msk.bf16.vlgmr.msra.gmra.mrb[96].mxu1 %vm2208_vm3, %v4350_v1  ;;  %v4972_v57 = vpop.permute.xlu0 %4971  ;;  %v4976_v25 = vpop.permute.xlu1 %4975 }
 0x7d8   : > { %7454 = vmatpush3.bf16.xpose.msra.mxu1 %v4660_v19  ;;  %7437 = vmatprep.mubr.msk.bf16.mxu1 %vm2208_vm3, %v4352_v8  ;;  %v12976_v19 = vld [vmem:[#allocation68_spill] sm:$0xff] }
 0x7d9   : > { %7656 = vmatprep.subr.msk.bf16.mxu1 %vm2208_vm3, %v4658_v17  ;;  %v3530_v17 = vadd.f32 %v12976_v19, %v6796_v63 }
 0x7db   : > { %v5274_v40 = vpop.permute.xlu0 %5273  ;;  %v5276_v27 = vpop.permute.xlu1 %5275 }
 0x7dc   : > { %v5278_v14 = vsel %vm2208_vm3, %v5274_v40, 0  ;;  %v5281_v21 = vsel %vm2208_vm3, %v5276_v27, 0 }
 0x7df   : > { %7438 = vmatmul.mubr.msk.bf16.gmra.mrb[100].mxu1 %vm2208_vm3, %v4354_v10  ;;  %v4978_v5 = vpop.permute.xlu0 %4977  ;;  %v5598_v50 = vpop.permute.xlu1 %5597 }
 0x7e0   : > { %7456 = vmatpush3.bf16.xpose.msra.mxu1 %v4663_v28  ;;  %7457 = vmatprep.mubr.msk.bf16.mxu1 %vm2208_vm3, %v4348_v36  ;;  %v5615_v47 = vsel %vm2208_vm3, %v5598_v50, 0  ;;  %v12975_v36 = vld [vmem:[#allocation67_spill] sm:$0xff] }
 0x7e1   : > { %7657 = vmatprep.subr.msk.bf16.mxu1 %vm2208_vm3, %v4980_v59  ;;  %v3527_v56 = vadd.f32 %v12975_v36, %v6796_v63 }
 0x7e3   : > { %v5596_v18 = vpop.permute.xlu0 %5595  ;;  %v5590_v55 = vpop.permute.xlu1 %5589 }
 0x7e4   : > { %v5612_v43 = vsel %vm2208_vm3, %v5596_v18, 0 }
 0x7e7   : > { %7458 = vmatmul.mubr.msk.bf16.vlgmr.msra.gmra.mrb[104].mxu1 %vm2208_vm3, %v4350_v1  ;;  %v5588_v38 = vpop.permute.xlu0 %5587  ;;  %v5592_v42 = vpop.permute.xlu1 %5591 }
 0x7e8   : > { %7478 = vmatpush3.bf16.xpose.msra.mxu1 %v4996_v35  ;;  %7461 = vmatprep.mubr.msk.bf16.mxu1 %vm2208_vm3, %v4352_v8 }
 0x7e9   : > { %7658 = vmatprep.subr.msk.bf16.mxu1 %vm2208_vm3, %v4982_v54 }
 0x7eb   : > { %v5890_v2 = vpop.permute.xlu0 %5889  ;;  %v5892_v41 = vpop.permute.xlu1 %5891 }
 0x7ec   : > { %v5894_v61 = vsel %vm2208_vm3, %v5890_v2, 0  ;;  %v5897_v31 = vsel %vm2208_vm3, %v5892_v41, 0 }
 0x7ef   : > { %7462 = vmatmul.mubr.msk.bf16.gmra.mrb[108].mxu1 %vm2208_vm3, %v4354_v10  ;;  %v5594_v24 = vpop.permute.xlu0 %5593 }
 0x7f0   : > { %7480 = vmatpush3.bf16.xpose.msra.mxu1 %v4999_v22  ;;  %7481 = vmatprep.mubr.msk.bf16.mxu1 %vm2208_vm3, %v4972_v57 }
 0x7f1   : > { %7659 = vmatprep.subr.msk.bf16.mxu1 %vm2208_vm3, %v5274_v40 }
 0x7f7   : > { %7482 = vmatmul.mubr.msk.bf16.vlgmr.msra.gmra.mrb[112].mxu1 %vm2208_vm3, %v4974_v3 }
 0x7f8   : > { %7502 = vmatpush3.bf16.xpose.msra.mxu1 %v5278_v14  ;;  %7485 = vmatprep.mubr.msk.bf16.mxu1 %vm2208_vm3, %v4976_v25  ;;  %v12980_v14 = vld [vmem:[#allocation70_spill] sm:$0xff] }
 0x7f9   : > { %7660 = vmatprep.subr.msk.bf16.mxu1 %vm2208_vm3, %v5276_v27  ;;  %v3538_v27 = vadd.f32 %v12980_v14, %v6796_v63 }
 0x7ff   : > { %7486 = vmatmul.mubr.msk.bf16.gmra.mrb[116].mxu1 %vm2208_vm3, %v4978_v5 }
 0x800   : > { %7504 = vmatpush3.bf16.xpose.msra.mxu1 %v5281_v21  ;;  %7505 = vmatprep.mubr.msk.bf16.mxu1 %vm2208_vm3, %v4972_v57  ;;  %v12979_v57 = vld [vmem:[#allocation69_spill] sm:$0xff] }
 0x801   : > { %7661 = vmatprep.subr.msk.bf16.mxu1 %vm2208_vm3, %v5596_v18 }
 0x807   : > { %7506 = vmatmul.mubr.msk.bf16.vlgmr.msra.gmra.mrb[120].mxu1 %vm2208_vm3, %v4974_v3  ;;  %v3535_v3 = vadd.f32 %v12979_v57, %v6796_v63 }
 0x808   : > { %7526 = vmatpush3.bf16.xpose.msra.mxu1 %v5612_v43  ;;  %7509 = vmatprep.mubr.msk.bf16.mxu1 %vm2208_vm3, %v4976_v25 }
 0x809   : > { %7662 = vmatprep.subr.msk.bf16.mxu1 %vm2208_vm3, %v5598_v50 }
 0x80f   : > { %7510 = vmatmul.mubr.msk.bf16.gmra.mrb[124].mxu1 %vm2208_vm3, %v4978_v5 }
 0x810   : > { %7528 = vmatpush3.bf16.xpose.msra.mxu1 %v5615_v47  ;;  %7529 = vmatprep.mubr.msk.bf16.mxu1 %vm2208_vm3, %v5588_v38 }
 0x811   : > { %7663 = vmatprep.subr.msk.bf16.mxu1 %vm2208_vm3, %v5890_v2 }
 0x817   : > { %7530 = vmatmul.mubr.msk.bf16.vlgmr.msra.gmra.mrb[128].mxu1 %vm2208_vm3, %v5590_v55 }
 0x818   : > { %7550 = vmatpush3.bf16.xpose.msra.mxu1 %v5894_v61  ;;  %7533 = vmatprep.mubr.msk.bf16.mxu1 %vm2208_vm3, %v5592_v42  ;;  %v12984_v61 = vld [vmem:[#allocation72_spill] sm:$0xff] }
 0x819   : > { %7664 = vmatprep.subr.msk.bf16.mxu1 %vm2208_vm3, %v5892_v41  ;;  %v3546_v41 = vadd.f32 %v12984_v61, %v6796_v63 }
 0x81f   : > { %7534 = vmatmul.mubr.msk.bf16.gmra.mrb[132].mxu1 %vm2208_vm3, %v5594_v24 }
 0x820   : > { %7552 = vmatpush3.bf16.xpose.msra.mxu1 %v5897_v31  ;;  %7553 = vmatprep.mubr.msk.bf16.mxu1 %vm2208_vm3, %v5588_v38  ;;  %v12983_v38 = vld [vmem:[#allocation71_spill] sm:$0xff] }
 0x827   : > { %7554 = vmatmul.mubr.msk.bf16.vlgmr.msra.gmra.mrb[136].mxu1 %vm2208_vm3, %v5590_v55  ;;  %v3543_v55 = vadd.f32 %v12983_v38, %v6796_v63 }
 0x828   : > { %7557 = vmatprep.mubr.msk.bf16.mxu1 %vm2208_vm3, %v5592_v42 }
 0x82f   : > { %7558 = vmatmul.mubr.msk.bf16.gmra.mrb[140].mxu1 %vm2208_vm3, %v5594_v24 }
 0x84a   : > { %v7351_v46 = vpop.f32.mrb[56].mxu1 }
 0x84b   : > { %v2886_v30 = vpop.f32.mrb[57].mxu1 }
 0x84c   : > { %v7352_v23 = vpop.f32.mrb[58].mxu1 }
 0x84d   : > { %v3615_v37 = vpack.c.bf16 %v7352_v23, %v7351_v46  ;;  %v2889_v20 = vpop.f32.mrb[59].mxu1 }
 0x84e   : > { %v3614_v0 = vpack.c.bf16 %v2889_v20, %v2886_v30 }
 0x850   : > { %7373 = vmatprep.mubr.bf16.mxu0 %v3614_v0 }
 0x851   : > { %7374 = vmatmul.mubr.bf16.vlgmr.msra.gmra.mrb[64].mxu0 %v3615_v37 }
 0x852   : > { %7394 = vmatpush3.bf16.msra.mxu0 %v12907_v60 }
 0x853   : > { %7395 = vmatprep.subr.bf16.mxu0 %v12944_v49 }
 0x856   : > { %7396 = vmatpush3.bf16.msra.mxu0 %v12944_v49 }
 0x857   : > { %7417 = vmatprep.subr.bf16.mxu0 %v12943_v4 }
 0x85a   : > { %v7355_v53 = vpop.f32.mrb[60].mxu1 }
 0x85b   : > { %v2902_v44 = vpop.f32.mrb[61].mxu1 }
 0x85c   : > { %v7356_v13 = vpop.f32.mrb[62].mxu1 }
 0x85d   : > { %v3617_v29 = vpack.c.bf16 %v7356_v13, %v7355_v53  ;;  %v2905_v52 = vpop.f32.mrb[63].mxu1 }
 0x85e   : > { %v3616_v16 = vpack.c.bf16 %v2905_v52, %v2902_v44 }
 0x860   : > { %7377 = vmatprep.mubr.bf16.mxu0 %v3616_v16 }
 0x861   : > { %7378 = vmatmul.mubr.bf16.gmra.mrb[68].mxu0 %v3617_v29 }
 0x86a   : > { %v7057_v11 = vpop.f32.mrb[64].mxu1 }
 0x86b   : > { %v7058_v51 = vpop.f32.mrb[65].mxu1 }
 0x86c   : > { %v7059_v9 = vadd.f32 %v7058_v51, %v7057_v11  ;;  %v7060_v26 = vpop.f32.mrb[66].mxu1 }
 0x86d   : > { %v7061_v62 = vpop.f32.mrb[67].mxu1 }
 0x86e   : > { %v7062_v6 = vadd.f32 %v7061_v62, %v7060_v26  ;;  %v11076_v39 = vadd.f32 %v7059_v9, %v3519_v12 }
 0x870   : > { %12973 = vst [vmem:[#allocation31_spill] sm:$0xff] %v11076_v39  ;;  %v11078_v32 = vadd.f32 %v7062_v6, %v3522_v34 }
 0x872   : > { %12974 = vst [vmem:[#allocation30_spill] sm:$0xff] %v11078_v32  ;;  %v7063_v7 = vpop.f32.mrb[68].mxu1 }
 0x873   : > { %v7064_v33 = vpop.f32.mrb[69].mxu1 }
 0x874   : > { %v7065_v1 = vadd.f32 %v7064_v33, %v7063_v7  ;;  %v7066_v58 = vpop.f32.mrb[70].mxu1 }
 0x875   : > { %v7067_v8 = vpop.f32.mrb[71].mxu1 }
 0x876   : > { %v7068_v10 = vadd.f32 %v7067_v8, %v7066_v58  ;;  %v11082_v28 = vadd.f32 %v7065_v1, %v3527_v56 }
 0x878   : > { %12977 = vst [vmem:[#allocation34_spill] sm:$0xff] %v11082_v28  ;;  %v11084_v59 = vadd.f32 %v7068_v10, %v3530_v17 }
 0x87a   : > { %12978 = vst [vmem:[#allocation33_spill] sm:$0xff] %v11084_v59  ;;  %v7069_v54 = vpop.f32.mrb[72].mxu1 }
 0x87b   : > { %v7070_v35 = vpop.f32.mrb[73].mxu1 }
 0x87c   : > { %v7071_v22 = vadd.f32 %v7070_v35, %v7069_v54  ;;  %v7072_v40 = vpop.f32.mrb[74].mxu1 }
 0x87d   : > { %v7073_v25 = vpop.f32.mrb[75].mxu1 }
 0x87e   : > { %v7074_v5 = vadd.f32 %v7073_v25, %v7072_v40  ;;  %v11088_v21 = vadd.f32 %v7071_v22, %v3535_v3 }
 0x880   : > { %12981 = vst [vmem:[#allocation41_spill] sm:$0xff] %v11088_v21  ;;  %v11090_v18 = vadd.f32 %v7074_v5, %v3538_v27 }
 0x882   : > { %12982 = vst [vmem:[#allocation37_spill] sm:$0xff] %v11090_v18  ;;  %v7075_v50 = vpop.f32.mrb[76].mxu1 }
 0x883   : > { %v7076_v43 = vpop.f32.mrb[77].mxu1 }
 0x884   : > { %v7077_v47 = vadd.f32 %v7076_v43, %v7075_v50  ;;  %v7078_v2 = vpop.f32.mrb[78].mxu1 }
 0x885   : > { %v7079_v42 = vpop.f32.mrb[79].mxu1 }
 0x886   : > { %v7080_v24 = vadd.f32 %v7079_v42, %v7078_v2  ;;  %v11094_v31 = vadd.f32 %v7077_v47, %v3543_v55 }
 0x888   : > { %12985 = vst [vmem:[#allocation46_spill] sm:$0xff] %v11094_v31  ;;  %v11096_v46 = vadd.f32 %v7080_v24, %v3546_v41 }
 0x88a   : > { %12986 = vst [vmem:[#allocation45_spill] sm:$0xff] %v11096_v46  ;;  %v11098_v30 = vpop.f32.mrb[80].mxu1 }
 0x88b   : > { %v11100_v23 = vpop.f32.mrb[81].mxu1  ;;  %v3844_v37 = vsel %vm2208_vm3, %v11098_v30, -inf }
 0x88c   : > { %v11104_v20 = vpop.f32.mrb[82].mxu1  ;;  %3845 = vmax.xlane.f32.xlu0 %v3844_v37  ;;  %v3838_v44 = vsel %vm2208_vm3, %v11100_v23, -inf }
 0x88d   : > { %v11106_v0 = vpop.f32.mrb[83].mxu1  ;;  %v3847_v52 = vsel %vm2208_vm3, %v11104_v20, -inf }
 0x88e   : > { %v3841_v53 = vsel %vm2208_vm3, %v11106_v0, -inf }
 0x88f   : > { %3842 = vmax.xlane.f32.xlu1 %v3841_v53 }
 0x890   : > { %3839 = vmax.xlane.f32.xlu0 %v3838_v44 }
 0x892   : > { %v11112_v13 = vpop.f32.mrb[84].mxu1 }
 0x893   : > { %v11114_v29 = vpop.f32.mrb[85].mxu1  ;;  %v3856_v51 = vsel %vm2208_vm3, %v11112_v13, -inf }
 0x894   : > { %v11118_v16 = vpop.f32.mrb[86].mxu1  ;;  %3848 = vmax.xlane.f32.xlu0 %v3847_v52  ;;  %v3850_v26 = vsel %vm2208_vm3, %v11114_v29, -inf }
 0x895   : > { %v11120_v63 = vpop.f32.mrb[87].mxu1  ;;  %v3859_v11 = vsel %vm2208_vm3, %v11118_v16, -inf }
 0x896   : > { %3860 = vmax.xlane.f32.xlu1 %v3859_v11  ;;  %v3853_v15 = vsel %vm2208_vm3, %v11120_v63, -inf }
 0x898   : > { %3857 = vmax.xlane.f32.xlu0 %v3856_v51 }
 0x89a   : > { %3854 = vmax.xlane.f32.xlu1 %v3853_v15  ;;  %v11128_v12 = vpop.f32.mrb[88].mxu1 }
 0x89b   : > { %v11130_v9 = vpop.f32.mrb[89].mxu1  ;;  %v4116_v6 = vsel %vm2208_vm3, %v11128_v12, -inf }
 0x89c   : > { %3851 = vmax.xlane.f32.xlu0 %v3850_v26  ;;  %v11134_v62 = vpop.f32.mrb[90].mxu1  ;;  %v4110_v56 = vsel %vm2208_vm3, %v11130_v9, -inf }
 0x89d   : > { %v11136_v45 = vpop.f32.mrb[91].mxu1  ;;  %v4119_v34 = vsel %vm2208_vm3, %v11134_v62, -inf }
 0x89e   : > { %4120 = vmax.xlane.f32.xlu1 %v4119_v34  ;;  %v4113_v7 = vsel %vm2208_vm3, %v11136_v45, -inf }
 0x8a0   : > { %4117 = vmax.xlane.f32.xlu0 %v4116_v6 }
 0x8a2   : > { %4114 = vmax.xlane.f32.xlu1 %v4113_v7  ;;  %v11144_v33 = vpop.f32.mrb[92].mxu1 }
 0x8a3   : > { %v11146_v36 = vpop.f32.mrb[93].mxu1  ;;  %v4128_v19 = vsel %vm2208_vm3, %v11144_v33, -inf }
 0x8a4   : > { %4111 = vmax.xlane.f32.xlu0 %v4110_v56  ;;  %v11150_v1 = vpop.f32.mrb[94].mxu1  ;;  %v4122_v35 = vsel %vm2208_vm3, %v11146_v36, -inf }
 0x8a5   : > { %v11152_v58 = vpop.f32.mrb[95].mxu1  ;;  %v4131_v8 = vsel %vm2208_vm3, %v11150_v1, -inf }
 0x8a6   : > { %4132 = vmax.xlane.f32.xlu1 %v4131_v8  ;;  %v4125_v17 = vsel %vm2208_vm3, %v11152_v58, -inf }
 0x8a8   : > { %4129 = vmax.xlane.f32.xlu0 %v4128_v19 }
 0x8aa   : > { %v11160_v10 = vpop.f32.mrb[96].mxu1  ;;  %4126 = vmax.xlane.f32.xlu1 %v4125_v17 }
 0x8ab   : > { %v11162_v54 = vpop.f32.mrb[97].mxu1  ;;  %v4450_v40 = vsel %vm2208_vm3, %v11160_v10, -inf }
 0x8ac   : > { %4123 = vmax.xlane.f32.xlu0 %v4122_v35  ;;  %v11166_v57 = vpop.f32.mrb[98].mxu1  ;;  %v4444_v5 = vsel %vm2208_vm3, %v11162_v54, -inf }
 0x8ad   : > { %v11168_v3 = vpop.f32.mrb[99].mxu1  ;;  %v4453_v22 = vsel %vm2208_vm3, %v11166_v57, -inf }
 0x8ae   : > { %4454 = vmax.xlane.f32.xlu1 %v4453_v22  ;;  %v4447_v25 = vsel %vm2208_vm3, %v11168_v3, -inf }
 0x8b0   : > { %4451 = vmax.xlane.f32.xlu0 %v4450_v40 }
 0x8b2   : > { %v11176_v14 = vpop.f32.mrb[100].mxu1  ;;  %4448 = vmax.xlane.f32.xlu1 %v4447_v25 }
 0x8b3   : > { %v11178_v27 = vpop.f32.mrb[101].mxu1  ;;  %v4462_v55 = vsel %vm2208_vm3, %v11176_v14, -inf }
 0x8b4   : > { %4445 = vmax.xlane.f32.xlu0 %v4444_v5  ;;  %v11182_v50 = vpop.f32.mrb[102].mxu1  ;;  %v4456_v61 = vsel %vm2208_vm3, %v11178_v27, -inf }
 0x8b5   : > { %v11184_v43 = vpop.f32.mrb[103].mxu1  ;;  %v4465_v38 = vsel %vm2208_vm3, %v11182_v50, -inf }
 0x8b6   : > { %4466 = vmax.xlane.f32.xlu1 %v4465_v38  ;;  %v4459_v47 = vsel %vm2208_vm3, %v11184_v43, -inf }
 0x8b8   : > { %4463 = vmax.xlane.f32.xlu0 %v4462_v55 }
 0x8ba   : > { %v11192_v2 = vpop.f32.mrb[104].mxu1  ;;  %4460 = vmax.xlane.f32.xlu1 %v4459_v47 }
 0x8bb   : > { %v11194_v42 = vpop.f32.mrb[105].mxu1  ;;  %v4736_v53 = vsel %vm2208_vm3, %v11192_v2, -inf }
 0x8bc   : > { %4457 = vmax.xlane.f32.xlu0 %v4456_v61  ;;  %v11198_v41 = vpop.f32.mrb[106].mxu1  ;;  %v4730_v51 = vsel %vm2208_vm3, %v11194_v42, -inf }
 0x8bd   : > { %v11200_v24 = vpop.f32.mrb[107].mxu1  ;;  %v4739_v37 = vsel %vm2208_vm3, %v11198_v41, -inf }
 0x8be   : > { %4740 = vmax.xlane.f32.xlu1 %v4739_v37  ;;  %v4733_v44 = vsel %vm2208_vm3, %v11200_v24, -inf }
 0x8c0   : > { %4737 = vmax.xlane.f32.xlu0 %v4736_v53 }
 0x8c2   : > { %v11208_v52 = vpop.f32.mrb[108].mxu1  ;;  %4734 = vmax.xlane.f32.xlu1 %v4733_v44 }
 0x8c3   : > { %v11210_v11 = vpop.f32.mrb[109].mxu1  ;;  %v4748_v6 = vsel %vm2208_vm3, %v11208_v52, -inf }
 0x8c4   : > { %4731 = vmax.xlane.f32.xlu0 %v4730_v51  ;;  %v11214_v15 = vpop.f32.mrb[110].mxu1  ;;  %v4742_v19 = vsel %vm2208_vm3, %v11210_v11, -inf }
 0x8c5   : > { %v11216_v26 = vpop.f32.mrb[111].mxu1  ;;  %v4751_v34 = vsel %vm2208_vm3, %v11214_v15, -inf }
 0x8c6   : > { %4752 = vmax.xlane.f32.xlu1 %v4751_v34  ;;  %v4745_v7 = vsel %vm2208_vm3, %v11216_v26, -inf }
 0x8c8   : > { %4749 = vmax.xlane.f32.xlu0 %v4748_v6 }
 0x8ca   : > { %v11224_v56 = vpop.f32.mrb[112].mxu1  ;;  %4746 = vmax.xlane.f32.xlu1 %v4745_v7 }
 0x8cb   : > { %v11226_v8 = vpop.f32.mrb[113].mxu1  ;;  %v5072_v40 = vsel %vm2208_vm3, %v11224_v56, -inf }
 0x8cc   : > { %4743 = vmax.xlane.f32.xlu0 %v4742_v19  ;;  %v11230_v17 = vpop.f32.mrb[114].mxu1  ;;  %v5066_v35 = vsel %vm2208_vm3, %v11226_v8, -inf }
 0x8cd   : > { %v11234_v22 = vpop.f32.mrb[115].mxu1  ;;  %v5075_v25 = vsel %vm2208_vm3, %v11230_v17, -inf }
 0x8ce   : > { %5067 = vmax.xlane.f32.xlu1 %v5066_v35  ;;  %v5069_v55 = vsel %vm2208_vm3, %v11234_v22, -inf }
 0x8d0   : > { %5073 = vmax.xlane.f32.xlu0 %v5072_v40 }
 0x8d2   : > { %v11240_v5 = vpop.f32.mrb[116].mxu1  ;;  %5076 = vmax.xlane.f32.xlu1 %v5075_v25 }
 0x8d3   : > { %v11242_v38 = vpop.f32.mrb[117].mxu1  ;;  %v5084_v37 = vsel %vm2208_vm3, %v11240_v5, -inf }
 0x8d4   : > { %5070 = vmax.xlane.f32.xlu0 %v5069_v55  ;;  %v11246_v47 = vpop.f32.mrb[118].mxu1  ;;  %v5078_v53 = vsel %vm2208_vm3, %v11242_v38, -inf }
 0x8d5   : > { %v11248_v61 = vpop.f32.mrb[119].mxu1  ;;  %v5087_v19 = vsel %vm2208_vm3, %v11246_v47, -inf }
 0x8d6   : > { %5085 = vmax.xlane.f32.xlu1 %v5084_v37  ;;  %v5081_v40 = vsel %vm2208_vm3, %v11248_v61, -inf }
 0x8da   : > { %v11254_v44 = vpop.f32.mrb[120].mxu1  ;;  %5079 = vmax.xlane.f32.xlu1 %v5078_v53 }
 0x8db   : > { %v11256_v51 = vpop.f32.mrb[121].mxu1  ;;  %v5354_v34 = vsel %vm2208_vm3, %v11254_v44, -inf }
 0x8dc   : > { %5355 = vmax.xlane.f32.xlu0 %v5354_v34  ;;  %v11260_v6 = vpop.f32.mrb[122].mxu1  ;;  %v5348_v35 = vsel %vm2208_vm3, %v11256_v51, -inf }
 0x8dd   : > { %12987 = vst [vmem:[#allocation44_spill] sm:$0xff] %v11260_v6  ;;  %v11262_v7 = vpop.f32.mrb[123].mxu1  ;;  %v5357_v37 = vsel %vm2208_vm3, %v11260_v6, -inf }
 0x8de   : > { %12988 = vst [vmem:[#allocation43_spill] sm:$0xff] %v11262_v7  ;;  %5088 = vmax.xlane.f32.xlu1 %v5087_v19  ;;  %v5351_v19 = vsel %vm2208_vm3, %v11262_v7, -inf }
 0x8e0   : > { %5349 = vmax.xlane.f32.xlu0 %v5348_v35 }
 0x8e2   : > { %v11270_v25 = vpop.f32.mrb[124].mxu1  ;;  %5082 = vmax.xlane.f32.xlu1 %v5081_v40 }
 0x8e3   : > { %12989 = vst [vmem:[#allocation49_spill] sm:$0xff] %v11270_v25  ;;  %v11272_v55 = vpop.f32.mrb[125].mxu1  ;;  %v5366_v35 = vsel %vm2208_vm3, %v11270_v25, -inf }
 0x8e4   : > { %12990 = vst [vmem:[#allocation47_spill] sm:$0xff] %v11272_v55  ;;  %5358 = vmax.xlane.f32.xlu0 %v5357_v37  ;;  %v11276_v53 = vpop.f32.mrb[126].mxu1  ;;  %v5360_v37 = vsel %vm2208_vm3, %v11272_v55, -inf }
 0x8e5   : > { %12991 = vst [vmem:[#allocation36_spill] sm:$0xff] %v11276_v53  ;;  %v11278_v34 = vpop.f32.mrb[127].mxu1  ;;  %v5369_v40 = vsel %vm2208_vm3, %v11276_v53, -inf }
 0x8e6   : > { %12992 = vst [vmem:[#allocation38_spill] sm:$0xff] %v11278_v34  ;;  %5352 = vmax.xlane.f32.xlu1 %v5351_v19 }
 0x8e8   : > { %5367 = vmax.xlane.f32.xlu0 %v5366_v35  ;;  %v5363_v35 = vsel %vm2208_vm3, %v11278_v34, -inf }
 0x8ea   : > { %v11286_v18 = vpop.f32.mrb[128].mxu1  ;;  %5370 = vmax.xlane.f32.xlu1 %v5369_v40 }
 0x8eb   : > { %12993 = vst [vmem:[#allocation39_spill] sm:$0xff] %v11286_v18  ;;  %v11288_v46 = vpop.f32.mrb[129].mxu1 }
 0x8ec   : > { %12994 = vst [vmem:[#allocation40_spill] sm:$0xff] %v11288_v46  ;;  %5361 = vmax.xlane.f32.xlu0 %v5360_v37  ;;  %v11292_v21 = vpop.f32.mrb[130].mxu1  ;;  %v5682_v19 = vsel %vm2208_vm3, %v11288_v46, -inf  ;;  %v5688_v37 = vsel %vm2208_vm3, %v11286_v18, -inf }
 0x8ed   : > { %12995 = vst [vmem:[#allocation42_spill] sm:$0xff] %v11292_v21  ;;  %v11296_v31 = vpop.f32.mrb[131].mxu1  ;;  %v5691_v40 = vsel %vm2208_vm3, %v11292_v21, -inf }
 0x8ee   : > { %12996 = vst [vmem:[#allocation35_spill] sm:$0xff] %v11296_v31  ;;  %5683 = vmax.xlane.f32.xlu1 %v5682_v19 }
 0x8f0   : > { %5364 = vmax.xlane.f32.xlu0 %v5363_v35  ;;  %v5685_v35 = vsel %vm2208_vm3, %v11296_v31, -inf }
 0x8f2   : > { %v11302_v32 = vpop.f32.mrb[132].mxu1  ;;  %5692 = vmax.xlane.f32.xlu1 %v5691_v40 }
 0x8f3   : > { %12997 = vst [vmem:[#allocation48_spill] sm:$0xff] %v11302_v32  ;;  %v11304_v59 = vpop.f32.mrb[133].mxu1  ;;  %v5700_v19 = vsel %vm2208_vm3, %v11302_v32, -inf }
 0x8f4   : > { %12998 = vst [vmem:[#allocation50_spill] sm:$0xff] %v11304_v59  ;;  %v11308_v39 = vpop.f32.mrb[134].mxu1  ;;  %5689 = vmax.xlane.f32.xlu0 %v5688_v37  ;;  %v5694_v40 = vsel %vm2208_vm3, %v11304_v59, -inf }
 0x8f5   : > { %12999 = vst [vmem:[#allocation55_spill] sm:$0xff] %v11308_v39  ;;  %v11310_v28 = vpop.f32.mrb[135].mxu1 }
 0x8f6   : > { %13000 = vst [vmem:[#allocation58_spill] sm:$0xff] %v11310_v28  ;;  %5701 = vmax.xlane.f32.xlu1 %v5700_v19  ;;  %v5703_v19 = vsel %vm2208_vm3, %v11308_v39, -inf }
 0x8f8   : > { %5686 = vmax.xlane.f32.xlu0 %v5685_v35 }
 0x8fa   : > { %v11318_v34 = vpop.f32.mrb[136].mxu1  ;;  %5695 = vmax.xlane.f32.xlu1 %v5694_v40  ;;  %v5697_v40 = vsel %vm2208_vm3, %v11310_v28, -inf }
 0x8fb   : > { %13001 = vst [vmem:[#allocation57_spill] sm:$0xff] %v11318_v34  ;;  %v11320_v18 = vpop.f32.mrb[137].mxu1  ;;  %v5970_v37 = vsel %vm2208_vm3, %v11318_v34, -inf  ;;  %v11336_v34 = vpop.permute.xlu0 %4562 }
 0x8fc   : > { %13002 = vst [vmem:[#allocation52_spill] sm:$0xff] %v11320_v18  ;;  %v11324_v46 = vpop.f32.mrb[138].mxu1  ;;  %5971 = vmax.xlane.f32.xlu0 %v5970_v37  ;;  %v5964_v35 = vsel %vm2208_vm3, %v11320_v18, -inf  ;;  %v11348_v18 = vpop.permute.xlu1 %4564 }
 0x8fd   : > { %13003 = vst [vmem:[#allocation51_spill] sm:$0xff] %v11324_v46  ;;  %v11326_v32 = vpop.f32.mrb[139].mxu1  ;;  %v5973_v37 = vsel %vm2208_vm3, %v11324_v46, -inf }
 0x8fe   : > { %13004 = vst [vmem:[#allocation53_spill] sm:$0xff] %v11326_v32  ;;  %5704 = vmax.xlane.f32.xlu1 %v5703_v19 }
 0x8ff   : > { %v11352_v28 = vpop.permute.xlu0 %4864 }
 0x900   : > { %5965 = vmax.xlane.f32.xlu0 %v5964_v35  ;;  %v5967_v35 = vsel %vm2208_vm3, %v11326_v32, -inf  ;;  %v11358_v39 = vpop.permute.xlu1 %4866 }
 0x902   : > { %v11334_v59 = vpop.f32.mrb[140].mxu1  ;;  %5698 = vmax.xlane.f32.xlu1 %v5697_v40 }
 0x903   : > { %13005 = vst [vmem:[#allocation54_spill] sm:$0xff] %v11334_v59  ;;  %v11338_v31 = vpop.f32.mrb[141].mxu1  ;;  %v5982_v40 = vsel %vm2208_vm3, %v11334_v59, -inf  ;;  %v11360_v32 = vpop.permute.xlu0 %5182 }
 0x904   : > { %13006 = vst [vmem:[#allocation59_spill] sm:$0xff] %v11338_v31  ;;  %v11342_v21 = vpop.f32.mrb[142].mxu1  ;;  %5974 = vmax.xlane.f32.xlu0 %v5973_v37  ;;  %v5976_v37 = vsel %vm2208_vm3, %v11338_v31, -inf  ;;  %v11364_v59 = vpop.permute.xlu1 %5184 }
 0x905   : > { %13007 = vst [vmem:[#allocation56_spill] sm:$0xff] %v11342_v21  ;;  %v11344_v19 = vpop.f32.mrb[143].mxu1  ;;  %v5985_v46 = vsel %vm2208_vm3, %v11342_v21, -inf }
 0x906   : > { %13008 = vst [vmem:[#allocation61_spill] sm:$0xff] %v11344_v19  ;;  %5968 = vmax.xlane.f32.xlu1 %v5967_v35  ;;  %v5979_v35 = vsel %vm2208_vm3, %v11344_v19, -inf }
 0x908   : > { %5983 = vmax.xlane.f32.xlu0 %v5982_v40  ;;  %v11366_v40 = vpop.permute.xlu0 %5480  ;;  %v11368_v55 = vpop.permute.xlu1 %5482 }
 0x909   : > { %13009 = vst [vmem:[#allocation60_spill] sm:$0xff] %v11368_v55 }
 0x90a   : > { %5986 = vmax.xlane.f32.xlu1 %v5985_v46 }
 0x90c   : > { %5977 = vmax.xlane.f32.xlu0 %v5976_v37 }
 0x910   : > { %5980 = vmax.xlane.f32.xlu0 %v5979_v35 }
 0x919   : > { %v11370_v21 = vpop.xlane.xlu0 %3845 }
 0x91a   : > { %13010 = vst [vmem:[#allocation62_spill] sm:$0xff] %v11370_v21  ;;  %v3888_v37 = vsub.f32 %v11098_v30, %v11370_v21 }
 0x91b   : > { %5800 = vrot.lane.b32.xlu1 %v12944_v49, %s8813_s3 }
 0x91c   : > { %v11374_v46 = vpop.xlane.xlu1 %3842  ;;  %v3898_v25 = vmul.f32 1.442695, %v3888_v37 }
 0x91d   : > { %v3887_v19 = vsub.f32 %v11106_v0, %v11374_v46  ;;  %v11380_v35 = vpop.xlane.xlu0 %3839 }
 0x91e   : > { %v3886_v31 = vsub.f32 %v11100_v23, %v11380_v35 }
 0x91f   : > { %v3896_v53 = vmul.f32 1.442695, %v3887_v19  ;;  %6096 = vrot.lane.b32.xlu1 %v12943_v4, %s8813_s3 }
 0x920   : > { %v3894_v55 = vmul.f32 1.442695, %v3886_v31 }
 0x921   : > { %8117 = vpow2.f32 %v3896_v53  ;;  %v11386_v49 = vpop.xlane.xlu0 %3848 }
 0x922   : > { %13011 = vst [vmem:[#allocation32_spill] sm:$0xff] %v11386_v49  ;;  %8119 = vpow2.f32 %v3894_v55  ;;  %v3889_v30 = vsub.f32 %v11104_v20, %v11386_v49 }
 0x923   : > { %v11390_v7 = vpop.xlane.xlu1 %3860  ;;  %6098 = vrot.lane.b32.xlu1 %v12945_v48, %s8813_s3  ;;  %8121 = vpow2.f32 %v3898_v25 }
 0x924   : > { %13012 = vst [vmem:[#allocation64_spill] sm:$0xff] %v11390_v7  ;;  %v3900_v0 = vmul.f32 1.442695, %v3889_v30  ;;  %v3893_v23 = vsub.f32 %v11118_v16, %v11390_v7 }
 0x925   : > { %v11396_v19 = vpop.xlane.xlu0 %3857 }
 0x926   : > { %13013 = vst [vmem:[#allocation63_spill] sm:$0xff] %v11396_v19  ;;  %8123 = vpow2.f32 %v3900_v0  ;;  %v3908_v31 = vmul.f32 1.442695, %v3893_v23  ;;  %v3892_v55 = vsub.f32 %v11112_v13, %v11396_v19  ;;  %5798 = vrot.lane.b32.xlu0 %v12907_v60, %s8813_s3 }
 0x927   : > { %v11402_v20 = vpop.xlane.xlu1 %3854 }
 0x928   : > { %13014 = vst [vmem:[#allocation65_spill] sm:$0xff] %v11402_v20  ;;  %v3906_v53 = vmul.f32 1.442695, %v3892_v55  ;;  %v3891_v37 = vsub.f32 %v11120_v63, %v11402_v20  ;;  %8125 = vpow2.f32 %v3908_v31 }
 0x929   : > { %v11406_v30 = vpop.xlane.xlu0 %3851 }
 0x92a   : > { %13015 = vst [vmem:[#allocation66_spill] sm:$0xff] %v11406_v30  ;;  %8127 = vpow2.f32 %v3906_v53  ;;  %v3904_v16 = vmul.f32 1.442695, %v3891_v37  ;;  %v3890_v25 = vsub.f32 %v11114_v29, %v11406_v30 }
 0x92b   : > { %v11410_v0 = vpop.eup %8117  ;;  %v4121_v13 = vpop.xlane.xlu1 %4120 }
 0x92c   : > { %v11412_v23 = vpop.eup %8119  ;;  %v3902_v60 = vmul.f32 1.442695, %v3890_v25  ;;  %v11415_v6 = vmax.f32 %v11386_v49, %v4121_v13  ;;  %8129 = vpow2.f32 %v3904_v16 }
 0x92d   : > { %v4118_v55 = vpop.xlane.xlu0 %4117  ;;  %v3950_v63 = vpack.c.bf16 %v11410_v0, %v11412_v23  ;;  %v11424_v53 = vpop.eup %8121 }
 0x92e   : > { %13016 = vst [vmem:[#allocation67_spill] sm:$0xff] %v11415_v6  ;;  %8131 = vpow2.f32 %v3902_v60  ;;  %v4169_v31 = vsub.f32 %v11134_v62, %v11415_v6  ;;  %v11422_v29 = vmax.f32 %v11370_v21, %v4118_v55 }
 0x92f   : > { %7397 = vmatprep.mubr.msk.bf16.mxu0 %vm2208_vm3, %v3950_v63  ;;  %v4115_v37 = vpop.xlane.xlu1 %4114 }
 0x930   : > { %13017 = vst [vmem:[#allocation68_spill] sm:$0xff] %v11422_v29  ;;  %v11427_v25 = vpop.eup %8123  ;;  %v4180_v13 = vmul.f32 1.442695, %v4169_v31  ;;  %v4168_v16 = vsub.f32 %v11128_v12, %v11422_v29  ;;  %v11432_v49 = vmax.f32 %v11374_v46, %v4115_v37 }
 0x931   : > { %v4112_v60 = vpop.xlane.xlu0 %4111  ;;  %v3951_v62 = vpack.c.bf16 %v11427_v25, %v11424_v53 }
 0x932   : > { %13018 = vst [vmem:[#allocation69_spill] sm:$0xff] %v11432_v49  ;;  %v4178_v55 = vmul.f32 1.442695, %v4168_v16  ;;  %v11437_v6 = vmax.f32 %v11380_v35, %v4112_v60  ;;  %v11439_v21 = vpop.eup %8125  ;;  %v4167_v63 = vsub.f32 %v11136_v45, %v11432_v49  ;;  %8133 = vpow2.f32 %v4180_v13 }
 0x933   : > { %7398 = vmatmul.mubr.msk.bf16.vlgmr.msra.gmra.mrb[72].mxu0 %vm2208_vm3, %v3951_v62  ;;  %v4133_v31 = vpop.xlane.xlu1 %4132 }
 0x934   : > { %13019 = vst [vmem:[#allocation70_spill] sm:$0xff] %v11437_v6  ;;  %v11444_v12 = vpop.eup %8127  ;;  %v4166_v37 = vsub.f32 %v11130_v9, %v11437_v6  ;;  %7418 = vmatpush3.bf16.msra.mxu0 %v12943_v4  ;;  %v11450_v16 = vmax.f32 %v11390_v7, %v4133_v31  ;;  %8135 = vpow2.f32 %v4178_v55  ;;  %v4176_v60 = vmul.f32 1.442695, %v4167_v63 }
 0x935   : > { %7419 = vmatprep.subr.bf16.mxu0 %v12945_v48  ;;  %v4130_v29 = vpop.xlane.xlu0 %4129  ;;  %v3953_v45 = vpack.c.bf16 %v11439_v21, %v11444_v12 }
 0x936   : > { %13020 = vst [vmem:[#allocation71_spill] sm:$0xff] %v11450_v16  ;;  %v4174_v62 = vmul.f32 1.442695, %v4166_v37  ;;  %v4173_v13 = vsub.f32 %v11150_v1, %v11450_v16  ;;  %v11457_v49 = vpop.eup %8129  ;;  %v11460_v9 = vmax.f32 %v11396_v19, %v4130_v29  ;;  %8137 = vpow2.f32 %v4176_v60 }
 0x937   : > { %v4127_v4 = vpop.xlane.xlu1 %4126 }
 0x938   : > { %13021 = vst [vmem:[#allocation72_spill] sm:$0xff] %v11460_v9  ;;  %v11462_v31 = vpop.eup %8131  ;;  %7420 = vmatpush3.bf16.msra.mxu0 %v12945_v48  ;;  %v11466_v55 = vmax.f32 %v11402_v20, %v4127_v4  ;;  %v4188_v63 = vmul.f32 1.442695, %v4173_v13  ;;  %v4172_v37 = vsub.f32 %v11144_v33, %v11460_v9  ;;  %8139 = vpow2.f32 %v4174_v62 }
 0x939   : > { %7441 = vmatprep.subr.bf16.mxu0 %v11336_v34  ;;  %v4124_v1 = vpop.xlane.xlu0 %4123  ;;  %v3952_v29 = vpack.c.bf16 %v11457_v49, %v11462_v31 }
 0x93a   : > { %13022 = vst [vmem:[#allocation73_spill] sm:$0xff] %v11466_v55  ;;  %v4171_v16 = vsub.f32 %v11152_v58, %v11466_v55  ;;  %v11476_v48 = vmax.f32 %v11406_v30, %v4124_v1  ;;  %v4186_v4 = vmul.f32 1.442695, %v4172_v37  ;;  %8141 = vpow2.f32 %v4188_v63 }
 0x93b   : > { %7401 = vmatprep.mubr.msk.bf16.mxu0 %vm2208_vm3, %v3952_v29  ;;  %v11479_v60 = vpop.xlane.xlu1 %4454 }
 0x93c   : > { %13023 = vst [vmem:[#allocation74_spill] sm:$0xff] %v11476_v48  ;;  %13024 = vst [vmem:[#allocation75_spill] sm:$0xff] %v11479_v60  ;;  %7402 = vmatmul.mubr.msk.bf16.gmra.mrb[76].mxu0 %vm2208_vm3, %v3953_v45  ;;  %v4184_v33 = vmul.f32 1.442695, %v4171_v16  ;;  %v4170_v13 = vsub.f32 %v11146_v36, %v11476_v48  ;;  %v4495_v62 = vsub.f32 %v11166_v57, %v11479_v60  ;;  %v11488_v58 = vpop.eup %8133  ;;  %8143 = vpow2.f32 %v4186_v4 }
 0x93d   : > { %v11486_v9 = vpop.xlane.xlu0 %4451 }
 0x93e   : > { %13025 = vst [vmem:[#allocation76_spill] sm:$0xff] %v11486_v9  ;;  %v4494_v37 = vsub.f32 %v11160_v10, %v11486_v9  ;;  %v11492_v1 = vpop.eup %8135  ;;  %v4182_v29 = vmul.f32 1.442695, %v4170_v13  ;;  %v4506_v45 = vmul.f32 1.442695, %v4495_v62  ;;  %8145 = vpow2.f32 %v4184_v33 }
 0x93f   : > { %v11494_v63 = vpop.xlane.xlu1 %4448  ;;  %v4239_v36 = vpack.c.bf16 %v11488_v58, %v11492_v1 }
 0x940   : > { %v4504_v16 = vmul.f32 1.442695, %v4494_v37  ;;  %v4493_v57 = vsub.f32 %v11168_v3, %v11494_v63  ;;  %8147 = vpow2.f32 %v4182_v29  ;;  %v11504_v55 = vpop.eup %8137 }
 0x941   : > { %v11500_v48 = vpop.xlane.xlu0 %4445  ;;  %8149 = vpow2.f32 %v4506_v45 }
 0x942   : > { %v4502_v4 = vmul.f32 1.442695, %v4493_v57  ;;  %v4492_v10 = vsub.f32 %v11162_v54, %v11500_v48  ;;  %v11508_v62 = vpop.eup %8139  ;;  %8151 = vpow2.f32 %v4504_v16 }
 0x943   : > { %v11506_v13 = vpop.xlane.xlu1 %4466  ;;  %v4238_v33 = vpack.c.bf16 %v11504_v55, %v11508_v62 }
 0x944   : > { %v4500_v37 = vmul.f32 1.442695, %v4492_v10  ;;  %v4499_v3 = vsub.f32 %v11182_v50, %v11506_v13  ;;  %8153 = vpow2.f32 %v4502_v4  ;;  %v11518_v57 = vpop.eup %8141 }
 0x945   : > { %v11514_v29 = vpop.xlane.xlu0 %4463  ;;  %7421 = vmatprep.mubr.msk.bf16.mxu0 %vm2208_vm3, %v4238_v33 }
 0x946   : > { %8155 = vpow2.f32 %v4500_v37  ;;  %v4514_v54 = vmul.f32 1.442695, %v4499_v3  ;;  %v4498_v45 = vsub.f32 %v11176_v14, %v11514_v29  ;;  %v11523_v10 = vpop.eup %8143  ;;  %7422 = vmatmul.mubr.msk.bf16.vlgmr.msra.gmra.mrb[80].mxu0 %vm2208_vm3, %v4239_v36 }
 0x947   : > { %v11521_v16 = vpop.xlane.xlu1 %4460  ;;  %7442 = vmatpush3.bf16.msra.mxu0 %v11336_v34  ;;  %v4241_v14 = vpack.c.bf16 %v11518_v57, %v11523_v10 }
 0x948   : > { %8157 = vpow2.f32 %v4514_v54  ;;  %v4512_v50 = vmul.f32 1.442695, %v4498_v45  ;;  %v4497_v4 = vsub.f32 %v11184_v43, %v11521_v16  ;;  %7443 = vmatprep.subr.bf16.mxu0 %v11348_v18  ;;  %v11536_v54 = vpop.eup %8145 }
 0x949   : > { %v11529_v37 = vpop.xlane.xlu0 %4457 }
 0x94a   : > { %8159 = vpow2.f32 %v4512_v50  ;;  %v4510_v3 = vmul.f32 1.442695, %v4497_v4  ;;  %v4496_v33 = vsub.f32 %v11178_v27, %v11529_v37  ;;  %v11538_v45 = vpop.eup %8147 }
 0x94b   : > { %v4741_v36 = vpop.xlane.xlu1 %4740  ;;  %v8150_v6 = vpop.eup %8149  ;;  %7444 = vmatpush3.bf16.msra.mxu0 %v11348_v18  ;;  %v4240_v4 = vpack.c.bf16 %v11536_v54, %v11538_v45 }
 0x94c   : > { %8161 = vpow2.f32 %v4510_v3  ;;  %v4508_v43 = vmul.f32 1.442695, %v4496_v33  ;;  %v11541_v34 = vmax.f32 %v11479_v60, %v4741_v36  ;;  %v8152_v30 = vpop.eup %8151  ;;  %7465 = vmatprep.subr.bf16.mxu0 %v11352_v28 }
 0x94d   : > { %v4738_v50 = vpop.xlane.xlu0 %4737  ;;  %7425 = vmatprep.mubr.msk.bf16.mxu0 %vm2208_vm3, %v4240_v4  ;;  %v4530_v36 = vsel %vm2208_vm3, %v8152_v30, 0.0  ;;  %v4557_v60 = vpack.c.bf16 %v8150_v6, %v8152_v30 }
 0x94e   : > { %13026 = vst [vmem:[#allocation77_spill] sm:$0xff] %v11541_v34  ;;  %8163 = vpow2.f32 %v4508_v43  ;;  %v4789_v27 = vsub.f32 %v11198_v41, %v11541_v34  ;;  %v11550_v3 = vmax.f32 %v11486_v9, %v4738_v50  ;;  %v8154_v33 = vpop.eup %8153  ;;  %4531 = vadd.xlane.f32.xlu0 %v4530_v36  ;;  %7426 = vmatmul.mubr.msk.bf16.gmra.mrb[84].mxu0 %vm2208_vm3, %v4241_v14 }
 0x94f   : > { %v4735_v18 = vpop.xlane.xlu1 %4734  ;;  %v4527_v50 = vsel %vm2208_vm3, %v8154_v33, 0.0 }
 0x950   : > { %13027 = vst [vmem:[#allocation78_spill] sm:$0xff] %v11550_v3  ;;  %v8156_v20 = vpop.eup %8155  ;;  %v4800_v19 = vmul.f32 1.442695, %v4789_v27  ;;  %v4788_v43 = vsub.f32 %v11192_v2, %v11550_v3  ;;  %v11558_v41 = vmax.f32 %v11494_v63, %v4735_v18  ;;  %4528 = vadd.xlane.f32.xlu1 %v4527_v50 }
 0x951   : > { %v4732_v34 = vpop.xlane.xlu0 %4731  ;;  %v4524_v4 = vsel %vm2208_vm3, %v8156_v20, 0.0  ;;  %v4556_v9 = vpack.c.bf16 %v8154_v33, %v8156_v20 }
 0x952   : > { %13028 = vst [vmem:[#allocation79_spill] sm:$0xff] %v11558_v41  ;;  %v11562_v7 = vpop.eup %8157  ;;  %v4798_v30 = vmul.f32 1.442695, %v4788_v43  ;;  %v11565_v27 = vmax.f32 %v11500_v48, %v4732_v34  ;;  %8165 = vpow2.f32 %v4800_v19  ;;  %v4787_v2 = vsub.f32 %v11200_v24, %v11558_v41  ;;  %4525 = vadd.xlane.f32.xlu0 %v4524_v4 }
 0x953   : > { %7445 = vmatprep.mubr.msk.bf16.mxu0 %vm2208_vm3, %v4556_v9  ;;  %v4753_v14 = vpop.xlane.xlu1 %4752  ;;  %v4545_v36 = vsel %vm2208_vm3, %v11562_v7, 0.0  ;;  %v4533_v41 = vsel %vm2208_vm3, %v8150_v6, 0.0 }
 0x954   : > { %v8160_v18 = vpop.eup %8159  ;;  %v4786_v20 = vsub.f32 %v11194_v42, %v11565_v27  ;;  %v11575_v33 = vmax.f32 %v11506_v13, %v4753_v14  ;;  %8167 = vpow2.f32 %v4798_v30  ;;  %v4796_v34 = vmul.f32 1.442695, %v4787_v2  ;;  %4546 = vadd.xlane.f32.xlu1 %v4545_v36 }
 0x955   : > { %v4750_v19 = vpop.xlane.xlu0 %4749  ;;  %v4559_v4 = vpack.c.bf16 %v11562_v7, %v8160_v18 }
 0x956   : > { %v8162_v43 = vpop.eup %8161  ;;  %v4794_v50 = vmul.f32 1.442695, %v4786_v20  ;;  %v4793_v24 = vsub.f32 %v11214_v15, %v11575_v33  ;;  %v11580_v9 = vmax.f32 %v11514_v29, %v4750_v19  ;;  %8169 = vpow2.f32 %v4796_v34  ;;  %4534 = vadd.xlane.f32.xlu0 %v4533_v41  ;;  %7446 = vmatmul.mubr.msk.bf16.vlgmr.msra.gmra.mrb[88].mxu0 %vm2208_vm3, %v4557_v60 }
 0x957   : > { %v4747_v3 = vpop.xlane.xlu1 %4746  ;;  %v4539_v42 = vsel %vm2208_vm3, %v8162_v43, 0.0  ;;  %7466 = vmatpush3.bf16.msra.mxu0 %v11352_v28 }
 0x958   : > { %v8164_v14 = vpop.eup %8163  ;;  %v4808_v30 = vmul.f32 1.442695, %v4793_v24  ;;  %v11587_v2 = vmax.f32 %v11521_v16, %v4747_v3  ;;  %v4792_v15 = vsub.f32 %v11208_v52, %v11580_v9  ;;  %8171 = vpow2.f32 %v4794_v50  ;;  %7467 = vmatprep.subr.bf16.mxu0 %v11358_v39  ;;  %4540 = vadd.xlane.f32.xlu1 %v4539_v42 }
 0x959   : > { %v4744_v6 = vpop.xlane.xlu0 %4743  ;;  %v4558_v36 = vpack.c.bf16 %v8162_v43, %v8164_v14  ;;  %v4542_v3 = vsel %vm2208_vm3, %v8160_v18, 0.0 }
 0x95a   : > { %v4791_v7 = vsub.f32 %v11216_v26, %v11587_v2  ;;  %v11596_v41 = vmax.f32 %v11529_v37, %v4744_v6  ;;  %v4806_v60 = vmul.f32 1.442695, %v4792_v15  ;;  %8173 = vpow2.f32 %v4808_v30  ;;  %4543 = vadd.xlane.f32.xlu0 %v4542_v3 }
 0x95b   : > { %7449 = vmatprep.mubr.msk.bf16.mxu0 %vm2208_vm3, %v4558_v36  ;;  %v11600_v52 = vpop.xlane.xlu1 %5067  ;;  %7468 = vmatpush3.bf16.msra.mxu0 %v11358_v39 }
 0x95c   : > { %13029 = vst [vmem:[#allocation80_spill] sm:$0xff] %v11600_v52  ;;  %v4804_v28 = vmul.f32 1.442695, %v4791_v7  ;;  %v8166_v20 = vpop.eup %8165  ;;  %v4790_v34 = vsub.f32 %v11210_v11, %v11596_v41  ;;  %v5114_v26 = vsub.f32 %v11226_v8, %v11600_v52  ;;  %8175 = vpow2.f32 %v4806_v60  ;;  %7489 = vmatprep.subr.bf16.mxu0 %v11360_v32 }
 0x95d   : > { %v11607_v19 = vpop.xlane.xlu0 %5073  ;;  %v4827_v43 = vsel %vm2208_vm3, %v8166_v20, 0.0  ;;  %v4536_v11 = vsel %vm2208_vm3, %v8164_v14, 0.0 }
 0x95e   : > { %13030 = vst [vmem:[#allocation81_spill] sm:$0xff] %v11607_v19  ;;  %v5116_v18 = vsub.f32 %v11224_v56, %v11607_v19  ;;  %v8168_v50 = vpop.eup %8167  ;;  %v4802_v24 = vmul.f32 1.442695, %v4790_v34  ;;  %v5122_v42 = vmul.f32 1.442695, %v5114_v26  ;;  %4828 = vadd.xlane.f32.xlu1 %v4827_v43  ;;  %8177 = vpow2.f32 %v4804_v28  ;;  %4537 = vadd.xlane.f32.xlu0 %v4536_v11 }
 0x95f   : > { %v11614_v39 = vpop.xlane.xlu1 %5076  ;;  %v4859_v30 = vpack.c.bf16 %v8166_v20, %v8168_v50  ;;  %7450 = vmatmul.mubr.msk.bf16.gmra.mrb[92].mxu0 %vm2208_vm3, %v4559_v4  ;;  %v4824_v7 = vsel %vm2208_vm3, %v8168_v50, 0.0 }
 0x960   : > { %13031 = vst [vmem:[#allocation82_spill] sm:$0xff] %v11614_v39  ;;  %v5126_v8 = vmul.f32 1.442695, %v5116_v18  ;;  %v5117_v15 = vsub.f32 %v11230_v17, %v11614_v39  ;;  %v8170_v6 = vpop.eup %8169  ;;  %8179 = vpow2.f32 %v4802_v24 }
 0x961   : > { %v11619_v56 = vpop.xlane.xlu0 %5070  ;;  %8181 = vpow2.f32 %v5122_v42  ;;  %v4821_v60 = vsel %vm2208_vm3, %v8170_v6, 0.0 }
 0x962   : > { %13032 = vst [vmem:[#allocation83_spill] sm:$0xff] %v11619_v56  ;;  %v5128_v36 = vmul.f32 1.442695, %v5117_v15  ;;  %v5115_v14 = vsub.f32 %v11234_v22, %v11619_v56  ;;  %v8172_v28 = vpop.eup %8171  ;;  %8183 = vpow2.f32 %v5126_v8  ;;  %4825 = vadd.xlane.f32.xlu0 %v4824_v7  ;;  %4822 = vadd.xlane.f32.xlu1 %v4821_v60 }
 0x963   : > { %v11625_v3 = vpop.xlane.xlu1 %5085  ;;  %v4858_v17 = vpack.c.bf16 %v8170_v6, %v8172_v28  ;;  %v4818_v22 = vsel %vm2208_vm3, %v8172_v28, 0.0 }
 0x964   : > { %13033 = vst [vmem:[#allocation84_spill] sm:$0xff] %v11625_v3  ;;  %v5124_v4 = vmul.f32 1.442695, %v5115_v14  ;;  %8185 = vpow2.f32 %v5128_v36  ;;  %v8174_v20 = vpop.eup %8173  ;;  %v5120_v34 = vsub.f32 %v11240_v5, %v11625_v3 }
 0x965   : > { %7469 = vmatprep.mubr.msk.bf16.mxu0 %vm2208_vm3, %v4858_v17  ;;  %v4839_v26 = vsel %vm2208_vm3, %v8174_v20, 0.0 }
 0x966   : > { %8187 = vpow2.f32 %v5124_v4  ;;  %v8176_v43 = vpop.eup %8175  ;;  %4819 = vadd.xlane.f32.xlu0 %v4818_v22  ;;  %4840 = vadd.xlane.f32.xlu1 %v4839_v26  ;;  %v5134_v11 = vmul.f32 1.442695, %v5120_v34 }
 0x967   : > { %v11632_v18 = vpop.xlane.xlu1 %5079  ;;  %7470 = vmatmul.mubr.msk.bf16.vlgmr.msra.gmra.mrb[96].mxu0 %vm2208_vm3, %v4859_v30  ;;  %v4861_v5 = vpack.c.bf16 %v8174_v20, %v8176_v43  ;;  %v4836_v15 = vsel %vm2208_vm3, %v8176_v43, 0.0 }
 0x968   : > { %13034 = vst [vmem:[#allocation85_spill] sm:$0xff] %v11632_v18  ;;  %v5118_v50 = vsub.f32 %v11242_v38, %v11632_v18  ;;  %7490 = vmatpush3.bf16.msra.mxu0 %v11360_v32  ;;  %v8178_v42 = vpop.eup %8177  ;;  %8189 = vpow2.f32 %v5134_v11 }
 0x969   : > { %v5356_v24 = vpop.xlane.xlu0 %5355  ;;  %7491 = vmatprep.subr.bf16.mxu0 %v11364_v59  ;;  %v4833_v6 = vsel %vm2208_vm3, %v8178_v42, 0.0 }
 0x96a   : > { %v11640_v8 = vmax.f32 %v11607_v19, %v5356_v24  ;;  %v8180_v36 = vpop.eup %8179  ;;  %v5130_v38 = vmul.f32 1.442695, %v5118_v50  ;;  %4837 = vadd.xlane.f32.xlu0 %v4836_v15  ;;  %4834 = vadd.xlane.f32.xlu1 %v4833_v6 }
 0x96b   : > { %v11644_v30 = vpop.xlane.xlu1 %5088  ;;  %v8182_v14 = vpop.eup %8181  ;;  %v4860_v28 = vpack.c.bf16 %v8178_v42, %v8180_v36 }
 0x96c   : > { %13035 = vst [vmem:[#allocation86_spill] sm:$0xff] %v11640_v8  ;;  %13036 = vst [vmem:[#allocation87_spill] sm:$0xff] %v11644_v30  ;;  %v5121_v32 = vsub.f32 %v11246_v47, %v11644_v30  ;;  %v5406_v7 = vsub.f32 %v11254_v44, %v11640_v8  ;;  %7492 = vmatpush3.bf16.msra.mxu0 %v11364_v59  ;;  %v8184_v4 = vpop.eup %8183  ;;  %v4830_v47 = vsel %vm2208_vm3, %v8180_v36, 0.0  ;;  %8191 = vpow2.f32 %v5130_v38  ;;  %v13041_v38 = vld [vmem:[#allocation44_spill] sm:$0xff] }
 0x96d   : > { %v5350_v60 = vpop.xlane.xlu0 %5349  ;;  %7513 = vmatprep.subr.bf16.mxu0 %v11366_v40  ;;  %7473 = vmatprep.mubr.msk.bf16.mxu0 %vm2208_vm3, %v4860_v28  ;;  %v5152_v6 = vsel %vm2208_vm3, %v8184_v4, 0.0  ;;  %v13042_v28 = vld [vmem:[#allocation43_spill] sm:$0xff] }
 0x96e   : > { %v5136_v17 = vmul.f32 1.442695, %v5121_v32  ;;  %v11653_v20 = vmax.f32 %v11600_v52, %v5350_v60  ;;  %v8186_v34 = vpop.eup %8185  ;;  %4831 = vadd.xlane.f32.xlu0 %v4830_v47  ;;  %v5416_v26 = vmul.f32 1.442695, %v5406_v7 }
 0x96f   : > { %v11657_v22 = vpop.xlane.xlu1 %5082  ;;  %7474 = vmatmul.mubr.msk.bf16.gmra.mrb[100].mxu0 %vm2208_vm3, %v4861_v5  ;;  %v5155_v50 = vsel %vm2208_vm3, %v8186_v34, 0.0 }
 0x970   : > { %13037 = vst [vmem:[#allocation88_spill] sm:$0xff] %v11653_v20  ;;  %13038 = vst [vmem:[#allocation89_spill] sm:$0xff] %v11657_v22  ;;  %v8188_v44 = vpop.eup %8187  ;;  %v5119_v59 = vsub.f32 %v11248_v61, %v11657_v22  ;;  %v5404_v43 = vsub.f32 %v11256_v51, %v11653_v20  ;;  %8193 = vpow2.f32 %v5136_v17  ;;  %5156 = vadd.xlane.f32.xlu1 %v5155_v50  ;;  %v13044_v50 = vld [vmem:[#allocation49_spill] sm:$0xff] }
 0x971   : > { %v5359_v24 = vpop.xlane.xlu0 %5358  ;;  %v5178_v42 = vpack.c.bf16 %v8188_v44, %v8182_v14  ;;  %v5179_v61 = vpack.c.bf16 %v8186_v34, %v8184_v4  ;;  %8195 = vpow2.f32 %v5416_v26  ;;  %v5149_v7 = vsel %vm2208_vm3, %v8188_v44, 0.0 }
 0x972   : > { %v5132_v11 = vmul.f32 1.442695, %v5119_v59  ;;  %v11666_v15 = vmax.f32 %v11614_v39, %v5359_v24  ;;  %5153 = vadd.xlane.f32.xlu0 %v5152_v6  ;;  %v5412_v51 = vmul.f32 1.442695, %v5404_v43  ;;  %v5146_v34 = vsel %vm2208_vm3, %v8182_v14, 0.0  ;;  %v8190_v26 = vpop.eup %8189  ;;  %v13046_v6 = vld [vmem:[#allocation60_spill] sm:$0xff] }
 0x973   : > { %7493 = vmatprep.mubr.msk.bf16.mxu0 %vm2208_vm3, %v5178_v42  ;;  %v5353_v5 = vpop.xlane.xlu1 %5352 }
 0x974   : > { %13039 = vst [vmem:[#allocation90_spill] sm:$0xff] %v11666_v15  ;;  %v11671_v36 = vmax.f32 %v11619_v56, %v5353_v5  ;;  %v5407_v32 = vsub.f32 %v13041_v38, %v11666_v15  ;;  %8197 = vpow2.f32 %v5132_v11  ;;  %5150 = vadd.xlane.f32.xlu1 %v5149_v7  ;;  %v13048_v38 = vld [vmem:[#allocation36_spill] sm:$0xff]  ;;  %v13049_v7 = vld [vmem:[#allocation47_spill] sm:$0xff] }
 0x975   : > { %v5368_v60 = vpop.xlane.xlu0 %5367  ;;  %8199 = vpow2.f32 %v5412_v51 }
 0x976   : > { %13040 = vst [vmem:[#allocation91_spill] sm:$0xff] %v11671_v36  ;;  %v5405_v17 = vsub.f32 %v13042_v28, %v11671_v36  ;;  %v11679_v47 = vmax.f32 %v11625_v3, %v5368_v60  ;;  %v5418_v4 = vmul.f32 1.442695, %v5407_v32  ;;  %5147 = vadd.xlane.f32.xlu0 %v5146_v34  ;;  %v8192_v11 = vpop.eup %8191  ;;  %v13060_v36 = vld [vmem:[#allocation58_spill] sm:$0xff] }
 0x977   : > { %v5371_v59 = vpop.xlane.xlu1 %5370  ;;  %7494 = vmatmul.mubr.msk.bf16.vlgmr.msra.gmra.mrb[104].mxu0 %vm2208_vm3, %v5179_v61  ;;  %v5164_v61 = vsel %vm2208_vm3, %v8190_v26, 0.0 }
 0x978   : > { %13043 = vst [vmem:[#allocation44_spill] sm:$0xff] %v11679_v47  ;;  %v5414_v43 = vmul.f32 1.442695, %v5405_v17  ;;  %v5410_v24 = vsub.f32 %v13044_v50, %v11679_v47  ;;  %7514 = vmatpush3.bf16.msra.mxu0 %v11366_v40  ;;  %v11687_v44 = vmax.f32 %v11644_v30, %v5371_v59  ;;  %8201 = vpow2.f32 %v5418_v4 }
 0x979   : > { %v5362_v42 = vpop.xlane.xlu0 %5361  ;;  %7515 = vmatprep.subr.bf16.mxu0 %v13046_v6 }
 0x97a   : > { %13045 = vst [vmem:[#allocation43_spill] sm:$0xff] %v11687_v44  ;;  %v11691_v14 = vmax.f32 %v11632_v18, %v5362_v42  ;;  %v5424_v5 = vmul.f32 1.442695, %v5410_v24  ;;  %v5411_v32 = vsub.f32 %v13048_v38, %v11687_v44  ;;  %v8194_v40 = vpop.eup %8193  ;;  %8203 = vpow2.f32 %v5414_v43  ;;  %5165 = vadd.xlane.f32.xlu0 %v5164_v61  ;;  %v13052_v61 = vld [vmem:[#allocation40_spill] sm:$0xff]  ;;  %v13054_v44 = vld [vmem:[#allocation39_spill] sm:$0xff] }
 0x97b   : > { %v11696_v51 = vpop.xlane.xlu1 %5683  ;;  %v5167_v34 = vsel %vm2208_vm3, %v8194_v40, 0.0  ;;  %v11702_v59 = vpop.eup %8195  ;;  %v5158_v43 = vsel %vm2208_vm3, %v8192_v11, 0.0 }
 0x97c   : > { %13047 = vst [vmem:[#allocation49_spill] sm:$0xff] %v11691_v14  ;;  %v5408_v60 = vsub.f32 %v13049_v7, %v11691_v14  ;;  %v5426_v28 = vmul.f32 1.442695, %v5411_v32  ;;  %7516 = vmatpush3.bf16.msra.mxu0 %v13046_v6  ;;  %8205 = vpow2.f32 %v5424_v5  ;;  %5168 = vadd.xlane.f32.xlu1 %v5167_v34  ;;  %v13051_v6 = vld [vmem:[#allocation42_spill] sm:$0xff]  ;;  %v5181_v32 = vpack.c.bf16 %v8194_v40, %v8190_v26 }
 0x97d   : > { %v5365_v17 = vpop.xlane.xlu0 %5364  ;;  %v5730_v7 = vsub.f32 %v13052_v61, %v11696_v51  ;;  %v13053_v5 = vld [vmem:[#allocation38_spill] sm:$0xff]  ;;  %v5442_v26 = vsel %vm2208_vm3, %v11702_v59, 0.0 }
 0x97e   : > { %v5420_v4 = vmul.f32 1.442695, %v5408_v60  ;;  %v11705_v50 = vmax.f32 %v11657_v22, %v5365_v17  ;;  %v8198_v42 = vpop.eup %8197  ;;  %8207 = vpow2.f32 %v5426_v28  ;;  %5159 = vadd.xlane.f32.xlu0 %v5158_v43 }
 0x97f   : > { %v11708_v24 = vpop.xlane.xlu1 %5692  ;;  %v5161_v17 = vsel %vm2208_vm3, %v8198_v42, 0.0  ;;  %v8200_v28 = vpop.eup %8199  ;;  %v5180_v47 = vpack.c.bf16 %v8198_v42, %v8192_v11  ;;  %v5738_v22 = vmul.f32 1.442695, %v5730_v7  ;;  %v13055_v11 = vld [vmem:[#allocation48_spill] sm:$0xff] }
 0x980   : > { %13050 = vst [vmem:[#allocation60_spill] sm:$0xff] %v11705_v50  ;;  %v5733_v38 = vsub.f32 %v13051_v6, %v11708_v24  ;;  %v5409_v60 = vsub.f32 %v13053_v5, %v11705_v50  ;;  %8209 = vpow2.f32 %v5420_v4  ;;  %5162 = vadd.xlane.f32.xlu1 %v5161_v17 }
 0x981   : > { %v11717_v34 = vpop.xlane.xlu0 %5689  ;;  %7497 = vmatprep.mubr.msk.bf16.mxu0 %vm2208_vm3, %v5180_v47 }
 0x982   : > { %v5732_v14 = vsub.f32 %v13054_v44, %v11717_v34  ;;  %v5422_v43 = vmul.f32 1.442695, %v5409_v60  ;;  %v8202_v6 = vpop.eup %8201  ;;  %v5744_v61 = vmul.f32 1.442695, %v5733_v38  ;;  %5443 = vadd.xlane.f32.xlu0 %v5442_v26  ;;  %7498 = vmatmul.mubr.msk.bf16.gmra.mrb[108].mxu0 %vm2208_vm3, %v5181_v32  ;;  %v13056_v38 = vld [vmem:[#allocation35_spill] sm:$0xff] }
 0x983   : > { %v11723_v40 = vpop.xlane.xlu1 %5701  ;;  %v5477_v50 = vpack.c.bf16 %v8202_v6, %v11702_v59  ;;  %v5445_v44 = vsel %vm2208_vm3, %v8202_v6, 0.0  ;;  %v5436_v59 = vsel %vm2208_vm3, %v8200_v28, 0.0 }
 0x984   : > { %v5742_v5 = vmul.f32 1.442695, %v5732_v14  ;;  %v8204_v60 = vpop.eup %8203  ;;  %8211 = vpow2.f32 %v5422_v43  ;;  %v5736_v42 = vsub.f32 %v13055_v11, %v11723_v40  ;;  %5446 = vadd.xlane.f32.xlu1 %v5445_v44  ;;  %v13057_v43 = vld [vmem:[#allocation50_spill] sm:$0xff] }
 0x985   : > { %v11728_v4 = vpop.xlane.xlu0 %5686  ;;  %v5476_v7 = vpack.c.bf16 %v8204_v60, %v8200_v28  ;;  %v5439_v28 = vsel %vm2208_vm3, %v8204_v60, 0.0 }
 0x986   : > { %v5731_v14 = vsub.f32 %v13056_v38, %v11728_v4  ;;  %8213 = vpow2.f32 %v5742_v5  ;;  %5437 = vadd.xlane.f32.xlu0 %v5436_v59  ;;  %v11740_v32 = vpop.eup %8205  ;;  %v5750_v5 = vmul.f32 1.442695, %v5736_v42 }
 0x987   : > { %v11736_v47 = vpop.xlane.xlu1 %5695  ;;  %8215 = vpow2.f32 %v5744_v61  ;;  %7517 = vmatprep.mubr.msk.bf16.mxu0 %vm2208_vm3, %v5476_v7  ;;  %v13058_v7 = vld [vmem:[#allocation57_spill] sm:$0xff] }
 0x988   : > { %v5740_v17 = vmul.f32 1.442695, %v5731_v14  ;;  %v5734_v26 = vsub.f32 %v13057_v43, %v11736_v47  ;;  %8217 = vpow2.f32 %v5738_v22  ;;  %v11743_v11 = vpop.eup %8207  ;;  %5440 = vadd.xlane.f32.xlu1 %v5439_v28 }
 0x989   : > { %v5972_v6 = vpop.xlane.xlu0 %5971  ;;  %v5479_v38 = vpack.c.bf16 %v11743_v11, %v11740_v32 }
 0x98a   : > { %8219 = vpow2.f32 %v5740_v17  ;;  %v11747_v44 = vmax.f32 %v11717_v34, %v5972_v6  ;;  %v8210_v14 = vpop.eup %8209  ;;  %v5746_v22 = vmul.f32 1.442695, %v5734_v26  ;;  %v13059_v17 = vld [vmem:[#allocation55_spill] sm:$0xff]  ;;  %7518 = vmatmul.mubr.msk.bf16.vlgmr.msra.gmra.mrb[112].mxu0 %vm2208_vm3, %v5477_v50 }
 0x98b   : > { %v11749_v61 = vpop.xlane.xlu1 %5704  ;;  %v5448_v43 = vsel %vm2208_vm3, %v8210_v14, 0.0  ;;  %8221 = vpow2.f32 %v5750_v5 }
 0x98c   : > { %v6022_v42 = vsub.f32 %v13058_v7, %v11747_v44  ;;  %v5737_v60 = vsub.f32 %v13059_v17, %v11749_v61  ;;  %5449 = vadd.xlane.f32.xlu0 %v5448_v43  ;;  %8223 = vpow2.f32 %v5746_v22 }
 0x98d   : > { %v5966_v6 = vpop.xlane.xlu0 %5965 }
 0x98e   : > { %v11762_v28 = vmax.f32 %v11696_v51, %v5966_v6  ;;  %v5752_v26 = vmul.f32 1.442695, %v5737_v60  ;;  %v8212_v59 = vpop.eup %8211  ;;  %v6032_v17 = vmul.f32 1.442695, %v6022_v42  ;;  %v13061_v60 = vld [vmem:[#allocation52_spill] sm:$0xff] }
 0x98f   : > { %v11764_v30 = vpop.xlane.xlu1 %5698  ;;  %v5451_v50 = vsel %vm2208_vm3, %v8212_v59, 0.0  ;;  %v5478_v15 = vpack.c.bf16 %v8212_v59, %v8210_v14 }
 0x990   : > { %v11768_v3 = vpop.eup %8213  ;;  %v5735_v5 = vsub.f32 %v13060_v36, %v11764_v30  ;;  %8225 = vpow2.f32 %v5752_v26  ;;  %v6020_v20 = vsub.f32 %v13061_v60, %v11762_v28  ;;  %5452 = vadd.xlane.f32.xlu1 %v5451_v50  ;;  %v13062_v50 = vld [vmem:[#allocation51_spill] sm:$0xff] }
 0x991   : > { %v5975_v43 = vpop.xlane.xlu0 %5974  ;;  %v11773_v6 = vpop.eup %8215  ;;  %7521 = vmatprep.mubr.msk.bf16.mxu0 %vm2208_vm3, %v5478_v15  ;;  %v5768_v36 = vsel %vm2208_vm3, %v11768_v3, 0.0  ;;  %8227 = vpow2.f32 %v6032_v17 }
 0x992   : > { %v11778_v22 = vmax.f32 %v11708_v24, %v5975_v43  ;;  %v8218_v7 = vpop.eup %8217  ;;  %v5748_v18 = vmul.f32 1.442695, %v5735_v5  ;;  %5769 = vadd.xlane.f32.xlu0 %v5768_v36  ;;  %v5771_v15 = vsel %vm2208_vm3, %v11773_v6, 0.0  ;;  %v6028_v52 = vmul.f32 1.442695, %v6020_v20  ;;  %7522 = vmatmul.mubr.msk.bf16.gmra.mrb[116].mxu0 %vm2208_vm3, %v5479_v38  ;;  %v13063_v36 = vld [vmem:[#allocation53_spill] sm:$0xff] }
 0x993   : > { %v5969_v42 = vpop.xlane.xlu1 %5968  ;;  %v5762_v17 = vsel %vm2208_vm3, %v8218_v7, 0.0 }
 0x994   : > { %v8220_v59 = vpop.eup %8219  ;;  %v6023_v60 = vsub.f32 %v13062_v50, %v11778_v22  ;;  %v11790_v43 = vmax.f32 %v11728_v4, %v5969_v42  ;;  %8229 = vpow2.f32 %v5748_v18  ;;  %5772 = vadd.xlane.f32.xlu1 %v5771_v15 }
 0x995   : > { %v5984_v5 = vpop.xlane.xlu0 %5983  ;;  %v5794_v8 = vpack.c.bf16 %v8220_v59, %v8218_v7  ;;  %v11804_v20 = vpop.eup %8221  ;;  %v5765_v38 = vsel %vm2208_vm3, %v8220_v59, 0.0 }
 0x996   : > { %v6034_v14 = vmul.f32 1.442695, %v6023_v60  ;;  %v6021_v50 = vsub.f32 %v13063_v36, %v11790_v43  ;;  %v11800_v42 = vmax.f32 %v11723_v40, %v5984_v5  ;;  %5763 = vadd.xlane.f32.xlu0 %v5762_v17  ;;  %v13065_v5 = vld [vmem:[#allocation54_spill] sm:$0xff]  ;;  %v8224_v26 = vpop.eup %8223  ;;  %v13066_v17 = vld [vmem:[#allocation56_spill] sm:$0xff] }
 0x997   : > { %7541 = vmatprep.mubr.msk.bf16.mxu0 %vm2208_vm3, %v5794_v8  ;;  %v5987_v56 = vpop.xlane.xlu1 %5986  ;;  %v13068_v8 = vld [vmem:[#allocation59_spill] sm:$0xff]  ;;  %v5774_v39 = vsel %vm2208_vm3, %v8224_v26, 0.0 }
 0x998   : > { %v11807_v18 = vmax.f32 %v11749_v61, %v5987_v56  ;;  %8231 = vpow2.f32 %v6034_v14  ;;  %v6030_v60 = vmul.f32 1.442695, %v6021_v50  ;;  %v6026_v36 = vsub.f32 %v13065_v5, %v11800_v42  ;;  %5766 = vadd.xlane.f32.xlu1 %v5765_v38 }
 0x999   : > { %v5978_v7 = vpop.xlane.xlu0 %5977  ;;  %8233 = vpow2.f32 %v6028_v52  ;;  %v5780_v50 = vsel %vm2208_vm3, %v11804_v20, 0.0 }
 0x99a   : > { %13064 = vst [vmem:[#allocation36_spill] sm:$0xff] %v11807_v18  ;;  %v6027_v56 = vsub.f32 %v13066_v17, %v11807_v18  ;;  %v11819_v59 = vmax.f32 %v11736_v47, %v5978_v7  ;;  %8235 = vpow2.f32 %v6030_v60  ;;  %v6040_v14 = vmul.f32 1.442695, %v6026_v36  ;;  %v11823_v15 = vpop.eup %8225  ;;  %5781 = vadd.xlane.f32.xlu0 %v5780_v50 }
 0x99b   : > { %v5783_v38 = vsel %vm2208_vm3, %v11823_v15, 0.0  ;;  %v5797_v60 = vpack.c.bf16 %v11823_v15, %v11804_v20  ;;  %v5801_v52 = vpop.permute.xlu1 %5800 }
 0x99c   : > { %13067 = vst [vmem:[#allocation47_spill] sm:$0xff] %v11819_v59  ;;  %v6042_v5 = vmul.f32 1.442695, %v6027_v56  ;;  %v6024_v19 = vsub.f32 %v13068_v8, %v11819_v59  ;;  %5784 = vadd.xlane.f32.xlu1 %v5783_v38  ;;  %v11836_v56 = vpop.eup %8227  ;;  %8237 = vpow2.f32 %v6040_v14  ;;  %v13069_v59 = vld [vmem:[#allocation61_spill] sm:$0xff] }
 0x99d   : > { %v5981_v7 = vpop.xlane.xlu0 %5980 }
 0x99e   : > { %v6036_v36 = vmul.f32 1.442695, %v6024_v19  ;;  %v11834_v17 = vmax.f32 %v11764_v30, %v5981_v7  ;;  %v8230_v8 = vpop.eup %8229  ;;  %8239 = vpow2.f32 %v6042_v5  ;;  %5775 = vadd.xlane.f32.xlu0 %v5774_v39  ;;  %v6058_v7 = vsel %vm2208_vm3, %v11836_v56, 0.0 }
 0x99f   : > { %v5777_v19 = vsel %vm2208_vm3, %v8230_v8, 0.0  ;;  %v5796_v15 = vpack.c.bf16 %v8230_v8, %v8224_v26  ;;  %v6097_v39 = vpop.permute.xlu1 %6096  ;;  %v5457_v26 = vsel %vm2208_vm3, %v11743_v11, 0.0  ;;  %v5454_v11 = vsel %vm2208_vm3, %v11740_v32, 0.0 }
 0x9a0   : > { %v6025_v18 = vsub.f32 %v13069_v59, %v11834_v17  ;;  %8241 = vpow2.f32 %v6036_v36  ;;  %5778 = vadd.xlane.f32.xlu1 %v5777_v19  ;;  %v3921_v32 = vsel %vm2208_vm3, %v11410_v0, 0.0  ;;  %v3924_v0 = vsel %vm2208_vm3, %v11424_v53, 0.0 }
 0x9a1   : > { %v5799_v20 = vpop.permute.xlu0 %5798  ;;  %v4201_v53 = vsel %vm2208_vm3, %v11504_v55, 0.0  ;;  %v8441_v55 = vld [vmem:[#allocation16 + $0x20] sm:$0xff]  }
 0x9a2   : > { %v6038_v38 = vmul.f32 1.442695, %v6025_v18  ;;  %7537 = vmatprep.subr.bf16.mxu0 %v5799_v20  ;;  %v8232_v14 = vpop.eup %8231  ;;  %6059 = vadd.xlane.f32.xlu0 %v6058_v7 }
 0x9a3   : > { %7538 = vmatpush3.bf16.msra.mxu0 %v5799_v20  ;;  %v8234_v5 = vpop.eup %8233  ;;  %v6093_v50 = vpack.c.bf16 %v8232_v14, %v11836_v56  ;;  %v6061_v19 = vsel %vm2208_vm3, %v8232_v14, 0.0  ;;  %v13070_v56 = vpack.c.bf16 %v11773_v6, %v11768_v3  ;;  %v8437_v6 = vld [vmem:[#allocation16] sm:$0xff]  }
 0x9a4   : > { %7539 = vmatprep.subr.bf16.mxu0 %v5801_v52  ;;  %v8236_v59 = vpop.eup %8235  ;;  %8243 = vpow2.f32 %v6038_v38  ;;  %5458 = vadd.xlane.f32.xlu1 %v5457_v26  ;;  %v6052_v36 = vsel %vm2208_vm3, %v8234_v5, 0.0  ;;  %v6099_v38 = vpop.permute.xlu1 %6098 }
 0x9a5   : > { %v6092_v18 = vpack.c.bf16 %v8236_v59, %v8234_v5  ;;  %v6055_v14 = vsel %vm2208_vm3, %v8236_v59, 0.0 }
 0x9a6   : > { %6053 = vadd.xlane.f32.xlu0 %v6052_v36  ;;  %v8238_v8 = vpop.eup %8237 }
 0x9a7   : > { %7540 = vmatpush3.bf16.msra.mxu0 %v5801_v52 }
 0x9a8   : > { %7561 = vmatprep.subr.bf16.mxu0 %v6097_v39  ;;  %v8240_v20 = vpop.eup %8239  ;;  %6062 = vadd.xlane.f32.xlu1 %v6061_v19  ;;  %v3930_v19 = vsel %vm2208_vm3, %v11462_v31, 0.0  ;;  %v4210_v31 = vsel %vm2208_vm3, %v11538_v45, 0.0 }
 0x9a9   : > { %v6095_v52 = vpack.c.bf16 %v8240_v20, %v8238_v8  ;;  %v6073_v59 = vsel %vm2208_vm3, %v8240_v20, 0.0  ;;  %v3933_v20 = vsel %vm2208_vm3, %v11457_v49, 0.0  ;;  %v4213_v49 = vsel %vm2208_vm3, %v11536_v54, 0.0 }
 0x9aa   : > { %7542 = vmatmul.mubr.msk.bf16.vlgmr.msra.gmra.mrb[120].mxu0 %vm2208_vm3, %v13070_v56  ;;  %v8242_v7 = vpop.eup %8241  ;;  %5455 = vadd.xlane.f32.xlu0 %v5454_v11  ;;  %v8442_v56 = vld [vmem:[#allocation16 + $0x28] sm:$0xff]   ;;  %v8444_v11 = vld [vmem:[#allocation16 + $0x38] sm:$0xff]  }
 0x9ab   : > { %7545 = vmatprep.mubr.msk.bf16.mxu0 %vm2208_vm3, %v5796_v15  ;;  %7562 = vmatpush3.bf16.msra.mxu0 %v6097_v39  ;;  %v6064_v26 = vsel %vm2208_vm3, %v8242_v7, 0.0  ;;  %v6070_v15 = vsel %vm2208_vm3, %v8238_v8, 0.0  ;;  %v3918_v39 = vsel %vm2208_vm3, %v11412_v23, 0.0  ;;  %v4198_v23 = vsel %vm2208_vm3, %v11508_v62, 0.0  ;;  %v8439_v8 = vld [vmem:[#allocation16 + $0x10] sm:$0xff]  }
 0x9ac   : > { %7563 = vmatprep.subr.bf16.mxu0 %v6099_v38  ;;  %6056 = vadd.xlane.f32.xlu1 %v6055_v14  ;;  %v4207_v62 = vsel %vm2208_vm3, %v11488_v58, 0.0  ;;  %v3939_v58 = vsel %vm2208_vm3, %v11439_v21, 0.0  ;;  %v4219_v21 = vsel %vm2208_vm3, %v11518_v57, 0.0 }
 0x9ae   : > { %v8244_v5 = vpop.eup %8243  ;;  %6065 = vadd.xlane.f32.xlu0 %v6064_v26 }
 0x9af   : > { %7564 = vmatpush3.bf16.msra.mxu0 %v6099_v38  ;;  %v6094_v3 = vpack.c.bf16 %v8244_v5, %v8242_v7  ;;  %v6067_v36 = vsel %vm2208_vm3, %v8244_v5, 0.0  ;;  %v8443_v38 = vld [vmem:[#allocation16 + $0x30] sm:$0xff]  }
 0x9b0   : > { %7573 = vmatprep.subr.bf16.mxu0 %v8437_v6  ;;  %3922 = vadd.xlane.f32.xlu1 %v3921_v32  ;;  %v3862_v32 = vsub.f32 -inf, %v11380_v35 }
 0x9b2   : > { %7546 = vmatmul.mubr.msk.bf16.gmra.mrb[124].mxu0 %vm2208_vm3, %v5797_v60  ;;  %6071 = vadd.xlane.f32.xlu0 %v6070_v15  ;;  %v8438_v60 = vld [vmem:[#allocation16 + $0x8] sm:$0xff]   ;;  %v3863_v15 = vsub.f32 -inf, %v11374_v46 }
 0x9b3   : > { %7565 = vmatprep.mubr.msk.bf16.mxu0 %vm2208_vm3, %v6092_v18  ;;  %v3927_v18 = vsel %vm2208_vm3, %v11427_v25, 0.0  ;;  %v8440_v25 = vld [vmem:[#allocation16 + $0x18] sm:$0xff]  }
 0x9b4   : > { %6074 = vadd.xlane.f32.xlu1 %v6073_v59  ;;  %v13073_v59 = vld [vmem:[#allocation32_spill] sm:$0xff] }
 0x9b6   : > { %3919 = vadd.xlane.f32.xlu0 %v3918_v39  ;;  %v3865_v39 = vsub.f32 -inf, %v13073_v59 }
 0x9b8   : > { %6068 = vadd.xlane.f32.xlu1 %v6067_v36 }
 0x9ba   : > { %7566 = vmatmul.mubr.msk.bf16.vlgmr.msra.gmra.mrb[128].mxu0 %vm2208_vm3, %v6093_v50  ;;  %3925 = vadd.xlane.f32.xlu0 %v3924_v0  ;;  %v4204_v50 = vsel %vm2208_vm3, %v11492_v1, 0.0  ;;  %v3936_v1 = vsel %vm2208_vm3, %v11444_v12, 0.0  ;;  %v4216_v12 = vsel %vm2208_vm3, %v11523_v10, 0.0  ;;  %v13074_v0 = vld [vmem:[#allocation64_spill] sm:$0xff] }
 0x9bb   : > { %7569 = vmatprep.mubr.msk.bf16.mxu0 %vm2208_vm3, %v6094_v3  ;;  %7574 = vmatpush3.bf16.msra.mxu0 %v8437_v6  ;;  %v13072_v3 = vld [vmem:[#allocation62_spill] sm:$0xff] }
 0x9bc   : > { %7575 = vmatprep.subr.bf16.mxu0 %v8438_v60  ;;  %3928 = vadd.xlane.f32.xlu1 %v3927_v18  ;;  %v3864_v57 = vsub.f32 -inf, %v13072_v3 }
 0x9be   : > { %4199 = vadd.xlane.f32.xlu0 %v4198_v23  ;;  %v3874_v36 = vmul.f32 1.442695, %v3864_v57  ;;  %v3870_v23 = vmul.f32 1.442695, %v3862_v32 }
 0x9bf   : > { %7576 = vmatpush3.bf16.msra.mxu0 %v8438_v60  ;;  %v3869_v60 = vsub.f32 -inf, %v13074_v0 }
 0x9c0   : > { %7577 = vmatprep.subr.bf16.mxu0 %v8439_v8  ;;  %4202 = vadd.xlane.f32.xlu1 %v4201_v53  ;;  %8245 = vpow2.f32 %v3874_v36  ;;  %v13082_v36 = vld [vmem:[#allocation71_spill] sm:$0xff] }
 0x9c1   : > { %8247 = vpow2.f32 %v3870_v23  ;;  %v13084_v23 = vld [vmem:[#allocation72_spill] sm:$0xff] }
 0x9c2   : > { %7570 = vmatmul.mubr.msk.bf16.gmra.mrb[132].mxu0 %vm2208_vm3, %v6095_v52  ;;  %4205 = vadd.xlane.f32.xlu0 %v4204_v50 }
 0x9c3   : > { %7578 = vmatpush3.bf16.msra.mxu0 %v8439_v8  ;;  %v13075_v8 = vld [vmem:[#allocation63_spill] sm:$0xff] }
 0x9c4   : > { %7579 = vmatprep.subr.bf16.mxu0 %v8440_v25  ;;  %4208 = vadd.xlane.f32.xlu1 %v4207_v62  ;;  %v3868_v53 = vsub.f32 -inf, %v13075_v8  ;;  %v13076_v62 = vld [vmem:[#allocation65_spill] sm:$0xff] }
 0x9c6   : > { %3931 = vadd.xlane.f32.xlu0 %v3930_v19  ;;  %v3867_v19 = vsub.f32 -inf, %v13076_v62 }
 0x9c7   : > { %7580 = vmatpush3.bf16.msra.mxu0 %v8440_v25  ;;  %v3872_v25 = vmul.f32 1.442695, %v3863_v15  ;;  %v13081_v15 = vld [vmem:[#allocation70_spill] sm:$0xff] }
 0x9c8   : > { %7581 = vmatprep.subr.bf16.mxu0 %v8441_v55  ;;  %3934 = vadd.xlane.f32.xlu1 %v3933_v20  ;;  %v13077_v20 = vld [vmem:[#allocation66_spill] sm:$0xff]  ;;  %v3880_v32 = vmul.f32 1.442695, %v3867_v19 }
 0x9c9   : > { %8249 = vpow2.f32 %v3872_v25  ;;  %v13085_v25 = vld [vmem:[#allocation73_spill] sm:$0xff] }
 0x9ca   : > { %3937 = vadd.xlane.f32.xlu0 %v3936_v1  ;;  %v3866_v1 = vsub.f32 -inf, %v13077_v20 }
 0x9cb   : > { %7582 = vmatpush3.bf16.msra.mxu0 %v8441_v55  ;;  %v3876_v55 = vmul.f32 1.442695, %v3865_v39  ;;  %v4142_v39 = vsub.f32 %v11380_v35, %v13081_v15  ;;  %v4147_v35 = vsub.f32 %v13076_v62, %v13085_v25  ;;  %v4468_v62 = vsub.f32 -inf, %v11500_v48 }
 0x9cc   : > { %7583 = vmatprep.subr.bf16.mxu0 %v8442_v56  ;;  %3940 = vadd.xlane.f32.xlu1 %v3939_v58 }
 0x9cd   : > { %8251 = vpow2.f32 %v3876_v55  ;;  %v4150_v19 = vmul.f32 1.442695, %v4142_v39  ;;  %v13086_v55 = vld [vmem:[#allocation74_spill] sm:$0xff] }
 0x9ce   : > { %4211 = vadd.xlane.f32.xlu0 %v4210_v31  ;;  %v3884_v31 = vmul.f32 1.442695, %v3869_v60  ;;  %v4149_v60 = vsub.f32 %v13074_v0, %v13082_v36  ;;  %v13090_v36 = vld [vmem:[#allocation75_spill] sm:$0xff] }
 0x9cf   : > { %7584 = vmatpush3.bf16.msra.mxu0 %v8442_v56  ;;  %v13078_v56 = vld [vmem:[#allocation67_spill] sm:$0xff] }
 0x9d0   : > { %7585 = vmatprep.subr.bf16.mxu0 %v8443_v38  ;;  %4214 = vadd.xlane.f32.xlu1 %v4213_v49  ;;  %v4145_v58 = vsub.f32 %v13073_v59, %v13078_v56  ;;  %8253 = vpow2.f32 %v3884_v31  ;;  %v4164_v0 = vmul.f32 1.442695, %v4149_v60  ;;  %v4471_v60 = vsub.f32 -inf, %v13090_v36 }
 0x9d2   : > { %4217 = vadd.xlane.f32.xlu0 %v4216_v12  ;;  %v4156_v59 = vmul.f32 1.442695, %v4145_v58  ;;  %v13087_v58 = vld [vmem:[#allocation76_spill] sm:$0xff] }
 0x9d3   : > { %7586 = vmatpush3.bf16.msra.mxu0 %v8443_v38  ;;  %v13079_v38 = vld [vmem:[#allocation68_spill] sm:$0xff]  ;;  %v4470_v31 = vsub.f32 -inf, %v13087_v58 }
 0x9d4   : > { %7587 = vmatprep.subr.bf16.mxu0 %v8444_v11  ;;  %4220 = vadd.xlane.f32.xlu1 %v4219_v21  ;;  %v4144_v49 = vsub.f32 %v13072_v3, %v13079_v38  ;;  %v13080_v21 = vld [vmem:[#allocation69_spill] sm:$0xff] }
 0x9d5   : > { %v4143_v57 = vsub.f32 %v11374_v46, %v13080_v21 }
 0x9d6   : > { %v4154_v3 = vmul.f32 1.442695, %v4144_v49 }
 0x9d7   : > { %7588 = vmatpush3.bf16.msra.mxu0 %v8444_v11  ;;  %v3882_v11 = vmul.f32 1.442695, %v3868_v53  ;;  %v4148_v53 = vsub.f32 %v13075_v8, %v13084_v23  ;;  %v4152_v46 = vmul.f32 1.442695, %v4143_v57  ;;  %v4469_v8 = vsub.f32 -inf, %v11494_v63  ;;  %v13091_v23 = vld [vmem:[#allocation77_spill] sm:$0xff] }
 0x9d8   : > { %v4160_v57 = vmul.f32 1.442695, %v4147_v35 }
 0x9d9   : > { %8255 = vpow2.f32 %v3882_v11  ;;  %v4162_v49 = vmul.f32 1.442695, %v4148_v53  ;;  %v8246_v11 = vpop.eup %8245  ;;  %v4765_v53 = vsub.f32 %v13090_v36, %v13091_v23  ;;  %v4482_v23 = vmul.f32 1.442695, %v4471_v60 }
 0x9da   : > { %8257 = vpow2.f32 %v3880_v32  ;;  %v8248_v15 = vpop.eup %8247  ;;  %v11975_v36 = vmul.f32 0.0, %v8246_v11 }
 0x9db   : > { %v11900_v45 = vpop.xlane.xlu0 %4531  ;;  %v8250_v39 = vpop.eup %8249 }
 0x9dc   : > { %13096 = vst [vmem:[#allocation50_spill] sm:$0xff] %v11975_v36 }
 0x9dd   : > { %v11902_v52 = vpop.xlane.xlu1 %4528 }
 0x9df   : > { %v11904_v7 = vpop.xlane.xlu0 %4525 }
 0x9e1   : > { %v11906_v54 = vpop.xlane.xlu1 %4546 }
 0x9e3   : > { %v11908_v14 = vpop.xlane.xlu0 %4534 }
 0x9e5   : > { %v11910_v10 = vpop.xlane.xlu1 %4540 }
 0x9e6   : > { %13071 = vst [vmem:[#allocation42_spill] sm:$0xff] %v11910_v10  ;;  %v3878_v10 = vmul.f32 1.442695, %v3866_v1  ;;  %v4146_v1 = vsub.f32 %v13077_v20, %v13086_v55  ;;  %v4475_v20 = vsub.f32 -inf, %v11506_v13 }
 0x9e7   : > { %v11912_v5 = vpop.xlane.xlu0 %4543 }
 0x9e8   : > { %8259 = vpow2.f32 %v3878_v10  ;;  %v4158_v10 = vmul.f32 1.442695, %v4146_v1  ;;  %v4476_v1 = vmul.f32 1.442695, %v4468_v62 }
 0x9e9   : > { %8261 = vpow2.f32 %v4156_v59  ;;  %v4480_v59 = vmul.f32 1.442695, %v4470_v31  ;;  %v13095_v31 = vld [vmem:[#allocation79_spill] sm:$0xff] }
 0x9ea   : > { %8263 = vpow2.f32 %v4154_v3  ;;  %v8252_v3 = vpop.eup %8251 }
 0x9eb   : > { %v11914_v26 = vpop.xlane.xlu1 %4828  ;;  %v11917_v6 = vpop.xlane.xlu0 %4537  ;;  %8265 = vpow2.f32 %v4152_v46  ;;  %v4478_v46 = vmul.f32 1.442695, %v4469_v8 }
 0x9ec   : > { %8267 = vpow2.f32 %v4150_v19  ;;  %v11965_v35 = vpop.eup %8253  ;;  %v13093_v19 = vld [vmem:[#allocation78_spill] sm:$0xff] }
 0x9ed   : > { %8269 = vpow2.f32 %v4164_v0  ;;  %v4764_v55 = vsub.f32 %v13087_v58, %v13093_v19  ;;  %v11971_v0 = vpop.eup %8255  ;;  %v11981_v58 = vmul.f32 0.0, %v8248_v15  ;;  %v4776_v19 = vmul.f32 1.442695, %v4765_v53 }
 0x9ee   : > { %8271 = vpow2.f32 %v4162_v49  ;;  %v4763_v49 = vsub.f32 %v11494_v63, %v13095_v31  ;;  %v11977_v8 = vpop.eup %8257  ;;  %v11987_v63 = vmul.f32 0.0, %v8250_v39  ;;  %v11993_v15 = vmul.f32 0.0, %v8252_v3 }
 0x9ef   : > { %v11923_v18 = vpop.xlane.xlu0 %4825  ;;  %v11926_v50 = vpop.xlane.xlu1 %4822  ;;  %8273 = vpow2.f32 %v4160_v57  ;;  %v4762_v57 = vsub.f32 %v11500_v48, %v11565_v27  ;;  %13097 = vst [vmem:[#allocation57_spill] sm:$0xff] %v11981_v58  ;;  %v4768_v48 = vsub.f32 %v11514_v29, %v11580_v9  ;;  %v4474_v9 = vsub.f32 -inf, %v11514_v29 }
 0x9f0   : > { %8275 = vpow2.f32 %v4158_v10  ;;  %v4769_v10 = vsub.f32 %v11506_v13, %v11575_v33  ;;  %13099 = vst [vmem:[#allocation58_spill] sm:$0xff] %v11987_v63  ;;  %13101 = vst [vmem:[#allocation51_spill] sm:$0xff] %v11993_v15  ;;  %v4772_v60 = vmul.f32 1.442695, %v4763_v49  ;;  %v4767_v13 = vsub.f32 %v11521_v16, %v11587_v2 }
 0x9f1   : > { %8277 = vpow2.f32 %v4480_v59  ;;  %v4782_v29 = vmul.f32 1.442695, %v4768_v48 }
 0x9f2   : > { %v8260_v62 = vpop.eup %8259  ;;  %8279 = vpow2.f32 %v4478_v46  ;;  %v4770_v46 = vmul.f32 1.442695, %v4762_v57  ;;  %v4784_v49 = vmul.f32 1.442695, %v4769_v10  ;;  %v5708_v10 = vsub.f32 -inf, %v11717_v34 }
 0x9f3   : > { %v11934_v12 = vpop.xlane.xlu0 %4819  ;;  %v11942_v56 = vpop.xlane.xlu1 %4840  ;;  %8281 = vpow2.f32 %v4476_v1 }
 0x9f4   : > { %13083 = vst [vmem:[#allocation40_spill] sm:$0xff] %v11942_v56  ;;  %v4490_v56 = vmul.f32 1.442695, %v4475_v20  ;;  %v11989_v11 = vpop.eup %8261  ;;  %v4774_v20 = vmul.f32 1.442695, %v4764_v55 }
 0x9f5   : > { %13100 = vst [vmem:[#allocation52_spill] sm:$0xff] %v11989_v11  ;;  %v11995_v59 = vpop.eup %8263 }
 0x9f6   : > { %13102 = vst [vmem:[#allocation53_spill] sm:$0xff] %v11995_v59  ;;  %8283 = vpow2.f32 %v4490_v56  ;;  %v12000_v53 = vpop.eup %8265 }
 0x9f7   : > { %v11946_v38 = vpop.xlane.xlu0 %4837  ;;  %v11957_v32 = vpop.xlane.xlu1 %4834  ;;  %13103 = vst [vmem:[#allocation54_spill] sm:$0xff] %v12000_v53  ;;  %8285 = vpow2.f32 %v4482_v23 }
 0x9f8   : > { %13089 = vst [vmem:[#allocation39_spill] sm:$0xff] %v11957_v32  ;;  %v12006_v31 = vpop.eup %8267  ;;  %8287 = vpow2.f32 %v4776_v19  ;;  %v4780_v19 = vmul.f32 1.442695, %v4767_v13 }
 0x9f9   : > { %13105 = vst [vmem:[#allocation59_spill] sm:$0xff] %v12006_v31  ;;  %v12014_v57 = vpop.eup %8269  ;;  %8289 = vpow2.f32 %v4774_v20  ;;  %v4472_v20 = vsub.f32 -inf, %v11529_v37 }
 0x9fa   : > { %13107 = vst [vmem:[#allocation62_spill] sm:$0xff] %v12014_v57  ;;  %8291 = vpow2.f32 %v4772_v60  ;;  %v5709_v60 = vsub.f32 -inf, %v11708_v24 }
 0x9fb   : > { %v11954_v21 = vpop.xlane.xlu0 %4831  ;;  %8293 = vpow2.f32 %v4770_v46  ;;  %v12042_v46 = vmul.f32 0.0, %v11971_v0  ;;  %v12055_v0 = vmul.f32 0.0, %v11965_v35 }
 0x9fc   : > { %13088 = vst [vmem:[#allocation38_spill] sm:$0xff] %v11954_v21  ;;  %8295 = vpow2.f32 %v4784_v49 }
 0x9fd   : > { %v11969_v32 = vpop.xlane.xlu1 %5156  ;;  %8297 = vpow2.f32 %v4782_v29  ;;  %13113 = vst [vmem:[#allocation67_spill] sm:$0xff] %v12042_v46  ;;  %13116 = vst [vmem:[#allocation70_spill] sm:$0xff] %v12055_v0 }
 0x9fe   : > { %13094 = vst [vmem:[#allocation35_spill] sm:$0xff] %v11969_v32  ;;  %8299 = vpow2.f32 %v4780_v19  ;;  %v5707_v19 = vsub.f32 -inf, %v11728_v4 }
 0x9ff   : > { %v11963_v25 = vpop.xlane.xlu0 %5153 }
 0xa00   : > { %13092 = vst [vmem:[#allocation48_spill] sm:$0xff] %v11963_v25 }
 0xa01   : > { %v12003_v55 = vpop.xlane.xlu1 %5150 }
 0xa02   : > { %13104 = vst [vmem:[#allocation56_spill] sm:$0xff] %v12003_v55  ;;  %v12020_v55 = vpop.eup %8271 }
 0xa03   : > { %v11985_v25 = vpop.xlane.xlu0 %5147  ;;  %13108 = vst [vmem:[#allocation32_spill] sm:$0xff] %v12020_v55 }
 0xa04   : > { %13098 = vst [vmem:[#allocation55_spill] sm:$0xff] %v11985_v25 }
 0xa06   : > { %v7399_v27 = vpop.f32.mrb[72].mxu0 }
 0xa07   : > { %v4033_v33 = vadd.f32 %v7399_v27, %v11975_v36  ;;  %v4000_v39 = vpop.f32.mrb[73].mxu0  ;;  %v12008_v2 = vpop.xlane.xlu0 %5165 }
 0xa08   : > { %v4031_v3 = vadd.f32 %v4000_v39, %v11981_v58  ;;  %v7400_v1 = vpop.f32.mrb[74].mxu0  ;;  %13106 = vst [vmem:[#allocation61_spill] sm:$0xff] %v12008_v2  ;;  %v4488_v2 = vmul.f32 1.442695, %v4474_v9 }
 0xa09   : > { %v4034_v56 = vadd.f32 %v7400_v1, %v11993_v15  ;;  %v4003_v27 = vpop.f32.mrb[75].mxu0  ;;  %v12012_v25 = vmul.f32 %v11995_v59, %v4033_v33  ;;  %v12026_v33 = vpop.eup %8273  ;;  %v5718_v59 = vmul.f32 1.442695, %v5708_v10  ;;  %v4484_v15 = vmul.f32 1.442695, %v4472_v20 }
 0xa0a   : > { %v4032_v23 = vadd.f32 %v4003_v27, %v11987_v63  ;;  %v12018_v39 = vmul.f32 %v12006_v31, %v4031_v3  ;;  %13109 = vst [vmem:[#allocation64_spill] sm:$0xff] %v12026_v33  ;;  %v12029_v48 = vpop.xlane.xlu1 %5168  ;;  %v12034_v27 = vpop.eup %8275  ;;  %8301 = vpow2.f32 %v4488_v2  ;;  %v12062_v10 = vmul.f32 0.0, %v11977_v8 }
 0xa0b   : > { %v12024_v1 = vmul.f32 %v11989_v11, %v4034_v56  ;;  %13110 = vst [vmem:[#allocation63_spill] sm:$0xff] %v12029_v48  ;;  %13111 = vst [vmem:[#allocation65_spill] sm:$0xff] %v12034_v27  ;;  %v12037_v13 = vpop.xlane.xlu0 %5159  ;;  %v12039_v56 = vpop.eup %8277  ;;  %v5706_v48 = vsub.f32 -inf, %v11696_v51  ;;  %v12047_v11 = vmul.f32 0.0, %v8260_v62  ;;  %v5720_v2 = vmul.f32 1.442695, %v5709_v60 }
 0xa0c   : > { %v12032_v3 = vmul.f32 %v12000_v53, %v4032_v23  ;;  %13112 = vst [vmem:[#allocation66_spill] sm:$0xff] %v12037_v13  ;;  %v12044_v9 = vpop.eup %8279  ;;  %8303 = vpow2.f32 %v5718_v59 }
 0xa0d   : > { %13114 = vst [vmem:[#allocation68_spill] sm:$0xff] %v12047_v11  ;;  %v12049_v49 = vpop.eup %8281  ;;  %v5714_v63 = vmul.f32 1.442695, %v5706_v48  ;;  %8305 = vpow2.f32 %v4484_v15  ;;  %v5716_v48 = vmul.f32 1.442695, %v5707_v19  ;;  %v4766_v19 = vsub.f32 %v11529_v37, %v11596_v41 }
 0xa0e   : > { %v12051_v13 = vpop.xlane.xlu1 %5162  ;;  %v12057_v31 = vpop.eup %8283  ;;  %8307 = vpow2.f32 %v5720_v2 }
 0xa0f   : > { %v7403_v23 = vpop.f32.mrb[76].mxu0  ;;  %13115 = vst [vmem:[#allocation69_spill] sm:$0xff] %v12051_v13  ;;  %v12064_v20 = vpop.eup %8285  ;;  %v5712_v13 = vsub.f32 -inf, %v11723_v40 }
 0xa10   : > { %v4037_v29 = vadd.f32 %v7403_v23, %v12042_v46  ;;  %v4016_v32 = vpop.f32.mrb[77].mxu0  ;;  %v13117_v23 = vsub.f32 %v11717_v34, %v11747_v44  ;;  %v13118_v34 = vsub.f32 %v11696_v51, %v11762_v28  ;;  %v5710_v51 = vsub.f32 -inf, %v11736_v47 }
 0xa11   : > { %v4035_v62 = vadd.f32 %v4016_v32, %v12047_v11  ;;  %v7404_v36 = vpop.f32.mrb[78].mxu0  ;;  %v12074_v32 = vpop.eup %8287  ;;  %v13119_v28 = vsub.f32 %v11708_v24, %v11778_v22 }
 0xa12   : > { %v6008_v35 = vmul.f32 1.442695, %v13117_v23  ;;  %v4038_v46 = vadd.f32 %v7404_v36, %v12055_v0  ;;  %v4019_v58 = vpop.f32.mrb[79].mxu0  ;;  %v12072_v53 = vmul.f32 %v12020_v55, %v4037_v29  ;;  %v12076_v11 = vpop.xlane.xlu0 %5443  ;;  %v6004_v44 = vmul.f32 1.442695, %v13118_v34 }
 0xa13   : > { %v4036_v8 = vadd.f32 %v4019_v58, %v12062_v10  ;;  %v12080_v60 = vmul.f32 %v12034_v27, %v4035_v62  ;;  %v12082_v21 = vpop.eup %8289  ;;  %v5713_v23 = vsub.f32 -inf, %v11749_v61  ;;  %v12093_v58 = vpop.xlane.xlu1 %5446  ;;  %v6010_v15 = vmul.f32 1.442695, %v13119_v28 }
 0xa14   : > { %v12088_v36 = vmul.f32 %v12014_v57, %v4038_v46  ;;  %v12090_v29 = vpop.eup %8291  ;;  %8309 = vpow2.f32 %v6008_v35  ;;  %v5711_v34 = vsub.f32 -inf, %v11764_v30  ;;  %v5726_v57 = vmul.f32 1.442695, %v5712_v13 }
 0xa15   : > { %v12096_v59 = vmul.f32 %v12026_v33, %v4036_v8  ;;  %v12098_v62 = vpop.eup %8293  ;;  %8311 = vpow2.f32 %v5714_v63  ;;  %v13120_v8 = vsub.f32 %v11728_v4, %v11790_v43  ;;  %v5728_v22 = vmul.f32 1.442695, %v5713_v23 }
 0xa16   : > { %v12104_v46 = vpop.eup %8295  ;;  %8313 = vpow2.f32 %v6004_v44  ;;  %v12116_v24 = vpop.xlane.xlu0 %5437  ;;  %v4473_v63 = vsub.f32 -inf, %v11521_v16  ;;  %v5722_v13 = vmul.f32 1.442695, %v5710_v51  ;;  %v5724_v41 = vmul.f32 1.442695, %v5711_v34 }
 0xa17   : > { %v12107_v2 = vpop.eup %8297  ;;  %v6006_v35 = vmul.f32 1.442695, %v13120_v8  ;;  %8315 = vpow2.f32 %v5716_v48  ;;  %v12121_v33 = vpop.xlane.xlu1 %5440  ;;  %v4778_v44 = vmul.f32 1.442695, %v4766_v19  ;;  %v13122_v23 = vsub.f32 %v11723_v40, %v11800_v42 }
 0xa18   : > { %v12114_v55 = vpop.eup %8299  ;;  %8317 = vpow2.f32 %v6010_v15  ;;  %v4486_v34 = vmul.f32 1.442695, %v4473_v63  ;;  %v12150_v63 = vmul.f32 0.0, %v12039_v56  ;;  %v12167_v56 = vmul.f32 0.0, %v12057_v31 }
 0xa19   : > { %v12118_v28 = vpop.eup %8301  ;;  %v7423_v37 = vpop.f32.mrb[80].mxu0  ;;  %8319 = vpow2.f32 %v5726_v57  ;;  %v6016_v48 = vmul.f32 1.442695, %v13122_v23 }
 0xa1a   : > { %8321 = vpow2.f32 %v6006_v35  ;;  %v12124_v4 = vadd.f32 %v7423_v37, %v12012_v25  ;;  %v4288_v43 = vpop.f32.mrb[81].mxu0  ;;  %v8304_v8 = vpop.eup %8303  ;;  %v13125_v37 = vld [vmem:[#allocation36_spill] sm:$0xff] }
 0xa1b   : > { %v12129_v15 = vpop.xlane.xlu0 %5449  ;;  %v12132_v16 = vadd.f32 %v4288_v43, %v12018_v39  ;;  %v7424_v51 = vpop.f32.mrb[82].mxu0  ;;  %8323 = vpow2.f32 %v5728_v22  ;;  %v13126_v40 = vsub.f32 %v11749_v61, %v13125_v37  ;;  %v13131_v61 = vld [vmem:[#allocation47_spill] sm:$0xff] }
 0xa1c   : > { %13121 = vst [vmem:[#allocation71_spill] sm:$0xff] %v12124_v4  ;;  %v12134_v57 = vpop.eup %8305  ;;  %v12137_v19 = vadd.f32 %v7424_v51, %v12024_v1  ;;  %v4291_v25 = vpop.f32.mrb[83].mxu0  ;;  %8325 = vpow2.f32 %v5722_v13  ;;  %v12153_v1 = vmul.f32 0.0, %v12044_v9  ;;  %v12155_v13 = vmul.f32 0.0, %v8304_v8 }
 0xa1d   : > { %13123 = vst [vmem:[#allocation72_spill] sm:$0xff] %v12132_v16  ;;  %v8308_v35 = vpop.eup %8307  ;;  %v6018_v42 = vmul.f32 1.442695, %v13126_v40  ;;  %v12143_v23 = vadd.f32 %v4291_v25, %v12032_v3  ;;  %v12145_v39 = vpop.xlane.xlu1 %5452  ;;  %8327 = vpow2.f32 %v5724_v41  ;;  %v13132_v3 = vsub.f32 %v11736_v47, %v13131_v61  ;;  %v13133_v41 = vld [vmem:[#allocation82_spill] sm:$0xff]  ;;  %v13137_v61 = vld [vmem:[#allocation81_spill] sm:$0xff] }
 0xa1e   : > { %13124 = vst [vmem:[#allocation73_spill] sm:$0xff] %v12137_v19  ;;  %13128 = vst [vmem:[#allocation76_spill] sm:$0xff] %v12145_v39  ;;  %v12147_v22 = vpop.eup %8309  ;;  %8329 = vpow2.f32 %v4778_v44  ;;  %v12161_v25 = vmul.f32 0.0, %v12049_v49  ;;  %v5093_v37 = vsub.f32 -inf, %v13133_v41  ;;  %v12170_v8 = vmul.f32 0.0, %v8308_v35  ;;  %v13138_v19 = vld [vmem:[#allocation83_spill] sm:$0xff] }
 0xa1f   : > { %13127 = vst [vmem:[#allocation74_spill] sm:$0xff] %v12143_v23  ;;  %13129 = vst [vmem:[#allocation75_spill] sm:$0xff] %v12147_v22  ;;  %v8312_v43 = vpop.eup %8311  ;;  %8331 = vpow2.f32 %v6016_v48  ;;  %v6012_v51 = vmul.f32 1.442695, %v13132_v3  ;;  %v5770_v44 = vpop.xlane.xlu0 %5769  ;;  %v13136_v47 = vsub.f32 %v11764_v30, %v11834_v17  ;;  %v5092_v3 = vsub.f32 -inf, %v13137_v61 }
 0xa20   : > { %13130 = vst [vmem:[#allocation77_spill] sm:$0xff] %v12155_v13  ;;  %v12164_v40 = vpop.eup %8313  ;;  %8333 = vpow2.f32 %v4486_v34  ;;  %v5788_v9 = vadd.f32 %v5770_v44, %v12155_v13  ;;  %13135 = vst [vmem:[#allocation79_spill] sm:$0xff] %v12170_v8  ;;  %v5091_v4 = vsub.f32 -inf, %v13138_v19  ;;  %v12183_v44 = vmul.f32 0.0, %v8312_v43 }
 0xa21   : > { %13134 = vst [vmem:[#allocation78_spill] sm:$0xff] %v12164_v40  ;;  %v8316_v48 = vpop.eup %8315  ;;  %8335 = vpow2.f32 %v6018_v42  ;;  %v6014_v49 = vmul.f32 1.442695, %v13136_v47  ;;  %v7427_v0 = vpop.f32.mrb[84].mxu0  ;;  %v4519_v17 = vmul.f32 0.0, %v12064_v20 }
 0xa22   : > { %v5773_v23 = vpop.xlane.xlu1 %5772  ;;  %v12177_v27 = vpop.eup %8317  ;;  %v12180_v31 = vadd.f32 %v7427_v0, %v12072_v53  ;;  %v12186_v42 = vmul.f32 %v12147_v22, %v5788_v9  ;;  %8337 = vpow2.f32 %v6012_v51  ;;  %v5104_v47 = vmul.f32 1.442695, %v5093_v37 }
 0xa23   : > { %13139 = vst [vmem:[#allocation36_spill] sm:$0xff] %v12177_v27  ;;  %v5789_v34 = vadd.f32 %v5773_v23, %v12170_v8  ;;  %v4304_v35 = vpop.f32.mrb[85].mxu0  ;;  %v8320_v30 = vpop.eup %8319  ;;  %v12198_v9 = vmul.f32 0.0, %v8316_v48  ;;  %8339 = vpow2.f32 %v6014_v49  ;;  %v5102_v37 = vmul.f32 1.442695, %v5092_v3 }
 0xa24   : > { %13140 = vst [vmem:[#allocation47_spill] sm:$0xff] %v12186_v42  ;;  %v12190_v13 = vadd.f32 %v4304_v35, %v12080_v60  ;;  %v7428_v16 = vpop.f32.mrb[86].mxu0  ;;  %v5764_v39 = vpop.xlane.xlu0 %5763  ;;  %v12203_v60 = vmul.f32 1.442695, %v5091_v4  ;;  %v12210_v8 = vmul.f32 0.0, %v8320_v30  ;;  %v4550_v49 = vadd.f32 %v11900_v45, %v12150_v63 }
 0xa25   : > { %v12192_v53 = vpop.eup %8321  ;;  %v12195_v0 = vadd.f32 %v7428_v16, %v12088_v36  ;;  %v5786_v23 = vadd.f32 %v5764_v39, %v12183_v44  ;;  %v4307_v43 = vpop.f32.mrb[87].mxu0  ;;  %13142 = vst [vmem:[#allocation81_spill] sm:$0xff] %v12198_v9  ;;  %v12201_v51 = vmul.f32 %v12177_v27, %v5789_v34  ;;  %v13144_v36 = vld [vmem:[#allocation80_spill] sm:$0xff]  ;;  %v4549_v4 = vadd.f32 %v11902_v52, %v12153_v1 }
 0xa26   : > { %13141 = vst [vmem:[#allocation82_spill] sm:$0xff] %v12192_v53  ;;  %v8324_v20 = vpop.eup %8323  ;;  %v12206_v35 = vadd.f32 %v4307_v43, %v12096_v59  ;;  %v5767_v42 = vpop.xlane.xlu1 %5766  ;;  %v5090_v16 = vsub.f32 -inf, %v13144_v36  ;;  %13145 = vst [vmem:[#allocation80_spill] sm:$0xff] %v12210_v8  ;;  %v4548_v59 = vadd.f32 %v11904_v7, %v12161_v25  ;;  %8341 = vpow2.f32 %v5104_v47 }
 0xa27   : > { %13143 = vst [vmem:[#allocation83_spill] sm:$0xff] %v12201_v51  ;;  %v8326_v22 = vpop.eup %8325  ;;  %v5787_v39 = vadd.f32 %v5767_v42, %v12198_v9  ;;  %v12213_v48 = vmul.f32 %v12164_v40, %v5786_v23  ;;  %v13147_v42 = vld [vmem:[#allocation86_spill] sm:$0xff]  ;;  %v12226_v51 = vmul.f32 0.0, %v8324_v20  ;;  %v4551_v52 = vadd.f32 %v11908_v14, %v4519_v17 }
 0xa28   : > { %v8328_v34 = vpop.eup %8327  ;;  %v5782_v3 = vpop.xlane.xlu0 %5781  ;;  %v5382_v30 = vsub.f32 %v13137_v61, %v13147_v42  ;;  %v4522_v7 = vmul.f32 0.0, %v12118_v28  ;;  %v4520_v47 = vmul.f32 0.0, %v12134_v57  ;;  %v12236_v9 = vmul.f32 0.0, %v8326_v22 }
 0xa29   : > { %13146 = vst [vmem:[#allocation92_spill] sm:$0xff] %v12213_v48  ;;  %v12221_v43 = vpop.eup %8329  ;;  %v5792_v23 = vadd.f32 %v5782_v3, %v12210_v8  ;;  %13148 = vst [vmem:[#allocation86_spill] sm:$0xff] %v12226_v51  ;;  %v12229_v27 = vmul.f32 %v12192_v53, %v5787_v39  ;;  %v7447_v48 = vpop.f32.mrb[88].mxu0  ;;  %v12240_v39 = vmul.f32 0.0, %v8328_v34  ;;  %v4812_v28 = vmul.f32 %v12082_v21, %v4550_v49 }
 0xa2a   : > { %v12231_v45 = vpop.eup %8331  ;;  %v5785_v40 = vpop.xlane.xlu1 %5784  ;;  %v4647_v3 = vadd.f32 %v7447_v48, %v12150_v63  ;;  %v4811_v57 = vmul.f32 %v12090_v29, %v4549_v4  ;;  %v4810_v22 = vmul.f32 %v12098_v62, %v4548_v59  ;;  %v4813_v49 = vmul.f32 %v12074_v32, %v4551_v52 }
 0xa2b   : > { %13149 = vst [vmem:[#allocation93_spill] sm:$0xff] %v12229_v27  ;;  %v8334_v61 = vpop.eup %8333  ;;  %v5793_v20 = vadd.f32 %v5785_v40, %v12226_v51  ;;  %v4614_v42 = vpop.f32.mrb[89].mxu0  ;;  %v12243_v8 = vmul.f32 %v12231_v45, %v5792_v23  ;;  %v4844_v4 = vadd.f32 %v11923_v18, %v4812_v28  ;;  %v4554_v18 = vadd.f32 %v11912_v5, %v4522_v7 }
 0xa2c   : > { %v12245_v14 = vpop.eup %8335  ;;  %v4645_v27 = vadd.f32 %v4614_v42, %v12161_v25  ;;  %v7448_v53 = vpop.f32.mrb[90].mxu0  ;;  %v12253_v51 = vmul.f32 %v12082_v21, %v4647_v3  ;;  %8343 = vpow2.f32 %v5102_v37  ;;  %v4555_v5 = vadd.f32 %v11906_v54, %v12167_v56  ;;  %v13152_v37 = vld [vmem:[#allocation85_spill] sm:$0xff] }
 0xa2d   : > { %13150 = vst [vmem:[#allocation94_spill] sm:$0xff] %v12243_v8  ;;  %v5776_v63 = vpop.xlane.xlu0 %5775  ;;  %v4648_v48 = vadd.f32 %v7448_v53, %v4519_v17  ;;  %v4617_v34 = vpop.f32.mrb[91].mxu0  ;;  %v12256_v23 = vmul.f32 %v12245_v14, %v5793_v20  ;;  %v4842_v53 = vadd.f32 %v11934_v12, %v4810_v22  ;;  %v4521_v12 = vmul.f32 0.0, %v8334_v61 }
 0xa2e   : > { %v5790_v40 = vadd.f32 %v5776_v63, %v12236_v9  ;;  %v12258_v8 = vpop.eup %8337  ;;  %v4646_v25 = vadd.f32 %v4617_v34, %v12153_v1  ;;  %v5779_v59 = vpop.xlane.xlu1 %5778  ;;  %v12264_v17 = vmul.f32 %v12098_v62, %v4645_v27  ;;  %v4845_v1 = vadd.f32 %v11914_v26, %v4813_v49  ;;  %v13154_v34 = vld [vmem:[#allocation88_spill] sm:$0xff] }
 0xa2f   : > { %v5791_v21 = vadd.f32 %v5779_v59, %v12240_v39  ;;  %v12269_v3 = vmul.f32 %v12074_v32, %v4648_v48  ;;  %v12274_v42 = vpop.eup %8339  ;;  %v4552_v62 = vadd.f32 %v11917_v6, %v4520_v47  ;;  %v4843_v32 = vadd.f32 %v11926_v50, %v4811_v57 }
 0xa30   : > { %v12272_v20 = vmul.f32 %v12258_v8, %v5790_v40  ;;  %v12281_v27 = vmul.f32 %v12090_v29, %v4646_v25  ;;  %v12288_v22 = vpop.eup %8341  ;;  %8345 = vrcp.f32 %v4844_v4  ;;  %v5098_v26 = vmul.f32 1.442695, %v5090_v16  ;;  %v13153_v40 = vld [vmem:[#allocation42_spill] sm:$0xff] }
 0xa31   : > { %v12278_v52 = vpop.xlane.xlu0 %6059  ;;  %v12286_v28 = vmul.f32 %v12274_v42, %v5791_v21  ;;  %v5094_v63 = vsub.f32 -inf, %v13152_v37  ;;  %v5392_v61 = vmul.f32 1.442695, %v5382_v30  ;;  %v4553_v6 = vadd.f32 %v13153_v40, %v4521_v12 }
 0xa32   : > { %v7451_v48 = vpop.f32.mrb[92].mxu0  ;;  %v12293_v29 = vpop.xlane.xlu1 %5458  ;;  %8347 = vrcp.f32 %v4842_v53  ;;  %v5380_v49 = vsub.f32 %v13144_v36, %v13154_v34  ;;  %v4816_v25 = vmul.f32 %v12107_v2, %v4554_v18  ;;  %v4814_v59 = vmul.f32 %v12221_v43, %v4552_v62  ;;  %v13159_v34 = vld [vmem:[#allocation91_spill] sm:$0xff] }
 0xa33   : > { %13151 = vst [vmem:[#allocation95_spill] sm:$0xff] %v12286_v28  ;;  %v4651_v50 = vadd.f32 %v7451_v48, %v4522_v7  ;;  %v4630_v57 = vpop.f32.mrb[93].mxu0  ;;  %8349 = vrcp.f32 %v4845_v1  ;;  %v4817_v7 = vmul.f32 %v12104_v46, %v4555_v5  ;;  %v4815_v18 = vmul.f32 %v12114_v55, %v4553_v6 }
 0xa34   : > { %v4649_v54 = vadd.f32 %v4630_v57, %v4520_v47  ;;  %v7452_v4 = vpop.f32.mrb[94].mxu0  ;;  %8351 = vrcp.f32 %v4843_v32  ;;  %v4848_v36 = vadd.f32 %v11946_v38, %v4816_v25  ;;  %v13155_v32 = vld [vmem:[#allocation38_spill] sm:$0xff]  ;;  %v13157_v38 = vld [vmem:[#allocation40_spill] sm:$0xff] }
 0xa35   : > { %v12299_v16 = vpop.xlane.xlu0 %6053  ;;  %v4652_v30 = vadd.f32 %v7452_v4, %v12167_v56  ;;  %v4633_v21 = vpop.f32.mrb[95].mxu0  ;;  %v12304_v53 = vmul.f32 %v12107_v2, %v4651_v50  ;;  %v4846_v62 = vadd.f32 %v13155_v32, %v4814_v59  ;;  %8353 = vpow2.f32 %v12203_v60  ;;  %v13156_v2 = vld [vmem:[#allocation90_spill] sm:$0xff]  ;;  %v13158_v50 = vld [vmem:[#allocation39_spill] sm:$0xff] }
 0xa36   : > { %v4650_v1 = vadd.f32 %v4633_v21, %v4521_v12  ;;  %v12308_v48 = vpop.xlane.xlu1 %6062  ;;  %v12311_v47 = vmul.f32 %v12221_v43, %v4649_v54  ;;  %8355 = vpow2.f32 %v5392_v61  ;;  %v5383_v5 = vsub.f32 %v13133_v41, %v13156_v2  ;;  %v12328_v57 = vpop.eup %8343  ;;  %v13160_v41 = vld [vmem:[#allocation84_spill] sm:$0xff] }
 0xa37   : > { %v12317_v56 = vmul.f32 %v12104_v46, %v4652_v30  ;;  %v4849_v12 = vadd.f32 %v13157_v38, %v4817_v7  ;;  %v4847_v6 = vadd.f32 %v13158_v50, %v4815_v18  ;;  %8357 = vpow2.f32 %v5098_v26  ;;  %v13161_v26 = vld [vmem:[#allocation87_spill] sm:$0xff]  ;;  %v13162_v18 = vld [vmem:[#allocation89_spill] sm:$0xff] }
 0xa38   : > { %v12325_v43 = vmul.f32 %v12114_v55, %v4650_v1  ;;  %v5388_v60 = vmul.f32 1.442695, %v5380_v49  ;;  %v5381_v46 = vsub.f32 %v13138_v19, %v13159_v34  ;;  %8359 = vrcp.f32 %v4848_v36 }
 0xa39   : > { %v12322_v40 = vpop.xlane.xlu0 %5455  ;;  %8361 = vrcp.f32 %v4846_v62  ;;  %v5096_v54 = vsub.f32 -inf, %v13160_v41  ;;  %v5106_v4 = vmul.f32 1.442695, %v5094_v63  ;;  %v5394_v21 = vmul.f32 1.442695, %v5383_v5 }
 0xa3a   : > { %v7471_v61 = vpop.f32.mrb[96].mxu0  ;;  %v12332_v25 = vpop.xlane.xlu1 %6056  ;;  %8363 = vrcp.f32 %v4849_v12  ;;  %v5097_v7 = vsub.f32 -inf, %v13161_v26  ;;  %v5095_v32 = vsub.f32 -inf, %v13162_v18  ;;  %v5390_v38 = vmul.f32 1.442695, %v5381_v46  ;;  %v13165_v46 = vld [vmem:[#allocation49_spill] sm:$0xff] }
 0xa3b   : > { %v4949_v55 = vadd.f32 %v7471_v61, %v12253_v51  ;;  %v4916_v59 = vpop.f32.mrb[97].mxu0  ;;  %v8346_v30 = vpop.eup %8345  ;;  %8365 = vrcp.f32 %v4847_v6  ;;  %v13164_v6 = vld [vmem:[#allocation44_spill] sm:$0xff] }
 0xa3c   : > { %v4947_v49 = vadd.f32 %v4916_v59, %v12264_v17  ;;  %v7472_v1 = vpop.f32.mrb[98].mxu0  ;;  %v8348_v36 = vpop.eup %8347  ;;  %8367 = vpow2.f32 %v5388_v60  ;;  %v5110_v17 = vmul.f32 1.442695, %v5096_v54  ;;  %v13163_v59 = vld [vmem:[#allocation58_spill] sm:$0xff] }
 0xa3d   : > { %v12338_v19 = vpop.xlane.xlu0 %6065  ;;  %v4965_v62 = vmul.f32 %v8346_v30, %v4949_v55  ;;  %v4950_v63 = vadd.f32 %v7472_v1, %v12269_v3  ;;  %v4919_v2 = vpop.f32.mrb[99].mxu0  ;;  %8369 = vpow2.f32 %v5106_v4  ;;  %v5386_v55 = vsub.f32 %v13160_v41, %v13164_v6 }
 0xa3e   : > { %v8350_v51 = vpop.eup %8349  ;;  %v4963_v5 = vmul.f32 %v8348_v36, %v4947_v49  ;;  %v4948_v12 = vadd.f32 %v4919_v2, %v12281_v27  ;;  %v3923_v50 = vpop.xlane.xlu1 %3922  ;;  %8371 = vpow2.f32 %v5394_v21  ;;  %v5112_v30 = vmul.f32 1.442695, %v5097_v7  ;;  %v13166_v2 = vld [vmem:[#allocation54_spill] sm:$0xff]  ;;  %v13167_v21 = vld [vmem:[#allocation43_spill] sm:$0xff] }
 0xa3f   : > { %v8352_v34 = vpop.eup %8351  ;;  %v4966_v61 = vmul.f32 %v8350_v51, %v4950_v63  ;;  %v3943_v28 = vadd.f32 %v3923_v50, %v13163_v59  ;;  %v5384_v49 = vsub.f32 %v13152_v37, %v13165_v46  ;;  %v5108_v27 = vmul.f32 1.442695, %v5095_v32  ;;  %v13168_v50 = vld [vmem:[#allocation60_spill] sm:$0xff] }
 0xa40   : > { %v4964_v3 = vmul.f32 %v8352_v34, %v4948_v12  ;;  %v8354_v60 = vpop.eup %8353  ;;  %8373 = vpow2.f32 %v5390_v38  ;;  %v5387_v63 = vsub.f32 %v13161_v26, %v13167_v21  ;;  %v5385_v34 = vsub.f32 %v13162_v18, %v13168_v50  ;;  %v13170_v21 = vld [vmem:[#allocation57_spill] sm:$0xff] }
 0xa41   : > { %v12346_v1 = vpop.xlane.xlu0 %6071  ;;  %v7784_v36 = vpack.i.bf16 %v4966_v61, %v4965_v62  ;;  %v12351_v54 = vmul.f32 %v13166_v2, %v3943_v28  ;;  %v12353_v4 = vpop.eup %8355  ;;  %8375 = vpow2.f32 %v5110_v17  ;;  %v5400_v62 = vmul.f32 1.442695, %v5386_v55 }
 0xa42   : > { %v7789_v41 = vpack.i.bf16 %v4964_v3, %v4963_v5  ;;  %v7475_v7 = vpop.f32.mrb[100].mxu0  ;;  %v12357_v51 = vpop.xlane.xlu1 %6074  ;;  %8377 = vpow2.f32 %v5112_v30  ;;  %v5396_v59 = vmul.f32 1.442695, %v5384_v49  ;;  %v5402_v3 = vmul.f32 1.442695, %v5387_v63 }
 0xa43   : > { %v8358_v12 = vpop.eup %8357  ;;  %v4953_v37 = vadd.f32 %v7475_v7, %v12304_v53  ;;  %v4932_v32 = vpop.f32.mrb[101].mxu0  ;;  %7785 = vrot.lane.b32.xlu1 %v7784_v36, %s8813_s3  ;;  %8379 = vpow2.f32 %v5108_v27  ;;  %v5140_v63 = vmul.f32 0.0, %v12328_v57 }
 0xa44   : > { %v8360_v28 = vpop.eup %8359  ;;  %v4951_v38 = vadd.f32 %v4932_v32, %v12311_v47  ;;  %v7476_v26 = vpop.f32.mrb[102].mxu0  ;;  %7790 = vrot.lane.b32.xlu0 %v7789_v41, %s8813_s3  ;;  %v5398_v47 = vmul.f32 1.442695, %v5385_v34  ;;  %8381 = vpow2.f32 %v5400_v62 }
 0xa45   : > { %v3920_v5 = vpop.xlane.xlu0 %3919  ;;  %v8362_v61 = vpop.eup %8361  ;;  %v4969_v6 = vmul.f32 %v8360_v28, %v4953_v37  ;;  %v4954_v18 = vadd.f32 %v7476_v26, %v12317_v56  ;;  %8383 = vpow2.f32 %v5396_v59  ;;  %v5141_v56 = vmul.f32 0.0, %v12288_v22  ;;  %v13172_v59 = vld [vmem:[#allocation59_spill] sm:$0xff] }
 0xa46   : > { %v4935_v17 = vpop.f32.mrb[103].mxu0  ;;  %v8364_v53 = vpop.eup %8363  ;;  %v4967_v46 = vmul.f32 %v8362_v61, %v4951_v38  ;;  %v3942_v7 = vadd.f32 %v3920_v5, %v13170_v21  ;;  %8385 = vpow2.f32 %v5402_v3  ;;  %v5138_v28 = vmul.f32 0.0, %v8358_v12  ;;  %v13171_v5 = vld [vmem:[#allocation50_spill] sm:$0xff] }
 0xa47   : > { %v4952_v36 = vadd.f32 %v4935_v17, %v12325_v43  ;;  %v12367_v55 = vpop.xlane.xlu1 %6068  ;;  %v8366_v30 = vpop.eup %8365  ;;  %v4970_v2 = vmul.f32 %v8364_v53, %v4954_v18  ;;  %v5139_v43 = vmul.f32 0.0, %v8354_v60  ;;  %8387 = vpow2.f32 %v5398_v47  ;;  %v13173_v53 = vld [vmem:[#allocation35_spill] sm:$0xff] }
 0xa48   : > { %13169 = vst [vmem:[#allocation85_spill] sm:$0xff] %v12367_v55  ;;  %v8368_v41 = vpop.eup %8367  ;;  %v4190_v17 = vmul.f32 %v13172_v59, %v3942_v7  ;;  %v5173_v57 = vadd.f32 %v13173_v53, %v5141_v56  ;;  %v13175_v47 = vld [vmem:[#allocation51_spill] sm:$0xff] }
 0xa49   : > { %v4968_v49 = vmul.f32 %v8366_v30, %v4952_v36  ;;  %v3926_v27 = vpop.xlane.xlu0 %3925  ;;  %v8370_v50 = vpop.eup %8369  ;;  %v7794_v37 = vpack.i.bf16 %v4970_v2, %v4969_v6  ;;  %v13174_v6 = vld [vmem:[#allocation48_spill] sm:$0xff] }
 0xa4a   : > { %v8372_v32 = vpop.eup %8371  ;;  %v7495_v34 = vpop.f32.mrb[104].mxu0  ;;  %v3944_v61 = vadd.f32 %v3926_v27, %v13171_v5  ;;  %v5172_v36 = vadd.f32 %v13174_v6, %v5140_v63  ;;  %v12377_v3 = vmul.f32 0.0, %v8370_v50 }
 0xa4b   : > { %v7799_v38 = vpack.i.bf16 %v4968_v49, %v4967_v46  ;;  %v3929_v26 = vpop.xlane.xlu1 %3928  ;;  %v5267_v62 = vadd.f32 %v7495_v34, %v5140_v63  ;;  %v5234_v18 = vpop.f32.mrb[105].mxu0  ;;  %7795 = vrot.lane.b32.xlu1 %v7794_v37, %s8813_s3  ;;  %v13176_v34 = vld [vmem:[#allocation56_spill] sm:$0xff]  ;;  %v13177_v63 = vld [vmem:[#allocation55_spill] sm:$0xff] }
 0xa4c   : > { %v8374_v22 = vpop.eup %8373  ;;  %v5265_v60 = vadd.f32 %v5234_v18, %v5138_v28  ;;  %v7496_v12 = vpop.f32.mrb[106].mxu0  ;;  %v3945_v2 = vadd.f32 %v3929_v26, %v13175_v47  ;;  %v5171_v5 = vadd.f32 %v13176_v34, %v5139_v43  ;;  %v5170_v50 = vadd.f32 %v13177_v63, %v5138_v28  ;;  %v13178_v26 = vld [vmem:[#allocation53_spill] sm:$0xff] }
 0xa4d   : > { %v4200_v46 = vpop.xlane.xlu0 %4199  ;;  %7800 = vrot.lane.b32.xlu0 %v7799_v38, %s8813_s3  ;;  %v8376_v30 = vpop.eup %8375  ;;  %v5268_v21 = vadd.f32 %v7496_v12, %v5141_v56  ;;  %v12382_v7 = vmul.f32 %v12353_v4, %v5267_v62  ;;  %v4192_v56 = vmul.f32 %v13178_v26, %v3944_v61  ;;  %v13179_v62 = vld [vmem:[#allocation66_spill] sm:$0xff]  ;;  %v5430_v47 = vmul.f32 %v12353_v4, %v5172_v36 }
 0xa4e   : > { %v4222_v49 = vadd.f32 %v4200_v46, %v4190_v17  ;;  %v5237_v27 = vpop.f32.mrb[107].mxu0  ;;  %v8378_v37 = vpop.eup %8377  ;;  %v12386_v53 = vmul.f32 %v8368_v41, %v5265_v60  ;;  %v5144_v12 = vmul.f32 0.0, %v8376_v30  ;;  %v5174_v46 = vadd.f32 %v13179_v62, %v12377_v3 }
 0xa4f   : > { %v5266_v59 = vadd.f32 %v5237_v27, %v5139_v43  ;;  %v4203_v18 = vpop.xlane.xlu1 %4202  ;;  %v8380_v6 = vpop.eup %8379  ;;  %v12390_v17 = vmul.f32 %v8372_v32, %v5268_v21  ;;  %v5431_v43 = vmul.f32 %v8372_v32, %v5173_v57  ;;  %v13180_v27 = vld [vmem:[#allocation52_spill] sm:$0xff]  ;;  %v5462_v61 = vadd.f32 %v12076_v11, %v5430_v47  ;;  %v13182_v57 = vld [vmem:[#allocation69_spill] sm:$0xff] }
 0xa50   : > { %8389 = vrcp.f32 %v4222_v49  ;;  %v4223_v38 = vadd.f32 %v4203_v18, %v12351_v54  ;;  %v4193_v49 = vmul.f32 %v13180_v27, %v3945_v2  ;;  %v8382_v63 = vpop.eup %8381  ;;  %v5145_v54 = vmul.f32 0.0, %v8378_v37 }
 0xa51   : > { %v4206_v34 = vpop.xlane.xlu0 %4205  ;;  %v12395_v28 = vmul.f32 %v8374_v22, %v5266_v59  ;;  %v5143_v18 = vmul.f32 0.0, %v8380_v6  ;;  %v5428_v21 = vmul.f32 %v8368_v41, %v5170_v50  ;;  %v8384_v26 = vpop.eup %8383  ;;  %v5463_v62 = vadd.f32 %v12093_v58, %v5431_v43  ;;  %v13181_v59 = vld [vmem:[#allocation61_spill] sm:$0xff] }
 0xa52   : > { %8391 = vrcp.f32 %v4223_v38  ;;  %v4224_v60 = vadd.f32 %v4206_v34, %v4192_v56  ;;  %v5429_v55 = vmul.f32 %v8374_v22, %v5171_v5  ;;  %v8386_v36 = vpop.eup %8385  ;;  %v5176_v32 = vadd.f32 %v13181_v59, %v5144_v12  ;;  %v13183_v34 = vld [vmem:[#allocation63_spill] sm:$0xff]  ;;  %v13184_v5 = vld [vmem:[#allocation68_spill] sm:$0xff] }
 0xa53   : > { %v4209_v30 = vpop.xlane.xlu1 %4208  ;;  %v5175_v38 = vadd.f32 %v13182_v57, %v5143_v18  ;;  %v5460_v2 = vadd.f32 %v12116_v24, %v5428_v21  ;;  %v5432_v56 = vmul.f32 %v8384_v26, %v5174_v46  ;;  %v8388_v6 = vpop.eup %8387  ;;  %v5177_v11 = vadd.f32 %v13183_v34, %v5145_v54 }
 0xa54   : > { %8393 = vrcp.f32 %v4224_v60  ;;  %v4225_v4 = vadd.f32 %v4209_v30, %v4193_v49  ;;  %v5461_v41 = vadd.f32 %v12121_v33, %v5429_v55  ;;  %v5434_v43 = vmul.f32 %v8382_v63, %v5176_v32  ;;  %v13185_v55 = vld [vmem:[#allocation76_spill] sm:$0xff] }
 0xa55   : > { %v3932_v37 = vpop.xlane.xlu0 %3931  ;;  %v5464_v58 = vadd.f32 %v12129_v15, %v5432_v56  ;;  %v5433_v47 = vmul.f32 %v8388_v6, %v5175_v38  ;;  %v7499_v60 = vpop.f32.mrb[108].mxu0  ;;  %v5435_v27 = vmul.f32 %v8386_v36, %v5177_v11  ;;  %v13187_v38 = vld [vmem:[#allocation67_spill] sm:$0xff] }
 0xa56   : > { %8395 = vrcp.f32 %v4225_v4  ;;  %v3946_v50 = vadd.f32 %v3932_v37, %v13184_v5  ;;  %v5271_v49 = vadd.f32 %v7499_v60, %v5144_v12  ;;  %v5250_v33 = vpop.f32.mrb[109].mxu0  ;;  %v13186_v4 = vld [vmem:[#allocation72_spill] sm:$0xff]  ;;  %v13188_v37 = vld [vmem:[#allocation65_spill] sm:$0xff] }
 0xa57   : > { %8397 = vrcp.f32 %v5462_v61  ;;  %v3935_v22 = vpop.xlane.xlu1 %3934  ;;  %v5465_v61 = vadd.f32 %v13185_v55, %v5433_v47  ;;  %v5269_v15 = vadd.f32 %v5250_v33, %v12377_v3  ;;  %v7500_v30 = vpop.f32.mrb[110].mxu0  ;;  %v13190_v47 = vld [vmem:[#allocation70_spill] sm:$0xff]  ;;  %v13191_v33 = vld [vmem:[#allocation64_spill] sm:$0xff] }
 0xa58   : > { %8399 = vrcp.f32 %v5463_v62  ;;  %v3947_v21 = vadd.f32 %v3935_v22, %v12062_v10  ;;  %v5272_v57 = vadd.f32 %v7500_v30, %v5145_v54  ;;  %v5253_v56 = vpop.f32.mrb[111].mxu0  ;;  %v4194_v12 = vmul.f32 %v13188_v37, %v3946_v50  ;;  %v13189_v22 = vld [vmem:[#allocation74_spill] sm:$0xff] }
 0xa59   : > { %8401 = vrcp.f32 %v5460_v2  ;;  %v3938_v24 = vpop.xlane.xlu0 %3937  ;;  %v5474_v34 = vmul.f32 %v8382_v63, %v5271_v49  ;;  %v5466_v10 = vadd.f32 %v12322_v40, %v5434_v43  ;;  %v5270_v11 = vadd.f32 %v5253_v56, %v5143_v18  ;;  %v13192_v49 = vld [vmem:[#allocation71_spill] sm:$0xff]  ;;  %v13193_v43 = vld [vmem:[#allocation32_spill] sm:$0xff] }
 0xa5a   : > { %v8390_v46 = vpop.eup %8389  ;;  %8403 = vrcp.f32 %v5461_v41  ;;  %v3948_v2 = vadd.f32 %v3938_v24, %v13187_v38  ;;  %v4195_v54 = vmul.f32 %v13191_v33, %v3947_v21  ;;  %v5475_v55 = vmul.f32 %v8386_v36, %v5272_v57 }
 0xa5b   : > { %8405 = vrcp.f32 %v5464_v58  ;;  %v3941_v62 = vpop.xlane.xlu1 %3940  ;;  %v12411_v59 = vmul.f32 %v8390_v46, %v13186_v4  ;;  %v5472_v58 = vmul.f32 %v8384_v26, %v5269_v15  ;;  %v5467_v24 = vadd.f32 %v12293_v29, %v5435_v27 }
 0xa5c   : > { %v8392_v32 = vpop.eup %8391  ;;  %v3949_v60 = vadd.f32 %v3941_v62, %v13190_v47  ;;  %8407 = vrcp.f32 %v5465_v61  ;;  %v5473_v63 = vmul.f32 %v8388_v6, %v5270_v11  ;;  %v4196_v15 = vmul.f32 %v13193_v43, %v3948_v2  ;;  %v13195_v61 = vld [vmem:[#allocation62_spill] sm:$0xff] }
 0xa5d   : > { %v4212_v41 = vpop.xlane.xlu0 %4211  ;;  %v12417_v3 = vmul.f32 %v8392_v32, %v13189_v22  ;;  %v7519_v62 = vpop.f32.mrb[112].mxu0  ;;  %v13194_v32 = vld [vmem:[#allocation73_spill] sm:$0xff] }
 0xa5e   : > { %v8394_v5 = vpop.eup %8393  ;;  %v4226_v46 = vadd.f32 %v4212_v41, %v4194_v12  ;;  %v5565_v29 = vadd.f32 %v7519_v62, %v12382_v7  ;;  %v5532_v6 = vpop.f32.mrb[113].mxu0  ;;  %v4197_v57 = vmul.f32 %v13195_v61, %v3949_v60 }
 0xa5f   : > { %v4215_v50 = vpop.xlane.xlu1 %4214  ;;  %v12423_v40 = vmul.f32 %v8394_v5, %v13192_v49  ;;  %v5563_v56 = vadd.f32 %v5532_v6, %v12386_v53  ;;  %v7520_v2 = vpop.f32.mrb[114].mxu0 }
 0xa60   : > { %v8396_v18 = vpop.eup %8395  ;;  %8409 = vrcp.f32 %v4226_v46  ;;  %v4227_v26 = vadd.f32 %v4215_v50, %v4195_v54  ;;  %v5566_v11 = vadd.f32 %v7520_v2, %v12390_v17  ;;  %v5535_v41 = vpop.f32.mrb[115].mxu0 }
 0xa61   : > { %v8398_v30 = vpop.eup %8397  ;;  %8411 = vrcp.f32 %v5466_v10  ;;  %v4218_v4 = vpop.xlane.xlu0 %4217  ;;  %v12427_v21 = vmul.f32 %v8396_v18, %v13194_v32  ;;  %v5564_v47 = vadd.f32 %v5535_v41, %v12395_v28  ;;  %v13198_v41 = vld [vmem:[#allocation75_spill] sm:$0xff] }
 0xa62   : > { %v8400_v36 = vpop.eup %8399  ;;  %8413 = vrcp.f32 %v4227_v26  ;;  %v4228_v27 = vadd.f32 %v4218_v4, %v4196_v15  ;;  %v5581_v10 = vmul.f32 %v8398_v30, %v5565_v29 }
 0xa63   : > { %v8402_v38 = vpop.eup %8401  ;;  %8415 = vrcp.f32 %v5467_v24  ;;  %v4221_v37 = vpop.xlane.xlu1 %4220  ;;  %v5582_v46 = vmul.f32 %v8400_v36, %v5566_v11 }
 0xa64   : > { %v8404_v12 = vpop.eup %8403  ;;  %8417 = vrcp.f32 %v4228_v27  ;;  %v4229_v22 = vadd.f32 %v4221_v37, %v4197_v57  ;;  %v5579_v7 = vmul.f32 %v8402_v38, %v5563_v56  ;;  %v13196_v38 = vld [vmem:[#allocation77_spill] sm:$0xff] }
 0xa65   : > { %v8406_v5 = vpop.eup %8405  ;;  %v5580_v60 = vmul.f32 %v8404_v12, %v5564_v47  ;;  %v7804_v33 = vpack.i.bf16 %v5582_v46, %v5581_v10  ;;  %v7523_v53 = vpop.f32.mrb[116].mxu0  ;;  %v13197_v10 = vld [vmem:[#allocation79_spill] sm:$0xff]  ;;  %v13200_v47 = vld [vmem:[#allocation81_spill] sm:$0xff] }
 0xa66   : > { %8419 = vrcp.f32 %v4229_v22  ;;  %v8408_v54 = vpop.eup %8407  ;;  %v5569_v49 = vadd.f32 %v7523_v53, %v5474_v34  ;;  %v5548_v18 = vpop.f32.mrb[117].mxu0 }
 0xa67   : > { %v7809_v24 = vpack.i.bf16 %v5580_v60, %v5579_v7  ;;  %7805 = vrot.lane.b32.xlu1 %v7804_v33, %s8814_s20  ;;  %v5567_v26 = vadd.f32 %v5548_v18, %v5472_v58  ;;  %v7524_v43 = vpop.f32.mrb[118].mxu0  ;;  %v13201_v60 = vld [vmem:[#allocation78_spill] sm:$0xff]  ;;  %v13202_v33 = vld [vmem:[#allocation92_spill] sm:$0xff] }
 0xa68   : > { %v5570_v62 = vadd.f32 %v7524_v43, %v5475_v55  ;;  %v5551_v4 = vpop.f32.mrb[119].mxu0 }
 0xa69   : > { %v12440_v36 = vmul.f32 %v8406_v5, %v5567_v26  ;;  %v5568_v29 = vadd.f32 %v5551_v4, %v5473_v63  ;;  %v13199_v5 = vld [vmem:[#allocation47_spill] sm:$0xff] }
 0xa6a   : > { %v8410_v50 = vpop.eup %8409  ;;  %v6078_v7 = vadd.f32 %v12278_v52, %v13199_v5  ;;  %v13207_v52 = vld [vmem:[#allocation80_spill] sm:$0xff] }
 0xa6b   : > { %v8412_v17 = vpop.eup %8411  ;;  %v12436_v15 = vmul.f32 %v8410_v50, %v12190_v13  ;;  %7810 = vrot.lane.b32.xlu1 %v7809_v24, %s8814_s20  ;;  %v12448_v58 = vmul.f32 %v8408_v54, %v5568_v29  ;;  %v6076_v54 = vadd.f32 %v12299_v16, %v13202_v33  ;;  %v13203_v24 = vld [vmem:[#allocation36_spill] sm:$0xff]  ;;  %v13204_v50 = vld [vmem:[#allocation83_spill] sm:$0xff] }
 0xa6c   : > { %v8414_v30 = vpop.eup %8413  ;;  %v12438_v28 = vmul.f32 %v8412_v17, %v5569_v49  ;;  %v13205_v49 = vld [vmem:[#allocation82_spill] sm:$0xff]  ;;  %v13206_v17 = vld [vmem:[#allocation93_spill] sm:$0xff]  ;;  %8421 = vrcp.f32 %v6078_v7 }
 0xa6d   : > { %v8416_v32 = vpop.eup %8415  ;;  %v12443_v34 = vmul.f32 %v8414_v30, %v12206_v35  ;;  %v7824_v63 = vpack.i.bf16 %v12448_v58, %v12440_v36  ;;  %v6077_v26 = vadd.f32 %v12332_v25, %v13206_v17  ;;  %8423 = vrcp.f32 %v6076_v54 }
 0xa6e   : > { %v8418_v6 = vpop.eup %8417  ;;  %v12445_v27 = vmul.f32 %v8416_v32, %v5570_v62  ;;  %v13208_v32 = vld [vmem:[#allocation86_spill] sm:$0xff] }
 0xa6f   : > { %v12451_v13 = vmul.f32 %v8418_v6, %v12180_v31 }
 0xa70   : > { %v8420_v61 = vpop.eup %8419  ;;  %v7829_v55 = vpack.i.bf16 %v12445_v27, %v12438_v28 }
 0xa71   : > { %v12458_v35 = vmul.f32 %v8420_v61, %v12195_v0  ;;  %v13209_v61 = vld [vmem:[#allocation94_spill] sm:$0xff] }
 0xa7d   : > { %v7543_v57 = vpop.f32.mrb[120].mxu0 }
 0xa7e   : > { %v5883_v56 = vadd.f32 %v7543_v57, %v13196_v38  ;;  %v5850_v2 = vpop.f32.mrb[121].mxu0  ;;  %v6082_v57 = vadd.f32 %v12346_v1, %v13209_v61 }
 0xa7f   : > { %v5881_v37 = vadd.f32 %v5850_v2, %v12183_v44  ;;  %v7544_v12 = vpop.f32.mrb[122].mxu0  ;;  %v6079_v44 = vadd.f32 %v12308_v48, %v13204_v50 }
 0xa80   : > { %v5884_v31 = vadd.f32 %v7544_v12, %v13197_v10  ;;  %v5853_v11 = vpop.f32.mrb[123].mxu0  ;;  %v6086_v22 = vmul.f32 %v13198_v41, %v5883_v56  ;;  %v6080_v56 = vadd.f32 %v12338_v19, %v12272_v20  ;;  %v13210_v12 = vld [vmem:[#allocation95_spill] sm:$0xff]  ;;  %v13211_v10 = vld [vmem:[#allocation85_spill] sm:$0xff] }
 0xa81   : > { %v5882_v46 = vadd.f32 %v5853_v11, %v13200_v47  ;;  %v6084_v0 = vmul.f32 %v13201_v60, %v5881_v37  ;;  %8425 = vrcp.f32 %v6079_v44  ;;  %v8422_v11 = vpop.eup %8421 }
 0xa82   : > { %v6087_v53 = vmul.f32 %v13203_v24, %v5884_v31  ;;  %8427 = vrcp.f32 %v6077_v26  ;;  %v8424_v20 = vpop.eup %8423 }
 0xa83   : > { %v6085_v18 = vmul.f32 %v13205_v49, %v5882_v46  ;;  %8429 = vrcp.f32 %v6082_v57 }
 0xa84   : > { %8431 = vrcp.f32 %v6080_v56 }
 0xa85   : > { %v7547_v43 = vpop.f32.mrb[124].mxu0 }
 0xa86   : > { %v5887_v30 = vadd.f32 %v7547_v43, %v13207_v52  ;;  %v5866_v62 = vpop.f32.mrb[125].mxu0 }
 0xa87   : > { %v5885_v4 = vadd.f32 %v5866_v62, %v12236_v9  ;;  %v7548_v16 = vpop.f32.mrb[126].mxu0  ;;  %v6083_v9 = vadd.f32 %v12357_v51, %v12256_v23 }
 0xa88   : > { %v5888_v29 = vadd.f32 %v7548_v16, %v13208_v32  ;;  %v5869_v6 = vpop.f32.mrb[127].mxu0  ;;  %v6090_v48 = vmul.f32 %v12231_v45, %v5887_v30  ;;  %v6081_v45 = vadd.f32 %v13211_v10, %v13210_v12 }
 0xa89   : > { %v5886_v25 = vadd.f32 %v5869_v6, %v12240_v39  ;;  %v6088_v38 = vmul.f32 %v12258_v8, %v5885_v4  ;;  %8433 = vrcp.f32 %v6083_v9 }
 0xa8a   : > { %v6091_v2 = vmul.f32 %v12245_v14, %v5888_v29  ;;  %8435 = vrcp.f32 %v6081_v45 }
 0xa8b   : > { %v6089_v37 = vmul.f32 %v12274_v42, %v5886_v25  ;;  %v8426_v23 = vpop.eup %8425 }
 0xa8c   : > { %v8428_v7 = vpop.eup %8427 }
 0xa8d   : > { %v7567_v31 = vpop.f32.mrb[128].mxu0 }
 0xa8e   : > { %v6181_v1 = vadd.f32 %v7567_v31, %v6086_v22  ;;  %v6148_v39 = vpop.f32.mrb[129].mxu0 }
 0xa8f   : > { %v6179_v8 = vadd.f32 %v6148_v39, %v6084_v0  ;;  %v7568_v41 = vpop.f32.mrb[130].mxu0  ;;  %v8430_v0 = vpop.eup %8429 }
 0xa90   : > { %v6197_v14 = vmul.f32 %v8422_v11, %v6181_v1  ;;  %v6182_v19 = vadd.f32 %v7568_v41, %v6087_v53  ;;  %v6151_v5 = vpop.f32.mrb[131].mxu0  ;;  %v8432_v53 = vpop.eup %8431 }
 0xa91   : > { %v6195_v51 = vmul.f32 %v8424_v20, %v6179_v8  ;;  %v6180_v42 = vadd.f32 %v6151_v5, %v6085_v18 }
 0xa92   : > { %v6198_v47 = vmul.f32 %v8426_v23, %v6182_v19 }
 0xa93   : > { %v6196_v46 = vmul.f32 %v8428_v7, %v6180_v42  ;;  %v8434_v18 = vpop.eup %8433 }
 0xa94   : > { %v7814_v60 = vpack.i.bf16 %v6198_v47, %v6197_v14  ;;  %v8436_v30 = vpop.eup %8435 }
 0xa95   : > { %v7819_v33 = vpack.i.bf16 %v6196_v46, %v6195_v51  ;;  %v7571_v54 = vpop.f32.mrb[132].mxu0 }
 0xa96   : > { %v6185_v22 = vadd.f32 %v7571_v54, %v6090_v48  ;;  %v6164_v24 = vpop.f32.mrb[133].mxu0  ;;  %7815 = vrot.lane.b32.xlu1 %v7814_v60, %s8815_s16 }
 0xa97   : > { %v6183_v50 = vadd.f32 %v6164_v24, %v6088_v38  ;;  %v7572_v44 = vpop.f32.mrb[134].mxu0  ;;  %7820 = vrot.lane.b32.xlu0 %v7819_v33, %s8815_s16 }
 0xa98   : > { %v6201_v49 = vmul.f32 %v8430_v0, %v6185_v22  ;;  %v6186_v17 = vadd.f32 %v7572_v44, %v6091_v2  ;;  %v6167_v26 = vpop.f32.mrb[135].mxu0 }
 0xa99   : > { %v6199_v43 = vmul.f32 %v8432_v53, %v6183_v50  ;;  %v6184_v52 = vadd.f32 %v6167_v26, %v6089_v37 }
 0xa9a   : > { %v6202_v62 = vmul.f32 %v8434_v18, %v6186_v17  ;;  %7830 = vrot.lane.b32.xlu1 %v7829_v55, %s8814_s20 }
 0xa9b   : > { %v6200_v4 = vmul.f32 %v8436_v30, %v6184_v52  ;;  %7825 = vrot.lane.b32.xlu0 %v7824_v63, %s8814_s20  ;;  %s13220_s20 = sld [smem:[#allocation28_spill]] }
 0xa9c   : > { %v7839_v16 = vpack.i.bf16 %v6202_v62, %v6201_v49 }
 0xa9d   : > { %v7834_v32 = vpack.i.bf16 %v6200_v4, %v6199_v43 }
 0xa9e   : > { %7840 = vrot.lane.b32.xlu1 %v7839_v16, %s8815_s16 }
 0xa9f   : > { %7835 = vrot.lane.b32.xlu0 %v7834_v32, %s8815_s16 }
 0xaa1   : > { %p13222_p1 = scmp.ne.s32.totalorder %s13220_s20, 0 }
 0xab5   : > { %v7786_v29 = vpop.permute.xlu1 %7785 }
 0xab6   : > { %v7791_v61 = vpop.permute.xlu0 %7790  ;;  %v7788_v57 = vunpack.i.h.bf16 %v7786_v29  ;;  %v7787_v25 = vunpack.i.l.bf16 %v7786_v29 }
 0xab7   : > { %v7792_v28 = vunpack.i.l.bf16 %v7791_v61  ;;  %v7793_v55 = vunpack.i.h.bf16 %v7791_v61 }
 0xab8   : > { %v6302_v63 = vsel %vm2208_vm3, %v12427_v21, %v7788_v57  ;;  %v6301_v9 = vsel %vm2208_vm3, %v12423_v40, %v7787_v25  ;;  %v13213_v25 = vld [vmem:[#allocation31_spill] sm:$0xff] }
 0xab9   : > { %v6299_v37 = vsel %vm2208_vm3, %v12411_v59, %v7792_v28  ;;  %v6300_v10 = vsel %vm2208_vm3, %v12417_v3, %v7793_v55 }
 0xabd   : > { %v7796_v6 = vpop.permute.xlu1 %7795 }
 0xabe   : > { %v7798_v45 = vunpack.i.h.bf16 %v7796_v6  ;;  %v7797_v19 = vunpack.i.l.bf16 %v7796_v6  ;;  %v6901_v6 = vld [vmem:[%s719_s8] ss:$0 sm:$0xff]  ;;  %s12546_s8 = scalar_lea.vmem [#allocation17], %s6686_s17  ;;  %s6912_s17 = sshll.u32 %s8937_s0, 10 }
 0xabf   : > { %v7801_v38 = vpop.permute.xlu0 %7800  ;;  %s6445_s3 = sshll.u32 %s12546_s8, 4  ;;  %s12567_s27 = scalar_lea.hbm %s13221_s1, %s6912_s17  ;;  %s12569_s3 = int_to_ptr.vmem [resolvable:$true] %s6445_s3 }
 0xac0   : > { %v7803_v42 = vunpack.i.h.bf16 %v7801_v38  ;;  %v7802_v7 = vunpack.i.l.bf16 %v7801_v38  ;;  %v6306_v24 = vsel %vm2208_vm3, %v12458_v35, %v7798_v45  ;;  %v6305_v0 = vsel %vm2208_vm3, %v12451_v13, %v7797_v19  ;;  %v13214_v38 = vld [vmem:[#allocation33_spill] sm:$0xff]  ;;  %s6432_s0 = scalar_lea.sflag [#allocation4], %s9277_s24  ;;  %s8715_s6 = scalar_lea.vmem %s12569_s3, 1024 }
 0xac1   : > { %p8716_p12 = scmp.ne.s32.totalorder %s12569_s3, %s8715_s6  ;;  %p8722_p6 = scmp.lt.s32.totalorder %s12569_s3, %s8720_s14 }
 0xac2   : > { %v6303_v44 = vsel %vm2208_vm3, %v12436_v15, %v7802_v7  ;;  %v6304_v53 = vsel %vm2208_vm3, %v12443_v34, %v7803_v42  ;;  %v13219_v7 = vld [vmem:[#allocation37_spill] sm:$0xff]  ;;  %p8723_p8 = scmp.lt.s32.totalorder %s8721_s19, %s8715_s6 }
 0xac3   : > { %p8717_p3 = pnand %p8716_p12, %p13222_p1 }
 0xac4   : > { %p8724_p13 = por %p8723_p8, %p8722_p6 }
 0xac5   : > { %p8718_p9 = pneg %p8717_p3 }
 0xac7   : > { %p8725_p10 = pnand %p8724_p13, %p8718_p9 }
 0xad9   : > { %v7806_v48 = vpop.permute.xlu1 %7805 }
 0xada   : > { %v7808_v56 = vunpack.i.h.bf16 %v7806_v48  ;;  %v7807_v2 = vunpack.i.l.bf16 %v7806_v48  ;;  %v13212_v48 = vld [vmem:[#allocation34_spill] sm:$0xff] }
 0xadc   : > { %v6309_v11 = vsel %vm2217_vm4, %v6301_v9, %v7807_v2  ;;  %v6310_v8 = vsel %vm2217_vm4, %v6302_v63, %v7808_v56  ;;  %v8445_v9 = vld [vmem:[%s9283_s2 + $0x10] sm:$0xff] }
 0xadd   : > { %v7811_v27 = vpop.permute.xlu1 %7810 }
 0xade   : > { %v7813_v36 = vunpack.i.h.bf16 %v7811_v27  ;;  %v7812_v58 = vunpack.i.l.bf16 %v7811_v27 }
 0xae0   : > { %v6308_v20 = vsel %vm2217_vm4, %v6300_v10, %v7813_v36  ;;  %v6307_v40 = vsel %vm2217_vm4, %v6299_v37, %v7812_v58  ;;  %v13215_v58 = vld [vmem:[#allocation30_spill] sm:$0xff]  ;;  %v8446_v10 = vld [vmem:[%s9283_s2] sm:$0xff] }
 0xb08   : > { %v7816_v12 = vpop.permute.xlu1 %7815 }
 0xb09   : > { %v7818_v31 = vunpack.i.h.bf16 %v7816_v12  ;;  %v7817_v1 = vunpack.i.l.bf16 %v7816_v12  ;;  %v7821_v39 = vpop.permute.xlu0 %7820 }
 0xb0a   : > { %v7823_v41 = vunpack.i.h.bf16 %v7821_v39  ;;  %v7822_v21 = vunpack.i.l.bf16 %v7821_v39 }
 0xb0b   : > { %v6317_v59 = vsel %vm2226_vm6, %v6309_v11, %v7817_v1  ;;  %v6318_v14 = vsel %vm2226_vm6, %v6310_v8, %v7818_v31  ;;  %v8447_v1 = vld [vmem:[%s9283_s2 + $0x18] sm:$0xff]  ;;  %v8448_v11 = vld [vmem:[%s9283_s2 + $0x8] sm:$0xff] }
 0xb0c   : > { %v6324_v3 = vpack.c.bf16 %v6318_v14, %v6317_v59  ;;  %v7831_v5 = vpop.permute.xlu1 %7830  ;;  %v6315_v23 = vsel %vm2226_vm6, %v6307_v40, %v7822_v21  ;;  %v6316_v51 = vsel %vm2226_vm6, %v6308_v20, %v7823_v41  ;;  %v13216_v21 = vld [vmem:[#allocation46_spill] sm:$0xff]  ;;  %v13217_v59 = vld [vmem:[#allocation41_spill] sm:$0xff] }
 0xb0d   : > { %v7826_v47 = vpop.permute.xlu0 %7825  ;;  %v6323_v46 = vpack.c.bf16 %v6316_v51, %v6315_v23  ;;  %v7833_v60 = vunpack.i.h.bf16 %v7831_v5  ;;  %v7832_v33 = vunpack.i.l.bf16 %v7831_v5  ;;  %v13218_v5 = vld [vmem:[#allocation45_spill] sm:$0xff] }
 0xb0e   : > { %v7828_v54 = vunpack.i.h.bf16 %v7826_v47  ;;  %v7827_v22 = vunpack.i.l.bf16 %v7826_v47 }
 0xb0f   : > { %7589 = vmatprep.mubr.bf16.mxu0 %v6323_v46  ;;  %v6313_v18 = vsel %vm2217_vm4, %v6305_v0, %v7832_v33  ;;  %v6314_v43 = vsel %vm2217_vm4, %v6306_v24, %v7833_v60  ;;  %v8449_v46 = vld [vmem:[%s9283_s2 + $0x30] sm:$0xff]  ;;  %v8451_v0 = vld [vmem:[%s9283_s2 + $0x38] sm:$0xff] }
 0xb10   : > { %v7841_v50 = vpop.permute.xlu1 %7840  ;;  %7590 = vmatmul.mubr.bf16.vlgmr.msra.gmra.mrb[64].mxu0 %v6324_v3  ;;  %v6311_v13 = vsel %vm2217_vm4, %v6303_v44, %v7827_v22  ;;  %v6312_v30 = vsel %vm2217_vm4, %v6304_v53, %v7828_v54  ;;  %v8450_v54 = vld [vmem:[%s9283_s2 + $0x20] sm:$0xff]  ;;  %v8452_v44 = vld [vmem:[%s9283_s2 + $0x28] sm:$0xff] }
 0xb11   : > { %v7843_v49 = vunpack.i.h.bf16 %v7841_v50  ;;  %v7842_v17 = vunpack.i.l.bf16 %v7841_v50  ;;  %v7836_v26 = vpop.permute.xlu0 %7835 }
 0xb12   : > { %v7838_v35 = vunpack.i.h.bf16 %v7836_v26  ;;  %v7837_v52 = vunpack.i.l.bf16 %v7836_v26 }
 0xb13   : > { %v6321_v62 = vsel %vm2226_vm6, %v6313_v18, %v7842_v17  ;;  %v6322_v15 = vsel %vm2226_vm6, %v6314_v43, %v7843_v49 }
 0xb14   : > { %v6319_v34 = vsel %vm2226_vm6, %v6311_v13, %v7837_v52  ;;  %v6320_v4 = vsel %vm2226_vm6, %v6312_v30, %v7838_v35  ;;  %v6326_v16 = vpack.c.bf16 %v6322_v15, %v6321_v62 }
 0xb15   : > { %v6325_v32 = vpack.c.bf16 %v6320_v4, %v6319_v34 }
 0xb17   : > { %7593 = vmatprep.mubr.bf16.mxu0 %v6325_v32 }
 0xb18   : > { %7594 = vmatmul.mubr.bf16.gmra.mrb[68].mxu0 %v6326_v16 }
 0xbe3   : > { %v7591_v29 = vpop.f32.mrb[64].mxu0 }
 0xbe4   : > { %v7633_v61 = vadd.f32 %v7591_v29, %v13212_v48  ;;  %v6361_v57 = vpop.f32.mrb[65].mxu0 }
 0xbe5   : > { %v7634_v28 = vadd.f32 %v6361_v57, %v13213_v25  ;;  %v7592_v27 = vpop.f32.mrb[66].mxu0 }
 0xbe6   : > { %v6409_v55 = vmul.f32 %v7633_v61, %v6901_v6  ;;  %v7635_v56 = vadd.f32 %v7592_v27, %v13214_v38  ;;  %v6364_v2 = vpop.f32.mrb[67].mxu0 }
 0xbe7   : > { %v6407_v36 = vmul.f32 %v7634_v28, %v6901_v6  ;;  %v7636_v63 = vadd.f32 %v6364_v2, %v13215_v58 }
 0xbe8   : > { %v6417_v37 = vadd.f32 %v8445_v9, %v6409_v55  ;;  %v6410_v12 = vmul.f32 %v7635_v56, %v6901_v6 }
 0xbe9   : > { %v6415_v45 = vadd.f32 %v8446_v10, %v6407_v36  ;;  %v6408_v31 = vmul.f32 %v7636_v63, %v6901_v6 }
 0xbea   : > { %6425 = vst [vmem:[%s12546_s8 + $0x10] sm:$0xff] %v6417_v37  ;;  %v6418_v39 = vadd.f32 %v8447_v1, %v6410_v12 }
 0xbeb   : > { %6423 = vst [vmem:[%s12546_s8] sm:$0xff] %v6415_v45  ;;  %v6416_v8 = vadd.f32 %v8448_v11, %v6408_v31  ;;  %v7595_v41 = vpop.f32.mrb[68].mxu0 }
 0xbec   : > { %6426 = vst [vmem:[%s12546_s8 + $0x18] sm:$0xff] %v6418_v39  ;;  %v7637_v20 = vadd.f32 %v7595_v41, %v13216_v21  ;;  %v6377_v40 = vpop.f32.mrb[69].mxu0 }
 0xbed   : > { %6424 = vst [vmem:[%s12546_s8 + $0x8] sm:$0xff] %v6416_v8  ;;  %v7638_v14 = vadd.f32 %v6377_v40, %v13217_v59  ;;  %v7596_v19 = vpop.f32.mrb[70].mxu0 }
 0xbee   : > { %v6413_v3 = vmul.f32 %v7637_v20, %v6901_v6  ;;  %v7639_v23 = vadd.f32 %v7596_v19, %v13218_v5  ;;  %v6380_v51 = vpop.f32.mrb[71].mxu0 }
 0xbef   : > { %v6411_v42 = vmul.f32 %v7638_v14, %v6901_v6  ;;  %v7640_v47 = vadd.f32 %v6380_v51, %v13219_v7 }
 0xbf0   : > { %v6421_v60 = vadd.f32 %v8449_v46, %v6413_v3  ;;  %v6414_v33 = vmul.f32 %v7639_v23, %v6901_v6 }
 0xbf1   : > { %v6419_v22 = vadd.f32 %v8450_v54, %v6411_v42  ;;  %v6412_v24 = vmul.f32 %v7640_v47, %v6901_v6 }
 0xbf2   : > { %6429 = vst [vmem:[%s12546_s8 + $0x30] sm:$0xff] %v6421_v60  ;;  %v6422_v50 = vadd.f32 %v8451_v0, %v6414_v33 }
 0xbf3   : > { %6427 = vst [vmem:[%s12546_s8 + $0x20] sm:$0xff] %v6419_v22  ;;  %v6420_v53 = vadd.f32 %v8452_v44, %v6412_v24 }
 0xbf4   : > { %6430 = vst [vmem:[%s12546_s8 + $0x38] sm:$0xff] %v6422_v50 }
 0xbf5   : > { %6428 = vst [vmem:[%s12546_s8 + $0x28] sm:$0xff] %v6420_v53 }
 0xbf6   : > { %8728 = shalt.err (!%p8725_p10)
}
 0xbf7   : > { %s8729_s2 = scalar_lea.hbm %s12567_s27, 1024  ;;  %s8733_s23 = scalar_lea.hbm %s13221_s1, 2048 }
 0xbf8   : > { %p8730_p4 = scmp.ne.s32.totalorder %s12567_s27, %s8729_s2  ;;  %p8734_p2 = scmp.lt.u32.totalorder %s12567_s27, %s13221_s1 }
 0xbf9   : > { %p8735_p11 = scmp.lt.u32.totalorder %s8733_s23, %s8729_s2  ;;  %p8737_p12 = scmp.lt.u32.totalorder %s8729_s2, %s12567_s27 }
 0xbfa   : > { %p8731_p5 = pnand %p8730_p4, %p13222_p1 }
 0xbfb   : > { %p8736_p0 = por %p8735_p11, %p8734_p2 }
 0xbfc   : > { %p8732_p7 = pneg %p8731_p5 }
 0xbfd   : > { %p8738_p3 = por %p8737_p12, %p8736_p0 }
 0xbff   : > { %p8739_p9 = pnand %p8738_p3, %p8732_p7 }
 0xc01   : > { %8742 = shalt.err (!%p8739_p9)
}
 0xc02   : > { %s8819_s4 = smov 128   ;;  %s8820_s8 = smov 8  }
 0xc03   : > { %7691 = dma.vmem_to_hbm [thread:$0]  (%p13222_p1), %s12569_s3, 1024, %s12567_s27, %s6432_s0, %s8819_s4, %s8819_s4, %s8820_s8  }
 0xc04 PF: > { %s13223_s17 = sld [smem:[#allocation24_spill]]  ;;  %s13224_s16 = sld [smem:[#allocation26_spill]] }
 0xc05   : > { %p13226_p8 = scmp.ge.s32.totalorder %s8797_s30, 2 }
 0xc0a   : > { %s6460_s5 = sand.u32 1, %s13223_s17   ;;  %p13225_p6 = scmp.ne.s32.totalorder %s13224_s16, 0 }
 0xc0b   : > { %s6461_s6 = scalar_lea.sflag [#allocation4], %s6460_s5 }
 0xc0c   : > { %p7723_p13 = pnand %p13226_p8, %p13225_p6 }
 0xc0e   : > { %8780 = dma.done.wait (!%p7723_p13), %s6461_s6, 1024  }
 0xc0f   : > { %8782 = vsyncadd (!%p7723_p13), %s6461_s6, 4294966272  ;;  %s13227_s30 = sld [smem:[#allocation27_spill]]  ;;  %s13228_s18 = sld [smem:[#allocation25_spill]] }
 0xc10   : > { %s13229_s29 = sld [smem:[#allocation29_spill]]  ;;  %s13230_s27 = smov %s8789_s28 }
 0xc15   : > { %p39_p10 = scmp.ge.s32.totalorder %s13227_s30, 4   ;;  %s13231_s28 = smov %s13228_s18 }
 0xc17   :  { %41 = sbr.rel (!%p39_p10) target bundleno = 26 (0x1a), region = 210 }
 0xc1e   :  { %6466 = vsyncpa [#allocation3], 1 }
 0xc1f   :  { %6468 = vsyncpa [#allocation3 + $0x1], 1 }
 0xc20   :  { %6469 = vsyncpa [#allocation6], 1 }
 0xc21   :  { %6471 = vsyncpa [#allocation6 + $0x1], 1 }
 0xc22   :  { %6472 = vsyncpa [#allocation9], 1 }
 0xc23   :  { %6474 = vsyncpa [#allocation9 + $0x1], 1 }
 0xc24   :  { %6475 = vsyncpa [#allocation12], 1 }
 0xc25   :  { %6476 = vsyncpa [#allocation15], 1 }
 0xc26   :  { %6477 = vsyncpa [#allocation4], 1 }
 0xc27   :  { %6479 = vsyncpa [#allocation4 + $0x1], 1 }

</bundles_post_ra>
